<compile_context>
chip_gen: v7x
topology: tpu7x:2x2x1
jax: 0.10.0
libtpu: 0.0.40
codegen_flags: <defaults>
</compile_context>

<pallas_src>
import jax
import jax.numpy as jnp
from jax.experimental import pallas as pl
from jax.experimental.pallas import tpu as pltpu

# ----------------------------- static dimensions ---------------------------
D_EMB = 30          # nn.Embedding(200, 30)
H_LSTM = 128        # LSTM hidden size
N_EXT = 1024        # ext feature dim, padded 1000 -> 1024
N_TILE = 512        # head N-tile width (grid of 2 over N_EXT)
D_L1 = 512          # linear1 out
D_L2 = 64           # linear2 out
D_OUT = 18          # linear3 out
C_CONV = 16         # synthetic conv output channels (stored unpadded)
VMEM_LIMIT = 32 * 1024 * 1024


# ----------------------------- Pallas kernels ------------------------------

def conv_pool_kernel(patch_ref, w_ref, b_ref, out_ref):
    # im2col'd 3x3 conv + ReLU + fused 2x2 maxpool.
    # Row ordering of patch_ref is (dh, dw, b, ho, wo): the four pooling-window
    # offsets are the OUTERMOST 128-row blocks, so the pool is 3 elementwise
    # maxes over contiguous slices (no reshapes / strided loads).
    y = jnp.dot(patch_ref[...].astype(jnp.bfloat16), w_ref[...],
                preferred_element_type=jnp.float32) + b_ref[...]
    y = jnp.maximum(y, 0.0)                       # (4*B*64, 16)
    q = patch_ref.shape[0] // 4                   # B*64 pooled rows
    pooled = jnp.maximum(jnp.maximum(y[0:q], y[q:2 * q]),
                         jnp.maximum(y[2 * q:3 * q], y[3 * q:4 * q]))
    out_ref[...] = pooled                         # (B*64, 16) f32


def lstm_head_kernel(emb_ref, wih0_ref, whh0_ref, b0_ref,
                     wih1_ref, whh1_ref, b1_ref,
                     img_ref, wext_ref, bext_ref,
                     w1a_ref, w1b_ref, b1l_ref,
                     w2_ref, b2_ref, w3_ref, b3_ref,
                     out_ref, acc_ref, h0buf_ref):
    # Fused: 2-layer LSTM (once, at j==0) + ext-FC column tile + concat-linear1
    # accumulation over the 2 N-tiles + (ReLU, BN-folded-linear2, ReLU, linear3)
    # epilogue at the last step.
    j = pl.program_id(0)
    nt = pl.num_programs(0)
    B = img_ref.shape[0]
    H = H_LSTM

    @pl.when(j == 0)
    def _lstm_and_seed():
        TB = emb_ref.shape[0]
        T = TB // B

        def cell(g, c_prev):
            i = jax.nn.sigmoid(g[:, 0:H])
            f = jax.nn.sigmoid(g[:, H:2 * H])
            gg = jnp.tanh(g[:, 2 * H:3 * H])
            o = jax.nn.sigmoid(g[:, 3 * H:4 * H])
            c_new = f * c_prev + i * gg
            return o * jnp.tanh(c_new), c_new

        # Layer 0: input projection hoisted over all T steps, then recurrence.
        g0_pre = (jnp.dot(emb_ref[...].astype(jnp.bfloat16), wih0_ref[...],
                          preferred_element_type=jnp.float32) + b0_ref[...])
        whh0 = whh0_ref[...]
        h = jnp.zeros((B, H), jnp.float32)
        c = jnp.zeros((B, H), jnp.float32)
        for t in range(T):                    # static unroll (T=8)
            g0 = g0_pre[t * B:(t + 1) * B, :] + jnp.dot(
                h.astype(jnp.bfloat16), whh0, preferred_element_type=jnp.float32)
            h, c = cell(g0, c)
            h0buf_ref[t * B:(t + 1) * B, :] = h   # stage layer-0 outputs

        # Layer 1: input projection hoisted as ONE (T*B,128)@(128,512) matmul,
        # removing T dependent matmuls from the recurrent chain.
        g1_pre = (jnp.dot(h0buf_ref[...].astype(jnp.bfloat16), wih1_ref[...],
                          preferred_element_type=jnp.float32) + b1_ref[...])
        whh1 = whh1_ref[...]
        h = jnp.zeros((B, H), jnp.float32)
        c = jnp.zeros((B, H), jnp.float32)
        for t in range(T):
            g1 = g1_pre[t * B:(t + 1) * B, :] + jnp.dot(
                h.astype(jnp.bfloat16), whh1, preferred_element_type=jnp.float32)
            h, c = cell(g1, c)

        # Seed linear1 accumulator with hidden-part + bias:
        # cat([hidden, imgf]) @ W1 == hidden @ W1[:128] + imgf @ W1[128:]
        acc_ref[...] = (jnp.dot(h.astype(jnp.bfloat16), w1a_ref[...],
                                preferred_element_type=jnp.float32)
                        + b1l_ref[...])

    # ext-FC column tile j + its contribution to linear1 (accumulated in f32).
    imgf = jnp.maximum(
        jnp.dot(img_ref[...].astype(jnp.bfloat16), wext_ref[...],
                preferred_element_type=jnp.float32) + bext_ref[...], 0.0)
    acc_ref[...] += jnp.dot(imgf.astype(jnp.bfloat16), w1b_ref[...],
                            preferred_element_type=jnp.float32)

    @pl.when(j == nt - 1)
    def _finish():
        x = jnp.maximum(acc_ref[...], 0.0)            # linear1 + ReLU
        # BatchNorm1d (eval) is folded into w2/b2 at init time.
        x = jnp.maximum(jnp.dot(x.astype(jnp.bfloat16), w2_ref[...],
                                preferred_element_type=jnp.float32)
                        + b2_ref[...], 0.0)           # linear2 + ReLU
        out_ref[...] = (jnp.dot(x.astype(jnp.bfloat16), w3_ref[...],
                                preferred_element_type=jnp.float32)
                        + b3_ref[...])                # linear3 -> (B, 18)


# ------------------------------ JAX wrapper --------------------------------

def forward(params, text_encoded, images, ratings):
    # `ratings` is accepted but unused, exactly like the reference forward.
    del ratings
    B, T = text_encoded.shape

    # 1) Embedding lookup (XLA gather glue); flatten time-major to (T*B, 30)
    #    so the LSTM kernel can hoist the whole layer-0 input projection.
    emb = params["embed"][text_encoded]                           # (B, T, 30)
    emb_flat = jnp.transpose(emb, (1, 0, 2)).reshape(T * B, D_EMB)

    # 2) Synthetic VGG-like conv3x3 -> ReLU -> 2x2 maxpool (one Pallas call).
    #    im2col stays in the wrapper (tiny at 16x16); rows are ordered
    #    (dh, dw, b, ho, wo) so the pool is contiguous-slice maxes in-kernel.
    x = jnp.transpose(images, (0, 2, 3, 1))                       # NCHW -> NHWC
    Bi, Hh, Ww, C = x.shape
    xp = jnp.pad(x, ((0, 0), (1, 1), (1, 1), (0, 0)))
    patches = jnp.stack([xp[:, kh:kh + Hh, kw:kw + Ww, :]
                         for kh in range(3) for kw in range(3)], axis=3)
    patches = patches.reshape(Bi, Hh, Ww, 9 * C)
    patches = patches.reshape(Bi, Hh // 2, 2, Ww // 2, 2, 9 * C)  # (b,ho,dh,wo,dw,27)
    patches = jnp.transpose(patches, (2, 4, 0, 1, 3, 5))          # (dh,dw,b,ho,wo,27)
    rows = Bi * Hh * Ww
    prows = rows // 4                                             # pooled rows
    patches = patches.reshape(rows, 9 * C)                        # (512, 27)

    pooled = pl.pallas_call(
        conv_pool_kernel,
        out_shape=jax.ShapeDtypeStruct((prows, C_CONV), jnp.float32),
        grid_spec=pltpu.PrefetchScalarGridSpec(
            num_scalar_prefetch=0,
            grid=(1,),
            in_specs=[
                pl.BlockSpec((rows, 9 * C), lambda i: (0, 0)),
                pl.BlockSpec((9 * C, C_CONV), lambda i: (0, 0)),
                pl.BlockSpec((1, C_CONV), lambda i: (0, 0)),
            ],
            out_specs=pl.BlockSpec((prows, C_CONV), lambda i: (0, 0)),
        ),
        compiler_params=pltpu.CompilerParams(
            dimension_semantics=("arbitrary",),
            vmem_limit_bytes=VMEM_LIMIT),
        cost_estimate=pl.CostEstimate(
            flops=2 * rows * 9 * C * C_CONV,
            transcendentals=0,
            bytes_accessed=rows * 9 * C * 4 + 9 * C * C_CONV * 2
                           + C_CONV * 4 + prows * C_CONV * 4),
    )(patches, params["wconv"], params["bconv"])
    # Pooled rows are (b, ho, wo); flatten per batch to (B, 1024) features
    # (8 KiB of XLA glue).  Feature ordering is self-consistent with wext.
    img_flat = pooled.reshape(Bi, -1)

    # 3) Fused LSTM + ext-FC + concat head in one pallas_call, 2 grid steps
    #    over the (padded) 1024-wide ext feature dim so the tile-1 weight DMAs
    #    stream behind the serialized LSTM at step 0.
    NT = N_EXT // N_TILE

    def const2(shape):
        return pl.BlockSpec(shape, lambda j: (0, 0))

    head_flops = (2 * B * (N_EXT * N_EXT + N_EXT * D_L1 + H_LSTM * D_L1
                           + D_L1 * D_L2 + D_L2 * D_OUT)
                  + 2 * T * B * (D_EMB + 3 * H_LSTM) * 4 * H_LSTM)
    head_bytes = (2 * (N_EXT * N_EXT + N_EXT * D_L1 + H_LSTM * D_L1
                       + D_L1 * D_L2 + D_L2 * D_OUT
                       + (D_EMB + 3 * H_LSTM) * 4 * H_LSTM)
                  + 4 * (T * B * D_EMB + B * N_EXT + B * D_OUT + 5 * D_L1))
    head_trans = T * B * 10 * H_LSTM

    out = pl.pallas_call(
        lstm_head_kernel,
        out_shape=jax.ShapeDtypeStruct((B, D_OUT), jnp.float32),
        grid_spec=pltpu.PrefetchScalarGridSpec(
            num_scalar_prefetch=0,
            grid=(NT,),
            in_specs=[
                const2((T * B, D_EMB)),                            # emb_flat
                const2((D_EMB, 4 * H_LSTM)),                       # wih0
                const2((H_LSTM, 4 * H_LSTM)),                      # whh0
                const2((1, 4 * H_LSTM)),                           # b0
                const2((H_LSTM, 4 * H_LSTM)),                      # wih1
                const2((H_LSTM, 4 * H_LSTM)),                      # whh1
                const2((1, 4 * H_LSTM)),                           # b1
                const2((B, N_EXT)),                                # img_flat
                pl.BlockSpec((N_EXT, N_TILE), lambda j: (0, j)),   # wext tile
                pl.BlockSpec((1, N_TILE), lambda j: (0, j)),       # bext tile
                const2((H_LSTM, D_L1)),                            # w1a
                pl.BlockSpec((N_TILE, D_L1), lambda j: (j, 0)),    # w1b tile
                const2((1, D_L1)),                                 # b1lin
                const2((D_L1, D_L2)),                              # w2 (BN folded)
                const2((1, D_L2)),                                 # b2 (BN folded)
                const2((D_L2, D_OUT)),                             # w3
                const2((1, D_OUT)),                                # b3
            ],
            out_specs=pl.BlockSpec((B, D_OUT), lambda j: (0, 0)),
            scratch_shapes=[pltpu.VMEM((B, D_L1), jnp.float32),      # linear1 acc
                            pltpu.VMEM((T * B, H_LSTM), jnp.float32)],  # layer-0 h
        ),
        compiler_params=pltpu.CompilerParams(
            dimension_semantics=("arbitrary",),   # reduction over N tiles
            vmem_limit_bytes=VMEM_LIMIT),
        cost_estimate=pl.CostEstimate(
            flops=head_flops, transcendentals=head_trans,
            bytes_accessed=head_bytes),
    )(emb_flat, params["wih0"], params["whh0"], params["b0"],
      params["wih1"], params["whh1"], params["b1"],
      img_flat, params["wext"], params["bext"],
      params["w1a"], params["w1b"], params["b1lin"],
      params["w2"], params["b2"], params["w3"], params["b3"])
    return out


def init_params(key):
    ks = jax.random.split(key, 16)
    bf16 = jnp.bfloat16

    def rnd(k, shape, scale=0.05):
        return (scale * jax.random.normal(k, shape)).astype(jnp.float32)

    eps = 1e-5

    # Ext FC (synthetic VGG classifier head): 1024 -> 1000, zero-padded to 1024
    # on the output dim so activations / contractions use full (8,128) tiles.
    wext = jnp.pad(rnd(ks[8], (1024, 1000), 0.02), ((0, 0), (0, 24))).astype(bf16)
    bext = jnp.zeros((1, N_EXT), jnp.float32)
    # nn.Linear(1128, 512): split at row 128 (hidden part / image part),
    # image part rows zero-padded 1000 -> 1024 to match the padded features.
    w1b = jnp.pad(rnd(ks[10], (1000, 512), 0.02), ((0, 24), (0, 0))).astype(bf16)

    # nn.BatchNorm1d(512) in eval mode with fresh running stats reduces to
    # x * s + t with s = 1/sqrt(1+eps), t = 0; fold into linear2 offline.
    bn_scale = jnp.full((D_L1, 1), float(1.0 / (1.0 + eps) ** 0.5), jnp.float32)
    bn_shift = jnp.zeros((1, D_L1), jnp.float32)
    w2_raw = rnd(ks[12], (D_L1, D_L2))
    b2_raw = rnd(ks[13], (1, D_L2))
    w2_folded = (w2_raw * bn_scale).astype(bf16)
    b2_folded = b2_raw + bn_shift @ w2_raw

    return {
        # nn.Embedding(200, 30)
        "embed": rnd(ks[0], (200, 30), 1.0),
        # nn.LSTM(30, 128, num_layers=2, batch_first=True): weights
        # pre-transposed to (in, 4H), gate order i,f,g,o, biases b_ih+b_hh
        # folded.  Matmul operands stored in bf16; math stays f32.
        "wih0": rnd(ks[1], (D_EMB, 4 * H_LSTM)).astype(bf16),
        "whh0": rnd(ks[2], (H_LSTM, 4 * H_LSTM)).astype(bf16),
        "b0":   rnd(ks[3], (1, 4 * H_LSTM)),
        "wih1": rnd(ks[4], (H_LSTM, 4 * H_LSTM)).astype(bf16),
        "whh1": rnd(ks[5], (H_LSTM, 4 * H_LSTM)).astype(bf16),
        "b1":   rnd(ks[6], (1, 4 * H_LSTM)),
        # synthetic VGG conv3x3 (3 -> 16) as a 27x16 matmul (unpadded store).
        "wconv": rnd(ks[7], (27, C_CONV), 0.1).astype(bf16),
        "bconv": jnp.zeros((1, C_CONV), jnp.float32),
        "wext": wext, "bext": bext,
        "w1a":   rnd(ks[9], (H_LSTM, D_L1), 0.02).astype(bf16),
        "w1b":   w1b,
        "b1lin": rnd(ks[11], (1, D_L1)),
        # nn.Linear(512, 64) with BN folded in; nn.Linear(64, 18)
        "w2": w2_folded,
        "b2": b2_folded,
        "w3": rnd(ks[14], (D_L2, D_OUT)).astype(bf16),
        "b3": rnd(ks[15], (1, D_OUT)),
    }


if __name__ == "__main__":
    key = jax.random.PRNGKey(0)
    k_text, k_img, k_rat, k_par = jax.random.split(key, 4)

    B, T = 2, 8
    text_encoded = jax.random.randint(k_text, (B, T), 0, 200, dtype=jnp.int32)
    images = jax.random.normal(k_img, (B, 3, 16, 16), dtype=jnp.float32)   # NCHW
    ratings = jax.random.normal(k_rat, (B, 1), dtype=jnp.float32)          # unused

    params = init_params(k_par)
    out = jax.jit(forward)(params, text_encoded, images, ratings)
    jax.block_until_ready(out)
    assert out.shape == (B, 18) and out.dtype == jnp.float32
    print("KERNEL_OK")
</pallas_src>

<mosaic_0001>
module attributes {stable_mosaic.version = 11 : i64} {
  func.func @conv_pool_kernel(%arg0: i32, %arg1: memref<512x27xf32, #tpu.memory_space<vmem>>, %arg2: memref<27x16xbf16, #tpu.memory_space<vmem>>, %arg3: memref<1x16xf32, #tpu.memory_space<vmem>>, %arg4: memref<128x16xf32, #tpu.memory_space<vmem>>) attributes {dimension_semantics = [#tpu.dimension_semantics<arbitrary>], iteration_bounds = array<i64: 1>, scalar_prefetch = 0 : i64, scratch_operands = 0 : i64, tpu.core_type = #tpu.core_type<tc>, window_params = [{pipeline_mode = #tpu.pipeline_mode<synchronous>, transform_indices = @transform_0, window_bounds = array<i64: 512, 27>}, {pipeline_mode = #tpu.pipeline_mode<synchronous>, transform_indices = @transform_1, window_bounds = array<i64: 27, 16>}, {pipeline_mode = #tpu.pipeline_mode<synchronous>, transform_indices = @transform_2, window_bounds = array<i64: 1, 16>}, {pipeline_mode = #tpu.pipeline_mode<synchronous>, transform_indices = @transform_3, window_bounds = array<i64: 128, 16>}]} {
    %c0 = arith.constant 0 : index
    %c0_0 = arith.constant 0 : index
    %0 = vector.load %arg1[%c0, %c0_0] : memref<512x27xf32, #tpu.memory_space<vmem>>, vector<512x27xf32>
    %1 = arith.truncf %0 : vector<512x27xf32> to vector<512x27xbf16>
    %c0_1 = arith.constant 0 : index
    %c0_2 = arith.constant 0 : index
    %2 = vector.load %arg2[%c0_1, %c0_2] : memref<27x16xbf16, #tpu.memory_space<vmem>>, vector<27x16xbf16>
    %cst = arith.constant dense<0.000000e+00> : vector<512x16xf32>
    %3 = tpu.matmul %1, %2, %cst {dimension_numbers = #tpu.dot_dimension_numbers<[1], [0], [0], [1], [0, 0, 1, 1], [], []>} : vector<512x27xbf16>, vector<27x16xbf16>, vector<512x16xf32> -> vector<512x16xf32>
    %c0_3 = arith.constant 0 : index
    %c0_4 = arith.constant 0 : index
    %4 = vector.load %arg3[%c0_3, %c0_4] : memref<1x16xf32, #tpu.memory_space<vmem>>, vector<1x16xf32>
    %5 = vector.broadcast %4 : vector<1x16xf32> to vector<512x16xf32>
    %6 = arith.addf %3, %5 : vector<512x16xf32>
    %cst_5 = arith.constant 0.000000e+00 : f32
    %7 = vector.broadcast %cst_5 : f32 to vector<512x16xf32>
    %8 = arith.maximumf %6, %7 : vector<512x16xf32>
    %9 = vector.extract_strided_slice %8 {offsets = [0, 0], sizes = [128, 16], strides = [1, 1]} : vector<512x16xf32> to vector<128x16xf32>
    %10 = vector.extract_strided_slice %8 {offsets = [128, 0], sizes = [128, 16], strides = [1, 1]} : vector<512x16xf32> to vector<128x16xf32>
    %11 = arith.maximumf %9, %10 : vector<128x16xf32>
    %12 = vector.extract_strided_slice %8 {offsets = [256, 0], sizes = [128, 16], strides = [1, 1]} : vector<512x16xf32> to vector<128x16xf32>
    %13 = vector.extract_strided_slice %8 {offsets = [384, 0], sizes = [128, 16], strides = [1, 1]} : vector<512x16xf32> to vector<128x16xf32>
    %14 = arith.maximumf %12, %13 : vector<128x16xf32>
    %15 = arith.maximumf %11, %14 : vector<128x16xf32>
    %c0_6 = arith.constant 0 : index
    %c0_7 = arith.constant 0 : index
    %16 = vector.load %arg4[%c0_6, %c0_7] : memref<128x16xf32, #tpu.memory_space<vmem>>, vector<128x16xf32>
    tpu.vector_store %arg4[%c0_6, %c0_7], %15 {strides = array<i32>} : memref<128x16xf32, #tpu.memory_space<vmem>>, vector<128x16xf32>,
    return
  }
  func.func @transform_0(%arg0: i32) -> (i32, i32) {
    %c0_i32 = arith.constant 0 : i32
    %c0_i32_0 = arith.constant 0 : i32
    %c0_i32_1 = arith.constant 0 : i32
    return %c0_i32, %c0_i32_0 : i32, i32
  }
  func.func @transform_1(%arg0: i32) -> (i32, i32) {
    %c0_i32 = arith.constant 0 : i32
    %c0_i32_0 = arith.constant 0 : i32
    %c0_i32_1 = arith.constant 0 : i32
    return %c0_i32, %c0_i32_0 : i32, i32
  }
  func.func @transform_2(%arg0: i32) -> (i32, i32) {
    %c0_i32 = arith.constant 0 : i32
    %c0_i32_0 = arith.constant 0 : i32
    %c0_i32_1 = arith.constant 0 : i32
    return %c0_i32, %c0_i32_0 : i32, i32
  }
  func.func @transform_3(%arg0: i32) -> (i32, i32) {
    %c0_i32 = arith.constant 0 : i32
    %c0_i32_0 = arith.constant 0 : i32
    %c0_i32_1 = arith.constant 0 : i32
    return %c0_i32, %c0_i32_0 : i32, i32
  }
}

module attributes {stable_mosaic.version = 11 : i64} {
  func.func @lstm_head_kernel(%arg0: i32, %arg1: memref<16x30xf32, #tpu.memory_space<vmem>>, %arg2: memref<30x512xbf16, #tpu.memory_space<vmem>>, %arg3: memref<128x512xbf16, #tpu.memory_space<vmem>>, %arg4: memref<1x512xf32, #tpu.memory_space<vmem>>, %arg5: memref<128x512xbf16, #tpu.memory_space<vmem>>, %arg6: memref<128x512xbf16, #tpu.memory_space<vmem>>, %arg7: memref<1x512xf32, #tpu.memory_space<vmem>>, %arg8: memref<2x1024xf32, #tpu.memory_space<vmem>>, %arg9: memref<1024x512xbf16, #tpu.memory_space<vmem>>, %arg10: memref<1x512xf32, #tpu.memory_space<vmem>>, %arg11: memref<128x512xbf16, #tpu.memory_space<vmem>>, %arg12: memref<512x512xbf16, #tpu.memory_space<vmem>>, %arg13: memref<1x512xf32, #tpu.memory_space<vmem>>, %arg14: memref<512x64xbf16, #tpu.memory_space<vmem>>, %arg15: memref<1x64xf32, #tpu.memory_space<vmem>>, %arg16: memref<64x18xbf16, #tpu.memory_space<vmem>>, %arg17: memref<1x18xf32, #tpu.memory_space<vmem>>, %arg18: memref<2x18xf32, #tpu.memory_space<vmem>>, %arg19: memref<2x512xf32, #tpu.memory_space<vmem>>, %arg20: memref<16x128xf32, #tpu.memory_space<vmem>>) attributes {dimension_semantics = [#tpu.dimension_semantics<arbitrary>], iteration_bounds = array<i64: 2>, scalar_prefetch = 0 : i64, scratch_operands = 2 : i64, tpu.core_type = #tpu.core_type<tc>, window_params = [{pipeline_mode = #tpu.pipeline_mode<synchronous>, transform_indices = @transform_0, window_bounds = array<i64: 16, 30>}, {pipeline_mode = #tpu.pipeline_mode<synchronous>, transform_indices = @transform_1, window_bounds = array<i64: 30, 512>}, {pipeline_mode = #tpu.pipeline_mode<synchronous>, transform_indices = @transform_2, window_bounds = array<i64: 128, 512>}, {pipeline_mode = #tpu.pipeline_mode<synchronous>, transform_indices = @transform_3, window_bounds = array<i64: 1, 512>}, {pipeline_mode = #tpu.pipeline_mode<synchronous>, transform_indices = @transform_4, window_bounds = array<i64: 128, 512>}, {pipeline_mode = #tpu.pipeline_mode<synchronous>, transform_indices = @transform_5, window_bounds = array<i64: 128, 512>}, {pipeline_mode = #tpu.pipeline_mode<synchronous>, transform_indices = @transform_6, window_bounds = array<i64: 1, 512>}, {pipeline_mode = #tpu.pipeline_mode<synchronous>, transform_indices = @transform_7, window_bounds = array<i64: 2, 1024>}, {transform_indices = @transform_8, window_bounds = array<i64: 1024, 512>}, {transform_indices = @transform_9, window_bounds = array<i64: 1, 512>}, {pipeline_mode = #tpu.pipeline_mode<synchronous>, transform_indices = @transform_10, window_bounds = array<i64: 128, 512>}, {transform_indices = @transform_11, window_bounds = array<i64: 512, 512>}, {pipeline_mode = #tpu.pipeline_mode<synchronous>, transform_indices = @transform_12, window_bounds = array<i64: 1, 512>}, {pipeline_mode = #tpu.pipeline_mode<synchronous>, transform_indices = @transform_13, window_bounds = array<i64: 512, 64>}, {pipeline_mode = #tpu.pipeline_mode<synchronous>, transform_indices = @transform_14, window_bounds = array<i64: 1, 64>}, {pipeline_mode = #tpu.pipeline_mode<synchronous>, transform_indices = @transform_15, window_bounds = array<i64: 64, 18>}, {pipeline_mode = #tpu.pipeline_mode<synchronous>, transform_indices = @transform_16, window_bounds = array<i64: 1, 18>}, {pipeline_mode = #tpu.pipeline_mode<synchronous>, transform_indices = @transform_17, window_bounds = array<i64: 2, 18>}]} {
    %c0_i32 = arith.constant 0 : i32
    %0 = arith.cmpi eq, %arg0, %c0_i32 : i32
    %1 = arith.extui %0 : i1 to i32
    %c0_i32_0 = arith.constant 0 : i32
    %2 = arith.cmpi ne, %1, %c0_i32_0 : i32
    scf.if %2 {
      %c0_15 = arith.constant 0 : index
      %c0_16 = arith.constant 0 : index
      %21 = vector.load %arg1[%c0_15, %c0_16] : memref<16x30xf32, #tpu.memory_space<vmem>>, vector<16x30xf32>
      %22 = arith.truncf %21 : vector<16x30xf32> to vector<16x30xbf16>
      %c0_17 = arith.constant 0 : index
      %c0_18 = arith.constant 0 : index
      %23 = vector.load %arg2[%c0_17, %c0_18] : memref<30x512xbf16, #tpu.memory_space<vmem>>, vector<30x512xbf16>
      %cst_19 = arith.constant dense<0.000000e+00> : vector<16x512xf32>
      %24 = tpu.matmul %22, %23, %cst_19 {dimension_numbers = #tpu.dot_dimension_numbers<[1], [0], [0], [1], [0, 0, 1, 1], [], []>} : vector<16x30xbf16>, vector<30x512xbf16>, vector<16x512xf32> -> vector<16x512xf32>
      %c0_20 = arith.constant 0 : index
      %c0_21 = arith.constant 0 : index
      %25 = vector.load %arg4[%c0_20, %c0_21] : memref<1x512xf32, #tpu.memory_space<vmem>>, vector<1x512xf32>
      %26 = vector.broadcast %25 : vector<1x512xf32> to vector<16x512xf32>
      %27 = arith.addf %24, %26 : vector<16x512xf32>
      %c0_22 = arith.constant 0 : index
      %c0_23 = arith.constant 0 : index
      %28 = vector.load %arg3[%c0_22, %c0_23] : memref<128x512xbf16, #tpu.memory_space<vmem>>, vector<128x512xbf16>
      %cst_24 = arith.constant 0.000000e+00 : f32
      %29 = vector.broadcast %cst_24 : f32 to vector<2x128xf32>
      %cst_25 = arith.constant 0.000000e+00 : f32
      %30 = vector.broadcast %cst_25 : f32 to vector<2x128xf32>
      %31 = vector.extract_strided_slice %27 {offsets = [0, 0], sizes = [2, 512], strides = [1, 1]} : vector<16x512xf32> to vector<2x512xf32>
      %32 = arith.truncf %29 : vector<2x128xf32> to vector<2x128xbf16>
      %cst_26 = arith.constant dense<0.000000e+00> : vector<2x512xf32>
      %33 = tpu.matmul %32, %28, %cst_26 {dimension_numbers = #tpu.dot_dimension_numbers<[1], [0], [0], [1], [0, 0, 1, 1], [], []>} : vector<2x128xbf16>, vector<128x512xbf16>, vector<2x512xf32> -> vector<2x512xf32>
      %34 = arith.addf %31, %33 : vector<2x512xf32>
      %35 = vector.extract_strided_slice %34 {offsets = [0, 0], sizes = [2, 128], strides = [1, 1]} : vector<2x512xf32> to vector<2x128xf32>
      %36 = arith.negf %35 : vector<2x128xf32>
      %37 = math.exp %36 : vector<2x128xf32>
      %cst_27 = arith.constant 1.000000e+00 : f32
      %38 = vector.broadcast %cst_27 : f32 to vector<2x128xf32>
      %39 = arith.addf %38, %37 : vector<2x128xf32>
      %40 = arith.divf %38, %39 : vector<2x128xf32>
      %41 = vector.extract_strided_slice %34 {offsets = [0, 128], sizes = [2, 128], strides = [1, 1]} : vector<2x512xf32> to vector<2x128xf32>
      %42 = arith.negf %41 : vector<2x128xf32>
      %43 = math.exp %42 : vector<2x128xf32>
      %cst_28 = arith.constant 1.000000e+00 : f32
      %44 = vector.broadcast %cst_28 : f32 to vector<2x128xf32>
      %45 = arith.addf %44, %43 : vector<2x128xf32>
      %46 = arith.divf %44, %45 : vector<2x128xf32>
      %47 = vector.extract_strided_slice %34 {offsets = [0, 256], sizes = [2, 128], strides = [1, 1]} : vector<2x512xf32> to vector<2x128xf32>
      %48 = math.tanh %47 : vector<2x128xf32>
      %49 = vector.extract_strided_slice %34 {offsets = [0, 384], sizes = [2, 128], strides = [1, 1]} : vector<2x512xf32> to vector<2x128xf32>
      %50 = arith.negf %49 : vector<2x128xf32>
      %51 = math.exp %50 : vector<2x128xf32>
      %cst_29 = arith.constant 1.000000e+00 : f32
      %52 = vector.broadcast %cst_29 : f32 to vector<2x128xf32>
      %53 = arith.addf %52, %51 : vector<2x128xf32>
      %54 = arith.divf %52, %53 : vector<2x128xf32>
      %55 = arith.mulf %46, %30 : vector<2x128xf32>
      %56 = arith.mulf %40, %48 : vector<2x128xf32>
      %57 = arith.addf %55, %56 : vector<2x128xf32>
      %58 = math.tanh %57 : vector<2x128xf32>
      %59 = arith.mulf %54, %58 : vector<2x128xf32>
      %c0_30 = arith.constant 0 : index
      %c0_31 = arith.constant 0 : index
      %60 = vector.load %arg20[%c0_30, %c0_31] : memref<16x128xf32, #tpu.memory_space<vmem>>, vector<2x128xf32>
      tpu.vector_store %arg20[%c0_30, %c0_31], %59 {strides = array<i32>} : memref<16x128xf32, #tpu.memory_space<vmem>>, vector<2x128xf32>,
      %61 = vector.extract_strided_slice %27 {offsets = [2, 0], sizes = [2, 512], strides = [1, 1]} : vector<16x512xf32> to vector<2x512xf32>
      %62 = arith.truncf %59 : vector<2x128xf32> to vector<2x128xbf16>
      %cst_32 = arith.constant dense<0.000000e+00> : vector<2x512xf32>
      %63 = tpu.matmul %62, %28, %cst_32 {dimension_numbers = #tpu.dot_dimension_numbers<[1], [0], [0], [1], [0, 0, 1, 1], [], []>} : vector<2x128xbf16>, vector<128x512xbf16>, vector<2x512xf32> -> vector<2x512xf32>
      %64 = arith.addf %61, %63 : vector<2x512xf32>
      %65 = vector.extract_strided_slice %64 {offsets = [0, 0], sizes = [2, 128], strides = [1, 1]} : vector<2x512xf32> to vector<2x128xf32>
      %66 = arith.negf %65 : vector<2x128xf32>
      %67 = math.exp %66 : vector<2x128xf32>
      %cst_33 = arith.constant 1.000000e+00 : f32
      %68 = vector.broadcast %cst_33 : f32 to vector<2x128xf32>
      %69 = arith.addf %68, %67 : vector<2x128xf32>
      %70 = arith.divf %68, %69 : vector<2x128xf32>
      %71 = vector.extract_strided_slice %64 {offsets = [0, 128], sizes = [2, 128], strides = [1, 1]} : vector<2x512xf32> to vector<2x128xf32>
      %72 = arith.negf %71 : vector<2x128xf32>
      %73 = math.exp %72 : vector<2x128xf32>
      %cst_34 = arith.constant 1.000000e+00 : f32
      %74 = vector.broadcast %cst_34 : f32 to vector<2x128xf32>
      %75 = arith.addf %74, %73 : vector<2x128xf32>
      %76 = arith.divf %74, %75 : vector<2x128xf32>
      %77 = vector.extract_strided_slice %64 {offsets = [0, 256], sizes = [2, 128], strides = [1, 1]} : vector<2x512xf32> to vector<2x128xf32>
      %78 = math.tanh %77 : vector<2x128xf32>
      %79 = vector.extract_strided_slice %64 {offsets = [0, 384], sizes = [2, 128], strides = [1, 1]} : vector<2x512xf32> to vector<2x128xf32>
      %80 = arith.negf %79 : vector<2x128xf32>
      %81 = math.exp %80 : vector<2x128xf32>
      %cst_35 = arith.constant 1.000000e+00 : f32
      %82 = vector.broadcast %cst_35 : f32 to vector<2x128xf32>
      %83 = arith.addf %82, %81 : vector<2x128xf32>
      %84 = arith.divf %82, %83 : vector<2x128xf32>
      %85 = arith.mulf %76, %57 : vector<2x128xf32>
      %86 = arith.mulf %70, %78 : vector<2x128xf32>
      %87 = arith.addf %85, %86 : vector<2x128xf32>
      %88 = math.tanh %87 : vector<2x128xf32>
      %89 = arith.mulf %84, %88 : vector<2x128xf32>
      %c2 = arith.constant 2 : index
      %c0_36 = arith.constant 0 : index
      %90 = vector.load %arg20[%c2, %c0_36] : memref<16x128xf32, #tpu.memory_space<vmem>>, vector<2x128xf32>
      tpu.vector_store %arg20[%c2, %c0_36], %89 {strides = array<i32>} : memref<16x128xf32, #tpu.memory_space<vmem>>, vector<2x128xf32>,
      %91 = vector.extract_strided_slice %27 {offsets = [4, 0], sizes = [2, 512], strides = [1, 1]} : vector<16x512xf32> to vector<2x512xf32>
      %92 = arith.truncf %89 : vector<2x128xf32> to vector<2x128xbf16>
      %cst_37 = arith.constant dense<0.000000e+00> : vector<2x512xf32>
      %93 = tpu.matmul %92, %28, %cst_37 {dimension_numbers = #tpu.dot_dimension_numbers<[1], [0], [0], [1], [0, 0, 1, 1], [], []>} : vector<2x128xbf16>, vector<128x512xbf16>, vector<2x512xf32> -> vector<2x512xf32>
      %94 = arith.addf %91, %93 : vector<2x512xf32>
      %95 = vector.extract_strided_slice %94 {offsets = [0, 0], sizes = [2, 128], strides = [1, 1]} : vector<2x512xf32> to vector<2x128xf32>
      %96 = arith.negf %95 : vector<2x128xf32>
      %97 = math.exp %96 : vector<2x128xf32>
      %cst_38 = arith.constant 1.000000e+00 : f32
      %98 = vector.broadcast %cst_38 : f32 to vector<2x128xf32>
      %99 = arith.addf %98, %97 : vector<2x128xf32>
      %100 = arith.divf %98, %99 : vector<2x128xf32>
      %101 = vector.extract_strided_slice %94 {offsets = [0, 128], sizes = [2, 128], strides = [1, 1]} : vector<2x512xf32> to vector<2x128xf32>
      %102 = arith.negf %101 : vector<2x128xf32>
      %103 = math.exp %102 : vector<2x128xf32>
      %cst_39 = arith.constant 1.000000e+00 : f32
      %104 = vector.broadcast %cst_39 : f32 to vector<2x128xf32>
      %105 = arith.addf %104, %103 : vector<2x128xf32>
      %106 = arith.divf %104, %105 : vector<2x128xf32>
      %107 = vector.extract_strided_slice %94 {offsets = [0, 256], sizes = [2, 128], strides = [1, 1]} : vector<2x512xf32> to vector<2x128xf32>
      %108 = math.tanh %107 : vector<2x128xf32>
      %109 = vector.extract_strided_slice %94 {offsets = [0, 384], sizes = [2, 128], strides = [1, 1]} : vector<2x512xf32> to vector<2x128xf32>
      %110 = arith.negf %109 : vector<2x128xf32>
      %111 = math.exp %110 : vector<2x128xf32>
      %cst_40 = arith.constant 1.000000e+00 : f32
      %112 = vector.broadcast %cst_40 : f32 to vector<2x128xf32>
      %113 = arith.addf %112, %111 : vector<2x128xf32>
      %114 = arith.divf %112, %113 : vector<2x128xf32>
      %115 = arith.mulf %106, %87 : vector<2x128xf32>
      %116 = arith.mulf %100, %108 : vector<2x128xf32>
      %117 = arith.addf %115, %116 : vector<2x128xf32>
      %118 = math.tanh %117 : vector<2x128xf32>
      %119 = arith.mulf %114, %118 : vector<2x128xf32>
      %c4 = arith.constant 4 : index
      %c0_41 = arith.constant 0 : index
      %120 = vector.load %arg20[%c4, %c0_41] : memref<16x128xf32, #tpu.memory_space<vmem>>, vector<2x128xf32>
      tpu.vector_store %arg20[%c4, %c0_41], %119 {strides = array<i32>} : memref<16x128xf32, #tpu.memory_space<vmem>>, vector<2x128xf32>,
      %121 = vector.extract_strided_slice %27 {offsets = [6, 0], sizes = [2, 512], strides = [1, 1]} : vector<16x512xf32> to vector<2x512xf32>
      %122 = arith.truncf %119 : vector<2x128xf32> to vector<2x128xbf16>
      %cst_42 = arith.constant dense<0.000000e+00> : vector<2x512xf32>
      %123 = tpu.matmul %122, %28, %cst_42 {dimension_numbers = #tpu.dot_dimension_numbers<[1], [0], [0], [1], [0, 0, 1, 1], [], []>} : vector<2x128xbf16>, vector<128x512xbf16>, vector<2x512xf32> -> vector<2x512xf32>
      %124 = arith.addf %121, %123 : vector<2x512xf32>
      %125 = vector.extract_strided_slice %124 {offsets = [0, 0], sizes = [2, 128], strides = [1, 1]} : vector<2x512xf32> to vector<2x128xf32>
      %126 = arith.negf %125 : vector<2x128xf32>
      %127 = math.exp %126 : vector<2x128xf32>
      %cst_43 = arith.constant 1.000000e+00 : f32
      %128 = vector.broadcast %cst_43 : f32 to vector<2x128xf32>
      %129 = arith.addf %128, %127 : vector<2x128xf32>
      %130 = arith.divf %128, %129 : vector<2x128xf32>
      %131 = vector.extract_strided_slice %124 {offsets = [0, 128], sizes = [2, 128], strides = [1, 1]} : vector<2x512xf32> to vector<2x128xf32>
      %132 = arith.negf %131 : vector<2x128xf32>
      %133 = math.exp %132 : vector<2x128xf32>
      %cst_44 = arith.constant 1.000000e+00 : f32
      %134 = vector.broadcast %cst_44 : f32 to vector<2x128xf32>
      %135 = arith.addf %134, %133 : vector<2x128xf32>
      %136 = arith.divf %134, %135 : vector<2x128xf32>
      %137 = vector.extract_strided_slice %124 {offsets = [0, 256], sizes = [2, 128], strides = [1, 1]} : vector<2x512xf32> to vector<2x128xf32>
      %138 = math.tanh %137 : vector<2x128xf32>
      %139 = vector.extract_strided_slice %124 {offsets = [0, 384], sizes = [2, 128], strides = [1, 1]} : vector<2x512xf32> to vector<2x128xf32>
      %140 = arith.negf %139 : vector<2x128xf32>
      %141 = math.exp %140 : vector<2x128xf32>
      %cst_45 = arith.constant 1.000000e+00 : f32
      %142 = vector.broadcast %cst_45 : f32 to vector<2x128xf32>
      %143 = arith.addf %142, %141 : vector<2x128xf32>
      %144 = arith.divf %142, %143 : vector<2x128xf32>
      %145 = arith.mulf %136, %117 : vector<2x128xf32>
      %146 = arith.mulf %130, %138 : vector<2x128xf32>
      %147 = arith.addf %145, %146 : vector<2x128xf32>
      %148 = math.tanh %147 : vector<2x128xf32>
      %149 = arith.mulf %144, %148 : vector<2x128xf32>
      %c6 = arith.constant 6 : index
      %c0_46 = arith.constant 0 : index
      %150 = vector.load %arg20[%c6, %c0_46] : memref<16x128xf32, #tpu.memory_space<vmem>>, vector<2x128xf32>
      tpu.vector_store %arg20[%c6, %c0_46], %149 {strides = array<i32>} : memref<16x128xf32, #tpu.memory_space<vmem>>, vector<2x128xf32>,
      %151 = vector.extract_strided_slice %27 {offsets = [8, 0], sizes = [2, 512], strides = [1, 1]} : vector<16x512xf32> to vector<2x512xf32>
      %152 = arith.truncf %149 : vector<2x128xf32> to vector<2x128xbf16>
      %cst_47 = arith.constant dense<0.000000e+00> : vector<2x512xf32>
      %153 = tpu.matmul %152, %28, %cst_47 {dimension_numbers = #tpu.dot_dimension_numbers<[1], [0], [0], [1], [0, 0, 1, 1], [], []>} : vector<2x128xbf16>, vector<128x512xbf16>, vector<2x512xf32> -> vector<2x512xf32>
      %154 = arith.addf %151, %153 : vector<2x512xf32>
      %155 = vector.extract_strided_slice %154 {offsets = [0, 0], sizes = [2, 128], strides = [1, 1]} : vector<2x512xf32> to vector<2x128xf32>
      %156 = arith.negf %155 : vector<2x128xf32>
      %157 = math.exp %156 : vector<2x128xf32>
      %cst_48 = arith.constant 1.000000e+00 : f32
      %158 = vector.broadcast %cst_48 : f32 to vector<2x128xf32>
      %159 = arith.addf %158, %157 : vector<2x128xf32>
      %160 = arith.divf %158, %159 : vector<2x128xf32>
      %161 = vector.extract_strided_slice %154 {offsets = [0, 128], sizes = [2, 128], strides = [1, 1]} : vector<2x512xf32> to vector<2x128xf32>
      %162 = arith.negf %161 : vector<2x128xf32>
      %163 = math.exp %162 : vector<2x128xf32>
      %cst_49 = arith.constant 1.000000e+00 : f32
      %164 = vector.broadcast %cst_49 : f32 to vector<2x128xf32>
      %165 = arith.addf %164, %163 : vector<2x128xf32>
      %166 = arith.divf %164, %165 : vector<2x128xf32>
      %167 = vector.extract_strided_slice %154 {offsets = [0, 256], sizes = [2, 128], strides = [1, 1]} : vector<2x512xf32> to vector<2x128xf32>
      %168 = math.tanh %167 : vector<2x128xf32>
      %169 = vector.extract_strided_slice %154 {offsets = [0, 384], sizes = [2, 128], strides = [1, 1]} : vector<2x512xf32> to vector<2x128xf32>
      %170 = arith.negf %169 : vector<2x128xf32>
      %171 = math.exp %170 : vector<2x128xf32>
      %cst_50 = arith.constant 1.000000e+00 : f32
      %172 = vector.broadcast %cst_50 : f32 to vector<2x128xf32>
      %173 = arith.addf %172, %171 : vector<2x128xf32>
      %174 = arith.divf %172, %173 : vector<2x128xf32>
      %175 = arith.mulf %166, %147 : vector<2x128xf32>
      %176 = arith.mulf %160, %168 : vector<2x128xf32>
      %177 = arith.addf %175, %176 : vector<2x128xf32>
      %178 = math.tanh %177 : vector<2x128xf32>
      %179 = arith.mulf %174, %178 : vector<2x128xf32>
      %c8 = arith.constant 8 : index
      %c0_51 = arith.constant 0 : index
      %180 = vector.load %arg20[%c8, %c0_51] : memref<16x128xf32, #tpu.memory_space<vmem>>, vector<2x128xf32>
      tpu.vector_store %arg20[%c8, %c0_51], %179 {strides = array<i32>} : memref<16x128xf32, #tpu.memory_space<vmem>>, vector<2x128xf32>,
      %181 = vector.extract_strided_slice %27 {offsets = [10, 0], sizes = [2, 512], strides = [1, 1]} : vector<16x512xf32> to vector<2x512xf32>
      %182 = arith.truncf %179 : vector<2x128xf32> to vector<2x128xbf16>
      %cst_52 = arith.constant dense<0.000000e+00> : vector<2x512xf32>
      %183 = tpu.matmul %182, %28, %cst_52 {dimension_numbers = #tpu.dot_dimension_numbers<[1], [0], [0], [1], [0, 0, 1, 1], [], []>} : vector<2x128xbf16>, vector<128x512xbf16>, vector<2x512xf32> -> vector<2x512xf32>
      %184 = arith.addf %181, %183 : vector<2x512xf32>
      %185 = vector.extract_strided_slice %184 {offsets = [0, 0], sizes = [2, 128], strides = [1, 1]} : vector<2x512xf32> to vector<2x128xf32>
      %186 = arith.negf %185 : vector<2x128xf32>
      %187 = math.exp %186 : vector<2x128xf32>
      %cst_53 = arith.constant 1.000000e+00 : f32
      %188 = vector.broadcast %cst_53 : f32 to vector<2x128xf32>
      %189 = arith.addf %188, %187 : vector<2x128xf32>
      %190 = arith.divf %188, %189 : vector<2x128xf32>
      %191 = vector.extract_strided_slice %184 {offsets = [0, 128], sizes = [2, 128], strides = [1, 1]} : vector<2x512xf32> to vector<2x128xf32>
      %192 = arith.negf %191 : vector<2x128xf32>
      %193 = math.exp %192 : vector<2x128xf32>
      %cst_54 = arith.constant 1.000000e+00 : f32
      %194 = vector.broadcast %cst_54 : f32 to vector<2x128xf32>
      %195 = arith.addf %194, %193 : vector<2x128xf32>
      %196 = arith.divf %194, %195 : vector<2x128xf32>
      %197 = vector.extract_strided_slice %184 {offsets = [0, 256], sizes = [2, 128], strides = [1, 1]} : vector<2x512xf32> to vector<2x128xf32>
      %198 = math.tanh %197 : vector<2x128xf32>
      %199 = vector.extract_strided_slice %184 {offsets = [0, 384], sizes = [2, 128], strides = [1, 1]} : vector<2x512xf32> to vector<2x128xf32>
      %200 = arith.negf %199 : vector<2x128xf32>
      %201 = math.exp %200 : vector<2x128xf32>
      %cst_55 = arith.constant 1.000000e+00 : f32
      %202 = vector.broadcast %cst_55 : f32 to vector<2x128xf32>
      %203 = arith.addf %202, %201 : vector<2x128xf32>
      %204 = arith.divf %202, %203 : vector<2x128xf32>
      %205 = arith.mulf %196, %177 : vector<2x128xf32>
      %206 = arith.mulf %190, %198 : vector<2x128xf32>
      %207 = arith.addf %205, %206 : vector<2x128xf32>
      %208 = math.tanh %207 : vector<2x128xf32>
      %209 = arith.mulf %204, %208 : vector<2x128xf32>
      %c10 = arith.constant 10 : index
      %c0_56 = arith.constant 0 : index
      %210 = vector.load %arg20[%c10, %c0_56] : memref<16x128xf32, #tpu.memory_space<vmem>>, vector<2x128xf32>
      tpu.vector_store %arg20[%c10, %c0_56], %209 {strides = array<i32>} : memref<16x128xf32, #tpu.memory_space<vmem>>, vector<2x128xf32>,
      %211 = vector.extract_strided_slice %27 {offsets = [12, 0], sizes = [2, 512], strides = [1, 1]} : vector<16x512xf32> to vector<2x512xf32>
      %212 = arith.truncf %209 : vector<2x128xf32> to vector<2x128xbf16>
      %cst_57 = arith.constant dense<0.000000e+00> : vector<2x512xf32>
      %213 = tpu.matmul %212, %28, %cst_57 {dimension_numbers = #tpu.dot_dimension_numbers<[1], [0], [0], [1], [0, 0, 1, 1], [], []>} : vector<2x128xbf16>, vector<128x512xbf16>, vector<2x512xf32> -> vector<2x512xf32>
      %214 = arith.addf %211, %213 : vector<2x512xf32>
      %215 = vector.extract_strided_slice %214 {offsets = [0, 0], sizes = [2, 128], strides = [1, 1]} : vector<2x512xf32> to vector<2x128xf32>
      %216 = arith.negf %215 : vector<2x128xf32>
      %217 = math.exp %216 : vector<2x128xf32>
      %cst_58 = arith.constant 1.000000e+00 : f32
      %218 = vector.broadcast %cst_58 : f32 to vector<2x128xf32>
      %219 = arith.addf %218, %217 : vector<2x128xf32>
      %220 = arith.divf %218, %219 : vector<2x128xf32>
      %221 = vector.extract_strided_slice %214 {offsets = [0, 128], sizes = [2, 128], strides = [1, 1]} : vector<2x512xf32> to vector<2x128xf32>
      %222 = arith.negf %221 : vector<2x128xf32>
      %223 = math.exp %222 : vector<2x128xf32>
      %cst_59 = arith.constant 1.000000e+00 : f32
      %224 = vector.broadcast %cst_59 : f32 to vector<2x128xf32>
      %225 = arith.addf %224, %223 : vector<2x128xf32>
      %226 = arith.divf %224, %225 : vector<2x128xf32>
      %227 = vector.extract_strided_slice %214 {offsets = [0, 256], sizes = [2, 128], strides = [1, 1]} : vector<2x512xf32> to vector<2x128xf32>
      %228 = math.tanh %227 : vector<2x128xf32>
      %229 = vector.extract_strided_slice %214 {offsets = [0, 384], sizes = [2, 128], strides = [1, 1]} : vector<2x512xf32> to vector<2x128xf32>
      %230 = arith.negf %229 : vector<2x128xf32>
      %231 = math.exp %230 : vector<2x128xf32>
      %cst_60 = arith.constant 1.000000e+00 : f32
      %232 = vector.broadcast %cst_60 : f32 to vector<2x128xf32>
      %233 = arith.addf %232, %231 : vector<2x128xf32>
      %234 = arith.divf %232, %233 : vector<2x128xf32>
      %235 = arith.mulf %226, %207 : vector<2x128xf32>
      %236 = arith.mulf %220, %228 : vector<2x128xf32>
      %237 = arith.addf %235, %236 : vector<2x128xf32>
      %238 = math.tanh %237 : vector<2x128xf32>
      %239 = arith.mulf %234, %238 : vector<2x128xf32>
      %c12 = arith.constant 12 : index
      %c0_61 = arith.constant 0 : index
      %240 = vector.load %arg20[%c12, %c0_61] : memref<16x128xf32, #tpu.memory_space<vmem>>, vector<2x128xf32>
      tpu.vector_store %arg20[%c12, %c0_61], %239 {strides = array<i32>} : memref<16x128xf32, #tpu.memory_space<vmem>>, vector<2x128xf32>,
      %241 = vector.extract_strided_slice %27 {offsets = [14, 0], sizes = [2, 512], strides = [1, 1]} : vector<16x512xf32> to vector<2x512xf32>
      %242 = arith.truncf %239 : vector<2x128xf32> to vector<2x128xbf16>
      %cst_62 = arith.constant dense<0.000000e+00> : vector<2x512xf32>
      %243 = tpu.matmul %242, %28, %cst_62 {dimension_numbers = #tpu.dot_dimension_numbers<[1], [0], [0], [1], [0, 0, 1, 1], [], []>} : vector<2x128xbf16>, vector<128x512xbf16>, vector<2x512xf32> -> vector<2x512xf32>
      %244 = arith.addf %241, %243 : vector<2x512xf32>
      %245 = vector.extract_strided_slice %244 {offsets = [0, 0], sizes = [2, 128], strides = [1, 1]} : vector<2x512xf32> to vector<2x128xf32>
      %246 = arith.negf %245 : vector<2x128xf32>
      %247 = math.exp %246 : vector<2x128xf32>
      %cst_63 = arith.constant 1.000000e+00 : f32
      %248 = vector.broadcast %cst_63 : f32 to vector<2x128xf32>
      %249 = arith.addf %248, %247 : vector<2x128xf32>
      %250 = arith.divf %248, %249 : vector<2x128xf32>
      %251 = vector.extract_strided_slice %244 {offsets = [0, 128], sizes = [2, 128], strides = [1, 1]} : vector<2x512xf32> to vector<2x128xf32>
      %252 = arith.negf %251 : vector<2x128xf32>
      %253 = math.exp %252 : vector<2x128xf32>
      %cst_64 = arith.constant 1.000000e+00 : f32
      %254 = vector.broadcast %cst_64 : f32 to vector<2x128xf32>
      %255 = arith.addf %254, %253 : vector<2x128xf32>
      %256 = arith.divf %254, %255 : vector<2x128xf32>
      %257 = vector.extract_strided_slice %244 {offsets = [0, 256], sizes = [2, 128], strides = [1, 1]} : vector<2x512xf32> to vector<2x128xf32>
      %258 = math.tanh %257 : vector<2x128xf32>
      %259 = vector.extract_strided_slice %244 {offsets = [0, 384], sizes = [2, 128], strides = [1, 1]} : vector<2x512xf32> to vector<2x128xf32>
      %260 = arith.negf %259 : vector<2x128xf32>
      %261 = math.exp %260 : vector<2x128xf32>
      %cst_65 = arith.constant 1.000000e+00 : f32
      %262 = vector.broadcast %cst_65 : f32 to vector<2x128xf32>
      %263 = arith.addf %262, %261 : vector<2x128xf32>
      %264 = arith.divf %262, %263 : vector<2x128xf32>
      %265 = arith.mulf %256, %237 : vector<2x128xf32>
      %266 = arith.mulf %250, %258 : vector<2x128xf32>
      %267 = arith.addf %265, %266 : vector<2x128xf32>
      %268 = math.tanh %267 : vector<2x128xf32>
      %269 = arith.mulf %264, %268 : vector<2x128xf32>
      %c14 = arith.constant 14 : index
      %c0_66 = arith.constant 0 : index
      %270 = vector.load %arg20[%c14, %c0_66] : memref<16x128xf32, #tpu.memory_space<vmem>>, vector<2x128xf32>
      tpu.vector_store %arg20[%c14, %c0_66], %269 {strides = array<i32>} : memref<16x128xf32, #tpu.memory_space<vmem>>, vector<2x128xf32>,
      %c0_67 = arith.constant 0 : index
      %c0_68 = arith.constant 0 : index
      %271 = vector.load %arg20[%c0_67, %c0_68] : memref<16x128xf32, #tpu.memory_space<vmem>>, vector<16x128xf32>
      %272 = arith.truncf %271 : vector<16x128xf32> to vector<16x128xbf16>
      %c0_69 = arith.constant 0 : index
      %c0_70 = arith.constant 0 : index
      %273 = vector.load %arg5[%c0_69, %c0_70] : memref<128x512xbf16, #tpu.memory_space<vmem>>, vector<128x512xbf16>
      %cst_71 = arith.constant dense<0.000000e+00> : vector<16x512xf32>
      %274 = tpu.matmul %272, %273, %cst_71 {dimension_numbers = #tpu.dot_dimension_numbers<[1], [0], [0], [1], [0, 0, 1, 1], [], []>} : vector<16x128xbf16>, vector<128x512xbf16>, vector<16x512xf32> -> vector<16x512xf32>
      %c0_72 = arith.constant 0 : index
      %c0_73 = arith.constant 0 : index
      %275 = vector.load %arg7[%c0_72, %c0_73] : memref<1x512xf32, #tpu.memory_space<vmem>>, vector<1x512xf32>
      %276 = vector.broadcast %275 : vector<1x512xf32> to vector<16x512xf32>
      %277 = arith.addf %274, %276 : vector<16x512xf32>
      %c0_74 = arith.constant 0 : index
      %c0_75 = arith.constant 0 : index
      %278 = vector.load %arg6[%c0_74, %c0_75] : memref<128x512xbf16, #tpu.memory_space<vmem>>, vector<128x512xbf16>
      %cst_76 = arith.constant 0.000000e+00 : f32
      %279 = vector.broadcast %cst_76 : f32 to vector<2x128xf32>
      %cst_77 = arith.constant 0.000000e+00 : f32
      %280 = vector.broadcast %cst_77 : f32 to vector<2x128xf32>
      %281 = vector.extract_strided_slice %277 {offsets = [0, 0], sizes = [2, 512], strides = [1, 1]} : vector<16x512xf32> to vector<2x512xf32>
      %282 = arith.truncf %279 : vector<2x128xf32> to vector<2x128xbf16>
      %cst_78 = arith.constant dense<0.000000e+00> : vector<2x512xf32>
      %283 = tpu.matmul %282, %278, %cst_78 {dimension_numbers = #tpu.dot_dimension_numbers<[1], [0], [0], [1], [0, 0, 1, 1], [], []>} : vector<2x128xbf16>, vector<128x512xbf16>, vector<2x512xf32> -> vector<2x512xf32>
      %284 = arith.addf %281, %283 : vector<2x512xf32>
      %285 = vector.extract_strided_slice %284 {offsets = [0, 0], sizes = [2, 128], strides = [1, 1]} : vector<2x512xf32> to vector<2x128xf32>
      %286 = arith.negf %285 : vector<2x128xf32>
      %287 = math.exp %286 : vector<2x128xf32>
      %cst_79 = arith.constant 1.000000e+00 : f32
      %288 = vector.broadcast %cst_79 : f32 to vector<2x128xf32>
      %289 = arith.addf %288, %287 : vector<2x128xf32>
      %290 = arith.divf %288, %289 : vector<2x128xf32>
      %291 = vector.extract_strided_slice %284 {offsets = [0, 128], sizes = [2, 128], strides = [1, 1]} : vector<2x512xf32> to vector<2x128xf32>
      %292 = arith.negf %291 : vector<2x128xf32>
      %293 = math.exp %292 : vector<2x128xf32>
      %cst_80 = arith.constant 1.000000e+00 : f32
      %294 = vector.broadcast %cst_80 : f32 to vector<2x128xf32>
      %295 = arith.addf %294, %293 : vector<2x128xf32>
      %296 = arith.divf %294, %295 : vector<2x128xf32>
      %297 = vector.extract_strided_slice %284 {offsets = [0, 256], sizes = [2, 128], strides = [1, 1]} : vector<2x512xf32> to vector<2x128xf32>
      %298 = math.tanh %297 : vector<2x128xf32>
      %299 = vector.extract_strided_slice %284 {offsets = [0, 384], sizes = [2, 128], strides = [1, 1]} : vector<2x512xf32> to vector<2x128xf32>
      %300 = arith.negf %299 : vector<2x128xf32>
      %301 = math.exp %300 : vector<2x128xf32>
      %cst_81 = arith.constant 1.000000e+00 : f32
      %302 = vector.broadcast %cst_81 : f32 to vector<2x128xf32>
      %303 = arith.addf %302, %301 : vector<2x128xf32>
      %304 = arith.divf %302, %303 : vector<2x128xf32>
      %305 = arith.mulf %296, %280 : vector<2x128xf32>
      %306 = arith.mulf %290, %298 : vector<2x128xf32>
      %307 = arith.addf %305, %306 : vector<2x128xf32>
      %308 = math.tanh %307 : vector<2x128xf32>
      %309 = arith.mulf %304, %308 : vector<2x128xf32>
      %310 = vector.extract_strided_slice %277 {offsets = [2, 0], sizes = [2, 512], strides = [1, 1]} : vector<16x512xf32> to vector<2x512xf32>
      %311 = arith.truncf %309 : vector<2x128xf32> to vector<2x128xbf16>
      %cst_82 = arith.constant dense<0.000000e+00> : vector<2x512xf32>
      %312 = tpu.matmul %311, %278, %cst_82 {dimension_numbers = #tpu.dot_dimension_numbers<[1], [0], [0], [1], [0, 0, 1, 1], [], []>} : vector<2x128xbf16>, vector<128x512xbf16>, vector<2x512xf32> -> vector<2x512xf32>
      %313 = arith.addf %310, %312 : vector<2x512xf32>
      %314 = vector.extract_strided_slice %313 {offsets = [0, 0], sizes = [2, 128], strides = [1, 1]} : vector<2x512xf32> to vector<2x128xf32>
      %315 = arith.negf %314 : vector<2x128xf32>
      %316 = math.exp %315 : vector<2x128xf32>
      %cst_83 = arith.constant 1.000000e+00 : f32
      %317 = vector.broadcast %cst_83 : f32 to vector<2x128xf32>
      %318 = arith.addf %317, %316 : vector<2x128xf32>
      %319 = arith.divf %317, %318 : vector<2x128xf32>
      %320 = vector.extract_strided_slice %313 {offsets = [0, 128], sizes = [2, 128], strides = [1, 1]} : vector<2x512xf32> to vector<2x128xf32>
      %321 = arith.negf %320 : vector<2x128xf32>
      %322 = math.exp %321 : vector<2x128xf32>
      %cst_84 = arith.constant 1.000000e+00 : f32
      %323 = vector.broadcast %cst_84 : f32 to vector<2x128xf32>
      %324 = arith.addf %323, %322 : vector<2x128xf32>
      %325 = arith.divf %323, %324 : vector<2x128xf32>
      %326 = vector.extract_strided_slice %313 {offsets = [0, 256], sizes = [2, 128], strides = [1, 1]} : vector<2x512xf32> to vector<2x128xf32>
      %327 = math.tanh %326 : vector<2x128xf32>
      %328 = vector.extract_strided_slice %313 {offsets = [0, 384], sizes = [2, 128], strides = [1, 1]} : vector<2x512xf32> to vector<2x128xf32>
      %329 = arith.negf %328 : vector<2x128xf32>
      %330 = math.exp %329 : vector<2x128xf32>
      %cst_85 = arith.constant 1.000000e+00 : f32
      %331 = vector.broadcast %cst_85 : f32 to vector<2x128xf32>
      %332 = arith.addf %331, %330 : vector<2x128xf32>
      %333 = arith.divf %331, %332 : vector<2x128xf32>
      %334 = arith.mulf %325, %307 : vector<2x128xf32>
      %335 = arith.mulf %319, %327 : vector<2x128xf32>
      %336 = arith.addf %334, %335 : vector<2x128xf32>
      %337 = math.tanh %336 : vector<2x128xf32>
      %338 = arith.mulf %333, %337 : vector<2x128xf32>
      %339 = vector.extract_strided_slice %277 {offsets = [4, 0], sizes = [2, 512], strides = [1, 1]} : vector<16x512xf32> to vector<2x512xf32>
      %340 = arith.truncf %338 : vector<2x128xf32> to vector<2x128xbf16>
      %cst_86 = arith.constant dense<0.000000e+00> : vector<2x512xf32>
      %341 = tpu.matmul %340, %278, %cst_86 {dimension_numbers = #tpu.dot_dimension_numbers<[1], [0], [0], [1], [0, 0, 1, 1], [], []>} : vector<2x128xbf16>, vector<128x512xbf16>, vector<2x512xf32> -> vector<2x512xf32>
      %342 = arith.addf %339, %341 : vector<2x512xf32>
      %343 = vector.extract_strided_slice %342 {offsets = [0, 0], sizes = [2, 128], strides = [1, 1]} : vector<2x512xf32> to vector<2x128xf32>
      %344 = arith.negf %343 : vector<2x128xf32>
      %345 = math.exp %344 : vector<2x128xf32>
      %cst_87 = arith.constant 1.000000e+00 : f32
      %346 = vector.broadcast %cst_87 : f32 to vector<2x128xf32>
      %347 = arith.addf %346, %345 : vector<2x128xf32>
      %348 = arith.divf %346, %347 : vector<2x128xf32>
      %349 = vector.extract_strided_slice %342 {offsets = [0, 128], sizes = [2, 128], strides = [1, 1]} : vector<2x512xf32> to vector<2x128xf32>
      %350 = arith.negf %349 : vector<2x128xf32>
      %351 = math.exp %350 : vector<2x128xf32>
      %cst_88 = arith.constant 1.000000e+00 : f32
      %352 = vector.broadcast %cst_88 : f32 to vector<2x128xf32>
      %353 = arith.addf %352, %351 : vector<2x128xf32>
      %354 = arith.divf %352, %353 : vector<2x128xf32>
      %355 = vector.extract_strided_slice %342 {offsets = [0, 256], sizes = [2, 128], strides = [1, 1]} : vector<2x512xf32> to vector<2x128xf32>
      %356 = math.tanh %355 : vector<2x128xf32>
      %357 = vector.extract_strided_slice %342 {offsets = [0, 384], sizes = [2, 128], strides = [1, 1]} : vector<2x512xf32> to vector<2x128xf32>
      %358 = arith.negf %357 : vector<2x128xf32>
      %359 = math.exp %358 : vector<2x128xf32>
      %cst_89 = arith.constant 1.000000e+00 : f32
      %360 = vector.broadcast %cst_89 : f32 to vector<2x128xf32>
      %361 = arith.addf %360, %359 : vector<2x128xf32>
      %362 = arith.divf %360, %361 : vector<2x128xf32>
      %363 = arith.mulf %354, %336 : vector<2x128xf32>
      %364 = arith.mulf %348, %356 : vector<2x128xf32>
      %365 = arith.addf %363, %364 : vector<2x128xf32>
      %366 = math.tanh %365 : vector<2x128xf32>
      %367 = arith.mulf %362, %366 : vector<2x128xf32>
      %368 = vector.extract_strided_slice %277 {offsets = [6, 0], sizes = [2, 512], strides = [1, 1]} : vector<16x512xf32> to vector<2x512xf32>
      %369 = arith.truncf %367 : vector<2x128xf32> to vector<2x128xbf16>
      %cst_90 = arith.constant dense<0.000000e+00> : vector<2x512xf32>
      %370 = tpu.matmul %369, %278, %cst_90 {dimension_numbers = #tpu.dot_dimension_numbers<[1], [0], [0], [1], [0, 0, 1, 1], [], []>} : vector<2x128xbf16>, vector<128x512xbf16>, vector<2x512xf32> -> vector<2x512xf32>
      %371 = arith.addf %368, %370 : vector<2x512xf32>
      %372 = vector.extract_strided_slice %371 {offsets = [0, 0], sizes = [2, 128], strides = [1, 1]} : vector<2x512xf32> to vector<2x128xf32>
      %373 = arith.negf %372 : vector<2x128xf32>
      %374 = math.exp %373 : vector<2x128xf32>
      %cst_91 = arith.constant 1.000000e+00 : f32
      %375 = vector.broadcast %cst_91 : f32 to vector<2x128xf32>
      %376 = arith.addf %375, %374 : vector<2x128xf32>
      %377 = arith.divf %375, %376 : vector<2x128xf32>
      %378 = vector.extract_strided_slice %371 {offsets = [0, 128], sizes = [2, 128], strides = [1, 1]} : vector<2x512xf32> to vector<2x128xf32>
      %379 = arith.negf %378 : vector<2x128xf32>
      %380 = math.exp %379 : vector<2x128xf32>
      %cst_92 = arith.constant 1.000000e+00 : f32
      %381 = vector.broadcast %cst_92 : f32 to vector<2x128xf32>
      %382 = arith.addf %381, %380 : vector<2x128xf32>
      %383 = arith.divf %381, %382 : vector<2x128xf32>
      %384 = vector.extract_strided_slice %371 {offsets = [0, 256], sizes = [2, 128], strides = [1, 1]} : vector<2x512xf32> to vector<2x128xf32>
      %385 = math.tanh %384 : vector<2x128xf32>
      %386 = vector.extract_strided_slice %371 {offsets = [0, 384], sizes = [2, 128], strides = [1, 1]} : vector<2x512xf32> to vector<2x128xf32>
      %387 = arith.negf %386 : vector<2x128xf32>
      %388 = math.exp %387 : vector<2x128xf32>
      %cst_93 = arith.constant 1.000000e+00 : f32
      %389 = vector.broadcast %cst_93 : f32 to vector<2x128xf32>
      %390 = arith.addf %389, %388 : vector<2x128xf32>
      %391 = arith.divf %389, %390 : vector<2x128xf32>
      %392 = arith.mulf %383, %365 : vector<2x128xf32>
      %393 = arith.mulf %377, %385 : vector<2x128xf32>
      %394 = arith.addf %392, %393 : vector<2x128xf32>
      %395 = math.tanh %394 : vector<2x128xf32>
      %396 = arith.mulf %391, %395 : vector<2x128xf32>
      %397 = vector.extract_strided_slice %277 {offsets = [8, 0], sizes = [2, 512], strides = [1, 1]} : vector<16x512xf32> to vector<2x512xf32>
      %398 = arith.truncf %396 : vector<2x128xf32> to vector<2x128xbf16>
      %cst_94 = arith.constant dense<0.000000e+00> : vector<2x512xf32>
      %399 = tpu.matmul %398, %278, %cst_94 {dimension_numbers = #tpu.dot_dimension_numbers<[1], [0], [0], [1], [0, 0, 1, 1], [], []>} : vector<2x128xbf16>, vector<128x512xbf16>, vector<2x512xf32> -> vector<2x512xf32>
      %400 = arith.addf %397, %399 : vector<2x512xf32>
      %401 = vector.extract_strided_slice %400 {offsets = [0, 0], sizes = [2, 128], strides = [1, 1]} : vector<2x512xf32> to vector<2x128xf32>
      %402 = arith.negf %401 : vector<2x128xf32>
      %403 = math.exp %402 : vector<2x128xf32>
      %cst_95 = arith.constant 1.000000e+00 : f32
      %404 = vector.broadcast %cst_95 : f32 to vector<2x128xf32>
      %405 = arith.addf %404, %403 : vector<2x128xf32>
      %406 = arith.divf %404, %405 : vector<2x128xf32>
      %407 = vector.extract_strided_slice %400 {offsets = [0, 128], sizes = [2, 128], strides = [1, 1]} : vector<2x512xf32> to vector<2x128xf32>
      %408 = arith.negf %407 : vector<2x128xf32>
      %409 = math.exp %408 : vector<2x128xf32>
      %cst_96 = arith.constant 1.000000e+00 : f32
      %410 = vector.broadcast %cst_96 : f32 to vector<2x128xf32>
      %411 = arith.addf %410, %409 : vector<2x128xf32>
      %412 = arith.divf %410, %411 : vector<2x128xf32>
      %413 = vector.extract_strided_slice %400 {offsets = [0, 256], sizes = [2, 128], strides = [1, 1]} : vector<2x512xf32> to vector<2x128xf32>
      %414 = math.tanh %413 : vector<2x128xf32>
      %415 = vector.extract_strided_slice %400 {offsets = [0, 384], sizes = [2, 128], strides = [1, 1]} : vector<2x512xf32> to vector<2x128xf32>
      %416 = arith.negf %415 : vector<2x128xf32>
      %417 = math.exp %416 : vector<2x128xf32>
      %cst_97 = arith.constant 1.000000e+00 : f32
      %418 = vector.broadcast %cst_97 : f32 to vector<2x128xf32>
      %419 = arith.addf %418, %417 : vector<2x128xf32>
      %420 = arith.divf %418, %419 : vector<2x128xf32>
      %421 = arith.mulf %412, %394 : vector<2x128xf32>
      %422 = arith.mulf %406, %414 : vector<2x128xf32>
      %423 = arith.addf %421, %422 : vector<2x128xf32>
      %424 = math.tanh %423 : vector<2x128xf32>
      %425 = arith.mulf %420, %424 : vector<2x128xf32>
      %426 = vector.extract_strided_slice %277 {offsets = [10, 0], sizes = [2, 512], strides = [1, 1]} : vector<16x512xf32> to vector<2x512xf32>
      %427 = arith.truncf %425 : vector<2x128xf32> to vector<2x128xbf16>
      %cst_98 = arith.constant dense<0.000000e+00> : vector<2x512xf32>
      %428 = tpu.matmul %427, %278, %cst_98 {dimension_numbers = #tpu.dot_dimension_numbers<[1], [0], [0], [1], [0, 0, 1, 1], [], []>} : vector<2x128xbf16>, vector<128x512xbf16>, vector<2x512xf32> -> vector<2x512xf32>
      %429 = arith.addf %426, %428 : vector<2x512xf32>
      %430 = vector.extract_strided_slice %429 {offsets = [0, 0], sizes = [2, 128], strides = [1, 1]} : vector<2x512xf32> to vector<2x128xf32>
      %431 = arith.negf %430 : vector<2x128xf32>
      %432 = math.exp %431 : vector<2x128xf32>
      %cst_99 = arith.constant 1.000000e+00 : f32
      %433 = vector.broadcast %cst_99 : f32 to vector<2x128xf32>
      %434 = arith.addf %433, %432 : vector<2x128xf32>
      %435 = arith.divf %433, %434 : vector<2x128xf32>
      %436 = vector.extract_strided_slice %429 {offsets = [0, 128], sizes = [2, 128], strides = [1, 1]} : vector<2x512xf32> to vector<2x128xf32>
      %437 = arith.negf %436 : vector<2x128xf32>
      %438 = math.exp %437 : vector<2x128xf32>
      %cst_100 = arith.constant 1.000000e+00 : f32
      %439 = vector.broadcast %cst_100 : f32 to vector<2x128xf32>
      %440 = arith.addf %439, %438 : vector<2x128xf32>
      %441 = arith.divf %439, %440 : vector<2x128xf32>
      %442 = vector.extract_strided_slice %429 {offsets = [0, 256], sizes = [2, 128], strides = [1, 1]} : vector<2x512xf32> to vector<2x128xf32>
      %443 = math.tanh %442 : vector<2x128xf32>
      %444 = vector.extract_strided_slice %429 {offsets = [0, 384], sizes = [2, 128], strides = [1, 1]} : vector<2x512xf32> to vector<2x128xf32>
      %445 = arith.negf %444 : vector<2x128xf32>
      %446 = math.exp %445 : vector<2x128xf32>
      %cst_101 = arith.constant 1.000000e+00 : f32
      %447 = vector.broadcast %cst_101 : f32 to vector<2x128xf32>
      %448 = arith.addf %447, %446 : vector<2x128xf32>
      %449 = arith.divf %447, %448 : vector<2x128xf32>
      %450 = arith.mulf %441, %423 : vector<2x128xf32>
      %451 = arith.mulf %435, %443 : vector<2x128xf32>
      %452 = arith.addf %450, %451 : vector<2x128xf32>
      %453 = math.tanh %452 : vector<2x128xf32>
      %454 = arith.mulf %449, %453 : vector<2x128xf32>
      %455 = vector.extract_strided_slice %277 {offsets = [12, 0], sizes = [2, 512], strides = [1, 1]} : vector<16x512xf32> to vector<2x512xf32>
      %456 = arith.truncf %454 : vector<2x128xf32> to vector<2x128xbf16>
      %cst_102 = arith.constant dense<0.000000e+00> : vector<2x512xf32>
      %457 = tpu.matmul %456, %278, %cst_102 {dimension_numbers = #tpu.dot_dimension_numbers<[1], [0], [0], [1], [0, 0, 1, 1], [], []>} : vector<2x128xbf16>, vector<128x512xbf16>, vector<2x512xf32> -> vector<2x512xf32>
      %458 = arith.addf %455, %457 : vector<2x512xf32>
      %459 = vector.extract_strided_slice %458 {offsets = [0, 0], sizes = [2, 128], strides = [1, 1]} : vector<2x512xf32> to vector<2x128xf32>
      %460 = arith.negf %459 : vector<2x128xf32>
      %461 = math.exp %460 : vector<2x128xf32>
      %cst_103 = arith.constant 1.000000e+00 : f32
      %462 = vector.broadcast %cst_103 : f32 to vector<2x128xf32>
      %463 = arith.addf %462, %461 : vector<2x128xf32>
      %464 = arith.divf %462, %463 : vector<2x128xf32>
      %465 = vector.extract_strided_slice %458 {offsets = [0, 128], sizes = [2, 128], strides = [1, 1]} : vector<2x512xf32> to vector<2x128xf32>
      %466 = arith.negf %465 : vector<2x128xf32>
      %467 = math.exp %466 : vector<2x128xf32>
      %cst_104 = arith.constant 1.000000e+00 : f32
      %468 = vector.broadcast %cst_104 : f32 to vector<2x128xf32>
      %469 = arith.addf %468, %467 : vector<2x128xf32>
      %470 = arith.divf %468, %469 : vector<2x128xf32>
      %471 = vector.extract_strided_slice %458 {offsets = [0, 256], sizes = [2, 128], strides = [1, 1]} : vector<2x512xf32> to vector<2x128xf32>
      %472 = math.tanh %471 : vector<2x128xf32>
      %473 = vector.extract_strided_slice %458 {offsets = [0, 384], sizes = [2, 128], strides = [1, 1]} : vector<2x512xf32> to vector<2x128xf32>
      %474 = arith.negf %473 : vector<2x128xf32>
      %475 = math.exp %474 : vector<2x128xf32>
      %cst_105 = arith.constant 1.000000e+00 : f32
      %476 = vector.broadcast %cst_105 : f32 to vector<2x128xf32>
      %477 = arith.addf %476, %475 : vector<2x128xf32>
      %478 = arith.divf %476, %477 : vector<2x128xf32>
      %479 = arith.mulf %470, %452 : vector<2x128xf32>
      %480 = arith.mulf %464, %472 : vector<2x128xf32>
      %481 = arith.addf %479, %480 : vector<2x128xf32>
      %482 = math.tanh %481 : vector<2x128xf32>
      %483 = arith.mulf %478, %482 : vector<2x128xf32>
      %484 = vector.extract_strided_slice %277 {offsets = [14, 0], sizes = [2, 512], strides = [1, 1]} : vector<16x512xf32> to vector<2x512xf32>
      %485 = arith.truncf %483 : vector<2x128xf32> to vector<2x128xbf16>
      %cst_106 = arith.constant dense<0.000000e+00> : vector<2x512xf32>
      %486 = tpu.matmul %485, %278, %cst_106 {dimension_numbers = #tpu.dot_dimension_numbers<[1], [0], [0], [1], [0, 0, 1, 1], [], []>} : vector<2x128xbf16>, vector<128x512xbf16>, vector<2x512xf32> -> vector<2x512xf32>
      %487 = arith.addf %484, %486 : vector<2x512xf32>
      %488 = vector.extract_strided_slice %487 {offsets = [0, 0], sizes = [2, 128], strides = [1, 1]} : vector<2x512xf32> to vector<2x128xf32>
      %489 = arith.negf %488 : vector<2x128xf32>
      %490 = math.exp %489 : vector<2x128xf32>
      %cst_107 = arith.constant 1.000000e+00 : f32
      %491 = vector.broadcast %cst_107 : f32 to vector<2x128xf32>
      %492 = arith.addf %491, %490 : vector<2x128xf32>
      %493 = arith.divf %491, %492 : vector<2x128xf32>
      %494 = vector.extract_strided_slice %487 {offsets = [0, 128], sizes = [2, 128], strides = [1, 1]} : vector<2x512xf32> to vector<2x128xf32>
      %495 = arith.negf %494 : vector<2x128xf32>
      %496 = math.exp %495 : vector<2x128xf32>
      %cst_108 = arith.constant 1.000000e+00 : f32
      %497 = vector.broadcast %cst_108 : f32 to vector<2x128xf32>
      %498 = arith.addf %497, %496 : vector<2x128xf32>
      %499 = arith.divf %497, %498 : vector<2x128xf32>
      %500 = vector.extract_strided_slice %487 {offsets = [0, 256], sizes = [2, 128], strides = [1, 1]} : vector<2x512xf32> to vector<2x128xf32>
      %501 = math.tanh %500 : vector<2x128xf32>
      %502 = vector.extract_strided_slice %487 {offsets = [0, 384], sizes = [2, 128], strides = [1, 1]} : vector<2x512xf32> to vector<2x128xf32>
      %503 = arith.negf %502 : vector<2x128xf32>
      %504 = math.exp %503 : vector<2x128xf32>
      %cst_109 = arith.constant 1.000000e+00 : f32
      %505 = vector.broadcast %cst_109 : f32 to vector<2x128xf32>
      %506 = arith.addf %505, %504 : vector<2x128xf32>
      %507 = arith.divf %505, %506 : vector<2x128xf32>
      %508 = arith.mulf %499, %481 : vector<2x128xf32>
      %509 = arith.mulf %493, %501 : vector<2x128xf32>
      %510 = arith.addf %508, %509 : vector<2x128xf32>
      %511 = math.tanh %510 : vector<2x128xf32>
      %512 = arith.mulf %507, %511 : vector<2x128xf32>
      %513 = arith.truncf %512 : vector<2x128xf32> to vector<2x128xbf16>
      %c0_110 = arith.constant 0 : index
      %c0_111 = arith.constant 0 : index
      %514 = vector.load %arg11[%c0_110, %c0_111] : memref<128x512xbf16, #tpu.memory_space<vmem>>, vector<128x512xbf16>
      %cst_112 = arith.constant dense<0.000000e+00> : vector<2x512xf32>
      %515 = tpu.matmul %513, %514, %cst_112 {dimension_numbers = #tpu.dot_dimension_numbers<[1], [0], [0], [1], [0, 0, 1, 1], [], []>} : vector<2x128xbf16>, vector<128x512xbf16>, vector<2x512xf32> -> vector<2x512xf32>
      %c0_113 = arith.constant 0 : index
      %c0_114 = arith.constant 0 : index
      %516 = vector.load %arg13[%c0_113, %c0_114] : memref<1x512xf32, #tpu.memory_space<vmem>>, vector<1x512xf32>
      %517 = vector.broadcast %516 : vector<1x512xf32> to vector<2x512xf32>
      %518 = arith.addf %515, %517 : vector<2x512xf32>
      %c0_115 = arith.constant 0 : index
      %c0_116 = arith.constant 0 : index
      %519 = vector.load %arg19[%c0_115, %c0_116] : memref<2x512xf32, #tpu.memory_space<vmem>>, vector<2x512xf32>
      tpu.vector_store %arg19[%c0_115, %c0_116], %518 {strides = array<i32>} : memref<2x512xf32, #tpu.memory_space<vmem>>, vector<2x512xf32>,
    } else {
    }
    %c0 = arith.constant 0 : index
    %c0_1 = arith.constant 0 : index
    %3 = vector.load %arg8[%c0, %c0_1] : memref<2x1024xf32, #tpu.memory_space<vmem>>, vector<2x1024xf32>
    %4 = arith.truncf %3 : vector<2x1024xf32> to vector<2x1024xbf16>
    %c0_2 = arith.constant 0 : index
    %c0_3 = arith.constant 0 : index
    %5 = vector.load %arg9[%c0_2, %c0_3] : memref<1024x512xbf16, #tpu.memory_space<vmem>>, vector<1024x512xbf16>
    %cst = arith.constant dense<0.000000e+00> : vector<2x512xf32>
    %6 = tpu.matmul %4, %5, %cst {dimension_numbers = #tpu.dot_dimension_numbers<[1], [0], [0], [1], [0, 0, 1, 1], [], []>} : vector<2x1024xbf16>, vector<1024x512xbf16>, vector<2x512xf32> -> vector<2x512xf32>
    %c0_4 = arith.constant 0 : index
    %c0_5 = arith.constant 0 : index
    %7 = vector.load %arg10[%c0_4, %c0_5] : memref<1x512xf32, #tpu.memory_space<vmem>>, vector<1x512xf32>
    %8 = vector.broadcast %7 : vector<1x512xf32> to vector<2x512xf32>
    %9 = arith.addf %6, %8 : vector<2x512xf32>
    %cst_6 = arith.constant 0.000000e+00 : f32
    %10 = vector.broadcast %cst_6 : f32 to vector<2x512xf32>
    %11 = arith.maximumf %9, %10 : vector<2x512xf32>
    %c0_7 = arith.constant 0 : index
    %c0_8 = arith.constant 0 : index
    %12 = vector.load %arg19[%c0_7, %c0_8] : memref<2x512xf32, #tpu.memory_space<vmem>>, vector<2x512xf32>
    %13 = arith.truncf %11 : vector<2x512xf32> to vector<2x512xbf16>
    %c0_9 = arith.constant 0 : index
    %c0_10 = arith.constant 0 : index
    %14 = vector.load %arg12[%c0_9, %c0_10] : memref<512x512xbf16, #tpu.memory_space<vmem>>, vector<512x512xbf16>
    %cst_11 = arith.constant dense<0.000000e+00> : vector<2x512xf32>
    %15 = tpu.matmul %13, %14, %cst_11 {dimension_numbers = #tpu.dot_dimension_numbers<[1], [0], [0], [1], [0, 0, 1, 1], [], []>} : vector<2x512xbf16>, vector<512x512xbf16>, vector<2x512xf32> -> vector<2x512xf32>
    %16 = arith.addf %12, %15 : vector<2x512xf32>
    %c0_12 = arith.constant 0 : index
    %c0_13 = arith.constant 0 : index
    %17 = vector.load %arg19[%c0_12, %c0_13] : memref<2x512xf32, #tpu.memory_space<vmem>>, vector<2x512xf32>
    tpu.vector_store %arg19[%c0_12, %c0_13], %16 {strides = array<i32>} : memref<2x512xf32, #tpu.memory_space<vmem>>, vector<2x512xf32>,
    %c1_i32 = arith.constant 1 : i32
    %18 = arith.cmpi eq, %arg0, %c1_i32 : i32
    %19 = arith.extui %18 : i1 to i32
    %c0_i32_14 = arith.constant 0 : i32
    %20 = arith.cmpi ne, %19, %c0_i32_14 : i32
    scf.if %20 {
      %c0_15 = arith.constant 0 : index
      %c0_16 = arith.constant 0 : index
      %21 = vector.load %arg19[%c0_15, %c0_16] : memref<2x512xf32, #tpu.memory_space<vmem>>, vector<2x512xf32>
      %cst_17 = arith.constant 0.000000e+00 : f32
      %22 = vector.broadcast %cst_17 : f32 to vector<2x512xf32>
      %23 = arith.maximumf %21, %22 : vector<2x512xf32>
      %24 = arith.truncf %23 : vector<2x512xf32> to vector<2x512xbf16>
      %c0_18 = arith.constant 0 : index
      %c0_19 = arith.constant 0 : index
      %25 = vector.load %arg14[%c0_18, %c0_19] : memref<512x64xbf16, #tpu.memory_space<vmem>>, vector<512x64xbf16>
      %cst_20 = arith.constant dense<0.000000e+00> : vector<2x64xf32>
      %26 = tpu.matmul %24, %25, %cst_20 {dimension_numbers = #tpu.dot_dimension_numbers<[1], [0], [0], [1], [0, 0, 1, 1], [], []>} : vector<2x512xbf16>, vector<512x64xbf16>, vector<2x64xf32> -> vector<2x64xf32>
      %c0_21 = arith.constant 0 : index
      %c0_22 = arith.constant 0 : index
      %27 = vector.load %arg15[%c0_21, %c0_22] : memref<1x64xf32, #tpu.memory_space<vmem>>, vector<1x64xf32>
      %28 = vector.broadcast %27 : vector<1x64xf32> to vector<2x64xf32>
      %29 = arith.addf %26, %28 : vector<2x64xf32>
      %cst_23 = arith.constant 0.000000e+00 : f32
      %30 = vector.broadcast %cst_23 : f32 to vector<2x64xf32>
      %31 = arith.maximumf %29, %30 : vector<2x64xf32>
      %32 = arith.truncf %31 : vector<2x64xf32> to vector<2x64xbf16>
      %c0_24 = arith.constant 0 : index
      %c0_25 = arith.constant 0 : index
      %33 = vector.load %arg16[%c0_24, %c0_25] : memref<64x18xbf16, #tpu.memory_space<vmem>>, vector<64x18xbf16>
      %cst_26 = arith.constant dense<0.000000e+00> : vector<2x18xf32>
      %34 = tpu.matmul %32, %33, %cst_26 {dimension_numbers = #tpu.dot_dimension_numbers<[1], [0], [0], [1], [0, 0, 1, 1], [], []>} : vector<2x64xbf16>, vector<64x18xbf16>, vector<2x18xf32> -> vector<2x18xf32>
      %c0_27 = arith.constant 0 : index
      %c0_28 = arith.constant 0 : index
      %35 = vector.load %arg17[%c0_27, %c0_28] : memref<1x18xf32, #tpu.memory_space<vmem>>, vector<1x18xf32>
      %36 = vector.broadcast %35 : vector<1x18xf32> to vector<2x18xf32>
      %37 = arith.addf %34, %36 : vector<2x18xf32>
      %c0_29 = arith.constant 0 : index
      %c0_30 = arith.constant 0 : index
      %38 = vector.load %arg18[%c0_29, %c0_30] : memref<2x18xf32, #tpu.memory_space<vmem>>, vector<2x18xf32>
      tpu.vector_store %arg18[%c0_29, %c0_30], %37 {strides = array<i32>} : memref<2x18xf32, #tpu.memory_space<vmem>>, vector<2x18xf32>,
    } else {
    }
    return
  }
  func.func @transform_0(%arg0: i32) -> (i32, i32) {
    %c0_i32 = arith.constant 0 : i32
    %c0_i32_0 = arith.constant 0 : i32
    %c0_i32_1 = arith.constant 0 : i32
    return %c0_i32, %c0_i32_0 : i32, i32
  }
  func.func @transform_1(%arg0: i32) -> (i32, i32) {
    %c0_i32 = arith.constant 0 : i32
    %c0_i32_0 = arith.constant 0 : i32
    %c0_i32_1 = arith.constant 0 : i32
    return %c0_i32, %c0_i32_0 : i32, i32
  }
  func.func @transform_2(%arg0: i32) -> (i32, i32) {
    %c0_i32 = arith.constant 0 : i32
    %c0_i32_0 = arith.constant 0 : i32
    %c0_i32_1 = arith.constant 0 : i32
    return %c0_i32, %c0_i32_0 : i32, i32
  }
  func.func @transform_3(%arg0: i32) -> (i32, i32) {
    %c0_i32 = arith.constant 0 : i32
    %c0_i32_0 = arith.constant 0 : i32
    %c0_i32_1 = arith.constant 0 : i32
    return %c0_i32, %c0_i32_0 : i32, i32
  }
  func.func @transform_4(%arg0: i32) -> (i32, i32) {
    %c0_i32 = arith.constant 0 : i32
    %c0_i32_0 = arith.constant 0 : i32
    %c0_i32_1 = arith.constant 0 : i32
    return %c0_i32, %c0_i32_0 : i32, i32
  }
  func.func @transform_5(%arg0: i32) -> (i32, i32) {
    %c0_i32 = arith.constant 0 : i32
    %c0_i32_0 = arith.constant 0 : i32
    %c0_i32_1 = arith.constant 0 : i32
    return %c0_i32, %c0_i32_0 : i32, i32
  }
  func.func @transform_6(%arg0: i32) -> (i32, i32) {
    %c0_i32 = arith.constant 0 : i32
    %c0_i32_0 = arith.constant 0 : i32
    %c0_i32_1 = arith.constant 0 : i32
    return %c0_i32, %c0_i32_0 : i32, i32
  }
  func.func @transform_7(%arg0: i32) -> (i32, i32) {
    %c0_i32 = arith.constant 0 : i32
    %c0_i32_0 = arith.constant 0 : i32
    %c0_i32_1 = arith.constant 0 : i32
    return %c0_i32, %c0_i32_0 : i32, i32
  }
  func.func @transform_8(%arg0: i32) -> (i32, i32) {
    %c0_i32 = arith.constant 0 : i32
    %c0_i32_0 = arith.constant 0 : i32
    return %c0_i32, %arg0 : i32, i32
  }
  func.func @transform_9(%arg0: i32) -> (i32, i32) {
    %c0_i32 = arith.constant 0 : i32
    %c0_i32_0 = arith.constant 0 : i32
    return %c0_i32, %arg0 : i32, i32
  }
  func.func @transform_10(%arg0: i32) -> (i32, i32) {
    %c0_i32 = arith.constant 0 : i32
    %c0_i32_0 = arith.constant 0 : i32
    %c0_i32_1 = arith.constant 0 : i32
    return %c0_i32, %c0_i32_0 : i32, i32
  }
  func.func @transform_11(%arg0: i32) -> (i32, i32) {
    %c0_i32 = arith.constant 0 : i32
    %c0_i32_0 = arith.constant 0 : i32
    return %arg0, %c0_i32 : i32, i32
  }
  func.func @transform_12(%arg0: i32) -> (i32, i32) {
    %c0_i32 = arith.constant 0 : i32
    %c0_i32_0 = arith.constant 0 : i32
    %c0_i32_1 = arith.constant 0 : i32
    return %c0_i32, %c0_i32_0 : i32, i32
  }
  func.func @transform_13(%arg0: i32) -> (i32, i32) {
    %c0_i32 = arith.constant 0 : i32
    %c0_i32_0 = arith.constant 0 : i32
    %c0_i32_1 = arith.constant 0 : i32
    return %c0_i32, %c0_i32_0 : i32, i32
  }
  func.func @transform_14(%arg0: i32) -> (i32, i32) {
    %c0_i32 = arith.constant 0 : i32
    %c0_i32_0 = arith.constant 0 : i32
    %c0_i32_1 = arith.constant 0 : i32
    return %c0_i32, %c0_i32_0 : i32, i32
  }
  func.func @transform_15(%arg0: i32) -> (i32, i32) {
    %c0_i32 = arith.constant 0 : i32
    %c0_i32_0 = arith.constant 0 : i32
    %c0_i32_1 = arith.constant 0 : i32
    return %c0_i32, %c0_i32_0 : i32, i32
  }
  func.func @transform_16(%arg0: i32) -> (i32, i32) {
    %c0_i32 = arith.constant 0 : i32
    %c0_i32_0 = arith.constant 0 : i32
    %c0_i32_1 = arith.constant 0 : i32
    return %c0_i32, %c0_i32_0 : i32, i32
  }
  func.func @transform_17(%arg0: i32) -> (i32, i32) {
    %c0_i32 = arith.constant 0 : i32
    %c0_i32_0 = arith.constant 0 : i32
    %c0_i32_1 = arith.constant 0 : i32
    return %c0_i32, %c0_i32_0 : i32, i32
  }
}

</mosaic_0001>

<bundles_post_ra>
// kernel: forward.2
= control target key start
LH: loop header
LB: loop body
LE: loop exit
PB: predicated region body
PF: predicated region fallthrough
CT: control target
= control target key end

     0   :  { %vm230_vm0 = vcmask 1044480   ;;  %vm231_vm1 = vcmask 1045504   ;;  %v803_v1 = vmov 65535   ;;  %vm133_vm2 = vcmask 220160   ;;  %s1351_s1 = inlined_call_operand.vmem [shape: bf16[27,16], index: 1, kind: input, shape index: {}]   ;;  %s1352_s0 = inlined_call_operand.vmem [shape: f32[512,27], index: 0, kind: input, shape index: {}]   ;;  %s1353_s2 = inlined_call_operand.vmem [shape: f32[1,16], index: 2, kind: input, shape index: {}]   ;;  %s1354_s3 = inlined_call_operand.vmem [shape: f32[128,16], index: 3, kind: output, shape index: {}]  }
   0x1   :  { %v801_v0 = vld [vmem:[%s1351_s1] sm:$0xff]   ;;  %v232_v2 = vsel %vm230_vm0, 4294967295, %v803_v1  ;;  %v802_v3 = vld [vmem:[%s1351_s1 + $0x8] sm:$0x3f]   ;;  %v17_v11 = vld [vmem:[%s1352_s0 + $0x10] sm:$0xff]  ;;  %vm638_vm3 = vcmask 130048  }
   0x2   :  { %728 = vmatprep.subr.bf16.mxu0 %v801_v0  ;;  %796 = vmatprep.subr.bf16.mxu1 %v801_v0  ;;  %v233_v4 = vsel %vm231_vm1, %v232_v2, 0  ;;  %v15_v5 = vld [vmem:[%s1352_s0] sm:$0xff]  ;;  %v16_v6 = vld [vmem:[%s1352_s0 + $0x8] sm:$0xff]  ;;  %v18_v12 = vld [vmem:[%s1352_s0 + $0x18] sm:$0xff] }
   0x3   :  { %v47_v7 = vld [vmem:[%s1352_s0 + $0x100] sm:$0xff]  ;;  %729 = vmatpush3.bf16.msra.mxu0 %v801_v0  ;;  %798 = vmatpush3.bf16.msra.mxu1 %v801_v0  ;;  %v235_v8 = vand.u32 %v802_v3, %v233_v4  ;;  %v79_v9 = vpack.c.bf16 %v16_v6, %v15_v5  ;;  %v48_v10 = vld [vmem:[%s1352_s0 + $0x108] sm:$0xff]  ;;  %v49_v14 = vld [vmem:[%s1352_s0 + $0x110] sm:$0xff]  ;;  %v80_v20 = vpack.c.bf16 %v18_v12, %v17_v11 }
   0x4   :  { %v95_v13 = vpack.c.bf16 %v48_v10, %v47_v7  ;;  %v50_v15 = vld [vmem:[%s1352_s0 + $0x118] sm:$0xff]  ;;  %v19_v16 = vld [vmem:[%s1352_s0 + $0x20] sm:$0xff]  ;;  %v20_v17 = vld [vmem:[%s1352_s0 + $0x28] sm:$0xff] }
   0x5   :  { %730 = vmatprep.subr.bf16.mxu0 %v235_v8  ;;  %797 = vmatprep.subr.bf16.mxu1 %v235_v8  ;;  %v51_v18 = vld [vmem:[%s1352_s0 + $0x120] sm:$0xff]  ;;  %v52_v19 = vld [vmem:[%s1352_s0 + $0x128] sm:$0xff]  ;;  %v96_v21 = vpack.c.bf16 %v50_v15, %v49_v14  ;;  %v81_v22 = vpack.c.bf16 %v20_v17, %v19_v16  ;;  %v21_v24 = vld [vmem:[%s1352_s0 + $0x30] sm:$0xff] }
   0x6   :  { %732 = vmatprep.mubr.msk.bf16.mxu0 %vm133_vm2, %v79_v9  ;;  %764 = vmatprep.mubr.msk.bf16.mxu1 %vm133_vm2, %v95_v13  ;;  %v97_v23 = vpack.c.bf16 %v52_v19, %v51_v18  ;;  %v22_v25 = vld [vmem:[%s1352_s0 + $0x38] sm:$0xff]  ;;  %v53_v26 = vld [vmem:[%s1352_s0 + $0x130] sm:$0xff]  ;;  %v23_v28 = vld [vmem:[%s1352_s0 + $0x40] sm:$0xff] }
   0x7   :  { %731 = vmatpush3.bf16.msra.mxu0 %v235_v8  ;;  %799 = vmatpush3.bf16.msra.mxu1 %v235_v8  ;;  %v54_v27 = vld [vmem:[%s1352_s0 + $0x138] sm:$0xff]  ;;  %v24_v29 = vld [vmem:[%s1352_s0 + $0x48] sm:$0xff]  ;;  %v55_v30 = vld [vmem:[%s1352_s0 + $0x140] sm:$0xff]  ;;  %v82_v32 = vpack.c.bf16 %v22_v25, %v21_v24 }
   0x8   :  { %v56_v31 = vld [vmem:[%s1352_s0 + $0x148] sm:$0xff]  ;;  %v98_v33 = vpack.c.bf16 %v54_v27, %v53_v26  ;;  %v83_v34 = vpack.c.bf16 %v24_v29, %v23_v28  ;;  %v25_v36 = vld [vmem:[%s1352_s0 + $0x50] sm:$0xff]  ;;  %v26_v37 = vld [vmem:[%s1352_s0 + $0x58] sm:$0xff] }
   0x9   :  { %v99_v35 = vpack.c.bf16 %v56_v31, %v55_v30  ;;  %v57_v38 = vld [vmem:[%s1352_s0 + $0x150] sm:$0xff]  ;;  %v58_v39 = vld [vmem:[%s1352_s0 + $0x158] sm:$0xff]  ;;  %v27_v40 = vld [vmem:[%s1352_s0 + $0x60] sm:$0xff]  ;;  %v84_v44 = vpack.c.bf16 %v26_v37, %v25_v36 }
   0xa   :  { %733 = vmatmul.mubr.msk.bf16.vlgmr.msra.gmra.mrb[0].mxu0 %vm133_vm2, %v80_v20  ;;  %765 = vmatmul.mubr.msk.bf16.vlgmr.msra.gmra.mrb[0].mxu1 %vm133_vm2, %v96_v21  ;;  %v28_v41 = vld [vmem:[%s1352_s0 + $0x68] sm:$0xff]  ;;  %v59_v42 = vld [vmem:[%s1352_s0 + $0x160] sm:$0xff]  ;;  %v100_v45 = vpack.c.bf16 %v58_v39, %v57_v38  ;;  %v29_v48 = vld [vmem:[%s1352_s0 + $0x70] sm:$0xff] }
   0xb   :  { %736 = vmatprep.mubr.msk.bf16.mxu0 %vm133_vm2, %v81_v22  ;;  %768 = vmatprep.mubr.msk.bf16.mxu1 %vm133_vm2, %v97_v23  ;;  %v60_v43 = vld [vmem:[%s1352_s0 + $0x168] sm:$0xff]  ;;  %v85_v46 = vpack.c.bf16 %v28_v41, %v27_v40  ;;  %v30_v49 = vld [vmem:[%s1352_s0 + $0x78] sm:$0xff]  ;;  %v61_v50 = vld [vmem:[%s1352_s0 + $0x170] sm:$0xff] }
   0xc   :  { %v101_v47 = vpack.c.bf16 %v60_v43, %v59_v42  ;;  %v62_v51 = vld [vmem:[%s1352_s0 + $0x178] sm:$0xff]  ;;  %v31_v52 = vld [vmem:[%s1352_s0 + $0x80] sm:$0xff]  ;;  %v32_v53 = vld [vmem:[%s1352_s0 + $0x88] sm:$0xff]  ;;  %v86_v56 = vpack.c.bf16 %v30_v49, %v29_v48 }
   0xd   :  { %v63_v54 = vld [vmem:[%s1352_s0 + $0x180] sm:$0xff]  ;;  %v64_v55 = vld [vmem:[%s1352_s0 + $0x188] sm:$0xff]  ;;  %v102_v57 = vpack.c.bf16 %v62_v51, %v61_v50  ;;  %v87_v58 = vpack.c.bf16 %v32_v53, %v31_v52  ;;  %v33_v60 = vld [vmem:[%s1352_s0 + $0x90] sm:$0xff] }
   0xe   :  { %v103_v59 = vpack.c.bf16 %v64_v55, %v63_v54  ;;  %v34_v61 = vld [vmem:[%s1352_s0 + $0x98] sm:$0xff]  ;;  %v65_v62 = vld [vmem:[%s1352_s0 + $0x190] sm:$0xff]  ;;  %v35_v0 = vld [vmem:[%s1352_s0 + $0xa0] sm:$0xff] }
   0xf   :  { %v66_v63 = vld [vmem:[%s1352_s0 + $0x198] sm:$0xff]  ;;  %v36_v1 = vld [vmem:[%s1352_s0 + $0xa8] sm:$0xff]  ;;  %v67_v2 = vld [vmem:[%s1352_s0 + $0x1a0] sm:$0xff]  ;;  %v88_v4 = vpack.c.bf16 %v34_v61, %v33_v60 }
  0x10   :  { %v68_v3 = vld [vmem:[%s1352_s0 + $0x1a8] sm:$0xff]  ;;  %v104_v5 = vpack.c.bf16 %v66_v63, %v65_v62  ;;  %v89_v6 = vpack.c.bf16 %v36_v1, %v35_v0  ;;  %v37_v8 = vld [vmem:[%s1352_s0 + $0xb0] sm:$0xff]  ;;  %v38_v9 = vld [vmem:[%s1352_s0 + $0xb8] sm:$0xff] }
  0x11   :  { %v105_v7 = vpack.c.bf16 %v68_v3, %v67_v2  ;;  %v69_v10 = vld [vmem:[%s1352_s0 + $0x1b0] sm:$0xff]  ;;  %v70_v11 = vld [vmem:[%s1352_s0 + $0x1b8] sm:$0xff]  ;;  %v39_v12 = vld [vmem:[%s1352_s0 + $0xc0] sm:$0xff]  ;;  %v90_v16 = vpack.c.bf16 %v38_v9, %v37_v8 }
  0x12   :  { %737 = vmatmul.mubr.msk.bf16.gmra.mrb[4].mxu0 %vm133_vm2, %v82_v32  ;;  %769 = vmatmul.mubr.msk.bf16.gmra.mrb[4].mxu1 %vm133_vm2, %v98_v33  ;;  %v40_v13 = vld [vmem:[%s1352_s0 + $0xc8] sm:$0xff]  ;;  %v71_v14 = vld [vmem:[%s1352_s0 + $0x1c0] sm:$0xff]  ;;  %v106_v17 = vpack.c.bf16 %v70_v11, %v69_v10  ;;  %v41_v20 = vld [vmem:[%s1352_s0 + $0xd0] sm:$0xff] }
  0x13   :  { %740 = vmatprep.mubr.msk.bf16.mxu0 %vm133_vm2, %v83_v34  ;;  %772 = vmatprep.mubr.msk.bf16.mxu1 %vm133_vm2, %v99_v35  ;;  %v72_v15 = vld [vmem:[%s1352_s0 + $0x1c8] sm:$0xff]  ;;  %v91_v18 = vpack.c.bf16 %v40_v13, %v39_v12  ;;  %v42_v21 = vld [vmem:[%s1352_s0 + $0xd8] sm:$0xff]  ;;  %v73_v22 = vld [vmem:[%s1352_s0 + $0x1d0] sm:$0xff] }
  0x14   :  { %v107_v19 = vpack.c.bf16 %v72_v15, %v71_v14  ;;  %v74_v23 = vld [vmem:[%s1352_s0 + $0x1d8] sm:$0xff]  ;;  %v43_v24 = vld [vmem:[%s1352_s0 + $0xe0] sm:$0xff]  ;;  %v44_v25 = vld [vmem:[%s1352_s0 + $0xe8] sm:$0xff]  ;;  %v92_v28 = vpack.c.bf16 %v42_v21, %v41_v20 }
  0x15   :  { %v75_v26 = vld [vmem:[%s1352_s0 + $0x1e0] sm:$0xff]  ;;  %v76_v27 = vld [vmem:[%s1352_s0 + $0x1e8] sm:$0xff]  ;;  %v108_v29 = vpack.c.bf16 %v74_v23, %v73_v22  ;;  %v93_v30 = vpack.c.bf16 %v44_v25, %v43_v24  ;;  %v45_v32 = vld [vmem:[%s1352_s0 + $0xf0] sm:$0xff] }
  0x16   :  { %v109_v31 = vpack.c.bf16 %v76_v27, %v75_v26  ;;  %v46_v33 = vld [vmem:[%s1352_s0 + $0xf8] sm:$0xff]  ;;  %v77_v34 = vld [vmem:[%s1352_s0 + $0x1f0] sm:$0xff]  ;;  %v1057_v54 = vld [vmem:[%s1353_s2] ss:$0 sm:$0xff] }
  0x17   :  { %v78_v35 = vld [vmem:[%s1352_s0 + $0x1f8] sm:$0xff]  ;;  %v94_v36 = vpack.c.bf16 %v46_v33, %v45_v32 }
  0x18   :  { %v110_v37 = vpack.c.bf16 %v78_v35, %v77_v34 }
  0x1a   :  { %741 = vmatmul.mubr.msk.bf16.gmra.mrb[8].mxu0 %vm133_vm2, %v84_v44  ;;  %773 = vmatmul.mubr.msk.bf16.gmra.mrb[8].mxu1 %vm133_vm2, %v100_v45 }
  0x1b   :  { %744 = vmatprep.mubr.msk.bf16.mxu0 %vm133_vm2, %v85_v46  ;;  %776 = vmatprep.mubr.msk.bf16.mxu1 %vm133_vm2, %v101_v47 }
  0x22   :  { %745 = vmatmul.mubr.msk.bf16.gmra.mrb[12].mxu0 %vm133_vm2, %v86_v56  ;;  %777 = vmatmul.mubr.msk.bf16.gmra.mrb[12].mxu1 %vm133_vm2, %v102_v57 }
  0x23   :  { %748 = vmatprep.mubr.msk.bf16.mxu0 %vm133_vm2, %v87_v58  ;;  %780 = vmatprep.mubr.msk.bf16.mxu1 %vm133_vm2, %v103_v59 }
  0x2a   :  { %749 = vmatmul.mubr.msk.bf16.gmra.mrb[16].mxu0 %vm133_vm2, %v88_v4  ;;  %781 = vmatmul.mubr.msk.bf16.gmra.mrb[16].mxu1 %vm133_vm2, %v104_v5 }
  0x2b   :  { %752 = vmatprep.mubr.msk.bf16.mxu0 %vm133_vm2, %v89_v6  ;;  %784 = vmatprep.mubr.msk.bf16.mxu1 %vm133_vm2, %v105_v7 }
  0x32   :  { %753 = vmatmul.mubr.msk.bf16.gmra.mrb[20].mxu0 %vm133_vm2, %v90_v16  ;;  %785 = vmatmul.mubr.msk.bf16.gmra.mrb[20].mxu1 %vm133_vm2, %v106_v17 }
  0x33   :  { %756 = vmatprep.mubr.msk.bf16.mxu0 %vm133_vm2, %v91_v18  ;;  %788 = vmatprep.mubr.msk.bf16.mxu1 %vm133_vm2, %v107_v19 }
  0x3a   :  { %757 = vmatmul.mubr.msk.bf16.gmra.mrb[24].mxu0 %vm133_vm2, %v92_v28  ;;  %789 = vmatmul.mubr.msk.bf16.gmra.mrb[24].mxu1 %vm133_vm2, %v108_v29 }
  0x3b   :  { %760 = vmatprep.mubr.msk.bf16.mxu0 %vm133_vm2, %v93_v30  ;;  %792 = vmatprep.mubr.msk.bf16.mxu1 %vm133_vm2, %v109_v31 }
  0x42   :  { %761 = vmatmul.mubr.msk.bf16.gmra.mrb[28].mxu0 %vm133_vm2, %v94_v36  ;;  %793 = vmatmul.mubr.msk.bf16.gmra.mrb[28].mxu1 %vm133_vm2, %v110_v37 }
  0xdd   :  { %v734_v38 = vpop.f32.mrb[0].mxu0  ;;  %v766_v39 = vpop.f32.mrb[0].mxu1 }
  0xde   :  { %v271_v40 = vpop.f32.mrb[1].mxu0  ;;  %v399_v41 = vpop.f32.mrb[1].mxu1  ;;  %v1060_v61 = vadd.f32 %v734_v38, %v1057_v54  ;;  %v1063_v62 = vadd.f32 %v766_v39, %v1057_v54 }
  0xdf   :  { %v735_v42 = vpop.f32.mrb[2].mxu0  ;;  %v767_v43 = vpop.f32.mrb[2].mxu1  ;;  %v1066_v63 = vadd.f32 %v1057_v54, %v271_v40  ;;  %v1069_v0 = vadd.f32 %v1057_v54, %v399_v41 }
  0xe0   :  { %v274_v44 = vpop.f32.mrb[3].mxu0  ;;  %v402_v45 = vpop.f32.mrb[3].mxu1  ;;  %v1072_v3 = vadd.f32 %v735_v42, %v1057_v54  ;;  %v1075_v4 = vadd.f32 %v767_v43, %v1057_v54  ;;  %v528_v7 = vmax.f32 %v1060_v61, 0.0  ;;  %v560_v8 = vmax.f32 %v1063_v62, 0.0 }
  0xe1   :  { %v1078_v5 = vadd.f32 %v1057_v54, %v274_v44  ;;  %v1081_v6 = vadd.f32 %v1057_v54, %v402_v45  ;;  %v526_v9 = vmax.f32 %v1066_v63, 0.0  ;;  %v558_v10 = vmax.f32 %v1069_v0, 0.0 }
  0xe2   :  { %v529_v11 = vmax.f32 %v1072_v3, 0.0  ;;  %v561_v12 = vmax.f32 %v1075_v4, 0.0 }
  0xe3   :  { %v527_v13 = vmax.f32 %v1078_v5, 0.0  ;;  %v559_v14 = vmax.f32 %v1081_v6, 0.0 }
  0xe5   :  { %v738_v46 = vpop.f32.mrb[4].mxu0  ;;  %v770_v47 = vpop.f32.mrb[4].mxu1 }
  0xe6   :  { %v287_v48 = vpop.f32.mrb[5].mxu0  ;;  %v415_v49 = vpop.f32.mrb[5].mxu1  ;;  %v1092_v17 = vadd.f32 %v738_v46, %v1057_v54  ;;  %v1095_v18 = vadd.f32 %v770_v47, %v1057_v54 }
  0xe7   :  { %v739_v50 = vpop.f32.mrb[6].mxu0  ;;  %v771_v51 = vpop.f32.mrb[6].mxu1  ;;  %v1098_v19 = vadd.f32 %v1057_v54, %v287_v48  ;;  %v1101_v20 = vadd.f32 %v1057_v54, %v415_v49 }
  0xe8   :  { %v290_v52 = vpop.f32.mrb[7].mxu0  ;;  %v418_v53 = vpop.f32.mrb[7].mxu1  ;;  %v1104_v23 = vadd.f32 %v739_v50, %v1057_v54  ;;  %v1107_v24 = vadd.f32 %v771_v51, %v1057_v54  ;;  %v532_v39 = vmax.f32 %v1092_v17, 0.0  ;;  %v564_v40 = vmax.f32 %v1095_v18, 0.0 }
  0xe9   :  { %v1110_v25 = vadd.f32 %v1057_v54, %v290_v52  ;;  %v1113_v26 = vadd.f32 %v1057_v54, %v418_v53  ;;  %v530_v41 = vmax.f32 %v1098_v19, 0.0  ;;  %v562_v42 = vmax.f32 %v1101_v20, 0.0 }
  0xeb   :  { %v1357_v19 = vmax.f32 %v1110_v25, 0.0  ;;  %v1358_v20 = vmax.f32 %v1113_v26, 0.0 }
  0xed   :  { %v742_v55 = vpop.f32.mrb[8].mxu0  ;;  %v774_v56 = vpop.f32.mrb[8].mxu1 }
  0xee   :  { %v303_v57 = vpop.f32.mrb[9].mxu0  ;;  %v431_v58 = vpop.f32.mrb[9].mxu1  ;;  %v1120_v29 = vadd.f32 %v742_v55, %v1057_v54  ;;  %v1123_v30 = vadd.f32 %v774_v56, %v1057_v54 }
  0xef   :  { %v743_v59 = vpop.f32.mrb[10].mxu0  ;;  %v775_v60 = vpop.f32.mrb[10].mxu1  ;;  %v1126_v31 = vadd.f32 %v1057_v54, %v303_v57  ;;  %v1129_v32 = vadd.f32 %v1057_v54, %v431_v58 }
  0xf0   :  { %v306_v1 = vpop.f32.mrb[11].mxu0  ;;  %v434_v2 = vpop.f32.mrb[11].mxu1  ;;  %v1136_v35 = vadd.f32 %v743_v59, %v1057_v54  ;;  %v1139_v36 = vadd.f32 %v775_v60, %v1057_v54 }
  0xf1   :  { %v1142_v37 = vadd.f32 %v1057_v54, %v306_v1  ;;  %v1145_v38 = vadd.f32 %v1057_v54, %v434_v2 }
  0xf5   :  { %v746_v15 = vpop.f32.mrb[12].mxu0  ;;  %v778_v16 = vpop.f32.mrb[12].mxu1 }
  0xf6   :  { %v319_v21 = vpop.f32.mrb[13].mxu0  ;;  %v447_v22 = vpop.f32.mrb[13].mxu1  ;;  %v1164_v58 = vadd.f32 %v746_v15, %v1057_v54  ;;  %v1167_v59 = vadd.f32 %v778_v16, %v1057_v54 }
  0xf7   :  { %v1115_v27 = vpop.f32.mrb[14].mxu0  ;;  %v1117_v28 = vpop.f32.mrb[14].mxu1  ;;  %v1172_v52 = vadd.f32 %v1057_v54, %v319_v21  ;;  %v1175_v53 = vadd.f32 %v1057_v54, %v447_v22 }
  0xf8   :  { %v1131_v33 = vpop.f32.mrb[15].mxu0  ;;  %v1133_v34 = vpop.f32.mrb[15].mxu1  ;;  %v1213_v6 = vadd.f32 %v1117_v28, %v1057_v54 }
  0xf9   :  { %v1263_v26 = vadd.f32 %v1057_v54, %v1133_v34 }
  0xfd   :  { %v750_v56 = vpop.f32.mrb[16].mxu0  ;;  %v782_v57 = vpop.f32.mrb[16].mxu1 }
  0xfe   :  { %v344_v60 = vadd.f32 %v750_v56, %v1057_v54  ;;  %v472_v1 = vadd.f32 %v782_v57, %v1057_v54  ;;  %v335_v2 = vpop.f32.mrb[17].mxu0  ;;  %v463_v51 = vpop.f32.mrb[17].mxu1 }
  0xff   :  { %v336_v55 = vadd.f32 %v1057_v54, %v335_v2  ;;  %v464_v15 = vadd.f32 %v1057_v54, %v463_v51  ;;  %v751_v50 = vpop.f32.mrb[18].mxu0  ;;  %v783_v49 = vpop.f32.mrb[18].mxu1 }
 0x100   :  { %v544_v16 = vmax.f32 %v344_v60, 0.0  ;;  %v576_v48 = vmax.f32 %v472_v1, 0.0  ;;  %v347_v56 = vadd.f32 %v751_v50, %v1057_v54  ;;  %v475_v57 = vadd.f32 %v783_v49, %v1057_v54  ;;  %v338_v47 = vpop.f32.mrb[19].mxu0  ;;  %v466_v46 = vpop.f32.mrb[19].mxu1 }
 0x101   :  { %v542_v45 = vmax.f32 %v336_v55, 0.0  ;;  %v574_v21 = vmax.f32 %v464_v15, 0.0  ;;  %v339_v44 = vadd.f32 %v1057_v54, %v338_v47  ;;  %v467_v22 = vadd.f32 %v1057_v54, %v466_v46 }
 0x102   :  { %v592_v2 = vmax.f32 %v528_v7, %v544_v16  ;;  %v608_v51 = vmax.f32 %v560_v8, %v576_v48  ;;  %v545_v60 = vmax.f32 %v347_v56, 0.0  ;;  %v577_v1 = vmax.f32 %v475_v57, 0.0 }
 0x103   :  { %v590_v50 = vmax.f32 %v526_v9, %v542_v45  ;;  %v606_v49 = vmax.f32 %v558_v10, %v574_v21  ;;  %v543_v55 = vmax.f32 %v339_v44, 0.0  ;;  %v575_v15 = vmax.f32 %v467_v22, 0.0 }
 0x104   :  { %v540_v47 = vmax.f32 %v1164_v58, 0.0  ;;  %v624_v43 = vmax.f32 %v592_v2, %v608_v51  ;;  %v593_v61 = vmax.f32 %v529_v11, %v545_v60  ;;  %v609_v62 = vmax.f32 %v561_v12, %v577_v1 }
 0x105   :  { %v572_v7 = vmax.f32 %v1167_v59, 0.0  ;;  %v622_v8 = vmax.f32 %v590_v50, %v606_v49  ;;  %v591_v63 = vmax.f32 %v527_v13, %v543_v55  ;;  %v607_v0 = vmax.f32 %v559_v14, %v575_v15  ;;  %v754_v9 = vpop.f32.mrb[20].mxu0  ;;  %v786_v10 = vpop.f32.mrb[20].mxu1 }
 0x106   :  { %v1203_v44 = vadd.f32 %v1115_v27, %v1057_v54  ;;  %641 = vst.msk [vmem:[%s1354_s3 + $0x10] sm:$0xff] %vm638_vm3, %v624_v43  ;;  %v625_v3 = vmax.f32 %v593_v61, %v609_v62  ;;  %v360_v4 = vadd.f32 %v754_v9, %v1057_v54  ;;  %v488_v5 = vadd.f32 %v786_v10, %v1057_v54  ;;  %v351_v11 = vpop.f32.mrb[21].mxu0  ;;  %v479_v12 = vpop.f32.mrb[21].mxu1 }
 0x107   :  { %639 = vst.msk [vmem:[%s1354_s3] sm:$0xff] %vm638_vm3, %v622_v8  ;;  %v623_v13 = vmax.f32 %v591_v63, %v607_v0  ;;  %v352_v14 = vadd.f32 %v1057_v54, %v351_v11  ;;  %v480_v27 = vadd.f32 %v1057_v54, %v479_v12  ;;  %v755_v43 = vpop.f32.mrb[22].mxu0  ;;  %v787_v45 = vpop.f32.mrb[22].mxu1  ;;  %v538_v8 = vmax.f32 %v1172_v52, 0.0 }
 0x108   :  { %642 = vst.msk [vmem:[%s1354_s3 + $0x18] sm:$0xff] %vm638_vm3, %v625_v3  ;;  %v548_v46 = vmax.f32 %v360_v4, 0.0  ;;  %v580_v28 = vmax.f32 %v488_v5, 0.0  ;;  %v363_v48 = vadd.f32 %v755_v43, %v1057_v54  ;;  %v491_v16 = vadd.f32 %v787_v45, %v1057_v54  ;;  %v354_v56 = vpop.f32.mrb[23].mxu0  ;;  %v482_v57 = vpop.f32.mrb[23].mxu1 }
 0x109   :  { %640 = vst.msk [vmem:[%s1354_s3 + $0x8] sm:$0xff] %vm638_vm3, %v623_v13  ;;  %v546_v21 = vmax.f32 %v352_v14, 0.0  ;;  %v578_v22 = vmax.f32 %v480_v27, 0.0  ;;  %v355_v2 = vadd.f32 %v1057_v54, %v354_v56  ;;  %v483_v51 = vadd.f32 %v1057_v54, %v482_v57 }
 0x10a   :  { %v596_v60 = vmax.f32 %v532_v39, %v548_v46  ;;  %v612_v1 = vmax.f32 %v564_v40, %v580_v28  ;;  %v549_v50 = vmax.f32 %v363_v48, 0.0  ;;  %v581_v49 = vmax.f32 %v491_v16, 0.0 }
 0x10b   :  { %v594_v55 = vmax.f32 %v530_v41, %v546_v21  ;;  %v610_v15 = vmax.f32 %v562_v42, %v578_v22  ;;  %v547_v61 = vmax.f32 %v355_v2, 0.0  ;;  %v579_v62 = vmax.f32 %v483_v51, 0.0 }
 0x10c   :  { %v628_v63 = vmax.f32 %v596_v60, %v612_v1  ;;  %v1355_v0 = vmax.f32 %v1104_v23, 0.0  ;;  %v1356_v39 = vmax.f32 %v1107_v24, 0.0  ;;  %v570_v40 = vmax.f32 %v1175_v53, 0.0 }
 0x10d   :  { %v626_v9 = vmax.f32 %v594_v55, %v610_v15  ;;  %v595_v41 = vmax.f32 %v1357_v19, %v547_v61  ;;  %v611_v42 = vmax.f32 %v1358_v20, %v579_v62  ;;  %v758_v10 = vpop.f32.mrb[24].mxu0  ;;  %v790_v3 = vpop.f32.mrb[24].mxu1  ;;  %v1253_v4 = vadd.f32 %v1057_v54, %v1131_v33 }
 0x10e   :  { %v597_v17 = vmax.f32 %v1355_v0, %v549_v50  ;;  %v613_v18 = vmax.f32 %v1356_v39, %v581_v49  ;;  %645 = vst.msk [vmem:[%s1354_s3 + $0x30] sm:$0xff] %vm638_vm3, %v628_v63  ;;  %v376_v24 = vadd.f32 %v758_v10, %v1057_v54  ;;  %v504_v25 = vadd.f32 %v790_v3, %v1057_v54  ;;  %v367_v5 = vpop.f32.mrb[25].mxu0  ;;  %v495_v11 = vpop.f32.mrb[25].mxu1 }
 0x10f   :  { %643 = vst.msk [vmem:[%s1354_s3 + $0x20] sm:$0xff] %vm638_vm3, %v626_v9  ;;  %v627_v33 = vmax.f32 %v595_v41, %v611_v42  ;;  %v368_v12 = vadd.f32 %v1057_v54, %v367_v5  ;;  %v496_v13 = vadd.f32 %v1057_v54, %v495_v11  ;;  %v759_v14 = vpop.f32.mrb[26].mxu0  ;;  %v791_v27 = vpop.f32.mrb[26].mxu1  ;;  %v1359_v22 = vmax.f32 %v1120_v29, 0.0 }
 0x110   :  { %v629_v23 = vmax.f32 %v597_v17, %v613_v18  ;;  %v552_v43 = vmax.f32 %v376_v24, 0.0  ;;  %v584_v34 = vmax.f32 %v504_v25, 0.0  ;;  %v379_v45 = vadd.f32 %v759_v14, %v1057_v54  ;;  %v370_v28 = vpop.f32.mrb[27].mxu0  ;;  %v498_v48 = vpop.f32.mrb[27].mxu1 }
 0x111   :  { %v507_v46 = vadd.f32 %v791_v27, %v1057_v54  ;;  %644 = vst.msk [vmem:[%s1354_s3 + $0x28] sm:$0xff] %vm638_vm3, %v627_v33  ;;  %v550_v16 = vmax.f32 %v368_v12, 0.0  ;;  %v582_v56 = vmax.f32 %v496_v13, 0.0  ;;  %v371_v57 = vadd.f32 %v1057_v54, %v370_v28 }
 0x112   :  { %646 = vst.msk [vmem:[%s1354_s3 + $0x38] sm:$0xff] %vm638_vm3, %v629_v23  ;;  %v499_v21 = vadd.f32 %v1057_v54, %v498_v48  ;;  %v600_v2 = vmax.f32 %v1359_v22, %v552_v43  ;;  %v1360_v51 = vmax.f32 %v1123_v30, 0.0  ;;  %v553_v1 = vmax.f32 %v379_v45, 0.0 }
 0x113   :  { %v585_v50 = vmax.f32 %v507_v46, 0.0  ;;  %v1361_v49 = vmax.f32 %v1126_v31, 0.0  ;;  %v1362_v15 = vmax.f32 %v1129_v32, 0.0  ;;  %v551_v62 = vmax.f32 %v371_v57, 0.0 }
 0x114   :  { %v616_v60 = vmax.f32 %v1360_v51, %v584_v34  ;;  %v583_v63 = vmax.f32 %v499_v21, 0.0  ;;  %v541_v0 = vmax.f32 %v1203_v44, 0.0  ;;  %v1363_v39 = vmax.f32 %v1136_v35, 0.0 }
 0x115   :  { %v598_v55 = vmax.f32 %v1361_v49, %v550_v16  ;;  %v614_v61 = vmax.f32 %v1362_v15, %v582_v56  ;;  %v1364_v18 = vmax.f32 %v1139_v36, 0.0  ;;  %v573_v9 = vmax.f32 %v1213_v6, 0.0  ;;  %v762_v42 = vpop.f32.mrb[28].mxu0  ;;  %v794_v10 = vpop.f32.mrb[28].mxu1 }
 0x116   :  { %v632_v17 = vmax.f32 %v600_v2, %v616_v60  ;;  %v601_v29 = vmax.f32 %v1363_v39, %v553_v1  ;;  %v1365_v31 = vmax.f32 %v1142_v37, 0.0  ;;  %v1366_v32 = vmax.f32 %v1145_v38, 0.0  ;;  %v383_v3 = vpop.f32.mrb[29].mxu0  ;;  %v511_v37 = vpop.f32.mrb[29].mxu1 }
 0x117   :  { %v617_v30 = vmax.f32 %v1364_v18, %v585_v50  ;;  %v630_v19 = vmax.f32 %v598_v55, %v614_v61  ;;  %v539_v44 = vmax.f32 %v1253_v4, 0.0  ;;  %v392_v36 = vadd.f32 %v762_v42, %v1057_v54  ;;  %v763_v25 = vpop.f32.mrb[30].mxu0  ;;  %v795_v5 = vpop.f32.mrb[30].mxu1 }
 0x118   :  { %v599_v41 = vmax.f32 %v1365_v31, %v551_v62  ;;  %v615_v20 = vmax.f32 %v1366_v32, %v583_v63  ;;  %649 = vst.msk [vmem:[%s1354_s3 + $0x50] sm:$0xff] %vm638_vm3, %v632_v17  ;;  %v520_v6 = vadd.f32 %v794_v10, %v1057_v54  ;;  %v571_v23 = vmax.f32 %v1263_v26, 0.0  ;;  %v386_v13 = vpop.f32.mrb[31].mxu0  ;;  %v514_v14 = vpop.f32.mrb[31].mxu1 }
 0x119   :  { %v633_v35 = vmax.f32 %v601_v29, %v617_v30  ;;  %647 = vst.msk [vmem:[%s1354_s3 + $0x40] sm:$0xff] %vm638_vm3, %v630_v19  ;;  %v384_v4 = vadd.f32 %v1057_v54, %v383_v3  ;;  %v512_v24 = vadd.f32 %v1057_v54, %v511_v37  ;;  %v556_v11 = vmax.f32 %v392_v36, 0.0 }
 0x11a   :  { %v631_v38 = vmax.f32 %v599_v41, %v615_v20  ;;  %v588_v33 = vmax.f32 %v520_v6, 0.0  ;;  %v395_v26 = vadd.f32 %v763_v25, %v1057_v54  ;;  %v523_v12 = vadd.f32 %v795_v5, %v1057_v54 }
 0x11b   :  { %650 = vst.msk [vmem:[%s1354_s3 + $0x58] sm:$0xff] %vm638_vm3, %v633_v35  ;;  %v554_v27 = vmax.f32 %v384_v4, 0.0  ;;  %v586_v43 = vmax.f32 %v512_v24, 0.0  ;;  %v387_v34 = vadd.f32 %v1057_v54, %v386_v13  ;;  %v515_v45 = vadd.f32 %v1057_v54, %v514_v14 }
 0x11c   :  { %648 = vst.msk [vmem:[%s1354_s3 + $0x48] sm:$0xff] %vm638_vm3, %v631_v38  ;;  %v604_v46 = vmax.f32 %v540_v47, %v556_v11  ;;  %v620_v28 = vmax.f32 %v572_v7, %v588_v33  ;;  %v557_v48 = vmax.f32 %v395_v26, 0.0  ;;  %v589_v16 = vmax.f32 %v523_v12, 0.0 }
 0x11d   :  { %v602_v56 = vmax.f32 %v538_v8, %v554_v27  ;;  %v618_v57 = vmax.f32 %v570_v40, %v586_v43  ;;  %v555_v21 = vmax.f32 %v387_v34, 0.0  ;;  %v587_v22 = vmax.f32 %v515_v45, 0.0 }
 0x11e   :  { %v636_v2 = vmax.f32 %v604_v46, %v620_v28  ;;  %v605_v51 = vmax.f32 %v541_v0, %v557_v48  ;;  %v621_v60 = vmax.f32 %v573_v9, %v589_v16 }
 0x11f   :  { %v634_v54 = vmax.f32 %v602_v56, %v618_v57  ;;  %v603_v1 = vmax.f32 %v539_v44, %v555_v21  ;;  %v619_v58 = vmax.f32 %v571_v23, %v587_v22 }
 0x120   :  { %653 = vst.msk [vmem:[%s1354_s3 + $0x70] sm:$0xff] %vm638_vm3, %v636_v2  ;;  %v637_v59 = vmax.f32 %v605_v51, %v621_v60 }
 0x121   :  { %651 = vst.msk [vmem:[%s1354_s3 + $0x60] sm:$0xff] %vm638_vm3, %v634_v54  ;;  %v635_v52 = vmax.f32 %v603_v1, %v619_v58 }
 0x122   :  { %654 = vst.msk [vmem:[%s1354_s3 + $0x78] sm:$0xff] %vm638_vm3, %v637_v59 }
 0x123   :  { %652 = vst.msk [vmem:[%s1354_s3 + $0x68] sm:$0xff] %vm638_vm3, %v635_v52 }

// kernel: forward.3
= control target key start
LH: loop header
LB: loop body
LE: loop exit
PB: predicated region body
PF: predicated region fallthrough
CT: control target
= control target key end

     0   :  { %s12458_s0 = inlined_call_operand.vmem [shape: f32[16,30], index: 0, kind: input, shape index: {}]   ;;  %s12459_s1 = inlined_call_operand.vmem [shape: bf16[30,512], index: 1, kind: input, shape index: {}]   ;;  %s12460_s2 = inlined_call_operand.vmem [shape: bf16[128,512], index: 2, kind: input, shape index: {}]   ;;  %s12461_s3 = inlined_call_operand.vmem [shape: f32[1,512], index: 3, kind: input, shape index: {}]   ;;  %s12462_s4 = inlined_call_operand.vmem [shape: bf16[128,512], index: 4, kind: input, shape index: {}]   ;;  %s12463_s5 = inlined_call_operand.vmem [shape: bf16[128,512], index: 5, kind: input, shape index: {}]   ;;  %s12464_s6 = inlined_call_operand.vmem [shape: f32[1,512], index: 6, kind: input, shape index: {}]   ;;  %s12465_s7 = inlined_call_operand.vmem [shape: f32[2,1024], index: 7, kind: input, shape index: {}]   ;;  %s12466_s8 = inlined_call_operand.vmem [shape: bf16[1024,1024], index: 8, kind: input, shape index: {}]   ;;  %s12467_s9 = inlined_call_operand.vmem [shape: f32[1,1024], index: 9, kind: input, shape index: {}]   ;;  %s12468_s10 = inlined_call_operand.vmem [shape: bf16[128,512], index: 10, kind: input, shape index: {}]   ;;  %s12469_s11 = inlined_call_operand.vmem [shape: bf16[1024,512], index: 11, kind: input, shape index: {}]   ;;  %s12470_s12 = inlined_call_operand.vmem [shape: f32[1,512], index: 12, kind: input, shape index: {}]   ;;  %s12471_s13 = inlined_call_operand.vmem [shape: bf16[512,64], index: 13, kind: input, shape index: {}]   ;;  %s12472_s14 = inlined_call_operand.vmem [shape: f32[1,64], index: 14, kind: input, shape index: {}]   ;;  %s12473_s15 = inlined_call_operand.vmem [shape: bf16[64,18], index: 15, kind: input, shape index: {}]   ;;  %s12474_s16 = inlined_call_operand.vmem [shape: f32[1,18], index: 16, kind: input, shape index: {}]   ;;  %s12475_s17 = inlined_call_operand.hbm [shape: f32[2,18], index: 17, kind: output, shape index: {}]  }
   0x1   :  { %12486 = sst [smem:[#allocation13_spill]] %s12458_s0 }
   0x2   :  { %12487 = sst [smem:[#allocation14_spill]] %s12459_s1 }
   0x3   :  { %12488 = sst [smem:[#allocation15_spill]] %s12466_s8 }
   0x4   :  { %12489 = sst [smem:[#allocation16_spill]] %s12474_s16 }
   0x5   :  { %12490 = sst [smem:[#allocation17_spill]] %s12475_s17 }
   0x6   :  { %22 = vsyncpa [#allocation6], 0  ;;  %s9787_s24 = smov 0   ;;  %s9789_s25 = smov 0  }
   0x7   :  { %s9791_s26 = smov 0  }
   0x8 LB: > { %12491 = sst [smem:[#allocation8_spill]] %s9685_s25  ;;  %s9803_s27 = sadd.s32 4294967295, %s9689_s26   ;;  %s9689_s26 = sphi %s9791_s26, %s12506_s26   ;;  %s9685_s25 = sphi %s9789_s25, %s12508_s25   ;;  %s9681_s24 = sphi %s9787_s24, %s12507_s24  }
   0x9   : > { %s9806_s28 = sadd.s32 1, %s9689_s26   ;;  %s203_s0 = sadd.s32 1, %s9685_s25 }
   0xa   : > { %12492 = sst [smem:[#allocation9_spill]] %s9806_s28  ;;  %s200_s29 = ssub.s32 %s9689_s26, %s9806_s28 }
   0xb   : > { %p201_p0 = scmp.eq.s32.totalorder %s200_s29, 0  ;;  %p210_p1 = scmp.ne.s32.totalorder %s9685_s25, %s9681_s24 }
   0xc   : > { %p211_p2 = scmp.eq.s32.totalorder %s9689_s26, 0  ;;  %p7737_p4 = scmp.ge.s32.totalorder %s9689_s26, 2 }
   0xd   : > { %s9815_s30 = scalar_select %p201_p0, %s9685_s25, %s203_s0  }
   0xe   : > { %p212_p3 = por %p211_p2, %p210_p1  ;;  %477 = sbr.rel (%p7737_p4) target bundleno = 159 (0x9f), region = 72 }
   0xf   : > { %12493 = sst [smem:[#allocation10_spill]] %s9815_s30 }
  0x15   : > { %480 = sbr.rel (!%p212_p3) target bundleno = 159 (0x9f), region = 76  ;;  %s482_s18 = sand.u32 (%p212_p3), 1, %s9685_s25  }
  0x16   : > { %s8364_s19 = sshll.u32 (%p212_p3), %s9689_s26, 4  ;;  %s7738_s1 = sshll.u32 (%p212_p3), %s482_s18, 11 }
  0x17   : > { %s12494_s8 = sld [smem:[#allocation15_spill]] (%p212_p3)  ;;  %s9828_s23 = scalar_lea.vmem (%p212_p3), [#allocation4], %s7738_s1 }
  0x1d   : > { %s9823_s22 = scalar_lea.vmem %s12494_s8, %s8364_s19 }
  0x1e   : > { %v500_v0 = vld [vmem:[%s9823_s22] sm:$0xff]  ;;  %v502_v1 = vld [vmem:[%s9823_s22 + $0x8] sm:$0xff] }
  0x1f   : > { %v504_v2 = vld [vmem:[%s9823_s22 + $0x20] sm:$0xff]  ;;  %501 = vst [vmem:[%s9828_s23] sm:$0xff] %v500_v0  ;;  %503 = vst [vmem:[%s9828_s23 + $0x8] sm:$0xff] %v502_v1  ;;  %v506_v3 = vld [vmem:[%s9823_s22 + $0x28] sm:$0xff] }
  0x20   : > { %505 = vst [vmem:[%s9828_s23 + $0x10] sm:$0xff] %v504_v2  ;;  %v508_v4 = vld [vmem:[%s9823_s22 + $0x40] sm:$0xff]  ;;  %v510_v5 = vld [vmem:[%s9823_s22 + $0x48] sm:$0xff]  ;;  %507 = vst [vmem:[%s9828_s23 + $0x18] sm:$0xff] %v506_v3 }
  0x21   : > { %509 = vst [vmem:[%s9828_s23 + $0x20] sm:$0xff] %v508_v4  ;;  %511 = vst [vmem:[%s9828_s23 + $0x28] sm:$0xff] %v510_v5  ;;  %v512_v6 = vld [vmem:[%s9823_s22 + $0x60] sm:$0xff]  ;;  %v514_v7 = vld [vmem:[%s9823_s22 + $0x68] sm:$0xff] }
  0x22   : > { %v516_v8 = vld [vmem:[%s9823_s22 + $0x80] sm:$0xff]  ;;  %513 = vst [vmem:[%s9828_s23 + $0x30] sm:$0xff] %v512_v6  ;;  %515 = vst [vmem:[%s9828_s23 + $0x38] sm:$0xff] %v514_v7  ;;  %v518_v9 = vld [vmem:[%s9823_s22 + $0x88] sm:$0xff] }
  0x23   : > { %517 = vst [vmem:[%s9828_s23 + $0x40] sm:$0xff] %v516_v8  ;;  %v520_v10 = vld [vmem:[%s9823_s22 + $0xa0] sm:$0xff]  ;;  %v522_v11 = vld [vmem:[%s9823_s22 + $0xa8] sm:$0xff]  ;;  %519 = vst [vmem:[%s9828_s23 + $0x48] sm:$0xff] %v518_v9 }
  0x24   : > { %521 = vst [vmem:[%s9828_s23 + $0x50] sm:$0xff] %v520_v10  ;;  %523 = vst [vmem:[%s9828_s23 + $0x58] sm:$0xff] %v522_v11  ;;  %v524_v12 = vld [vmem:[%s9823_s22 + $0xc0] sm:$0xff]  ;;  %v526_v13 = vld [vmem:[%s9823_s22 + $0xc8] sm:$0xff] }
  0x25   : > { %v528_v14 = vld [vmem:[%s9823_s22 + $0xe0] sm:$0xff]  ;;  %525 = vst [vmem:[%s9828_s23 + $0x60] sm:$0xff] %v524_v12  ;;  %527 = vst [vmem:[%s9828_s23 + $0x68] sm:$0xff] %v526_v13  ;;  %v530_v15 = vld [vmem:[%s9823_s22 + $0xe8] sm:$0xff] }
  0x26   : > { %529 = vst [vmem:[%s9828_s23 + $0x70] sm:$0xff] %v528_v14  ;;  %v532_v16 = vld [vmem:[%s9823_s22 + $0x100] sm:$0xff]  ;;  %v534_v17 = vld [vmem:[%s9823_s22 + $0x108] sm:$0xff]  ;;  %531 = vst [vmem:[%s9828_s23 + $0x78] sm:$0xff] %v530_v15 }
  0x27   : > { %533 = vst [vmem:[%s9828_s23 + $0x80] sm:$0xff] %v532_v16  ;;  %535 = vst [vmem:[%s9828_s23 + $0x88] sm:$0xff] %v534_v17  ;;  %v536_v18 = vld [vmem:[%s9823_s22 + $0x120] sm:$0xff]  ;;  %v538_v19 = vld [vmem:[%s9823_s22 + $0x128] sm:$0xff] }
  0x28   : > { %v540_v20 = vld [vmem:[%s9823_s22 + $0x140] sm:$0xff]  ;;  %537 = vst [vmem:[%s9828_s23 + $0x90] sm:$0xff] %v536_v18  ;;  %539 = vst [vmem:[%s9828_s23 + $0x98] sm:$0xff] %v538_v19  ;;  %v542_v21 = vld [vmem:[%s9823_s22 + $0x148] sm:$0xff] }
  0x29   : > { %541 = vst [vmem:[%s9828_s23 + $0xa0] sm:$0xff] %v540_v20  ;;  %v544_v22 = vld [vmem:[%s9823_s22 + $0x160] sm:$0xff]  ;;  %v546_v23 = vld [vmem:[%s9823_s22 + $0x168] sm:$0xff]  ;;  %543 = vst [vmem:[%s9828_s23 + $0xa8] sm:$0xff] %v542_v21 }
  0x2a   : > { %545 = vst [vmem:[%s9828_s23 + $0xb0] sm:$0xff] %v544_v22  ;;  %547 = vst [vmem:[%s9828_s23 + $0xb8] sm:$0xff] %v546_v23  ;;  %v548_v24 = vld [vmem:[%s9823_s22 + $0x180] sm:$0xff]  ;;  %v550_v25 = vld [vmem:[%s9823_s22 + $0x188] sm:$0xff] }
  0x2b   : > { %v552_v26 = vld [vmem:[%s9823_s22 + $0x1a0] sm:$0xff]  ;;  %549 = vst [vmem:[%s9828_s23 + $0xc0] sm:$0xff] %v548_v24  ;;  %551 = vst [vmem:[%s9828_s23 + $0xc8] sm:$0xff] %v550_v25  ;;  %v554_v27 = vld [vmem:[%s9823_s22 + $0x1a8] sm:$0xff] }
  0x2c   : > { %553 = vst [vmem:[%s9828_s23 + $0xd0] sm:$0xff] %v552_v26  ;;  %v556_v28 = vld [vmem:[%s9823_s22 + $0x1c0] sm:$0xff]  ;;  %v558_v29 = vld [vmem:[%s9823_s22 + $0x1c8] sm:$0xff]  ;;  %555 = vst [vmem:[%s9828_s23 + $0xd8] sm:$0xff] %v554_v27 }
  0x2d   : > { %557 = vst [vmem:[%s9828_s23 + $0xe0] sm:$0xff] %v556_v28  ;;  %559 = vst [vmem:[%s9828_s23 + $0xe8] sm:$0xff] %v558_v29  ;;  %v560_v30 = vld [vmem:[%s9823_s22 + $0x1e0] sm:$0xff]  ;;  %v562_v31 = vld [vmem:[%s9823_s22 + $0x1e8] sm:$0xff] }
  0x2e   : > { %v564_v32 = vld [vmem:[%s9823_s22 + $0x200] sm:$0xff]  ;;  %561 = vst [vmem:[%s9828_s23 + $0xf0] sm:$0xff] %v560_v30  ;;  %563 = vst [vmem:[%s9828_s23 + $0xf8] sm:$0xff] %v562_v31  ;;  %v566_v33 = vld [vmem:[%s9823_s22 + $0x208] sm:$0xff] }
  0x2f   : > { %565 = vst [vmem:[%s9828_s23 + $0x100] sm:$0xff] %v564_v32  ;;  %v568_v34 = vld [vmem:[%s9823_s22 + $0x220] sm:$0xff]  ;;  %v570_v35 = vld [vmem:[%s9823_s22 + $0x228] sm:$0xff]  ;;  %567 = vst [vmem:[%s9828_s23 + $0x108] sm:$0xff] %v566_v33 }
  0x30   : > { %569 = vst [vmem:[%s9828_s23 + $0x110] sm:$0xff] %v568_v34  ;;  %571 = vst [vmem:[%s9828_s23 + $0x118] sm:$0xff] %v570_v35  ;;  %v572_v36 = vld [vmem:[%s9823_s22 + $0x240] sm:$0xff]  ;;  %v574_v37 = vld [vmem:[%s9823_s22 + $0x248] sm:$0xff] }
  0x31   : > { %v576_v38 = vld [vmem:[%s9823_s22 + $0x260] sm:$0xff]  ;;  %573 = vst [vmem:[%s9828_s23 + $0x120] sm:$0xff] %v572_v36  ;;  %575 = vst [vmem:[%s9828_s23 + $0x128] sm:$0xff] %v574_v37  ;;  %v578_v39 = vld [vmem:[%s9823_s22 + $0x268] sm:$0xff] }
  0x32   : > { %577 = vst [vmem:[%s9828_s23 + $0x130] sm:$0xff] %v576_v38  ;;  %v580_v40 = vld [vmem:[%s9823_s22 + $0x280] sm:$0xff]  ;;  %v582_v41 = vld [vmem:[%s9823_s22 + $0x288] sm:$0xff]  ;;  %579 = vst [vmem:[%s9828_s23 + $0x138] sm:$0xff] %v578_v39 }
  0x33   : > { %581 = vst [vmem:[%s9828_s23 + $0x140] sm:$0xff] %v580_v40  ;;  %583 = vst [vmem:[%s9828_s23 + $0x148] sm:$0xff] %v582_v41  ;;  %v584_v42 = vld [vmem:[%s9823_s22 + $0x2a0] sm:$0xff]  ;;  %v586_v43 = vld [vmem:[%s9823_s22 + $0x2a8] sm:$0xff] }
  0x34   : > { %v588_v44 = vld [vmem:[%s9823_s22 + $0x2c0] sm:$0xff]  ;;  %585 = vst [vmem:[%s9828_s23 + $0x150] sm:$0xff] %v584_v42  ;;  %587 = vst [vmem:[%s9828_s23 + $0x158] sm:$0xff] %v586_v43  ;;  %v590_v45 = vld [vmem:[%s9823_s22 + $0x2c8] sm:$0xff] }
  0x35   : > { %589 = vst [vmem:[%s9828_s23 + $0x160] sm:$0xff] %v588_v44  ;;  %v592_v46 = vld [vmem:[%s9823_s22 + $0x2e0] sm:$0xff]  ;;  %v594_v47 = vld [vmem:[%s9823_s22 + $0x2e8] sm:$0xff]  ;;  %591 = vst [vmem:[%s9828_s23 + $0x168] sm:$0xff] %v590_v45 }
  0x36   : > { %593 = vst [vmem:[%s9828_s23 + $0x170] sm:$0xff] %v592_v46  ;;  %595 = vst [vmem:[%s9828_s23 + $0x178] sm:$0xff] %v594_v47  ;;  %v596_v48 = vld [vmem:[%s9823_s22 + $0x300] sm:$0xff]  ;;  %v598_v49 = vld [vmem:[%s9823_s22 + $0x308] sm:$0xff] }
  0x37   : > { %v600_v50 = vld [vmem:[%s9823_s22 + $0x320] sm:$0xff]  ;;  %597 = vst [vmem:[%s9828_s23 + $0x180] sm:$0xff] %v596_v48  ;;  %599 = vst [vmem:[%s9828_s23 + $0x188] sm:$0xff] %v598_v49  ;;  %v602_v51 = vld [vmem:[%s9823_s22 + $0x328] sm:$0xff] }
  0x38   : > { %601 = vst [vmem:[%s9828_s23 + $0x190] sm:$0xff] %v600_v50  ;;  %v604_v52 = vld [vmem:[%s9823_s22 + $0x340] sm:$0xff]  ;;  %v606_v53 = vld [vmem:[%s9823_s22 + $0x348] sm:$0xff]  ;;  %603 = vst [vmem:[%s9828_s23 + $0x198] sm:$0xff] %v602_v51 }
  0x39   : > { %605 = vst [vmem:[%s9828_s23 + $0x1a0] sm:$0xff] %v604_v52  ;;  %607 = vst [vmem:[%s9828_s23 + $0x1a8] sm:$0xff] %v606_v53  ;;  %v608_v54 = vld [vmem:[%s9823_s22 + $0x360] sm:$0xff]  ;;  %v610_v55 = vld [vmem:[%s9823_s22 + $0x368] sm:$0xff] }
  0x3a   : > { %v612_v56 = vld [vmem:[%s9823_s22 + $0x380] sm:$0xff]  ;;  %609 = vst [vmem:[%s9828_s23 + $0x1b0] sm:$0xff] %v608_v54  ;;  %611 = vst [vmem:[%s9828_s23 + $0x1b8] sm:$0xff] %v610_v55  ;;  %v614_v57 = vld [vmem:[%s9823_s22 + $0x388] sm:$0xff] }
  0x3b   : > { %613 = vst [vmem:[%s9828_s23 + $0x1c0] sm:$0xff] %v612_v56  ;;  %v616_v58 = vld [vmem:[%s9823_s22 + $0x3a0] sm:$0xff]  ;;  %v618_v59 = vld [vmem:[%s9823_s22 + $0x3a8] sm:$0xff]  ;;  %615 = vst [vmem:[%s9828_s23 + $0x1c8] sm:$0xff] %v614_v57 }
  0x3c   : > { %617 = vst [vmem:[%s9828_s23 + $0x1d0] sm:$0xff] %v616_v58  ;;  %619 = vst [vmem:[%s9828_s23 + $0x1d8] sm:$0xff] %v618_v59  ;;  %v620_v60 = vld [vmem:[%s9823_s22 + $0x3c0] sm:$0xff]  ;;  %v622_v61 = vld [vmem:[%s9823_s22 + $0x3c8] sm:$0xff] }
  0x3d   : > { %v624_v62 = vld [vmem:[%s9823_s22 + $0x3e0] sm:$0xff]  ;;  %621 = vst [vmem:[%s9828_s23 + $0x1e0] sm:$0xff] %v620_v60  ;;  %623 = vst [vmem:[%s9828_s23 + $0x1e8] sm:$0xff] %v622_v61  ;;  %v626_v63 = vld [vmem:[%s9823_s22 + $0x3e8] sm:$0xff] }
  0x3e   : > { %625 = vst [vmem:[%s9828_s23 + $0x1f0] sm:$0xff] %v624_v62  ;;  %v628_v0 = vld [vmem:[%s9823_s22 + $0x400] sm:$0xff]  ;;  %v630_v1 = vld [vmem:[%s9823_s22 + $0x408] sm:$0xff]  ;;  %627 = vst [vmem:[%s9828_s23 + $0x1f8] sm:$0xff] %v626_v63 }
  0x3f   : > { %629 = vst [vmem:[%s9828_s23 + $0x200] sm:$0xff] %v628_v0  ;;  %631 = vst [vmem:[%s9828_s23 + $0x208] sm:$0xff] %v630_v1  ;;  %v632_v2 = vld [vmem:[%s9823_s22 + $0x420] sm:$0xff]  ;;  %v634_v3 = vld [vmem:[%s9823_s22 + $0x428] sm:$0xff] }
  0x40   : > { %v636_v4 = vld [vmem:[%s9823_s22 + $0x440] sm:$0xff]  ;;  %633 = vst [vmem:[%s9828_s23 + $0x210] sm:$0xff] %v632_v2  ;;  %635 = vst [vmem:[%s9828_s23 + $0x218] sm:$0xff] %v634_v3  ;;  %v638_v5 = vld [vmem:[%s9823_s22 + $0x448] sm:$0xff] }
  0x41   : > { %637 = vst [vmem:[%s9828_s23 + $0x220] sm:$0xff] %v636_v4  ;;  %v640_v6 = vld [vmem:[%s9823_s22 + $0x460] sm:$0xff]  ;;  %v642_v7 = vld [vmem:[%s9823_s22 + $0x468] sm:$0xff]  ;;  %639 = vst [vmem:[%s9828_s23 + $0x228] sm:$0xff] %v638_v5 }
  0x42   : > { %641 = vst [vmem:[%s9828_s23 + $0x230] sm:$0xff] %v640_v6  ;;  %643 = vst [vmem:[%s9828_s23 + $0x238] sm:$0xff] %v642_v7  ;;  %v644_v8 = vld [vmem:[%s9823_s22 + $0x480] sm:$0xff]  ;;  %v646_v9 = vld [vmem:[%s9823_s22 + $0x488] sm:$0xff] }
  0x43   : > { %v648_v10 = vld [vmem:[%s9823_s22 + $0x4a0] sm:$0xff]  ;;  %645 = vst [vmem:[%s9828_s23 + $0x240] sm:$0xff] %v644_v8  ;;  %647 = vst [vmem:[%s9828_s23 + $0x248] sm:$0xff] %v646_v9  ;;  %v650_v11 = vld [vmem:[%s9823_s22 + $0x4a8] sm:$0xff] }
  0x44   : > { %649 = vst [vmem:[%s9828_s23 + $0x250] sm:$0xff] %v648_v10  ;;  %v652_v12 = vld [vmem:[%s9823_s22 + $0x4c0] sm:$0xff]  ;;  %v654_v13 = vld [vmem:[%s9823_s22 + $0x4c8] sm:$0xff]  ;;  %651 = vst [vmem:[%s9828_s23 + $0x258] sm:$0xff] %v650_v11 }
  0x45   : > { %653 = vst [vmem:[%s9828_s23 + $0x260] sm:$0xff] %v652_v12  ;;  %655 = vst [vmem:[%s9828_s23 + $0x268] sm:$0xff] %v654_v13  ;;  %v656_v14 = vld [vmem:[%s9823_s22 + $0x4e0] sm:$0xff]  ;;  %v658_v15 = vld [vmem:[%s9823_s22 + $0x4e8] sm:$0xff] }
  0x46   : > { %v660_v16 = vld [vmem:[%s9823_s22 + $0x500] sm:$0xff]  ;;  %657 = vst [vmem:[%s9828_s23 + $0x270] sm:$0xff] %v656_v14  ;;  %659 = vst [vmem:[%s9828_s23 + $0x278] sm:$0xff] %v658_v15  ;;  %v662_v17 = vld [vmem:[%s9823_s22 + $0x508] sm:$0xff] }
  0x47   : > { %661 = vst [vmem:[%s9828_s23 + $0x280] sm:$0xff] %v660_v16  ;;  %v664_v18 = vld [vmem:[%s9823_s22 + $0x520] sm:$0xff]  ;;  %v666_v19 = vld [vmem:[%s9823_s22 + $0x528] sm:$0xff]  ;;  %663 = vst [vmem:[%s9828_s23 + $0x288] sm:$0xff] %v662_v17 }
  0x48   : > { %665 = vst [vmem:[%s9828_s23 + $0x290] sm:$0xff] %v664_v18  ;;  %667 = vst [vmem:[%s9828_s23 + $0x298] sm:$0xff] %v666_v19  ;;  %v668_v20 = vld [vmem:[%s9823_s22 + $0x540] sm:$0xff]  ;;  %v670_v21 = vld [vmem:[%s9823_s22 + $0x548] sm:$0xff] }
  0x49   : > { %v672_v22 = vld [vmem:[%s9823_s22 + $0x560] sm:$0xff]  ;;  %669 = vst [vmem:[%s9828_s23 + $0x2a0] sm:$0xff] %v668_v20  ;;  %671 = vst [vmem:[%s9828_s23 + $0x2a8] sm:$0xff] %v670_v21  ;;  %v674_v23 = vld [vmem:[%s9823_s22 + $0x568] sm:$0xff] }
  0x4a   : > { %673 = vst [vmem:[%s9828_s23 + $0x2b0] sm:$0xff] %v672_v22  ;;  %v676_v24 = vld [vmem:[%s9823_s22 + $0x580] sm:$0xff]  ;;  %v678_v25 = vld [vmem:[%s9823_s22 + $0x588] sm:$0xff]  ;;  %675 = vst [vmem:[%s9828_s23 + $0x2b8] sm:$0xff] %v674_v23 }
  0x4b   : > { %677 = vst [vmem:[%s9828_s23 + $0x2c0] sm:$0xff] %v676_v24  ;;  %679 = vst [vmem:[%s9828_s23 + $0x2c8] sm:$0xff] %v678_v25  ;;  %v680_v26 = vld [vmem:[%s9823_s22 + $0x5a0] sm:$0xff]  ;;  %v682_v27 = vld [vmem:[%s9823_s22 + $0x5a8] sm:$0xff] }
  0x4c   : > { %v684_v28 = vld [vmem:[%s9823_s22 + $0x5c0] sm:$0xff]  ;;  %681 = vst [vmem:[%s9828_s23 + $0x2d0] sm:$0xff] %v680_v26  ;;  %683 = vst [vmem:[%s9828_s23 + $0x2d8] sm:$0xff] %v682_v27  ;;  %v686_v29 = vld [vmem:[%s9823_s22 + $0x5c8] sm:$0xff] }
  0x4d   : > { %685 = vst [vmem:[%s9828_s23 + $0x2e0] sm:$0xff] %v684_v28  ;;  %v688_v30 = vld [vmem:[%s9823_s22 + $0x5e0] sm:$0xff]  ;;  %v690_v31 = vld [vmem:[%s9823_s22 + $0x5e8] sm:$0xff]  ;;  %687 = vst [vmem:[%s9828_s23 + $0x2e8] sm:$0xff] %v686_v29 }
  0x4e   : > { %689 = vst [vmem:[%s9828_s23 + $0x2f0] sm:$0xff] %v688_v30  ;;  %691 = vst [vmem:[%s9828_s23 + $0x2f8] sm:$0xff] %v690_v31  ;;  %v692_v32 = vld [vmem:[%s9823_s22 + $0x600] sm:$0xff]  ;;  %v694_v33 = vld [vmem:[%s9823_s22 + $0x608] sm:$0xff] }
  0x4f   : > { %v696_v34 = vld [vmem:[%s9823_s22 + $0x620] sm:$0xff]  ;;  %693 = vst [vmem:[%s9828_s23 + $0x300] sm:$0xff] %v692_v32  ;;  %695 = vst [vmem:[%s9828_s23 + $0x308] sm:$0xff] %v694_v33  ;;  %v698_v35 = vld [vmem:[%s9823_s22 + $0x628] sm:$0xff] }
  0x50   : > { %697 = vst [vmem:[%s9828_s23 + $0x310] sm:$0xff] %v696_v34  ;;  %v700_v36 = vld [vmem:[%s9823_s22 + $0x640] sm:$0xff]  ;;  %v702_v37 = vld [vmem:[%s9823_s22 + $0x648] sm:$0xff]  ;;  %699 = vst [vmem:[%s9828_s23 + $0x318] sm:$0xff] %v698_v35 }
  0x51   : > { %701 = vst [vmem:[%s9828_s23 + $0x320] sm:$0xff] %v700_v36  ;;  %703 = vst [vmem:[%s9828_s23 + $0x328] sm:$0xff] %v702_v37  ;;  %v704_v38 = vld [vmem:[%s9823_s22 + $0x660] sm:$0xff]  ;;  %v706_v39 = vld [vmem:[%s9823_s22 + $0x668] sm:$0xff] }
  0x52   : > { %v708_v40 = vld [vmem:[%s9823_s22 + $0x680] sm:$0xff]  ;;  %705 = vst [vmem:[%s9828_s23 + $0x330] sm:$0xff] %v704_v38  ;;  %707 = vst [vmem:[%s9828_s23 + $0x338] sm:$0xff] %v706_v39  ;;  %v710_v41 = vld [vmem:[%s9823_s22 + $0x688] sm:$0xff] }
  0x53   : > { %709 = vst [vmem:[%s9828_s23 + $0x340] sm:$0xff] %v708_v40  ;;  %v712_v42 = vld [vmem:[%s9823_s22 + $0x6a0] sm:$0xff]  ;;  %v714_v43 = vld [vmem:[%s9823_s22 + $0x6a8] sm:$0xff]  ;;  %711 = vst [vmem:[%s9828_s23 + $0x348] sm:$0xff] %v710_v41 }
  0x54   : > { %713 = vst [vmem:[%s9828_s23 + $0x350] sm:$0xff] %v712_v42  ;;  %715 = vst [vmem:[%s9828_s23 + $0x358] sm:$0xff] %v714_v43  ;;  %v716_v44 = vld [vmem:[%s9823_s22 + $0x6c0] sm:$0xff]  ;;  %v718_v45 = vld [vmem:[%s9823_s22 + $0x6c8] sm:$0xff] }
  0x55   : > { %v720_v46 = vld [vmem:[%s9823_s22 + $0x6e0] sm:$0xff]  ;;  %717 = vst [vmem:[%s9828_s23 + $0x360] sm:$0xff] %v716_v44  ;;  %719 = vst [vmem:[%s9828_s23 + $0x368] sm:$0xff] %v718_v45  ;;  %v722_v47 = vld [vmem:[%s9823_s22 + $0x6e8] sm:$0xff] }
  0x56   : > { %721 = vst [vmem:[%s9828_s23 + $0x370] sm:$0xff] %v720_v46  ;;  %v724_v48 = vld [vmem:[%s9823_s22 + $0x700] sm:$0xff]  ;;  %v726_v49 = vld [vmem:[%s9823_s22 + $0x708] sm:$0xff]  ;;  %723 = vst [vmem:[%s9828_s23 + $0x378] sm:$0xff] %v722_v47 }
  0x57   : > { %725 = vst [vmem:[%s9828_s23 + $0x380] sm:$0xff] %v724_v48  ;;  %727 = vst [vmem:[%s9828_s23 + $0x388] sm:$0xff] %v726_v49  ;;  %v728_v50 = vld [vmem:[%s9823_s22 + $0x720] sm:$0xff]  ;;  %v730_v51 = vld [vmem:[%s9823_s22 + $0x728] sm:$0xff] }
  0x58   : > { %v732_v52 = vld [vmem:[%s9823_s22 + $0x740] sm:$0xff]  ;;  %729 = vst [vmem:[%s9828_s23 + $0x390] sm:$0xff] %v728_v50  ;;  %731 = vst [vmem:[%s9828_s23 + $0x398] sm:$0xff] %v730_v51  ;;  %v734_v53 = vld [vmem:[%s9823_s22 + $0x748] sm:$0xff] }
  0x59   : > { %733 = vst [vmem:[%s9828_s23 + $0x3a0] sm:$0xff] %v732_v52  ;;  %v736_v54 = vld [vmem:[%s9823_s22 + $0x760] sm:$0xff]  ;;  %v738_v55 = vld [vmem:[%s9823_s22 + $0x768] sm:$0xff]  ;;  %735 = vst [vmem:[%s9828_s23 + $0x3a8] sm:$0xff] %v734_v53 }
  0x5a   : > { %737 = vst [vmem:[%s9828_s23 + $0x3b0] sm:$0xff] %v736_v54  ;;  %739 = vst [vmem:[%s9828_s23 + $0x3b8] sm:$0xff] %v738_v55  ;;  %v740_v56 = vld [vmem:[%s9823_s22 + $0x780] sm:$0xff]  ;;  %v742_v57 = vld [vmem:[%s9823_s22 + $0x788] sm:$0xff] }
  0x5b   : > { %v744_v58 = vld [vmem:[%s9823_s22 + $0x7a0] sm:$0xff]  ;;  %741 = vst [vmem:[%s9828_s23 + $0x3c0] sm:$0xff] %v740_v56  ;;  %743 = vst [vmem:[%s9828_s23 + $0x3c8] sm:$0xff] %v742_v57  ;;  %v746_v59 = vld [vmem:[%s9823_s22 + $0x7a8] sm:$0xff] }
  0x5c   : > { %745 = vst [vmem:[%s9828_s23 + $0x3d0] sm:$0xff] %v744_v58  ;;  %v748_v60 = vld [vmem:[%s9823_s22 + $0x7c0] sm:$0xff]  ;;  %v750_v61 = vld [vmem:[%s9823_s22 + $0x7c8] sm:$0xff]  ;;  %747 = vst [vmem:[%s9828_s23 + $0x3d8] sm:$0xff] %v746_v59 }
  0x5d   : > { %749 = vst [vmem:[%s9828_s23 + $0x3e0] sm:$0xff] %v748_v60  ;;  %751 = vst [vmem:[%s9828_s23 + $0x3e8] sm:$0xff] %v750_v61  ;;  %v752_v62 = vld [vmem:[%s9823_s22 + $0x7e0] sm:$0xff]  ;;  %v754_v63 = vld [vmem:[%s9823_s22 + $0x7e8] sm:$0xff] }
  0x5e   : > { %v756_v0 = vld [vmem:[%s9823_s22 + $0x800] sm:$0xff]  ;;  %753 = vst [vmem:[%s9828_s23 + $0x3f0] sm:$0xff] %v752_v62  ;;  %755 = vst [vmem:[%s9828_s23 + $0x3f8] sm:$0xff] %v754_v63  ;;  %v758_v1 = vld [vmem:[%s9823_s22 + $0x808] sm:$0xff] }
  0x5f   : > { %757 = vst [vmem:[%s9828_s23 + $0x400] sm:$0xff] %v756_v0  ;;  %v760_v2 = vld [vmem:[%s9823_s22 + $0x820] sm:$0xff]  ;;  %v762_v3 = vld [vmem:[%s9823_s22 + $0x828] sm:$0xff]  ;;  %759 = vst [vmem:[%s9828_s23 + $0x408] sm:$0xff] %v758_v1 }
  0x60   : > { %761 = vst [vmem:[%s9828_s23 + $0x410] sm:$0xff] %v760_v2  ;;  %763 = vst [vmem:[%s9828_s23 + $0x418] sm:$0xff] %v762_v3  ;;  %v764_v4 = vld [vmem:[%s9823_s22 + $0x840] sm:$0xff]  ;;  %v766_v5 = vld [vmem:[%s9823_s22 + $0x848] sm:$0xff] }
  0x61   : > { %v768_v6 = vld [vmem:[%s9823_s22 + $0x860] sm:$0xff]  ;;  %765 = vst [vmem:[%s9828_s23 + $0x420] sm:$0xff] %v764_v4  ;;  %767 = vst [vmem:[%s9828_s23 + $0x428] sm:$0xff] %v766_v5  ;;  %v770_v7 = vld [vmem:[%s9823_s22 + $0x868] sm:$0xff] }
  0x62   : > { %769 = vst [vmem:[%s9828_s23 + $0x430] sm:$0xff] %v768_v6  ;;  %v772_v8 = vld [vmem:[%s9823_s22 + $0x880] sm:$0xff]  ;;  %v774_v9 = vld [vmem:[%s9823_s22 + $0x888] sm:$0xff]  ;;  %771 = vst [vmem:[%s9828_s23 + $0x438] sm:$0xff] %v770_v7 }
  0x63   : > { %773 = vst [vmem:[%s9828_s23 + $0x440] sm:$0xff] %v772_v8  ;;  %775 = vst [vmem:[%s9828_s23 + $0x448] sm:$0xff] %v774_v9  ;;  %v776_v10 = vld [vmem:[%s9823_s22 + $0x8a0] sm:$0xff]  ;;  %v778_v11 = vld [vmem:[%s9823_s22 + $0x8a8] sm:$0xff] }
  0x64   : > { %v780_v12 = vld [vmem:[%s9823_s22 + $0x8c0] sm:$0xff]  ;;  %777 = vst [vmem:[%s9828_s23 + $0x450] sm:$0xff] %v776_v10  ;;  %779 = vst [vmem:[%s9828_s23 + $0x458] sm:$0xff] %v778_v11  ;;  %v782_v13 = vld [vmem:[%s9823_s22 + $0x8c8] sm:$0xff] }
  0x65   : > { %781 = vst [vmem:[%s9828_s23 + $0x460] sm:$0xff] %v780_v12  ;;  %v784_v14 = vld [vmem:[%s9823_s22 + $0x8e0] sm:$0xff]  ;;  %v786_v15 = vld [vmem:[%s9823_s22 + $0x8e8] sm:$0xff]  ;;  %783 = vst [vmem:[%s9828_s23 + $0x468] sm:$0xff] %v782_v13 }
  0x66   : > { %785 = vst [vmem:[%s9828_s23 + $0x470] sm:$0xff] %v784_v14  ;;  %787 = vst [vmem:[%s9828_s23 + $0x478] sm:$0xff] %v786_v15  ;;  %v788_v16 = vld [vmem:[%s9823_s22 + $0x900] sm:$0xff]  ;;  %v790_v17 = vld [vmem:[%s9823_s22 + $0x908] sm:$0xff] }
  0x67   : > { %v792_v18 = vld [vmem:[%s9823_s22 + $0x920] sm:$0xff]  ;;  %789 = vst [vmem:[%s9828_s23 + $0x480] sm:$0xff] %v788_v16  ;;  %791 = vst [vmem:[%s9828_s23 + $0x488] sm:$0xff] %v790_v17  ;;  %v794_v19 = vld [vmem:[%s9823_s22 + $0x928] sm:$0xff] }
  0x68   : > { %793 = vst [vmem:[%s9828_s23 + $0x490] sm:$0xff] %v792_v18  ;;  %v796_v20 = vld [vmem:[%s9823_s22 + $0x940] sm:$0xff]  ;;  %v798_v21 = vld [vmem:[%s9823_s22 + $0x948] sm:$0xff]  ;;  %795 = vst [vmem:[%s9828_s23 + $0x498] sm:$0xff] %v794_v19 }
  0x69   : > { %797 = vst [vmem:[%s9828_s23 + $0x4a0] sm:$0xff] %v796_v20  ;;  %799 = vst [vmem:[%s9828_s23 + $0x4a8] sm:$0xff] %v798_v21  ;;  %v800_v22 = vld [vmem:[%s9823_s22 + $0x960] sm:$0xff]  ;;  %v802_v23 = vld [vmem:[%s9823_s22 + $0x968] sm:$0xff] }
  0x6a   : > { %v804_v24 = vld [vmem:[%s9823_s22 + $0x980] sm:$0xff]  ;;  %801 = vst [vmem:[%s9828_s23 + $0x4b0] sm:$0xff] %v800_v22  ;;  %803 = vst [vmem:[%s9828_s23 + $0x4b8] sm:$0xff] %v802_v23  ;;  %v806_v25 = vld [vmem:[%s9823_s22 + $0x988] sm:$0xff] }
  0x6b   : > { %805 = vst [vmem:[%s9828_s23 + $0x4c0] sm:$0xff] %v804_v24  ;;  %v808_v26 = vld [vmem:[%s9823_s22 + $0x9a0] sm:$0xff]  ;;  %v810_v27 = vld [vmem:[%s9823_s22 + $0x9a8] sm:$0xff]  ;;  %807 = vst [vmem:[%s9828_s23 + $0x4c8] sm:$0xff] %v806_v25 }
  0x6c   : > { %809 = vst [vmem:[%s9828_s23 + $0x4d0] sm:$0xff] %v808_v26  ;;  %811 = vst [vmem:[%s9828_s23 + $0x4d8] sm:$0xff] %v810_v27  ;;  %v812_v28 = vld [vmem:[%s9823_s22 + $0x9c0] sm:$0xff]  ;;  %v814_v29 = vld [vmem:[%s9823_s22 + $0x9c8] sm:$0xff] }
  0x6d   : > { %v816_v30 = vld [vmem:[%s9823_s22 + $0x9e0] sm:$0xff]  ;;  %813 = vst [vmem:[%s9828_s23 + $0x4e0] sm:$0xff] %v812_v28  ;;  %815 = vst [vmem:[%s9828_s23 + $0x4e8] sm:$0xff] %v814_v29  ;;  %v818_v31 = vld [vmem:[%s9823_s22 + $0x9e8] sm:$0xff] }
  0x6e   : > { %817 = vst [vmem:[%s9828_s23 + $0x4f0] sm:$0xff] %v816_v30  ;;  %v820_v32 = vld [vmem:[%s9823_s22 + $0xa00] sm:$0xff]  ;;  %v822_v33 = vld [vmem:[%s9823_s22 + $0xa08] sm:$0xff]  ;;  %819 = vst [vmem:[%s9828_s23 + $0x4f8] sm:$0xff] %v818_v31 }
  0x6f   : > { %821 = vst [vmem:[%s9828_s23 + $0x500] sm:$0xff] %v820_v32  ;;  %823 = vst [vmem:[%s9828_s23 + $0x508] sm:$0xff] %v822_v33  ;;  %v824_v34 = vld [vmem:[%s9823_s22 + $0xa20] sm:$0xff]  ;;  %v826_v35 = vld [vmem:[%s9823_s22 + $0xa28] sm:$0xff] }
  0x70   : > { %v828_v36 = vld [vmem:[%s9823_s22 + $0xa40] sm:$0xff]  ;;  %825 = vst [vmem:[%s9828_s23 + $0x510] sm:$0xff] %v824_v34  ;;  %827 = vst [vmem:[%s9828_s23 + $0x518] sm:$0xff] %v826_v35  ;;  %v830_v37 = vld [vmem:[%s9823_s22 + $0xa48] sm:$0xff] }
  0x71   : > { %829 = vst [vmem:[%s9828_s23 + $0x520] sm:$0xff] %v828_v36  ;;  %v832_v38 = vld [vmem:[%s9823_s22 + $0xa60] sm:$0xff]  ;;  %v834_v39 = vld [vmem:[%s9823_s22 + $0xa68] sm:$0xff]  ;;  %831 = vst [vmem:[%s9828_s23 + $0x528] sm:$0xff] %v830_v37 }
  0x72   : > { %833 = vst [vmem:[%s9828_s23 + $0x530] sm:$0xff] %v832_v38  ;;  %835 = vst [vmem:[%s9828_s23 + $0x538] sm:$0xff] %v834_v39  ;;  %v836_v40 = vld [vmem:[%s9823_s22 + $0xa80] sm:$0xff]  ;;  %v838_v41 = vld [vmem:[%s9823_s22 + $0xa88] sm:$0xff] }
  0x73   : > { %v840_v42 = vld [vmem:[%s9823_s22 + $0xaa0] sm:$0xff]  ;;  %837 = vst [vmem:[%s9828_s23 + $0x540] sm:$0xff] %v836_v40  ;;  %839 = vst [vmem:[%s9828_s23 + $0x548] sm:$0xff] %v838_v41  ;;  %v842_v43 = vld [vmem:[%s9823_s22 + $0xaa8] sm:$0xff] }
  0x74   : > { %841 = vst [vmem:[%s9828_s23 + $0x550] sm:$0xff] %v840_v42  ;;  %v844_v44 = vld [vmem:[%s9823_s22 + $0xac0] sm:$0xff]  ;;  %v846_v45 = vld [vmem:[%s9823_s22 + $0xac8] sm:$0xff]  ;;  %843 = vst [vmem:[%s9828_s23 + $0x558] sm:$0xff] %v842_v43 }
  0x75   : > { %845 = vst [vmem:[%s9828_s23 + $0x560] sm:$0xff] %v844_v44  ;;  %847 = vst [vmem:[%s9828_s23 + $0x568] sm:$0xff] %v846_v45  ;;  %v848_v46 = vld [vmem:[%s9823_s22 + $0xae0] sm:$0xff]  ;;  %v850_v47 = vld [vmem:[%s9823_s22 + $0xae8] sm:$0xff] }
  0x76   : > { %v852_v48 = vld [vmem:[%s9823_s22 + $0xb00] sm:$0xff]  ;;  %849 = vst [vmem:[%s9828_s23 + $0x570] sm:$0xff] %v848_v46  ;;  %851 = vst [vmem:[%s9828_s23 + $0x578] sm:$0xff] %v850_v47  ;;  %v854_v49 = vld [vmem:[%s9823_s22 + $0xb08] sm:$0xff] }
  0x77   : > { %853 = vst [vmem:[%s9828_s23 + $0x580] sm:$0xff] %v852_v48  ;;  %v856_v50 = vld [vmem:[%s9823_s22 + $0xb20] sm:$0xff]  ;;  %v858_v51 = vld [vmem:[%s9823_s22 + $0xb28] sm:$0xff]  ;;  %855 = vst [vmem:[%s9828_s23 + $0x588] sm:$0xff] %v854_v49 }
  0x78   : > { %857 = vst [vmem:[%s9828_s23 + $0x590] sm:$0xff] %v856_v50  ;;  %859 = vst [vmem:[%s9828_s23 + $0x598] sm:$0xff] %v858_v51  ;;  %v860_v52 = vld [vmem:[%s9823_s22 + $0xb40] sm:$0xff]  ;;  %v862_v53 = vld [vmem:[%s9823_s22 + $0xb48] sm:$0xff] }
  0x79   : > { %v864_v54 = vld [vmem:[%s9823_s22 + $0xb60] sm:$0xff]  ;;  %861 = vst [vmem:[%s9828_s23 + $0x5a0] sm:$0xff] %v860_v52  ;;  %863 = vst [vmem:[%s9828_s23 + $0x5a8] sm:$0xff] %v862_v53  ;;  %v866_v55 = vld [vmem:[%s9823_s22 + $0xb68] sm:$0xff] }
  0x7a   : > { %865 = vst [vmem:[%s9828_s23 + $0x5b0] sm:$0xff] %v864_v54  ;;  %v868_v56 = vld [vmem:[%s9823_s22 + $0xb80] sm:$0xff]  ;;  %v870_v57 = vld [vmem:[%s9823_s22 + $0xb88] sm:$0xff]  ;;  %867 = vst [vmem:[%s9828_s23 + $0x5b8] sm:$0xff] %v866_v55 }
  0x7b   : > { %869 = vst [vmem:[%s9828_s23 + $0x5c0] sm:$0xff] %v868_v56  ;;  %871 = vst [vmem:[%s9828_s23 + $0x5c8] sm:$0xff] %v870_v57  ;;  %v872_v58 = vld [vmem:[%s9823_s22 + $0xba0] sm:$0xff]  ;;  %v874_v59 = vld [vmem:[%s9823_s22 + $0xba8] sm:$0xff] }
  0x7c   : > { %v876_v60 = vld [vmem:[%s9823_s22 + $0xbc0] sm:$0xff]  ;;  %873 = vst [vmem:[%s9828_s23 + $0x5d0] sm:$0xff] %v872_v58  ;;  %875 = vst [vmem:[%s9828_s23 + $0x5d8] sm:$0xff] %v874_v59  ;;  %v878_v61 = vld [vmem:[%s9823_s22 + $0xbc8] sm:$0xff] }
  0x7d   : > { %877 = vst [vmem:[%s9828_s23 + $0x5e0] sm:$0xff] %v876_v60  ;;  %v880_v62 = vld [vmem:[%s9823_s22 + $0xbe0] sm:$0xff]  ;;  %v882_v63 = vld [vmem:[%s9823_s22 + $0xbe8] sm:$0xff]  ;;  %879 = vst [vmem:[%s9828_s23 + $0x5e8] sm:$0xff] %v878_v61 }
  0x7e   : > { %881 = vst [vmem:[%s9828_s23 + $0x5f0] sm:$0xff] %v880_v62  ;;  %883 = vst [vmem:[%s9828_s23 + $0x5f8] sm:$0xff] %v882_v63  ;;  %v884_v0 = vld [vmem:[%s9823_s22 + $0xc00] sm:$0xff]  ;;  %v886_v1 = vld [vmem:[%s9823_s22 + $0xc08] sm:$0xff] }
  0x7f   : > { %v888_v2 = vld [vmem:[%s9823_s22 + $0xc20] sm:$0xff]  ;;  %885 = vst [vmem:[%s9828_s23 + $0x600] sm:$0xff] %v884_v0  ;;  %887 = vst [vmem:[%s9828_s23 + $0x608] sm:$0xff] %v886_v1  ;;  %v890_v3 = vld [vmem:[%s9823_s22 + $0xc28] sm:$0xff] }
  0x80   : > { %889 = vst [vmem:[%s9828_s23 + $0x610] sm:$0xff] %v888_v2  ;;  %v892_v4 = vld [vmem:[%s9823_s22 + $0xc40] sm:$0xff]  ;;  %v894_v5 = vld [vmem:[%s9823_s22 + $0xc48] sm:$0xff]  ;;  %891 = vst [vmem:[%s9828_s23 + $0x618] sm:$0xff] %v890_v3 }
  0x81   : > { %893 = vst [vmem:[%s9828_s23 + $0x620] sm:$0xff] %v892_v4  ;;  %895 = vst [vmem:[%s9828_s23 + $0x628] sm:$0xff] %v894_v5  ;;  %v896_v6 = vld [vmem:[%s9823_s22 + $0xc60] sm:$0xff]  ;;  %v898_v7 = vld [vmem:[%s9823_s22 + $0xc68] sm:$0xff] }
  0x82   : > { %v900_v8 = vld [vmem:[%s9823_s22 + $0xc80] sm:$0xff]  ;;  %897 = vst [vmem:[%s9828_s23 + $0x630] sm:$0xff] %v896_v6  ;;  %899 = vst [vmem:[%s9828_s23 + $0x638] sm:$0xff] %v898_v7  ;;  %v902_v9 = vld [vmem:[%s9823_s22 + $0xc88] sm:$0xff] }
  0x83   : > { %901 = vst [vmem:[%s9828_s23 + $0x640] sm:$0xff] %v900_v8  ;;  %v904_v10 = vld [vmem:[%s9823_s22 + $0xca0] sm:$0xff]  ;;  %v906_v11 = vld [vmem:[%s9823_s22 + $0xca8] sm:$0xff]  ;;  %903 = vst [vmem:[%s9828_s23 + $0x648] sm:$0xff] %v902_v9 }
  0x84   : > { %905 = vst [vmem:[%s9828_s23 + $0x650] sm:$0xff] %v904_v10  ;;  %907 = vst [vmem:[%s9828_s23 + $0x658] sm:$0xff] %v906_v11  ;;  %v908_v12 = vld [vmem:[%s9823_s22 + $0xcc0] sm:$0xff]  ;;  %v910_v13 = vld [vmem:[%s9823_s22 + $0xcc8] sm:$0xff] }
  0x85   : > { %v912_v14 = vld [vmem:[%s9823_s22 + $0xce0] sm:$0xff]  ;;  %909 = vst [vmem:[%s9828_s23 + $0x660] sm:$0xff] %v908_v12  ;;  %911 = vst [vmem:[%s9828_s23 + $0x668] sm:$0xff] %v910_v13  ;;  %v914_v15 = vld [vmem:[%s9823_s22 + $0xce8] sm:$0xff] }
  0x86   : > { %913 = vst [vmem:[%s9828_s23 + $0x670] sm:$0xff] %v912_v14  ;;  %v916_v16 = vld [vmem:[%s9823_s22 + $0xd00] sm:$0xff]  ;;  %v918_v17 = vld [vmem:[%s9823_s22 + $0xd08] sm:$0xff]  ;;  %915 = vst [vmem:[%s9828_s23 + $0x678] sm:$0xff] %v914_v15 }
  0x87   : > { %917 = vst [vmem:[%s9828_s23 + $0x680] sm:$0xff] %v916_v16  ;;  %919 = vst [vmem:[%s9828_s23 + $0x688] sm:$0xff] %v918_v17  ;;  %v920_v18 = vld [vmem:[%s9823_s22 + $0xd20] sm:$0xff]  ;;  %v922_v19 = vld [vmem:[%s9823_s22 + $0xd28] sm:$0xff] }
  0x88   : > { %v924_v20 = vld [vmem:[%s9823_s22 + $0xd40] sm:$0xff]  ;;  %921 = vst [vmem:[%s9828_s23 + $0x690] sm:$0xff] %v920_v18  ;;  %923 = vst [vmem:[%s9828_s23 + $0x698] sm:$0xff] %v922_v19  ;;  %v926_v21 = vld [vmem:[%s9823_s22 + $0xd48] sm:$0xff] }
  0x89   : > { %925 = vst [vmem:[%s9828_s23 + $0x6a0] sm:$0xff] %v924_v20  ;;  %v928_v22 = vld [vmem:[%s9823_s22 + $0xd60] sm:$0xff]  ;;  %v930_v23 = vld [vmem:[%s9823_s22 + $0xd68] sm:$0xff]  ;;  %927 = vst [vmem:[%s9828_s23 + $0x6a8] sm:$0xff] %v926_v21 }
  0x8a   : > { %929 = vst [vmem:[%s9828_s23 + $0x6b0] sm:$0xff] %v928_v22  ;;  %931 = vst [vmem:[%s9828_s23 + $0x6b8] sm:$0xff] %v930_v23  ;;  %v932_v24 = vld [vmem:[%s9823_s22 + $0xd80] sm:$0xff]  ;;  %v934_v25 = vld [vmem:[%s9823_s22 + $0xd88] sm:$0xff] }
  0x8b   : > { %v936_v26 = vld [vmem:[%s9823_s22 + $0xda0] sm:$0xff]  ;;  %933 = vst [vmem:[%s9828_s23 + $0x6c0] sm:$0xff] %v932_v24  ;;  %935 = vst [vmem:[%s9828_s23 + $0x6c8] sm:$0xff] %v934_v25  ;;  %v938_v27 = vld [vmem:[%s9823_s22 + $0xda8] sm:$0xff] }
  0x8c   : > { %937 = vst [vmem:[%s9828_s23 + $0x6d0] sm:$0xff] %v936_v26  ;;  %v940_v28 = vld [vmem:[%s9823_s22 + $0xdc0] sm:$0xff]  ;;  %v942_v29 = vld [vmem:[%s9823_s22 + $0xdc8] sm:$0xff]  ;;  %939 = vst [vmem:[%s9828_s23 + $0x6d8] sm:$0xff] %v938_v27 }
  0x8d   : > { %941 = vst [vmem:[%s9828_s23 + $0x6e0] sm:$0xff] %v940_v28  ;;  %943 = vst [vmem:[%s9828_s23 + $0x6e8] sm:$0xff] %v942_v29  ;;  %v944_v30 = vld [vmem:[%s9823_s22 + $0xde0] sm:$0xff]  ;;  %v946_v31 = vld [vmem:[%s9823_s22 + $0xde8] sm:$0xff] }
  0x8e   : > { %v948_v32 = vld [vmem:[%s9823_s22 + $0xe00] sm:$0xff]  ;;  %945 = vst [vmem:[%s9828_s23 + $0x6f0] sm:$0xff] %v944_v30  ;;  %947 = vst [vmem:[%s9828_s23 + $0x6f8] sm:$0xff] %v946_v31  ;;  %v950_v33 = vld [vmem:[%s9823_s22 + $0xe08] sm:$0xff] }
  0x8f   : > { %949 = vst [vmem:[%s9828_s23 + $0x700] sm:$0xff] %v948_v32  ;;  %v952_v34 = vld [vmem:[%s9823_s22 + $0xe20] sm:$0xff]  ;;  %v954_v35 = vld [vmem:[%s9823_s22 + $0xe28] sm:$0xff]  ;;  %951 = vst [vmem:[%s9828_s23 + $0x708] sm:$0xff] %v950_v33 }
  0x90   : > { %953 = vst [vmem:[%s9828_s23 + $0x710] sm:$0xff] %v952_v34  ;;  %955 = vst [vmem:[%s9828_s23 + $0x718] sm:$0xff] %v954_v35  ;;  %v956_v36 = vld [vmem:[%s9823_s22 + $0xe40] sm:$0xff]  ;;  %v958_v37 = vld [vmem:[%s9823_s22 + $0xe48] sm:$0xff] }
  0x91   : > { %v960_v38 = vld [vmem:[%s9823_s22 + $0xe60] sm:$0xff]  ;;  %957 = vst [vmem:[%s9828_s23 + $0x720] sm:$0xff] %v956_v36  ;;  %959 = vst [vmem:[%s9828_s23 + $0x728] sm:$0xff] %v958_v37  ;;  %v962_v39 = vld [vmem:[%s9823_s22 + $0xe68] sm:$0xff] }
  0x92   : > { %961 = vst [vmem:[%s9828_s23 + $0x730] sm:$0xff] %v960_v38  ;;  %v964_v40 = vld [vmem:[%s9823_s22 + $0xe80] sm:$0xff]  ;;  %v966_v41 = vld [vmem:[%s9823_s22 + $0xe88] sm:$0xff]  ;;  %963 = vst [vmem:[%s9828_s23 + $0x738] sm:$0xff] %v962_v39 }
  0x93   : > { %965 = vst [vmem:[%s9828_s23 + $0x740] sm:$0xff] %v964_v40  ;;  %967 = vst [vmem:[%s9828_s23 + $0x748] sm:$0xff] %v966_v41  ;;  %v968_v42 = vld [vmem:[%s9823_s22 + $0xea0] sm:$0xff]  ;;  %v970_v43 = vld [vmem:[%s9823_s22 + $0xea8] sm:$0xff] }
  0x94   : > { %v972_v44 = vld [vmem:[%s9823_s22 + $0xec0] sm:$0xff]  ;;  %969 = vst [vmem:[%s9828_s23 + $0x750] sm:$0xff] %v968_v42  ;;  %971 = vst [vmem:[%s9828_s23 + $0x758] sm:$0xff] %v970_v43  ;;  %v974_v45 = vld [vmem:[%s9823_s22 + $0xec8] sm:$0xff] }
  0x95   : > { %973 = vst [vmem:[%s9828_s23 + $0x760] sm:$0xff] %v972_v44  ;;  %v976_v46 = vld [vmem:[%s9823_s22 + $0xee0] sm:$0xff]  ;;  %v978_v47 = vld [vmem:[%s9823_s22 + $0xee8] sm:$0xff]  ;;  %975 = vst [vmem:[%s9828_s23 + $0x768] sm:$0xff] %v974_v45 }
  0x96   : > { %977 = vst [vmem:[%s9828_s23 + $0x770] sm:$0xff] %v976_v46  ;;  %979 = vst [vmem:[%s9828_s23 + $0x778] sm:$0xff] %v978_v47  ;;  %v980_v48 = vld [vmem:[%s9823_s22 + $0xf00] sm:$0xff]  ;;  %v982_v49 = vld [vmem:[%s9823_s22 + $0xf08] sm:$0xff] }
  0x97   : > { %v984_v50 = vld [vmem:[%s9823_s22 + $0xf20] sm:$0xff]  ;;  %981 = vst [vmem:[%s9828_s23 + $0x780] sm:$0xff] %v980_v48  ;;  %983 = vst [vmem:[%s9828_s23 + $0x788] sm:$0xff] %v982_v49  ;;  %v986_v51 = vld [vmem:[%s9823_s22 + $0xf28] sm:$0xff] }
  0x98   : > { %985 = vst [vmem:[%s9828_s23 + $0x790] sm:$0xff] %v984_v50  ;;  %v988_v52 = vld [vmem:[%s9823_s22 + $0xf40] sm:$0xff]  ;;  %v990_v53 = vld [vmem:[%s9823_s22 + $0xf48] sm:$0xff]  ;;  %987 = vst [vmem:[%s9828_s23 + $0x798] sm:$0xff] %v986_v51 }
  0x99   : > { %989 = vst [vmem:[%s9828_s23 + $0x7a0] sm:$0xff] %v988_v52  ;;  %991 = vst [vmem:[%s9828_s23 + $0x7a8] sm:$0xff] %v990_v53  ;;  %v992_v54 = vld [vmem:[%s9823_s22 + $0xf60] sm:$0xff]  ;;  %v994_v55 = vld [vmem:[%s9823_s22 + $0xf68] sm:$0xff] }
  0x9a   : > { %v996_v56 = vld [vmem:[%s9823_s22 + $0xf80] sm:$0xff]  ;;  %993 = vst [vmem:[%s9828_s23 + $0x7b0] sm:$0xff] %v992_v54  ;;  %995 = vst [vmem:[%s9828_s23 + $0x7b8] sm:$0xff] %v994_v55  ;;  %v998_v57 = vld [vmem:[%s9823_s22 + $0xf88] sm:$0xff] }
  0x9b   : > { %997 = vst [vmem:[%s9828_s23 + $0x7c0] sm:$0xff] %v996_v56  ;;  %v1000_v58 = vld [vmem:[%s9823_s22 + $0xfa0] sm:$0xff]  ;;  %v1002_v59 = vld [vmem:[%s9823_s22 + $0xfa8] sm:$0xff]  ;;  %999 = vst [vmem:[%s9828_s23 + $0x7c8] sm:$0xff] %v998_v57 }
  0x9c   : > { %1001 = vst [vmem:[%s9828_s23 + $0x7d0] sm:$0xff] %v1000_v58  ;;  %1003 = vst [vmem:[%s9828_s23 + $0x7d8] sm:$0xff] %v1002_v59  ;;  %v1004_v60 = vld [vmem:[%s9823_s22 + $0xfc0] sm:$0xff]  ;;  %v1006_v61 = vld [vmem:[%s9823_s22 + $0xfc8] sm:$0xff] }
  0x9d   : > { %v1008_v62 = vld [vmem:[%s9823_s22 + $0xfe0] sm:$0xff]  ;;  %1005 = vst [vmem:[%s9828_s23 + $0x7e0] sm:$0xff] %v1004_v60  ;;  %1007 = vst [vmem:[%s9828_s23 + $0x7e8] sm:$0xff] %v1006_v61  ;;  %v1010_v63 = vld [vmem:[%s9823_s22 + $0xfe8] sm:$0xff] }
  0x9e   : > { %1009 = vst [vmem:[%s9828_s23 + $0x7f0] sm:$0xff] %v1008_v62  ;;  %1011 = vst [vmem:[%s9828_s23 + $0x7f8] sm:$0xff] %v1010_v63 }
  0x9f PF: > { %p7741_p5 = scmp.ge.s32.totalorder %s9689_s26, 1  ;;  %p1034_p6 = scmp.lt.s32.totalorder %s9689_s26, 3 }
  0xa1   : > { %p1035_p7 = pnand %p7741_p5, %p1034_p6 }
  0xa2   : > { %s1041_s29 = sand.u32 (!%p1035_p7), 1, %s9681_s24   ;;  %s7743_s0 = sshll.u32 (!%p1035_p7), %s9803_s27, 2 }
  0xa3   : > { %1038 = sbr.rel (%p1035_p7) target bundleno = 5942 (0x1736), region = 107  ;;  %s7742_s18 = sshll.u32 (!%p1035_p7), %s1041_s29, 11 }
  0xa4   : > { %p1099_p8 = scmp.lt.s32.totalorder (!%p1035_p7), %s7743_s0, 7  ;;  %s7744_s19 = sshll.u32 (!%p1035_p7), %s9803_s27, 6 }
  0xa5   : > { %p1104_p9 = scmp.lt.s32.totalorder (!%p1035_p7), %s7744_s19, 127  ;;  %s10355_s24 = scalar_lea.vmem (!%p1035_p7), [#allocation4], %s7742_s18 }
  0xa6   : > { %p7747_p10 = scmp.ne.s32.totalorder (!%p1035_p7), %s9803_s27, 0 }
  0xaa   : > { %s12510_s0 = smov (!%p1099_p8, %s7743_s0), 7  ;;  %s12512_s19 = smov (!%p1104_p9, %s7744_s19), 127 }
  0xab   : > { %s1101_s21 = scalar_lea.vmem %s12467_s9, %s12510_s0  ;;  %s8365_s26 = sshll.u32 %s12512_s19, 4 }
  0xac   : > { %s10353_s8 = scalar_lea.vmem %s12469_s11, %s8365_s26  ;;  %1114 = sbr.rel (%p7747_p10) target bundleno = 4694 (0x1256), region = 115 }
  0xb3   : > { %s12495_s25 = sld [smem:[#allocation14_spill]]  ;;  %v12482_v2 = vmov 0   ;;  %vm1188_vm0 = vcmask 1046528   ;;  %s12497_s23 = sld [smem:[#allocation13_spill]]  ;;  %vm1184_vm1 = vcmask 244736   ;;  %v1128_v46 = vlaneseq }
  0xb4   : > { %1233 = vmatprep.mubr.bf16.mxu0 %v12482_v2  ;;  %1276 = vmatprep.mubr.bf16.mxu1 %v12482_v2  ;;  %v10393_v14 = vld [vmem:[%s12460_s2 + $0x4] ss:$16 sps:$4 sm:$0xff]   ;;  %v10398_v15 = vld [vmem:[%s12460_s2 + $0xc] ss:$16 sps:$4 sm:$0xff]   ;;  %v10403_v16 = vld [vmem:[%s12460_s2] ss:$16 sps:$4 sm:$0xff]  }
  0xb5   : > { %v10408_v17 = vld [vmem:[%s12460_s2 + $0x8] ss:$16 sps:$4 sm:$0xff]   ;;  %v10414_v18 = vld [vmem:[%s12460_s2 + $0x24] ss:$16 sps:$4 sm:$0xff]   ;;  %v10420_v19 = vld [vmem:[%s12460_s2 + $0x2c] ss:$16 sps:$4 sm:$0xff]  }
  0xb6   : > { %v10425_v20 = vld [vmem:[%s12460_s2 + $0x20] ss:$16 sps:$4 sm:$0xff]   ;;  %v10432_v21 = vld [vmem:[%s12460_s2 + $0x28] ss:$16 sps:$4 sm:$0xff]   ;;  %v10439_v22 = vld [vmem:[%s12460_s2 + $0x44] ss:$16 sps:$4 sm:$0xff]  }
  0xb7   : > { %v10444_v23 = vld [vmem:[%s12460_s2 + $0x4c] ss:$16 sps:$4 sm:$0xff]   ;;  %v10453_v24 = vld [vmem:[%s12460_s2 + $0x40] ss:$16 sps:$4 sm:$0xff]   ;;  %v10458_v25 = vld [vmem:[%s12460_s2 + $0x48] ss:$16 sps:$4 sm:$0xff]  }
  0xb8   : > { %v10463_v26 = vld [vmem:[%s12460_s2 + $0x64] ss:$16 sps:$4 sm:$0xff]   ;;  %v10470_v27 = vld [vmem:[%s12460_s2 + $0x6c] ss:$16 sps:$4 sm:$0xff]   ;;  %v10475_v28 = vld [vmem:[%s12460_s2 + $0x60] ss:$16 sps:$4 sm:$0xff]  }
  0xb9   : > { %s12496_s28 = smov %s12495_s25  ;;  %v8499_v0 = vld [vmem:[%s12495_s25 + $0x4] ss:$16 sps:$4 sm:$0xff]   ;;  %v1116_v10 = vld [vmem:[%s12497_s23 + $0x8] sm:$0xff]  ;;  %v10501_v32 = vld [vmem:[%s12460_s2 + $0x80] ss:$16 sps:$4 sm:$0xff]   ;;  %v10622_v47 = vshrl.u32 %v1128_v46, 7 }
  0xba   : > { %v8501_v1 = vld [vmem:[%s12496_s28 + $0xc] ss:$16 sps:$4 sm:$0xff]   ;;  %1201 = vmatprep.subr.bf16.mxu0 %v8499_v0  ;;  %v8503_v3 = vld [vmem:[%s12496_s28] ss:$16 sps:$4 sm:$0xff]   ;;  %v8504_v4 = vld [vmem:[%s12496_s28 + $0x8] ss:$16 sps:$4 sm:$0xff]  }
  0xbb   : > { %1244 = vmatprep.subr.bf16.mxu1 %v8501_v1  ;;  %v8505_v5 = vld [vmem:[%s12496_s28 + $0x24] ss:$16 sps:$4 sm:$0x7f]   ;;  %1202 = vmatpush1.bf16.msra.mxu0 %v8503_v3  ;;  %v8507_v6 = vld [vmem:[%s12496_s28 + $0x2c] ss:$16 sps:$4 sm:$0x7f]  }
  0xbc   : > { %1245 = vmatpush1.bf16.msra.mxu1 %v8504_v4  ;;  %v1115_v7 = vld [vmem:[%s12497_s23] sm:$0xff]  ;;  %7756 = vmatprep.subr.msk.bf16.mxu0 %vm1188_vm0, %v8505_v5  ;;  %v8510_v9 = vld [vmem:[%s12496_s28 + $0x28] ss:$16 sps:$4 sm:$0x7f]   ;;  %v10494_v31 = vld [vmem:[%s12460_s2 + $0x8c] ss:$16 sps:$4 sm:$0xff]  }
  0xbd   : > { %v8509_v8 = vld [vmem:[%s12496_s28 + $0x20] ss:$16 sps:$4 sm:$0x7f]   ;;  %7758 = vmatprep.subr.msk.bf16.mxu1 %vm1188_vm0, %v8507_v6  ;;  %v1196_v12 = vsel %vm1188_vm0, %v8510_v9, 0  ;;  %v1117_v13 = vpack.c.bf16 %v1116_v10, %v1115_v7  ;;  %v10482_v29 = vld [vmem:[%s12460_s2 + $0x68] ss:$16 sps:$4 sm:$0xff]  }
  0xbe   : > { %v1190_v11 = vsel %vm1188_vm0, %v8509_v8, 0  ;;  %v10489_v30 = vld [vmem:[%s12460_s2 + $0x84] ss:$16 sps:$4 sm:$0xff]   ;;  %v10506_v33 = vld [vmem:[%s12460_s2 + $0x88] ss:$16 sps:$4 sm:$0xff]   ;;  %12498 = vst [vmem:[#allocation11_spill] sm:$0xff] %v10622_v47 }
  0xbf   : > { %1204 = vmatpush1.bf16.msra.mxu0 %v1190_v11  ;;  %v10511_v34 = vld [vmem:[%s12460_s2 + $0xa4] ss:$16 sps:$4 sm:$0xff]   ;;  %v10518_v35 = vld [vmem:[%s12460_s2 + $0xac] ss:$16 sps:$4 sm:$0xff]   ;;  %v10523_v36 = vld [vmem:[%s12460_s2 + $0xa0] ss:$16 sps:$4 sm:$0xff]  }
  0xc0   : > { %1247 = vmatpush1.bf16.msra.mxu1 %v1196_v12  ;;  %1479 = vmatprep.subr.bf16.mxu0 %v10393_v14  ;;  %v10528_v37 = vld [vmem:[%s12460_s2 + $0xa8] ss:$16 sps:$4 sm:$0xff]   ;;  %v10533_v38 = vld [vmem:[%s12460_s2 + $0xc4] ss:$16 sps:$4 sm:$0xff]   ;;  %v10538_v39 = vld [vmem:[%s12460_s2 + $0xcc] ss:$16 sps:$4 sm:$0xff]  }
  0xc1   : > { %1520 = vmatprep.subr.bf16.mxu1 %v10398_v15  ;;  %v10547_v40 = vld [vmem:[%s12460_s2 + $0xc0] ss:$16 sps:$4 sm:$0xff]   ;;  %v10552_v41 = vld [vmem:[%s12460_s2 + $0xc8] ss:$16 sps:$4 sm:$0xff]   ;;  %v10557_v42 = vld [vmem:[%s12460_s2 + $0xe4] ss:$16 sps:$4 sm:$0xff]  }
  0xc2   : > { %7757 = vmatmul.mubr.msk.bf16.vlgmr.msra.gmra.mrb[0].mxu0 %vm1184_vm1, %v1117_v13  ;;  %v10562_v43 = vld [vmem:[%s12460_s2 + $0xec] ss:$16 sps:$4 sm:$0xff]   ;;  %v10571_v44 = vld [vmem:[%s12460_s2 + $0xe0] ss:$16 sps:$4 sm:$0xff]   ;;  %v10576_v45 = vld [vmem:[%s12460_s2 + $0xe8] ss:$16 sps:$4 sm:$0xff]  }
  0xc3   : > { %7759 = vmatmul.mubr.msk.bf16.vlgmr.msra.gmra.mrb[0].mxu1 %vm1184_vm1, %v1117_v13  ;;  %1480 = vmatpush1.bf16.msra.mxu0 %v10403_v16  ;;  %v10625_v48 = vsub.s32 0, %v10622_v47  ;;  %v10628_v49 = vsub.s32 2, %v10622_v47  ;;  %v1126_v50 = vld [vmem:[%s12461_s3] sm:$0xf]  ;;  %v10634_v51 = vsub.s32 3, %v10622_v47  ;;  %v10637_v52 = vsub.s32 1, %v10622_v47 }
  0xc4   : > { %1521 = vmatpush1.bf16.msra.mxu1 %v10408_v17  ;;  %1481 = vmatprep.subr.bf16.mxu0 %v10414_v18 }
  0xc5   : > { %1522 = vmatprep.subr.bf16.mxu1 %v10420_v19  ;;  %1511 = vmatprep.mubr.bf16.mxu0 %v12482_v2  ;;  %12499 = vst [vmem:[#allocation12_spill] sm:$0xff] %v10634_v51  ;;  %v1131_v53 = vrot.slane %v1126_v50, %v10625_v48  ;;  %v1139_v54 = vrot.slane %v1126_v50, %v10628_v49 }
  0xc6   : > { %1552 = vmatprep.mubr.bf16.mxu1 %v12482_v2  ;;  %v1143_v57 = vrot.slane %v1126_v50, %v10634_v51  ;;  %v1135_v60 = vrot.slane %v1126_v50, %v10637_v52 }
  0xc7   : > { %1482 = vmatpush1.bf16.msra.mxu0 %v10425_v20 }
  0xc8   : > { %1523 = vmatpush1.bf16.msra.mxu1 %v10432_v21  ;;  %1483 = vmatprep.subr.bf16.mxu0 %v10439_v22 }
  0xc9   : > { %1524 = vmatprep.subr.bf16.mxu1 %v10444_v23 }
  0xcb   : > { %1484 = vmatpush1.bf16.msra.mxu0 %v10453_v24 }
  0xcc   : > { %1525 = vmatpush1.bf16.msra.mxu1 %v10458_v25  ;;  %1485 = vmatprep.subr.bf16.mxu0 %v10463_v26 }
  0xcd   : > { %1526 = vmatprep.subr.bf16.mxu1 %v10470_v27 }
  0xcf   : > { %1486 = vmatpush1.bf16.msra.mxu0 %v10475_v28 }
  0xd0   : > { %1527 = vmatpush1.bf16.msra.mxu1 %v10482_v29  ;;  %1487 = vmatprep.subr.bf16.mxu0 %v10489_v30 }
  0xd1   : > { %1528 = vmatprep.subr.bf16.mxu1 %v10494_v31 }
  0xd3   : > { %1488 = vmatpush1.bf16.msra.mxu0 %v10501_v32 }
  0xd4   : > { %1529 = vmatpush1.bf16.msra.mxu1 %v10506_v33  ;;  %1489 = vmatprep.subr.bf16.mxu0 %v10511_v34 }
  0xd5   : > { %1530 = vmatprep.subr.bf16.mxu1 %v10518_v35 }
  0xd7   : > { %1490 = vmatpush1.bf16.msra.mxu0 %v10523_v36 }
  0xd8   : > { %1531 = vmatpush1.bf16.msra.mxu1 %v10528_v37  ;;  %1491 = vmatprep.subr.bf16.mxu0 %v10533_v38 }
  0xd9   : > { %1532 = vmatprep.subr.bf16.mxu1 %v10538_v39 }
  0xdb   : > { %1492 = vmatpush1.bf16.msra.mxu0 %v10547_v40 }
  0xdc   : > { %1533 = vmatpush1.bf16.msra.mxu1 %v10552_v41  ;;  %1493 = vmatprep.subr.bf16.mxu0 %v10557_v42 }
  0xdd   : > { %1534 = vmatprep.subr.bf16.mxu1 %v10562_v43 }
  0xdf   : > { %1494 = vmatpush1.bf16.msra.mxu0 %v10571_v44 }
  0xe0   : > { %1535 = vmatpush1.bf16.msra.mxu1 %v10576_v45  ;;  %1591 = vmatprep.subr.bf16.mxu0 %v10393_v14 }
  0xe1   : > { %1632 = vmatprep.subr.bf16.mxu1 %v10398_v15 }
  0xe2   : > { %1512 = vmatmul.mubr.bf16.vlgmr.msra.gmra.mrb[4].mxu0 %v12482_v2 }
  0xe3   : > { %1553 = vmatmul.mubr.bf16.vlgmr.msra.gmra.mrb[4].mxu1 %v12482_v2  ;;  %1592 = vmatpush1.bf16.msra.mxu0 %v10403_v16 }
  0xe4   : > { %1633 = vmatpush1.bf16.msra.mxu1 %v10408_v17  ;;  %1593 = vmatprep.subr.bf16.mxu0 %v10414_v18 }
  0xe5   : > { %1634 = vmatprep.subr.bf16.mxu1 %v10420_v19  ;;  %1623 = vmatprep.mubr.bf16.mxu0 %v12482_v2 }
  0xe6   : > { %1664 = vmatprep.mubr.bf16.mxu1 %v12482_v2 }
  0xe7   : > { %1594 = vmatpush1.bf16.msra.mxu0 %v10425_v20 }
  0xe8   : > { %1635 = vmatpush1.bf16.msra.mxu1 %v10432_v21  ;;  %1595 = vmatprep.subr.bf16.mxu0 %v10439_v22 }
  0xe9   : > { %1636 = vmatprep.subr.bf16.mxu1 %v10444_v23 }
  0xeb   : > { %1596 = vmatpush1.bf16.msra.mxu0 %v10453_v24 }
  0xec   : > { %1637 = vmatpush1.bf16.msra.mxu1 %v10458_v25  ;;  %1597 = vmatprep.subr.bf16.mxu0 %v10463_v26 }
  0xed   : > { %1638 = vmatprep.subr.bf16.mxu1 %v10470_v27 }
  0xef   : > { %1598 = vmatpush1.bf16.msra.mxu0 %v10475_v28 }
  0xf0   : > { %1639 = vmatpush1.bf16.msra.mxu1 %v10482_v29  ;;  %1599 = vmatprep.subr.bf16.mxu0 %v10489_v30 }
  0xf1   : > { %1640 = vmatprep.subr.bf16.mxu1 %v10494_v31 }
  0xf3   : > { %1600 = vmatpush1.bf16.msra.mxu0 %v10501_v32 }
  0xf4   : > { %1641 = vmatpush1.bf16.msra.mxu1 %v10506_v33  ;;  %1601 = vmatprep.subr.bf16.mxu0 %v10511_v34 }
  0xf5   : > { %1642 = vmatprep.subr.bf16.mxu1 %v10518_v35 }
  0xf7   : > { %1602 = vmatpush1.bf16.msra.mxu0 %v10523_v36 }
  0xf8   : > { %1643 = vmatpush1.bf16.msra.mxu1 %v10528_v37  ;;  %1603 = vmatprep.subr.bf16.mxu0 %v10533_v38 }
  0xf9   : > { %1644 = vmatprep.subr.bf16.mxu1 %v10538_v39 }
  0xfb   : > { %1604 = vmatpush1.bf16.msra.mxu0 %v10547_v40 }
  0xfc   : > { %1645 = vmatpush1.bf16.msra.mxu1 %v10552_v41  ;;  %1605 = vmatprep.subr.bf16.mxu0 %v10557_v42 }
  0xfd   : > { %1646 = vmatprep.subr.bf16.mxu1 %v10562_v43 }
  0xff   : > { %1606 = vmatpush1.bf16.msra.mxu0 %v10571_v44 }
 0x100   : > { %1647 = vmatpush1.bf16.msra.mxu1 %v10576_v45  ;;  %1721 = vmatprep.subr.bf16.mxu0 %v10393_v14 }
 0x101   : > { %1762 = vmatprep.subr.bf16.mxu1 %v10398_v15 }
 0x195   : > { %v1235_v55 = vpop.f32.mrb[0].mxu0 }
 0x196   : > { %v1278_v56 = vpop.f32.mrb[0].mxu1  ;;  %v1237_v58 = vpop.f32.mrb[1].mxu0  ;;  %v10651_v6 = vadd.f32 %v1235_v55, %v1131_v53 }
 0x197   : > { %v1280_v59 = vpop.f32.mrb[1].mxu1  ;;  %v1239_v61 = vpop.f32.mrb[2].mxu0  ;;  %v10653_v7 = vadd.f32 %v1237_v58, %v1135_v60  ;;  %v10660_v55 = vadd.f32 %v1278_v56, %v1139_v54 }
 0x198   : > { %v1282_v62 = vpop.f32.mrb[2].mxu1  ;;  %v10643_v63 = vadd.f32 %v1239_v61, %v1131_v53  ;;  %v1241_v0 = vpop.f32.mrb[3].mxu0 }
 0x199   : > { %v10645_v1 = vadd.f32 %v1282_v62, %v1139_v54  ;;  %v1284_v3 = vpop.f32.mrb[3].mxu1  ;;  %v10647_v4 = vadd.f32 %v1241_v0, %v1135_v60 }
 0x19a   : > { %v10649_v5 = vadd.f32 %v1284_v3, %v1143_v57  ;;  %v10657_v3 = vadd.f32 %v1280_v59, %v1143_v57 }
 0x1b5   : > { %v1513_v8 = vpop.f32.mrb[4].mxu0 }
 0x1b6   : > { %v1554_v9 = vpop.f32.mrb[4].mxu1  ;;  %v1561_v10 = vadd.f32 %v1513_v8, %v10651_v6  ;;  %v1515_v11 = vpop.f32.mrb[5].mxu0 }
 0x1b7   : > { %v1556_v12 = vpop.f32.mrb[5].mxu1  ;;  %v1562_v13 = vadd.f32 %v1515_v11, %v10653_v7  ;;  %v1517_v46 = vpop.f32.mrb[6].mxu0  ;;  %v1563_v60 = vadd.f32 %v1554_v9, %v10660_v55 }
 0x1b8   : > { %v1558_v50 = vpop.f32.mrb[6].mxu1  ;;  %v7792_v61 = vmul.f32 -1.442695, %v1561_v10  ;;  %v1518_v62 = vpop.f32.mrb[7].mxu0  ;;  %v1564_v53 = vadd.f32 %v1556_v12, %v10657_v3 }
 0x1b9   : > { %v1559_v0 = vpop.f32.mrb[7].mxu1  ;;  %v7793_v2 = vmul.f32 -1.442695, %v1562_v13 }
 0x1ba   : > { %8703 = vpow2.f32 %v7792_v61  ;;  %v7794_v58 = vmul.f32 -1.442695, %v1564_v53 }
 0x1bb   : > { %8705 = vpow2.f32 %v7793_v2 }
 0x1bc   : > { %8707 = vpow2.f32 %v7794_v58 }
 0x1bd   : > { %8709 = vtanh.f32 %v1563_v60 }
 0x1c4   : > { %v8704_v8 = vpop.eup %8703 }
 0x1c5   : > { %v8706_v47 = vpop.eup %8705  ;;  %v1568_v11 = vadd.f32 1.0, %v8704_v8 }
 0x1c6   : > { %v1574_v10 = vadd.f32 1.0, %v8706_v47  ;;  %v8708_v13 = vpop.eup %8707  ;;  %v12500_v47 = vmov 0  }
 0x1c7   : > { %8711 = vrcp.f32 %v1568_v11  ;;  %v8710_v46 = vpop.eup %8709  ;;  %v1581_v50 = vadd.f32 1.0, %v8708_v13 }
 0x1c8   : > { %8713 = vrcp.f32 %v1574_v10 }
 0x1c9   : > { %8715 = vrcp.f32 %v1581_v50 }
 0x1d1   : > { %v8712_v57 = vpop.eup %8711 }
 0x1d2   : > { %v8714_v59 = vpop.eup %8713  ;;  %v1585_v2 = vmul.f32 %v8712_v57, %v8710_v46 }
 0x1d3   : > { %v1584_v12 = vmul.f32 0.0, %v8714_v59  ;;  %v8716_v56 = vpop.eup %8715 }
 0x1d5   : > { %v10663_v54 = vadd.f32 %v1585_v2, %v1584_v12 }
 0x1d7   : > { %8717 = vtanh.f32 %v10663_v54 }
 0x1e1   : > { %v8718_v9 = vpop.eup %8717 }
 0x1e2   : > { %v1588_v61 = vmul.f32 %v8718_v9, %v8716_v56 }
 0x1e4   : > { %1589 = vst [vmem:[#allocation3] sm:$0x3] %v1588_v61  ;;  %v1590_v62 = vpack.c.bf16 %v1588_v61, %v1588_v61 }
 0x1e6   : > { %1624 = vmatmul.mubr.bf16.vlgmr.msra.gmra.mrb[8].mxu0 %v1590_v62  ;;  %1665 = vmatmul.mubr.bf16.vlgmr.msra.gmra.mrb[8].mxu1 %v1590_v62 }
 0x1e7   : > { %1722 = vmatpush1.bf16.msra.mxu0 %v10403_v16  ;;  %1763 = vmatpush1.bf16.msra.mxu1 %v10408_v17 }
 0x1e8   : > { %1723 = vmatprep.subr.bf16.mxu0 %v10414_v18  ;;  %1764 = vmatprep.subr.bf16.mxu1 %v10420_v19 }
 0x1e9   : > { %1753 = vmatprep.mubr.bf16.mxu0 %v12500_v47  ;;  %1794 = vmatprep.mubr.bf16.mxu1 %v12500_v47 }
 0x1eb   : > { %1724 = vmatpush1.bf16.msra.mxu0 %v10425_v20  ;;  %1765 = vmatpush1.bf16.msra.mxu1 %v10432_v21 }
 0x1ec   : > { %1725 = vmatprep.subr.bf16.mxu0 %v10439_v22  ;;  %1766 = vmatprep.subr.bf16.mxu1 %v10444_v23 }
 0x1ef   : > { %1726 = vmatpush1.bf16.msra.mxu0 %v10453_v24  ;;  %1767 = vmatpush1.bf16.msra.mxu1 %v10458_v25 }
 0x1f0   : > { %1727 = vmatprep.subr.bf16.mxu0 %v10463_v26  ;;  %1768 = vmatprep.subr.bf16.mxu1 %v10470_v27 }
 0x1f3   : > { %1728 = vmatpush1.bf16.msra.mxu0 %v10475_v28  ;;  %1769 = vmatpush1.bf16.msra.mxu1 %v10482_v29 }
 0x1f4   : > { %1729 = vmatprep.subr.bf16.mxu0 %v10489_v30  ;;  %1770 = vmatprep.subr.bf16.mxu1 %v10494_v31 }
 0x1f7   : > { %1730 = vmatpush1.bf16.msra.mxu0 %v10501_v32  ;;  %1771 = vmatpush1.bf16.msra.mxu1 %v10506_v33 }
 0x1f8   : > { %1731 = vmatprep.subr.bf16.mxu0 %v10511_v34  ;;  %1772 = vmatprep.subr.bf16.mxu1 %v10518_v35 }
 0x1fb   : > { %1732 = vmatpush1.bf16.msra.mxu0 %v10523_v36  ;;  %1773 = vmatpush1.bf16.msra.mxu1 %v10528_v37 }
 0x1fc   : > { %1733 = vmatprep.subr.bf16.mxu0 %v10533_v38  ;;  %1774 = vmatprep.subr.bf16.mxu1 %v10538_v39 }
 0x1ff   : > { %1734 = vmatpush1.bf16.msra.mxu0 %v10547_v40  ;;  %1775 = vmatpush1.bf16.msra.mxu1 %v10552_v41 }
 0x200   : > { %1735 = vmatprep.subr.bf16.mxu0 %v10557_v42  ;;  %1776 = vmatprep.subr.bf16.mxu1 %v10562_v43 }
 0x203   : > { %1736 = vmatpush1.bf16.msra.mxu0 %v10571_v44  ;;  %1777 = vmatpush1.bf16.msra.mxu1 %v10576_v45 }
 0x204   : > { %1851 = vmatprep.subr.bf16.mxu0 %v10393_v14  ;;  %1892 = vmatprep.subr.bf16.mxu1 %v10398_v15 }
 0x2b9   : > { %v1625_v0 = vpop.f32.mrb[8].mxu0  ;;  %v1666_v53 = vpop.f32.mrb[8].mxu1 }
 0x2ba   : > { %v1677_v58 = vrot.slane %v1625_v0, 6  ;;  %v1627_v60 = vpop.f32.mrb[9].mxu0  ;;  %v1668_v8 = vpop.f32.mrb[9].mxu1  ;;  %v1679_v61 = vrot.slane %v1666_v53, 6 }
 0x2bb   : > { %v1678_v11 = vrot.slane %v1627_v60, 6  ;;  %v1629_v10 = vpop.f32.mrb[10].mxu0  ;;  %v1670_v13 = vpop.f32.mrb[10].mxu1  ;;  %v1680_v56 = vrot.slane %v1668_v8, 6  ;;  %v1709_v8 = vrot.slane %v10663_v54, 6 }
 0x2bc   : > { %v1685_v46 = vadd.f32 %v1677_v58, %v10651_v6  ;;  %v1630_v57 = vpop.f32.mrb[11].mxu0  ;;  %v1671_v59 = vpop.f32.mrb[11].mxu1  ;;  %v1687_v0 = vadd.f32 %v1679_v61, %v10660_v55 }
 0x2bd   : > { %v1686_v2 = vadd.f32 %v1678_v11, %v10653_v7  ;;  %v1688_v9 = vadd.f32 %v1680_v56, %v10657_v3 }
 0x2be   : > { %v7795_v50 = vmul.f32 -1.442695, %v1685_v46 }
 0x2bf   : > { %v7796_v12 = vmul.f32 -1.442695, %v1686_v2  ;;  %v7797_v62 = vmul.f32 -1.442695, %v1688_v9 }
 0x2c0   : > { %8719 = vpow2.f32 %v7795_v50 }
 0x2c1   : > { %8721 = vpow2.f32 %v7796_v12 }
 0x2c2   : > { %8723 = vpow2.f32 %v7797_v62 }
 0x2c3   : > { %8725 = vtanh.f32 %v1687_v0 }
 0x2ca   : > { %v8720_v60 = vpop.eup %8719 }
 0x2cb   : > { %v8722_v10 = vpop.eup %8721  ;;  %v1692_v13 = vadd.f32 1.0, %v8720_v60 }
 0x2cc   : > { %v1698_v58 = vadd.f32 1.0, %v8722_v10  ;;  %v8724_v11 = vpop.eup %8723 }
 0x2cd   : > { %8727 = vrcp.f32 %v1692_v13  ;;  %v8726_v46 = vpop.eup %8725  ;;  %v1705_v50 = vadd.f32 1.0, %v8724_v11 }
 0x2ce   : > { %8729 = vrcp.f32 %v1698_v58 }
 0x2cf   : > { %8731 = vrcp.f32 %v1705_v50 }
 0x2d7   : > { %v8728_v57 = vpop.eup %8727 }
 0x2d8   : > { %v8730_v59 = vpop.eup %8729  ;;  %v1712_v2 = vmul.f32 %v8728_v57, %v8726_v46 }
 0x2d9   : > { %v1711_v53 = vmul.f32 %v8730_v59, %v1709_v8  ;;  %v8732_v56 = vpop.eup %8731 }
 0x2db   : > { %v10705_v12 = vadd.f32 %v1712_v2, %v1711_v53 }
 0x2dd   : > { %8733 = vtanh.f32 %v10705_v12 }
 0x2e7   : > { %v8734_v9 = vpop.eup %8733 }
 0x2e8   : > { %v1715_v61 = vmul.f32 %v8734_v9, %v8732_v56 }
 0x2ea   : > { %1716 = vst [vmem:[#allocation3] sm:$0xc] %v1715_v61  ;;  %v1717_v62 = vpack.c.bf16 %v1715_v61, %v1715_v61 }
 0x2ec   : > { %v1719_v0 = vrot.slane %v1717_v62, 1 }
 0x2ee   : > { %1754 = vmatmul.mubr.bf16.vlgmr.msra.gmra.mrb[12].mxu0 %v1719_v0  ;;  %1795 = vmatmul.mubr.bf16.vlgmr.msra.gmra.mrb[12].mxu1 %v1719_v0 }
 0x2ef   : > { %1852 = vmatpush1.bf16.msra.mxu0 %v10403_v16  ;;  %1893 = vmatpush1.bf16.msra.mxu1 %v10408_v17 }
 0x2f0   : > { %1853 = vmatprep.subr.bf16.mxu0 %v10414_v18  ;;  %1894 = vmatprep.subr.bf16.mxu1 %v10420_v19 }
 0x2f1   : > { %1883 = vmatprep.mubr.bf16.mxu0 %v12500_v47  ;;  %1924 = vmatprep.mubr.bf16.mxu1 %v12500_v47 }
 0x2f3   : > { %1854 = vmatpush1.bf16.msra.mxu0 %v10425_v20  ;;  %1895 = vmatpush1.bf16.msra.mxu1 %v10432_v21 }
 0x2f4   : > { %1855 = vmatprep.subr.bf16.mxu0 %v10439_v22  ;;  %1896 = vmatprep.subr.bf16.mxu1 %v10444_v23 }
 0x2f7   : > { %1856 = vmatpush1.bf16.msra.mxu0 %v10453_v24  ;;  %1897 = vmatpush1.bf16.msra.mxu1 %v10458_v25 }
 0x2f8   : > { %1857 = vmatprep.subr.bf16.mxu0 %v10463_v26  ;;  %1898 = vmatprep.subr.bf16.mxu1 %v10470_v27 }
 0x2fb   : > { %1858 = vmatpush1.bf16.msra.mxu0 %v10475_v28  ;;  %1899 = vmatpush1.bf16.msra.mxu1 %v10482_v29 }
 0x2fc   : > { %1859 = vmatprep.subr.bf16.mxu0 %v10489_v30  ;;  %1900 = vmatprep.subr.bf16.mxu1 %v10494_v31 }
 0x2ff   : > { %1860 = vmatpush1.bf16.msra.mxu0 %v10501_v32  ;;  %1901 = vmatpush1.bf16.msra.mxu1 %v10506_v33 }
 0x300   : > { %1861 = vmatprep.subr.bf16.mxu0 %v10511_v34  ;;  %1902 = vmatprep.subr.bf16.mxu1 %v10518_v35 }
 0x303   : > { %1862 = vmatpush1.bf16.msra.mxu0 %v10523_v36  ;;  %1903 = vmatpush1.bf16.msra.mxu1 %v10528_v37 }
 0x304   : > { %1863 = vmatprep.subr.bf16.mxu0 %v10533_v38  ;;  %1904 = vmatprep.subr.bf16.mxu1 %v10538_v39 }
 0x307   : > { %1864 = vmatpush1.bf16.msra.mxu0 %v10547_v40  ;;  %1905 = vmatpush1.bf16.msra.mxu1 %v10552_v41 }
 0x308   : > { %1865 = vmatprep.subr.bf16.mxu0 %v10557_v42  ;;  %1906 = vmatprep.subr.bf16.mxu1 %v10562_v43 }
 0x30b   : > { %1866 = vmatpush1.bf16.msra.mxu0 %v10571_v44  ;;  %1907 = vmatpush1.bf16.msra.mxu1 %v10576_v45 }
 0x30c   : > { %1981 = vmatprep.subr.bf16.mxu0 %v10393_v14  ;;  %2022 = vmatprep.subr.bf16.mxu1 %v10398_v15 }
 0x3c1   : > { %v1755_v54 = vpop.f32.mrb[12].mxu0  ;;  %v1796_v60 = vpop.f32.mrb[12].mxu1 }
 0x3c2   : > { %v1807_v10 = vrot.slane %v1755_v54, 4  ;;  %v1757_v13 = vpop.f32.mrb[13].mxu0  ;;  %v1798_v58 = vpop.f32.mrb[13].mxu1  ;;  %v1809_v62 = vrot.slane %v1796_v60, 4 }
 0x3c3   : > { %v1808_v11 = vrot.slane %v1757_v13, 4  ;;  %v1759_v46 = vpop.f32.mrb[14].mxu0  ;;  %v1800_v57 = vpop.f32.mrb[14].mxu1  ;;  %v1810_v9 = vrot.slane %v1798_v58, 4  ;;  %v1839_v58 = vrot.slane %v10705_v12, 6 }
 0x3c4   : > { %v1815_v8 = vadd.f32 %v1807_v10, %v10651_v6  ;;  %v1760_v59 = vpop.f32.mrb[15].mxu0  ;;  %v1801_v2 = vpop.f32.mrb[15].mxu1  ;;  %v1817_v54 = vadd.f32 %v1809_v62, %v10660_v55 }
 0x3c5   : > { %v1816_v50 = vadd.f32 %v1808_v11, %v10653_v7  ;;  %v1818_v61 = vadd.f32 %v1810_v9, %v10657_v3 }
 0x3c6   : > { %v7798_v53 = vmul.f32 -1.442695, %v1815_v8 }
 0x3c7   : > { %v7799_v56 = vmul.f32 -1.442695, %v1816_v50  ;;  %v7800_v0 = vmul.f32 -1.442695, %v1818_v61 }
 0x3c8   : > { %8735 = vpow2.f32 %v7798_v53 }
 0x3c9   : > { %8737 = vpow2.f32 %v7799_v56 }
 0x3ca   : > { %8739 = vpow2.f32 %v7800_v0 }
 0x3cb   : > { %8741 = vtanh.f32 %v1817_v54 }
 0x3d2   : > { %v8736_v13 = vpop.eup %8735 }
 0x3d3   : > { %v8738_v46 = vpop.eup %8737  ;;  %v1822_v57 = vadd.f32 1.0, %v8736_v13 }
 0x3d4   : > { %v1828_v10 = vadd.f32 1.0, %v8738_v46  ;;  %v8740_v11 = vpop.eup %8739 }
 0x3d5   : > { %8743 = vrcp.f32 %v1822_v57  ;;  %v8742_v8 = vpop.eup %8741  ;;  %v1835_v53 = vadd.f32 1.0, %v8740_v11 }
 0x3d6   : > { %8745 = vrcp.f32 %v1828_v10 }
 0x3d7   : > { %8747 = vrcp.f32 %v1835_v53 }
 0x3df   : > { %v8744_v59 = vpop.eup %8743 }
 0x3e0   : > { %v8746_v2 = vpop.eup %8745  ;;  %v1842_v50 = vmul.f32 %v8744_v59, %v8742_v8 }
 0x3e1   : > { %v1841_v60 = vmul.f32 %v8746_v2, %v1839_v58  ;;  %v8748_v9 = vpop.eup %8747 }
 0x3e3   : > { %v10747_v56 = vadd.f32 %v1842_v50, %v1841_v60 }
 0x3e5   : > { %8749 = vtanh.f32 %v10747_v56  ;;  %v1969_v58 = vrot.slane %v10747_v56, 6  ;;  %v10795_v56 = vld [vmem:[%s12460_s2] ss:$16 sps:$4 sm:$0xff]  }
 0x3ef   : > { %v8750_v61 = vpop.eup %8749 }
 0x3f0   : > { %v1845_v62 = vmul.f32 %v8750_v61, %v8748_v9 }
 0x3f2   : > { %1846 = vst [vmem:[#allocation3] sm:$0x30] %v1845_v62  ;;  %v1847_v0 = vpack.c.bf16 %v1845_v62, %v1845_v62 }
 0x3f4   : > { %v1849_v54 = vrot.slane %v1847_v0, 2 }
 0x3f6   : > { %1884 = vmatmul.mubr.bf16.vlgmr.msra.gmra.mrb[16].mxu0 %v1849_v54  ;;  %1925 = vmatmul.mubr.bf16.vlgmr.msra.gmra.mrb[16].mxu1 %v1849_v54  ;;  %v10801_v54 = vld [vmem:[%s12460_s2 + $0x8] ss:$16 sps:$4 sm:$0xff]  }
 0x3f7   : > { %1982 = vmatpush1.bf16.msra.mxu0 %v10403_v16  ;;  %2023 = vmatpush1.bf16.msra.mxu1 %v10408_v17 }
 0x3f8   : > { %1983 = vmatprep.subr.bf16.mxu0 %v10414_v18  ;;  %2024 = vmatprep.subr.bf16.mxu1 %v10420_v19 }
 0x3f9   : > { %2013 = vmatprep.mubr.bf16.mxu0 %v12500_v47  ;;  %2054 = vmatprep.mubr.bf16.mxu1 %v12500_v47 }
 0x3fb   : > { %1984 = vmatpush1.bf16.msra.mxu0 %v10425_v20  ;;  %2025 = vmatpush1.bf16.msra.mxu1 %v10432_v21 }
 0x3fc   : > { %1985 = vmatprep.subr.bf16.mxu0 %v10439_v22  ;;  %2026 = vmatprep.subr.bf16.mxu1 %v10444_v23 }
 0x3ff   : > { %1986 = vmatpush1.bf16.msra.mxu0 %v10453_v24  ;;  %2027 = vmatpush1.bf16.msra.mxu1 %v10458_v25 }
 0x400   : > { %1987 = vmatprep.subr.bf16.mxu0 %v10463_v26  ;;  %2028 = vmatprep.subr.bf16.mxu1 %v10470_v27 }
 0x403   : > { %1988 = vmatpush1.bf16.msra.mxu0 %v10475_v28  ;;  %2029 = vmatpush1.bf16.msra.mxu1 %v10482_v29 }
 0x404   : > { %1989 = vmatprep.subr.bf16.mxu0 %v10489_v30  ;;  %2030 = vmatprep.subr.bf16.mxu1 %v10494_v31 }
 0x407   : > { %1990 = vmatpush1.bf16.msra.mxu0 %v10501_v32  ;;  %2031 = vmatpush1.bf16.msra.mxu1 %v10506_v33 }
 0x408   : > { %1991 = vmatprep.subr.bf16.mxu0 %v10511_v34  ;;  %2032 = vmatprep.subr.bf16.mxu1 %v10518_v35 }
 0x40b   : > { %1992 = vmatpush1.bf16.msra.mxu0 %v10523_v36  ;;  %2033 = vmatpush1.bf16.msra.mxu1 %v10528_v37 }
 0x40c   : > { %1993 = vmatprep.subr.bf16.mxu0 %v10533_v38  ;;  %2034 = vmatprep.subr.bf16.mxu1 %v10538_v39 }
 0x40f   : > { %1994 = vmatpush1.bf16.msra.mxu0 %v10547_v40  ;;  %2035 = vmatpush1.bf16.msra.mxu1 %v10552_v41 }
 0x410   : > { %1995 = vmatprep.subr.bf16.mxu0 %v10557_v42  ;;  %2036 = vmatprep.subr.bf16.mxu1 %v10562_v43 }
 0x413   : > { %1996 = vmatpush1.bf16.msra.mxu0 %v10571_v44  ;;  %2037 = vmatpush1.bf16.msra.mxu1 %v10576_v45 }
 0x414   : > { %2096 = vmatprep.subr.bf16.mxu0 %v10393_v14  ;;  %2137 = vmatprep.subr.bf16.mxu1 %v10398_v15 }
 0x4c9   : > { %v1885_v16 = vpop.f32.mrb[16].mxu0  ;;  %v1926_v17 = vpop.f32.mrb[16].mxu1 }
 0x4ca   : > { %v1937_v18 = vrot.slane %v1885_v16, 2  ;;  %v1887_v19 = vpop.f32.mrb[17].mxu0  ;;  %v1928_v20 = vpop.f32.mrb[17].mxu1  ;;  %v1939_v15 = vrot.slane %v1926_v17, 2  ;;  %v10807_v16 = vld [vmem:[%s12460_s2 + $0x24] ss:$16 sps:$4 sm:$0xff]  }
 0x4cb   : > { %v1938_v21 = vrot.slane %v1887_v19, 2  ;;  %v1889_v22 = vpop.f32.mrb[18].mxu0  ;;  %v1930_v23 = vpop.f32.mrb[18].mxu1  ;;  %v1940_v12 = vrot.slane %v1928_v20, 2  ;;  %v10813_v17 = vld [vmem:[%s12460_s2 + $0x2c] ss:$16 sps:$4 sm:$0xff]  }
 0x4cc   : > { %v1945_v24 = vadd.f32 %v1937_v18, %v10651_v6  ;;  %v1890_v25 = vpop.f32.mrb[19].mxu0  ;;  %v1931_v26 = vpop.f32.mrb[19].mxu1  ;;  %v1947_v46 = vadd.f32 %v1939_v15, %v10660_v55  ;;  %v10821_v18 = vld [vmem:[%s12460_s2 + $0x20] ss:$16 sps:$4 sm:$0xff]   ;;  %v10827_v19 = vld [vmem:[%s12460_s2 + $0x28] ss:$16 sps:$4 sm:$0xff]  }
 0x4cd   : > { %v1946_v27 = vadd.f32 %v1938_v21, %v10653_v7  ;;  %v1948_v14 = vadd.f32 %v1940_v12, %v10657_v3  ;;  %v10833_v20 = vld [vmem:[%s12460_s2 + $0x44] ss:$16 sps:$4 sm:$0xff]   ;;  %v10839_v21 = vld [vmem:[%s12460_s2 + $0x4c] ss:$16 sps:$4 sm:$0xff]   ;;  %v10845_v22 = vld [vmem:[%s12460_s2 + $0x40] ss:$16 sps:$4 sm:$0xff]  }
 0x4ce   : > { %v7801_v28 = vmul.f32 -1.442695, %v1945_v24  ;;  %v10851_v23 = vld [vmem:[%s12460_s2 + $0x48] ss:$16 sps:$4 sm:$0xff]   ;;  %v10857_v24 = vld [vmem:[%s12460_s2 + $0x64] ss:$16 sps:$4 sm:$0xff]  }
 0x4cf   : > { %v7802_v29 = vmul.f32 -1.442695, %v1946_v27  ;;  %v7803_v13 = vmul.f32 -1.442695, %v1948_v14  ;;  %v10863_v25 = vld [vmem:[%s12460_s2 + $0x6c] ss:$16 sps:$4 sm:$0xff]  }
 0x4d0   : > { %8751 = vpow2.f32 %v7801_v28  ;;  %v10869_v26 = vld [vmem:[%s12460_s2 + $0x60] ss:$16 sps:$4 sm:$0xff]   ;;  %v10875_v27 = vld [vmem:[%s12460_s2 + $0x68] ss:$16 sps:$4 sm:$0xff]  }
 0x4d1   : > { %8753 = vpow2.f32 %v7802_v29 }
 0x4d2   : > { %8755 = vpow2.f32 %v7803_v13 }
 0x4d3   : > { %8757 = vtanh.f32 %v1947_v46 }
 0x4da   : > { %v8752_v57 = vpop.eup %8751 }
 0x4db   : > { %v8754_v10 = vpop.eup %8753  ;;  %v1952_v11 = vadd.f32 1.0, %v8752_v57 }
 0x4dc   : > { %v1958_v6 = vadd.f32 1.0, %v8754_v10  ;;  %v8756_v7 = vpop.eup %8755 }
 0x4dd   : > { %8759 = vrcp.f32 %v1952_v11  ;;  %v8758_v8 = vpop.eup %8757  ;;  %v1965_v3 = vadd.f32 1.0, %v8756_v7 }
 0x4de   : > { %8761 = vrcp.f32 %v1958_v6 }
 0x4df   : > { %8763 = vrcp.f32 %v1965_v3 }
 0x4e7   : > { %v8760_v59 = vpop.eup %8759 }
 0x4e8   : > { %v8762_v2 = vpop.eup %8761  ;;  %v1972_v50 = vmul.f32 %v8760_v59, %v8758_v8 }
 0x4e9   : > { %v1971_v53 = vmul.f32 %v8762_v2, %v1969_v58  ;;  %v8764_v55 = vpop.eup %8763 }
 0x4eb   : > { %v10789_v60 = vadd.f32 %v1972_v50, %v1971_v53  ;;  %v10933_v53 = vld [vmem:[%s12460_s2 + $0x84] ss:$16 sps:$4 sm:$0xff]  }
 0x4ed   : > { %8765 = vtanh.f32 %v10789_v60  ;;  %v2087_v10 = vrot.slane %v10789_v60, 6  ;;  %v10939_v60 = vld [vmem:[%s12460_s2 + $0x8c] ss:$16 sps:$4 sm:$0xff]  }
 0x4f7   : > { %v8766_v9 = vpop.eup %8765 }
 0x4f8   : > { %v1975_v61 = vmul.f32 %v8766_v9, %v8764_v55  ;;  %v10945_v55 = vld [vmem:[%s12460_s2 + $0x80] ss:$16 sps:$4 sm:$0xff]   ;;  %v10951_v9 = vld [vmem:[%s12460_s2 + $0x88] ss:$16 sps:$4 sm:$0xff]  }
 0x4fa   : > { %1976 = vst [vmem:[#allocation3] sm:$0xc0] %v1975_v61  ;;  %v1977_v62 = vpack.c.bf16 %v1975_v61, %v1975_v61  ;;  %v10957_v61 = vld [vmem:[%s12460_s2 + $0xa4] ss:$16 sps:$4 sm:$0xff]  }
 0x4fc   : > { %v1979_v0 = vrot.slane %v1977_v62, 3  ;;  %v10963_v62 = vld [vmem:[%s12460_s2 + $0xac] ss:$16 sps:$4 sm:$0xff]  }
 0x4fe   : > { %2014 = vmatmul.mubr.bf16.vlgmr.msra.gmra.mrb[20].mxu0 %v1979_v0  ;;  %2055 = vmatmul.mubr.bf16.vlgmr.msra.gmra.mrb[20].mxu1 %v1979_v0  ;;  %v10969_v0 = vld [vmem:[%s12460_s2 + $0xa0] ss:$16 sps:$4 sm:$0xff]  }
 0x4ff   : > { %2097 = vmatpush1.bf16.msra.mxu0 %v10795_v56  ;;  %2138 = vmatpush1.bf16.msra.mxu1 %v10801_v54 }
 0x500   : > { %2098 = vmatprep.subr.bf16.mxu0 %v10807_v16  ;;  %2139 = vmatprep.subr.bf16.mxu1 %v10813_v17 }
 0x501   : > { %2128 = vmatprep.mubr.bf16.mxu0 %v12500_v47  ;;  %2169 = vmatprep.mubr.bf16.mxu1 %v12500_v47 }
 0x503   : > { %2099 = vmatpush1.bf16.msra.mxu0 %v10821_v18  ;;  %2140 = vmatpush1.bf16.msra.mxu1 %v10827_v19 }
 0x504   : > { %2100 = vmatprep.subr.bf16.mxu0 %v10833_v20  ;;  %2141 = vmatprep.subr.bf16.mxu1 %v10839_v21 }
 0x507   : > { %2101 = vmatpush1.bf16.msra.mxu0 %v10845_v22  ;;  %2142 = vmatpush1.bf16.msra.mxu1 %v10851_v23 }
 0x508   : > { %2102 = vmatprep.subr.bf16.mxu0 %v10857_v24  ;;  %2143 = vmatprep.subr.bf16.mxu1 %v10863_v25 }
 0x50b   : > { %2103 = vmatpush1.bf16.msra.mxu0 %v10869_v26  ;;  %2144 = vmatpush1.bf16.msra.mxu1 %v10875_v27 }
 0x50c   : > { %2104 = vmatprep.subr.bf16.mxu0 %v10489_v30  ;;  %2145 = vmatprep.subr.bf16.mxu1 %v10494_v31  ;;  %v10897_v30 = vld [vmem:[%s12460_s2 + $0x4] ss:$16 sps:$4 sm:$0xff]   ;;  %v10903_v31 = vld [vmem:[%s12460_s2 + $0xc] ss:$16 sps:$4 sm:$0xff]  }
 0x50f   : > { %2105 = vmatpush1.bf16.msra.mxu0 %v10501_v32  ;;  %2146 = vmatpush1.bf16.msra.mxu1 %v10506_v33 }
 0x510   : > { %2106 = vmatprep.subr.bf16.mxu0 %v10511_v34  ;;  %2147 = vmatprep.subr.bf16.mxu1 %v10518_v35 }
 0x513   : > { %2107 = vmatpush1.bf16.msra.mxu0 %v10523_v36  ;;  %2148 = vmatpush1.bf16.msra.mxu1 %v10528_v37 }
 0x514   : > { %2108 = vmatprep.subr.bf16.mxu0 %v10533_v38  ;;  %2149 = vmatprep.subr.bf16.mxu1 %v10538_v39 }
 0x517   : > { %2109 = vmatpush1.bf16.msra.mxu0 %v10547_v40  ;;  %2150 = vmatpush1.bf16.msra.mxu1 %v10552_v41 }
 0x518   : > { %2110 = vmatprep.subr.bf16.mxu0 %v10557_v42  ;;  %2151 = vmatprep.subr.bf16.mxu1 %v10562_v43 }
 0x51b   : > { %2111 = vmatpush1.bf16.msra.mxu0 %v10571_v44  ;;  %2152 = vmatpush1.bf16.msra.mxu1 %v10576_v45 }
 0x51c   : > { %2226 = vmatprep.subr.bf16.mxu0 %v10897_v30  ;;  %2267 = vmatprep.subr.bf16.mxu1 %v10903_v31 }
 0x5d1   : > { %v2015_v32 = vpop.f32.mrb[20].mxu0  ;;  %v2056_v33 = vpop.f32.mrb[20].mxu1 }
 0x5d2   : > { %v2063_v34 = vadd.f32 %v2015_v32, %v10643_v63  ;;  %v2017_v35 = vpop.f32.mrb[21].mxu0  ;;  %v2058_v36 = vpop.f32.mrb[21].mxu1  ;;  %v2065_v28 = vadd.f32 %v2056_v33, %v10645_v1  ;;  %v10975_v32 = vld [vmem:[%s12460_s2 + $0xa8] ss:$16 sps:$4 sm:$0xff]   ;;  %v10981_v33 = vld [vmem:[%s12460_s2 + $0xc4] ss:$16 sps:$4 sm:$0xff]  }
 0x5d3   : > { %v2064_v37 = vadd.f32 %v2017_v35, %v10647_v4  ;;  %v2019_v38 = vpop.f32.mrb[22].mxu0  ;;  %v2060_v39 = vpop.f32.mrb[22].mxu1  ;;  %v2066_v44 = vadd.f32 %v2058_v36, %v10649_v5  ;;  %v10993_v35 = vld [vmem:[%s12460_s2 + $0xc0] ss:$16 sps:$4 sm:$0xff]   ;;  %v10999_v36 = vld [vmem:[%s12460_s2 + $0xc8] ss:$16 sps:$4 sm:$0xff]  }
 0x5d4   : > { %v7804_v40 = vmul.f32 -1.442695, %v2063_v34  ;;  %v2020_v41 = vpop.f32.mrb[23].mxu0  ;;  %v2061_v42 = vpop.f32.mrb[23].mxu1  ;;  %v10987_v34 = vld [vmem:[%s12460_s2 + $0xcc] ss:$16 sps:$4 sm:$0xff]  }
 0x5d5   : > { %v7805_v43 = vmul.f32 -1.442695, %v2064_v37  ;;  %v7806_v45 = vmul.f32 -1.442695, %v2066_v44  ;;  %v11005_v37 = vld [vmem:[%s12460_s2 + $0xe4] ss:$16 sps:$4 sm:$0xff]  }
 0x5d6   : > { %8767 = vpow2.f32 %v7804_v40  ;;  %v11011_v38 = vld [vmem:[%s12460_s2 + $0xec] ss:$16 sps:$4 sm:$0xff]   ;;  %v11017_v39 = vld [vmem:[%s12460_s2 + $0xe0] ss:$16 sps:$4 sm:$0xff]   ;;  %v11023_v40 = vld [vmem:[%s12460_s2 + $0xe8] ss:$16 sps:$4 sm:$0xff]  }
 0x5d7   : > { %8769 = vpow2.f32 %v7805_v43 }
 0x5d8   : > { %8771 = vpow2.f32 %v7806_v45 }
 0x5d9   : > { %8773 = vtanh.f32 %v2065_v28 }
 0x5e0   : > { %v8768_v29 = vpop.eup %8767 }
 0x5e1   : > { %v8770_v12 = vpop.eup %8769  ;;  %v2070_v14 = vadd.f32 1.0, %v8768_v29 }
 0x5e2   : > { %v2076_v15 = vadd.f32 1.0, %v8770_v12  ;;  %v8772_v13 = vpop.eup %8771 }
 0x5e3   : > { %8775 = vrcp.f32 %v2070_v14  ;;  %v8774_v46 = vpop.eup %8773  ;;  %v2083_v7 = vadd.f32 1.0, %v8772_v13 }
 0x5e4   : > { %8777 = vrcp.f32 %v2076_v15 }
 0x5e5   : > { %8779 = vrcp.f32 %v2083_v7 }
 0x5ed   : > { %v8776_v57 = vpop.eup %8775 }
 0x5ee   : > { %v8778_v11 = vpop.eup %8777  ;;  %v2090_v6 = vmul.f32 %v8776_v57, %v8774_v46 }
 0x5ef   : > { %v2089_v8 = vmul.f32 %v8778_v11, %v2087_v10  ;;  %v8780_v58 = vpop.eup %8779 }
 0x5f1   : > { %v10911_v59 = vadd.f32 %v2090_v6, %v2089_v8 }
 0x5f3   : > { %8781 = vtanh.f32 %v10911_v59 }
 0x5fd   : > { %v8782_v2 = vpop.eup %8781 }
 0x5fe   : > { %v2093_v50 = vmul.f32 %v8782_v2, %v8780_v58 }
 0x600   : > { %2094 = vst [vmem:[#allocation3 + $0x8] sm:$0x3] %v2093_v50  ;;  %v2095_v3 = vpack.c.bf16 %v2093_v50, %v2093_v50 }
 0x602   : > { %2129 = vmatmul.mubr.bf16.vlgmr.msra.gmra.mrb[24].mxu0 %v2095_v3  ;;  %2170 = vmatmul.mubr.bf16.vlgmr.msra.gmra.mrb[24].mxu1 %v2095_v3 }
 0x603   : > { %2227 = vmatpush1.bf16.msra.mxu0 %v10795_v56  ;;  %2268 = vmatpush1.bf16.msra.mxu1 %v10801_v54 }
 0x604   : > { %2228 = vmatprep.subr.bf16.mxu0 %v10807_v16  ;;  %2269 = vmatprep.subr.bf16.mxu1 %v10813_v17 }
 0x605   : > { %2258 = vmatprep.mubr.bf16.mxu0 %v12500_v47  ;;  %2299 = vmatprep.mubr.bf16.mxu1 %v12500_v47 }
 0x607   : > { %2229 = vmatpush1.bf16.msra.mxu0 %v10821_v18  ;;  %2270 = vmatpush1.bf16.msra.mxu1 %v10827_v19 }
 0x608   : > { %2230 = vmatprep.subr.bf16.mxu0 %v10833_v20  ;;  %2271 = vmatprep.subr.bf16.mxu1 %v10839_v21 }
 0x60b   : > { %2231 = vmatpush1.bf16.msra.mxu0 %v10845_v22  ;;  %2272 = vmatpush1.bf16.msra.mxu1 %v10851_v23 }
 0x60c   : > { %2232 = vmatprep.subr.bf16.mxu0 %v10857_v24  ;;  %2273 = vmatprep.subr.bf16.mxu1 %v10863_v25 }
 0x60f   : > { %2233 = vmatpush1.bf16.msra.mxu0 %v10869_v26  ;;  %2274 = vmatpush1.bf16.msra.mxu1 %v10875_v27 }
 0x610   : > { %2234 = vmatprep.subr.bf16.mxu0 %v10933_v53  ;;  %2275 = vmatprep.subr.bf16.mxu1 %v10939_v60 }
 0x613   : > { %2235 = vmatpush1.bf16.msra.mxu0 %v10945_v55  ;;  %2276 = vmatpush1.bf16.msra.mxu1 %v10951_v9 }
 0x614   : > { %2236 = vmatprep.subr.bf16.mxu0 %v10957_v61  ;;  %2277 = vmatprep.subr.bf16.mxu1 %v10963_v62 }
 0x617   : > { %2237 = vmatpush1.bf16.msra.mxu0 %v10969_v0  ;;  %2278 = vmatpush1.bf16.msra.mxu1 %v10975_v32 }
 0x618   : > { %2238 = vmatprep.subr.bf16.mxu0 %v10981_v33  ;;  %2279 = vmatprep.subr.bf16.mxu1 %v10987_v34 }
 0x61b   : > { %2239 = vmatpush1.bf16.msra.mxu0 %v10993_v35  ;;  %2280 = vmatpush1.bf16.msra.mxu1 %v10999_v36 }
 0x61c   : > { %2240 = vmatprep.subr.bf16.mxu0 %v11005_v37  ;;  %2281 = vmatprep.subr.bf16.mxu1 %v11011_v38 }
 0x61f   : > { %2241 = vmatpush1.bf16.msra.mxu0 %v11017_v39  ;;  %2282 = vmatpush1.bf16.msra.mxu1 %v11023_v40 }
 0x620   : > { %2356 = vmatprep.subr.bf16.mxu0 %v10897_v30  ;;  %2397 = vmatprep.subr.bf16.mxu1 %v10903_v31 }
 0x6d5   : > { %v2130_v41 = vpop.f32.mrb[24].mxu0  ;;  %v2171_v42 = vpop.f32.mrb[24].mxu1 }
 0x6d6   : > { %v2182_v43 = vrot.slane %v2130_v41, 6  ;;  %v2132_v44 = vpop.f32.mrb[25].mxu0  ;;  %v2173_v45 = vpop.f32.mrb[25].mxu1  ;;  %v2184_v31 = vrot.slane %v2171_v42, 6 }
 0x6d7   : > { %v2183_v28 = vrot.slane %v2132_v44, 6  ;;  %v2134_v29 = vpop.f32.mrb[26].mxu0  ;;  %v2175_v12 = vpop.f32.mrb[26].mxu1  ;;  %v2185_v11 = vrot.slane %v2173_v45, 6  ;;  %v2214_v44 = vrot.slane %v10911_v59, 6 }
 0x6d8   : > { %v2190_v14 = vadd.f32 %v2182_v43, %v10643_v63  ;;  %v2135_v15 = vpop.f32.mrb[27].mxu0  ;;  %v2176_v13 = vpop.f32.mrb[27].mxu1  ;;  %v2192_v7 = vadd.f32 %v2184_v31, %v10645_v1 }
 0x6d9   : > { %v2191_v46 = vadd.f32 %v2183_v28, %v10647_v4  ;;  %v2193_v30 = vadd.f32 %v2185_v11, %v10649_v5 }
 0x6da   : > { %v7807_v57 = vmul.f32 -1.442695, %v2190_v14 }
 0x6db   : > { %v7808_v10 = vmul.f32 -1.442695, %v2191_v46  ;;  %v7809_v6 = vmul.f32 -1.442695, %v2193_v30 }
 0x6dc   : > { %8783 = vpow2.f32 %v7807_v57 }
 0x6dd   : > { %8785 = vpow2.f32 %v7808_v10 }
 0x6de   : > { %8787 = vpow2.f32 %v7809_v6 }
 0x6df   : > { %8789 = vtanh.f32 %v2192_v7 }
 0x6e6   : > { %v8784_v8 = vpop.eup %8783 }
 0x6e7   : > { %v8786_v58 = vpop.eup %8785  ;;  %v2197_v2 = vadd.f32 1.0, %v8784_v8  ;;  %v8561_v8 = vld [vmem:[%s12462_s4 + $0x4] ss:$16 sps:$4 sm:$0xff]  }
 0x6e8   : > { %v2203_v50 = vadd.f32 1.0, %v8786_v58  ;;  %v8788_v3 = vpop.eup %8787  ;;  %v8564_v58 = vld [vmem:[%s12462_s4 + $0xc] ss:$16 sps:$4 sm:$0xff]  }
 0x6e9   : > { %8791 = vrcp.f32 %v2197_v2  ;;  %v8790_v41 = vpop.eup %8789  ;;  %v2210_v29 = vadd.f32 1.0, %v8788_v3  ;;  %v8559_v2 = vld [vmem:[%s12462_s4] ss:$16 sps:$4 sm:$0xff]   ;;  %v8567_v3 = vld [vmem:[%s12462_s4 + $0x24] ss:$16 sps:$4 sm:$0xff]  }
 0x6ea   : > { %8793 = vrcp.f32 %v2203_v50  ;;  %v8562_v50 = vld [vmem:[%s12462_s4 + $0x8] ss:$16 sps:$4 sm:$0xff]  }
 0x6eb   : > { %8795 = vrcp.f32 %v2210_v29  ;;  %v8571_v29 = vld [vmem:[%s12462_s4 + $0x40] ss:$16 sps:$4 sm:$0xff]  }
 0x6f3   : > { %v8792_v43 = vpop.eup %8791 }
 0x6f4   : > { %v8794_v45 = vpop.eup %8793  ;;  %v2217_v28 = vmul.f32 %v8792_v43, %v8790_v41  ;;  %v8570_v41 = vld [vmem:[%s12462_s4 + $0x2c] ss:$16 sps:$4 sm:$0xff]   ;;  %v8565_v43 = vld [vmem:[%s12462_s4 + $0x20] ss:$16 sps:$4 sm:$0xff]  }
 0x6f5   : > { %v2216_v42 = vmul.f32 %v8794_v45, %v2214_v44  ;;  %v8796_v14 = vpop.eup %8795  ;;  %v8568_v44 = vld [vmem:[%s12462_s4 + $0x28] ss:$16 sps:$4 sm:$0xff]   ;;  %v8573_v45 = vld [vmem:[%s12462_s4 + $0x44] ss:$16 sps:$4 sm:$0xff]  }
 0x6f7   : > { %v11033_v12 = vadd.f32 %v2217_v28, %v2216_v42  ;;  %v8576_v28 = vld [vmem:[%s12462_s4 + $0x4c] ss:$16 sps:$4 sm:$0xff]   ;;  %v8574_v42 = vld [vmem:[%s12462_s4 + $0x48] ss:$16 sps:$4 sm:$0xff]  }
 0x6f9   : > { %8797 = vtanh.f32 %v11033_v12 }
 0x703   : > { %v8798_v15 = vpop.eup %8797 }
 0x704   : > { %v2220_v13 = vmul.f32 %v8798_v15, %v8796_v14  ;;  %v8582_v14 = vld [vmem:[%s12462_s4 + $0x6c] ss:$16 sps:$4 sm:$0xff]   ;;  %v8577_v15 = vld [vmem:[%s12462_s4 + $0x60] ss:$16 sps:$4 sm:$0xff]  }
 0x706   : > { %2221 = vst [vmem:[#allocation3 + $0x8] sm:$0xc] %v2220_v13  ;;  %v2222_v46 = vpack.c.bf16 %v2220_v13, %v2220_v13  ;;  %v8580_v13 = vld [vmem:[%s12462_s4 + $0x68] ss:$16 sps:$4 sm:$0xff]  }
 0x708   : > { %v2224_v57 = vrot.slane %v2222_v46, 1  ;;  %v8585_v46 = vld [vmem:[%s12462_s4 + $0x84] ss:$16 sps:$4 sm:$0xff]  }
 0x70a   : > { %2259 = vmatmul.mubr.bf16.vlgmr.msra.gmra.mrb[28].mxu0 %v2224_v57  ;;  %2300 = vmatmul.mubr.bf16.vlgmr.msra.gmra.mrb[28].mxu1 %v2224_v57  ;;  %v8588_v57 = vld [vmem:[%s12462_s4 + $0x8c] ss:$16 sps:$4 sm:$0xff]  }
 0x70b   : > { %2357 = vmatpush1.bf16.msra.mxu0 %v10795_v56  ;;  %2398 = vmatpush1.bf16.msra.mxu1 %v10801_v54 }
 0x70c   : > { %2358 = vmatprep.subr.bf16.mxu0 %v10807_v16  ;;  %2399 = vmatprep.subr.bf16.mxu1 %v10813_v17 }
 0x70d   : > { %2388 = vmatprep.mubr.bf16.mxu0 %v12500_v47  ;;  %2429 = vmatprep.mubr.bf16.mxu1 %v12500_v47 }
 0x70f   : > { %2359 = vmatpush1.bf16.msra.mxu0 %v10821_v18  ;;  %2400 = vmatpush1.bf16.msra.mxu1 %v10827_v19 }
 0x710   : > { %2360 = vmatprep.subr.bf16.mxu0 %v10833_v20  ;;  %2401 = vmatprep.subr.bf16.mxu1 %v10839_v21 }
 0x713   : > { %2361 = vmatpush1.bf16.msra.mxu0 %v10845_v22  ;;  %2402 = vmatpush1.bf16.msra.mxu1 %v10851_v23 }
 0x714   : > { %2362 = vmatprep.subr.bf16.mxu0 %v10857_v24  ;;  %2403 = vmatprep.subr.bf16.mxu1 %v10863_v25 }
 0x717   : > { %2363 = vmatpush1.bf16.msra.mxu0 %v10869_v26  ;;  %2404 = vmatpush1.bf16.msra.mxu1 %v10875_v27 }
 0x718   : > { %2364 = vmatprep.subr.bf16.mxu0 %v10933_v53  ;;  %2405 = vmatprep.subr.bf16.mxu1 %v10939_v60 }
 0x71b   : > { %2365 = vmatpush1.bf16.msra.mxu0 %v10945_v55  ;;  %2406 = vmatpush1.bf16.msra.mxu1 %v10951_v9 }
 0x71c   : > { %2366 = vmatprep.subr.bf16.mxu0 %v10957_v61  ;;  %2407 = vmatprep.subr.bf16.mxu1 %v10963_v62 }
 0x71f   : > { %2367 = vmatpush1.bf16.msra.mxu0 %v10969_v0  ;;  %2408 = vmatpush1.bf16.msra.mxu1 %v10975_v32 }
 0x720   : > { %2368 = vmatprep.subr.bf16.mxu0 %v10981_v33  ;;  %2409 = vmatprep.subr.bf16.mxu1 %v10987_v34 }
 0x723   : > { %2369 = vmatpush1.bf16.msra.mxu0 %v10993_v35  ;;  %2410 = vmatpush1.bf16.msra.mxu1 %v10999_v36  ;;  %v2344_v36 = vrot.slane %v11033_v12, 6  ;;  %v8579_v12 = vld [vmem:[%s12462_s4 + $0x64] ss:$16 sps:$4 sm:$0xff]  }
 0x724   : > { %2370 = vmatprep.subr.bf16.mxu0 %v11005_v37  ;;  %2411 = vmatprep.subr.bf16.mxu1 %v11011_v38 }
 0x727   : > { %2371 = vmatpush1.bf16.msra.mxu0 %v11017_v39  ;;  %2412 = vmatpush1.bf16.msra.mxu1 %v11023_v40 }
 0x728   : > { %2699 = vmatprep.subr.bf16.mxu0 %v8561_v8  ;;  %2742 = vmatprep.subr.bf16.mxu1 %v8564_v58 }
 0x7dd   : > { %v2260_v56 = vpop.f32.mrb[28].mxu0  ;;  %v2301_v54 = vpop.f32.mrb[28].mxu1 }
 0x7de   : > { %v2312_v16 = vrot.slane %v2260_v56, 4  ;;  %v2262_v17 = vpop.f32.mrb[29].mxu0  ;;  %v2303_v18 = vpop.f32.mrb[29].mxu1  ;;  %v2314_v60 = vrot.slane %v2301_v54, 4  ;;  %v8583_v56 = vld [vmem:[%s12462_s4 + $0x80] ss:$16 sps:$4 sm:$0xff]  }
 0x7df   : > { %v2313_v19 = vrot.slane %v2262_v17, 4  ;;  %v2264_v20 = vpop.f32.mrb[30].mxu0  ;;  %v2305_v21 = vpop.f32.mrb[30].mxu1  ;;  %v2315_v59 = vrot.slane %v2303_v18, 4  ;;  %v8586_v54 = vld [vmem:[%s12462_s4 + $0x88] ss:$16 sps:$4 sm:$0xff]  }
 0x7e0   : > { %v2320_v22 = vadd.f32 %v2312_v16, %v10643_v63  ;;  %v2265_v23 = vpop.f32.mrb[31].mxu0  ;;  %v2306_v24 = vpop.f32.mrb[31].mxu1  ;;  %v2322_v9 = vadd.f32 %v2314_v60, %v10645_v1  ;;  %v8591_v16 = vld [vmem:[%s12462_s4 + $0xa4] ss:$16 sps:$4 sm:$0xff]   ;;  %v8594_v17 = vld [vmem:[%s12462_s4 + $0xac] ss:$16 sps:$4 sm:$0xff]  }
 0x7e1   : > { %v2321_v25 = vadd.f32 %v2313_v19, %v10647_v4  ;;  %v2323_v53 = vadd.f32 %v2315_v59, %v10649_v5  ;;  %v8589_v18 = vld [vmem:[%s12462_s4 + $0xa0] ss:$16 sps:$4 sm:$0xff]   ;;  %v8592_v19 = vld [vmem:[%s12462_s4 + $0xa8] ss:$16 sps:$4 sm:$0xff]   ;;  %v8597_v21 = vld [vmem:[%s12462_s4 + $0xc4] ss:$16 sps:$4 sm:$0xff]  }
 0x7e2   : > { %v7810_v26 = vmul.f32 -1.442695, %v2320_v22  ;;  %v8595_v20 = vld [vmem:[%s12462_s4 + $0xc0] ss:$16 sps:$4 sm:$0xff]   ;;  %v8598_v22 = vld [vmem:[%s12462_s4 + $0xc8] ss:$16 sps:$4 sm:$0xff]  }
 0x7e3   : > { %v7811_v27 = vmul.f32 -1.442695, %v2321_v25  ;;  %v7812_v55 = vmul.f32 -1.442695, %v2323_v53  ;;  %v8600_v23 = vld [vmem:[%s12462_s4 + $0xcc] ss:$16 sps:$4 sm:$0xff]  }
 0x7e4   : > { %8799 = vpow2.f32 %v7810_v26  ;;  %v8603_v24 = vld [vmem:[%s12462_s4 + $0xe4] ss:$16 sps:$4 sm:$0xff]   ;;  %v8606_v25 = vld [vmem:[%s12462_s4 + $0xec] ss:$16 sps:$4 sm:$0xff]   ;;  %v8601_v26 = vld [vmem:[%s12462_s4 + $0xe0] ss:$16 sps:$4 sm:$0xff]  }
 0x7e5   : > { %8801 = vpow2.f32 %v7811_v27  ;;  %v8604_v27 = vld [vmem:[%s12462_s4 + $0xe8] ss:$16 sps:$4 sm:$0xff]   ;;  %v11177_v59 = vld [vmem:[%s12463_s5 + $0x4] ss:$16 sps:$4 sm:$0xff]   ;;  %v11182_v53 = vld [vmem:[%s12463_s5 + $0xc] ss:$16 sps:$4 sm:$0xff]  }
 0x7e6   : > { %8803 = vpow2.f32 %v7812_v55 }
 0x7e7   : > { %8805 = vtanh.f32 %v2322_v9 }
 0x7ee   : > { %v8800_v61 = vpop.eup %8799 }
 0x7ef   : > { %v8802_v62 = vpop.eup %8801  ;;  %v2327_v0 = vadd.f32 1.0, %v8800_v61 }
 0x7f0   : > { %v2333_v32 = vadd.f32 1.0, %v8802_v62  ;;  %v8804_v33 = vpop.eup %8803 }
 0x7f1   : > { %8807 = vrcp.f32 %v2327_v0  ;;  %v8806_v34 = vpop.eup %8805  ;;  %v2340_v39 = vadd.f32 1.0, %v8804_v33 }
 0x7f2   : > { %8809 = vrcp.f32 %v2333_v32 }
 0x7f3   : > { %8811 = vrcp.f32 %v2340_v39 }
 0x7fb   : > { %v8808_v35 = vpop.eup %8807 }
 0x7fc   : > { %v8810_v37 = vpop.eup %8809  ;;  %v2347_v38 = vmul.f32 %v8808_v35, %v8806_v34 }
 0x7fd   : > { %v2346_v40 = vmul.f32 %v8810_v37, %v2344_v36  ;;  %v8812_v11 = vpop.eup %8811 }
 0x7ff   : > { %v11073_v10 = vadd.f32 %v2347_v38, %v2346_v40 }
 0x801   : > { %8813 = vtanh.f32 %v11073_v10 }
 0x80b   : > { %v8814_v30 = vpop.eup %8813 }
 0x80c   : > { %v2350_v31 = vmul.f32 %v8814_v30, %v8812_v11 }
 0x80e   : > { %2351 = vst [vmem:[#allocation3 + $0x8] sm:$0x30] %v2350_v31  ;;  %v2352_v6 = vpack.c.bf16 %v2350_v31, %v2350_v31 }
 0x810   : > { %v2354_v7 = vrot.slane %v2352_v6, 2 }
 0x812   : > { %2389 = vmatmul.mubr.bf16.vlgmr.msra.gmra.mrb[32].mxu0 %v2354_v7  ;;  %2430 = vmatmul.mubr.bf16.vlgmr.msra.gmra.mrb[32].mxu1 %v2354_v7 }
 0x813   : > { %2731 = vmatprep.mubr.bf16.mxu0 %v12500_v47  ;;  %2774 = vmatprep.mubr.bf16.mxu1 %v12500_v47 }
 0x814   : > { %2700 = vmatpush1.bf16.msra.mxu0 %v8559_v2  ;;  %2743 = vmatpush1.bf16.msra.mxu1 %v8562_v50 }
 0x815   : > { %2701 = vmatprep.subr.bf16.mxu0 %v8567_v3  ;;  %2744 = vmatprep.subr.bf16.mxu1 %v8570_v41  ;;  %v2474_v3 = vrot.slane %v11073_v10, 6  ;;  %v11199_v10 = vld [vmem:[%s12463_s5 + $0x8] ss:$16 sps:$4 sm:$0xff]  }
 0x818   : > { %2702 = vmatpush1.bf16.msra.mxu0 %v8565_v43  ;;  %2745 = vmatpush1.bf16.msra.mxu1 %v8568_v44 }
 0x819   : > { %2703 = vmatprep.subr.bf16.mxu0 %v8573_v45  ;;  %2746 = vmatprep.subr.bf16.mxu1 %v8576_v28 }
 0x81c   : > { %2704 = vmatpush1.bf16.msra.mxu0 %v8571_v29  ;;  %2747 = vmatpush1.bf16.msra.mxu1 %v8574_v42  ;;  %v2482_v42 = vld [vmem:[#allocation3] sm:$0xff] }
 0x81d   : > { %2705 = vmatprep.subr.bf16.mxu0 %v8579_v12  ;;  %2748 = vmatprep.subr.bf16.mxu1 %v8582_v14  ;;  %v11194_v14 = vld [vmem:[%s12463_s5] ss:$16 sps:$4 sm:$0xff]  }
 0x820   : > { %2706 = vmatpush1.bf16.msra.mxu0 %v8577_v15  ;;  %2749 = vmatpush1.bf16.msra.mxu1 %v8580_v13  ;;  %v11204_v13 = vld [vmem:[%s12463_s5 + $0x24] ss:$16 sps:$4 sm:$0xff]  }
 0x821   : > { %2707 = vmatprep.subr.bf16.mxu0 %v8585_v46  ;;  %2750 = vmatprep.subr.bf16.mxu1 %v8588_v57  ;;  %v11209_v46 = vld [vmem:[%s12463_s5 + $0x2c] ss:$16 sps:$4 sm:$0xff]   ;;  %v11216_v57 = vld [vmem:[%s12463_s5 + $0x20] ss:$16 sps:$4 sm:$0xff]  }
 0x824   : > { %2708 = vmatpush1.bf16.msra.mxu0 %v8583_v56  ;;  %2751 = vmatpush1.bf16.msra.mxu1 %v8586_v54  ;;  %v11221_v56 = vld [vmem:[%s12463_s5 + $0x28] ss:$16 sps:$4 sm:$0xff]   ;;  %v11228_v54 = vld [vmem:[%s12463_s5 + $0x44] ss:$16 sps:$4 sm:$0xff]  }
 0x825   : > { %2709 = vmatprep.subr.bf16.mxu0 %v8591_v16  ;;  %2752 = vmatprep.subr.bf16.mxu1 %v8594_v17  ;;  %v11233_v16 = vld [vmem:[%s12463_s5 + $0x4c] ss:$16 sps:$4 sm:$0xff]   ;;  %v11242_v17 = vld [vmem:[%s12463_s5 + $0x40] ss:$16 sps:$4 sm:$0xff]  }
 0x828   : > { %2710 = vmatpush1.bf16.msra.mxu0 %v8589_v18  ;;  %2753 = vmatpush1.bf16.msra.mxu1 %v8592_v19  ;;  %v11247_v18 = vld [vmem:[%s12463_s5 + $0x48] ss:$16 sps:$4 sm:$0xff]   ;;  %v11254_v19 = vld [vmem:[%s12463_s5 + $0x64] ss:$16 sps:$4 sm:$0xff]  }
 0x829   : > { %2711 = vmatprep.subr.bf16.mxu0 %v8597_v21  ;;  %2754 = vmatprep.subr.bf16.mxu1 %v8600_v23  ;;  %v11266_v21 = vld [vmem:[%s12463_s5 + $0x60] ss:$16 sps:$4 sm:$0xff]   ;;  %v11278_v23 = vld [vmem:[%s12463_s5 + $0x84] ss:$16 sps:$4 sm:$0xff]  }
 0x82c   : > { %2712 = vmatpush1.bf16.msra.mxu0 %v8595_v20  ;;  %2755 = vmatpush1.bf16.msra.mxu1 %v8598_v22  ;;  %v11259_v20 = vld [vmem:[%s12463_s5 + $0x6c] ss:$16 sps:$4 sm:$0xff]   ;;  %v11271_v22 = vld [vmem:[%s12463_s5 + $0x68] ss:$16 sps:$4 sm:$0xff]  }
 0x82d   : > { %2713 = vmatprep.subr.bf16.mxu0 %v8603_v24  ;;  %2756 = vmatprep.subr.bf16.mxu1 %v8606_v25  ;;  %v11283_v24 = vld [vmem:[%s12463_s5 + $0x8c] ss:$16 sps:$4 sm:$0xff]   ;;  %v11290_v25 = vld [vmem:[%s12463_s5 + $0x80] ss:$16 sps:$4 sm:$0xff]  }
 0x830   : > { %2714 = vmatpush1.bf16.msra.mxu0 %v8601_v26  ;;  %2757 = vmatpush1.bf16.msra.mxu1 %v8604_v27  ;;  %v11295_v26 = vld [vmem:[%s12463_s5 + $0x88] ss:$16 sps:$4 sm:$0xff]   ;;  %v11302_v27 = vld [vmem:[%s12463_s5 + $0xa4] ss:$16 sps:$4 sm:$0xff]  }
 0x831   : > { %2977 = vmatprep.subr.bf16.mxu0 %v11177_v59  ;;  %3018 = vmatprep.subr.bf16.mxu1 %v11182_v53 }
 0x8e5   : > { %v2390_v60 = vpop.f32.mrb[32].mxu0  ;;  %v2431_v55 = vpop.f32.mrb[32].mxu1 }
 0x8e6   : > { %v2442_v9 = vrot.slane %v2390_v60, 2  ;;  %v2392_v61 = vpop.f32.mrb[33].mxu0  ;;  %v2433_v62 = vpop.f32.mrb[33].mxu1  ;;  %v2444_v30 = vrot.slane %v2431_v55, 2  ;;  %v11307_v60 = vld [vmem:[%s12463_s5 + $0xac] ss:$16 sps:$4 sm:$0xff]  }
 0x8e7   : > { %v2443_v0 = vrot.slane %v2392_v61, 2  ;;  %v2394_v32 = vpop.f32.mrb[34].mxu0  ;;  %v2435_v33 = vpop.f32.mrb[34].mxu1  ;;  %v2445_v40 = vrot.slane %v2433_v62, 2  ;;  %v11314_v55 = vld [vmem:[%s12463_s5 + $0xa0] ss:$16 sps:$4 sm:$0xff]  }
 0x8e8   : > { %v2450_v34 = vadd.f32 %v2442_v9, %v10643_v63  ;;  %v2395_v35 = vpop.f32.mrb[35].mxu0  ;;  %v2436_v36 = vpop.f32.mrb[35].mxu1  ;;  %v2452_v6 = vadd.f32 %v2444_v30, %v10645_v1  ;;  %v11319_v9 = vld [vmem:[%s12463_s5 + $0xa8] ss:$16 sps:$4 sm:$0xff]   ;;  %v11326_v61 = vld [vmem:[%s12463_s5 + $0xc4] ss:$16 sps:$4 sm:$0xff]  }
 0x8e9   : > { %v2451_v37 = vadd.f32 %v2443_v0, %v10647_v4  ;;  %v2453_v11 = vadd.f32 %v2445_v40, %v10649_v5  ;;  %v11331_v62 = vld [vmem:[%s12463_s5 + $0xcc] ss:$16 sps:$4 sm:$0xff]   ;;  %v11338_v0 = vld [vmem:[%s12463_s5 + $0xc0] ss:$16 sps:$4 sm:$0xff]   ;;  %v11343_v32 = vld [vmem:[%s12463_s5 + $0xc8] ss:$16 sps:$4 sm:$0xff]  }
 0x8ea   : > { %v7813_v38 = vmul.f32 -1.442695, %v2450_v34  ;;  %v11350_v33 = vld [vmem:[%s12463_s5 + $0xe4] ss:$16 sps:$4 sm:$0xff]   ;;  %v11355_v34 = vld [vmem:[%s12463_s5 + $0xec] ss:$16 sps:$4 sm:$0xff]  }
 0x8eb   : > { %v7814_v39 = vmul.f32 -1.442695, %v2451_v37  ;;  %v7815_v31 = vmul.f32 -1.442695, %v2453_v11  ;;  %v11362_v35 = vld [vmem:[%s12463_s5 + $0xe0] ss:$16 sps:$4 sm:$0xff]  }
 0x8ec   : > { %8815 = vpow2.f32 %v7813_v38  ;;  %v11367_v36 = vld [vmem:[%s12463_s5 + $0xe8] ss:$16 sps:$4 sm:$0xff]   ;;  %v2517_v37 = vld [vmem:[%s12464_s6] sm:$0xf] }
 0x8ed   : > { %8817 = vpow2.f32 %v7814_v39  ;;  %v2522_v40 = vrot.slane %v2517_v37, %v10625_v48  ;;  %v2530_v11 = vrot.slane %v2517_v37, %v10628_v49 }
 0x8ee   : > { %8819 = vpow2.f32 %v7815_v31 }
 0x8ef   : > { %8821 = vtanh.f32 %v2452_v6  ;;  %v2526_v6 = vrot.slane %v2517_v37, %v10637_v52 }
 0x8f6   : > { %v8816_v7 = vpop.eup %8815 }
 0x8f7   : > { %v8818_v8 = vpop.eup %8817  ;;  %v2457_v58 = vadd.f32 1.0, %v8816_v7  ;;  %v2534_v7 = vrot.slane %v2517_v37, %v10634_v51 }
 0x8f8   : > { %v2463_v63 = vadd.f32 1.0, %v8818_v8  ;;  %v8820_v4 = vpop.eup %8819 }
 0x8f9   : > { %8823 = vrcp.f32 %v2457_v58  ;;  %v8822_v2 = vpop.eup %8821  ;;  %v2470_v5 = vadd.f32 1.0, %v8820_v4 }
 0x8fa   : > { %8825 = vrcp.f32 %v2463_v63 }
 0x8fb   : > { %8827 = vrcp.f32 %v2470_v5 }
 0x903   : > { %v8824_v50 = vpop.eup %8823 }
 0x904   : > { %v8826_v41 = vpop.eup %8825  ;;  %v2477_v43 = vmul.f32 %v8824_v50, %v8822_v2 }
 0x905   : > { %v2476_v44 = vmul.f32 %v8826_v41, %v2474_v3  ;;  %v8828_v1 = vpop.eup %8827 }
 0x907   : > { %v2478_v45 = vadd.f32 %v2477_v43, %v2476_v44 }
 0x909   : > { %8829 = vtanh.f32 %v2478_v45 }
 0x913   : > { %v8830_v28 = vpop.eup %8829 }
 0x914   : > { %v2480_v29 = vmul.f32 %v8830_v28, %v8828_v1 }
 0x916   : > { %2481 = vst [vmem:[#allocation3 + $0x8] sm:$0xc0] %v2480_v29 }
 0x91d   : > { %v2483_v12 = vld [vmem:[#allocation3 + $0x8] sm:$0xff] }
 0x91e   : > { %v2484_v15 = vpack.c.bf16 %v2483_v12, %v2482_v42 }
 0x920   : > { %2732 = vmatmul.mubr.bf16.vlgmr.msra.gmra.mrb[36].mxu0 %v2484_v15  ;;  %2775 = vmatmul.mubr.bf16.vlgmr.msra.gmra.mrb[36].mxu1 %v2484_v15 }
 0x921   : > { %2978 = vmatpush1.bf16.msra.mxu0 %v11194_v14  ;;  %3019 = vmatpush1.bf16.msra.mxu1 %v11199_v10 }
 0x922   : > { %2979 = vmatprep.subr.bf16.mxu0 %v11204_v13  ;;  %3020 = vmatprep.subr.bf16.mxu1 %v11209_v46 }
 0x923   : > { %3009 = vmatprep.mubr.bf16.mxu0 %v12500_v47  ;;  %3050 = vmatprep.mubr.bf16.mxu1 %v12500_v47 }
 0x925   : > { %2980 = vmatpush1.bf16.msra.mxu0 %v11216_v57  ;;  %3021 = vmatpush1.bf16.msra.mxu1 %v11221_v56 }
 0x926   : > { %2981 = vmatprep.subr.bf16.mxu0 %v11228_v54  ;;  %3022 = vmatprep.subr.bf16.mxu1 %v11233_v16 }
 0x929   : > { %2982 = vmatpush1.bf16.msra.mxu0 %v11242_v17  ;;  %3023 = vmatpush1.bf16.msra.mxu1 %v11247_v18 }
 0x92a   : > { %2983 = vmatprep.subr.bf16.mxu0 %v11254_v19  ;;  %3024 = vmatprep.subr.bf16.mxu1 %v11259_v20 }
 0x92d   : > { %2984 = vmatpush1.bf16.msra.mxu0 %v11266_v21  ;;  %3025 = vmatpush1.bf16.msra.mxu1 %v11271_v22 }
 0x92e   : > { %2985 = vmatprep.subr.bf16.mxu0 %v11278_v23  ;;  %3026 = vmatprep.subr.bf16.mxu1 %v11283_v24 }
 0x931   : > { %2986 = vmatpush1.bf16.msra.mxu0 %v11290_v25  ;;  %3027 = vmatpush1.bf16.msra.mxu1 %v11295_v26 }
 0x932   : > { %2987 = vmatprep.subr.bf16.mxu0 %v11302_v27  ;;  %3028 = vmatprep.subr.bf16.mxu1 %v11307_v60 }
 0x935   : > { %2988 = vmatpush1.bf16.msra.mxu0 %v11314_v55  ;;  %3029 = vmatpush1.bf16.msra.mxu1 %v11319_v9 }
 0x936   : > { %2989 = vmatprep.subr.bf16.mxu0 %v11326_v61  ;;  %3030 = vmatprep.subr.bf16.mxu1 %v11331_v62 }
 0x939   : > { %2990 = vmatpush1.bf16.msra.mxu0 %v11338_v0  ;;  %3031 = vmatpush1.bf16.msra.mxu1 %v11343_v32 }
 0x93a   : > { %2991 = vmatprep.subr.bf16.mxu0 %v11350_v33  ;;  %3032 = vmatprep.subr.bf16.mxu1 %v11355_v34 }
 0x93d   : > { %2992 = vmatpush1.bf16.msra.mxu0 %v11362_v35  ;;  %3033 = vmatpush1.bf16.msra.mxu1 %v11367_v36 }
 0x93e   : > { %3088 = vmatprep.subr.bf16.mxu0 %v11177_v59  ;;  %3129 = vmatprep.subr.bf16.mxu1 %v11182_v53 }
 0x940   : > { %3010 = vmatmul.mubr.bf16.vlgmr.msra.gmra.mrb[40].mxu0 %v12500_v47  ;;  %3051 = vmatmul.mubr.bf16.vlgmr.msra.gmra.mrb[40].mxu1 %v12500_v47 }
 0x941   : > { %3089 = vmatpush1.bf16.msra.mxu0 %v11194_v14  ;;  %3130 = vmatpush1.bf16.msra.mxu1 %v11199_v10 }
 0x942   : > { %3090 = vmatprep.subr.bf16.mxu0 %v11204_v13  ;;  %3131 = vmatprep.subr.bf16.mxu1 %v11209_v46 }
 0x943   : > { %3120 = vmatprep.mubr.bf16.mxu0 %v12500_v47  ;;  %3161 = vmatprep.mubr.bf16.mxu1 %v12500_v47 }
 0x945   : > { %3091 = vmatpush1.bf16.msra.mxu0 %v11216_v57  ;;  %3132 = vmatpush1.bf16.msra.mxu1 %v11221_v56 }
 0x946   : > { %3092 = vmatprep.subr.bf16.mxu0 %v11228_v54  ;;  %3133 = vmatprep.subr.bf16.mxu1 %v11233_v16 }
 0x949   : > { %3093 = vmatpush1.bf16.msra.mxu0 %v11242_v17  ;;  %3134 = vmatpush1.bf16.msra.mxu1 %v11247_v18 }
 0x94a   : > { %3094 = vmatprep.subr.bf16.mxu0 %v11254_v19  ;;  %3135 = vmatprep.subr.bf16.mxu1 %v11259_v20 }
 0x94d   : > { %3095 = vmatpush1.bf16.msra.mxu0 %v11266_v21  ;;  %3136 = vmatpush1.bf16.msra.mxu1 %v11271_v22 }
 0x94e   : > { %3096 = vmatprep.subr.bf16.mxu0 %v11278_v23  ;;  %3137 = vmatprep.subr.bf16.mxu1 %v11283_v24 }
 0x951   : > { %3097 = vmatpush1.bf16.msra.mxu0 %v11290_v25  ;;  %3138 = vmatpush1.bf16.msra.mxu1 %v11295_v26 }
 0x952   : > { %3098 = vmatprep.subr.bf16.mxu0 %v11302_v27  ;;  %3139 = vmatprep.subr.bf16.mxu1 %v11307_v60 }
 0x955   : > { %3099 = vmatpush1.bf16.msra.mxu0 %v11314_v55  ;;  %3140 = vmatpush1.bf16.msra.mxu1 %v11319_v9 }
 0x956   : > { %3100 = vmatprep.subr.bf16.mxu0 %v11326_v61  ;;  %3141 = vmatprep.subr.bf16.mxu1 %v11331_v62 }
 0x959   : > { %3101 = vmatpush1.bf16.msra.mxu0 %v11338_v0  ;;  %3142 = vmatpush1.bf16.msra.mxu1 %v11343_v32 }
 0x95a   : > { %3102 = vmatprep.subr.bf16.mxu0 %v11350_v33  ;;  %3143 = vmatprep.subr.bf16.mxu1 %v11355_v34 }
 0x95d   : > { %3103 = vmatpush1.bf16.msra.mxu0 %v11362_v35  ;;  %3144 = vmatpush1.bf16.msra.mxu1 %v11367_v36 }
 0x95e   : > { %3217 = vmatprep.subr.bf16.mxu0 %v11177_v59  ;;  %3258 = vmatprep.subr.bf16.mxu1 %v11182_v53 }
 0x9f3   : > { %v2733_v38 = vpop.f32.mrb[36].mxu0  ;;  %v2776_v39 = vpop.f32.mrb[36].mxu1 }
 0x9f4   : > { %v2735_v30 = vpop.f32.mrb[37].mxu0  ;;  %v2778_v31 = vpop.f32.mrb[37].mxu1  ;;  %v11426_v43 = vadd.f32 %v2733_v38, %v2522_v40 }
 0x9f5   : > { %v2737_v8 = vpop.f32.mrb[38].mxu0  ;;  %v2780_v58 = vpop.f32.mrb[38].mxu1  ;;  %v11428_v5 = vadd.f32 %v2735_v30, %v2526_v6 }
 0x9f6   : > { %v11418_v63 = vadd.f32 %v2737_v8, %v2522_v40  ;;  %v11420_v4 = vadd.f32 %v2780_v58, %v2530_v11  ;;  %v2739_v2 = vpop.f32.mrb[39].mxu0  ;;  %v2782_v50 = vpop.f32.mrb[39].mxu1  ;;  %v11435_v40 = vadd.f32 %v2776_v39, %v2530_v11 }
 0x9f7   : > { %v11422_v3 = vadd.f32 %v2739_v2, %v2526_v6  ;;  %v11424_v41 = vadd.f32 %v2782_v50, %v2534_v7  ;;  %v11432_v50 = vadd.f32 %v2778_v31, %v2534_v7 }
 0xa13   : > { %v3011_v44 = vpop.f32.mrb[40].mxu0  ;;  %v3052_v45 = vpop.f32.mrb[40].mxu1 }
 0xa14   : > { %v3059_v1 = vadd.f32 %v3011_v44, %v11426_v43  ;;  %v3013_v28 = vpop.f32.mrb[41].mxu0  ;;  %v3054_v29 = vpop.f32.mrb[41].mxu1  ;;  %v3061_v6 = vadd.f32 %v3052_v45, %v11435_v40 }
 0xa15   : > { %v3060_v42 = vadd.f32 %v3013_v28, %v11428_v5  ;;  %v3015_v12 = vpop.f32.mrb[42].mxu0  ;;  %v3056_v15 = vpop.f32.mrb[42].mxu1  ;;  %v3062_v38 = vadd.f32 %v3054_v29, %v11432_v50 }
 0xa16   : > { %v7880_v37 = vmul.f32 -1.442695, %v3059_v1  ;;  %v3016_v8 = vpop.f32.mrb[43].mxu0  ;;  %v3057_v58 = vpop.f32.mrb[43].mxu1 }
 0xa17   : > { %v7881_v2 = vmul.f32 -1.442695, %v3060_v42  ;;  %v7882_v30 = vmul.f32 -1.442695, %v3062_v38 }
 0xa18   : > { %8831 = vpow2.f32 %v7880_v37 }
 0xa19   : > { %8833 = vpow2.f32 %v7881_v2 }
 0xa1a   : > { %8835 = vpow2.f32 %v7882_v30 }
 0xa1b   : > { %8837 = vtanh.f32 %v3061_v6 }
 0xa22   : > { %v8832_v44 = vpop.eup %8831 }
 0xa23   : > { %v8834_v51 = vpop.eup %8833  ;;  %v3066_v28 = vadd.f32 1.0, %v8832_v44 }
 0xa24   : > { %v3072_v1 = vadd.f32 1.0, %v8834_v51  ;;  %v8836_v42 = vpop.eup %8835 }
 0xa25   : > { %8839 = vrcp.f32 %v3066_v28  ;;  %v8838_v12 = vpop.eup %8837  ;;  %v3079_v37 = vadd.f32 1.0, %v8836_v42 }
 0xa26   : > { %8841 = vrcp.f32 %v3072_v1 }
 0xa27   : > { %8843 = vrcp.f32 %v3079_v37 }
 0xa2f   : > { %v8840_v31 = vpop.eup %8839 }
 0xa30   : > { %v8842_v7 = vpop.eup %8841  ;;  %v3083_v15 = vmul.f32 %v8840_v31, %v8838_v12 }
 0xa31   : > { %v3082_v29 = vmul.f32 0.0, %v8842_v7  ;;  %v8844_v11 = vpop.eup %8843 }
 0xa33   : > { %v11438_v39 = vadd.f32 %v3083_v15, %v3082_v29 }
 0xa35   : > { %8845 = vtanh.f32 %v11438_v39 }
 0xa3f   : > { %v8846_v45 = vpop.eup %8845 }
 0xa40   : > { %v3086_v8 = vmul.f32 %v8846_v45, %v8844_v11 }
 0xa42   : > { %v3087_v58 = vpack.c.bf16 %v3086_v8, %v3086_v8 }
 0xa44   : > { %3121 = vmatmul.mubr.bf16.vlgmr.msra.gmra.mrb[44].mxu0 %v3087_v58  ;;  %3162 = vmatmul.mubr.bf16.vlgmr.msra.gmra.mrb[44].mxu1 %v3087_v58 }
 0xa45   : > { %3218 = vmatpush1.bf16.msra.mxu0 %v11194_v14  ;;  %3259 = vmatpush1.bf16.msra.mxu1 %v11199_v10 }
 0xa46   : > { %3219 = vmatprep.subr.bf16.mxu0 %v11204_v13  ;;  %3260 = vmatprep.subr.bf16.mxu1 %v11209_v46 }
 0xa47   : > { %3249 = vmatprep.mubr.bf16.mxu0 %v12500_v47  ;;  %3290 = vmatprep.mubr.bf16.mxu1 %v12500_v47 }
 0xa49   : > { %3220 = vmatpush1.bf16.msra.mxu0 %v11216_v57  ;;  %3261 = vmatpush1.bf16.msra.mxu1 %v11221_v56 }
 0xa4a   : > { %3221 = vmatprep.subr.bf16.mxu0 %v11228_v54  ;;  %3262 = vmatprep.subr.bf16.mxu1 %v11233_v16 }
 0xa4d   : > { %3222 = vmatpush1.bf16.msra.mxu0 %v11242_v17  ;;  %3263 = vmatpush1.bf16.msra.mxu1 %v11247_v18 }
 0xa4e   : > { %3223 = vmatprep.subr.bf16.mxu0 %v11254_v19  ;;  %3264 = vmatprep.subr.bf16.mxu1 %v11259_v20 }
 0xa51   : > { %3224 = vmatpush1.bf16.msra.mxu0 %v11266_v21  ;;  %3265 = vmatpush1.bf16.msra.mxu1 %v11271_v22 }
 0xa52   : > { %3225 = vmatprep.subr.bf16.mxu0 %v11278_v23  ;;  %3266 = vmatprep.subr.bf16.mxu1 %v11283_v24 }
 0xa55   : > { %3226 = vmatpush1.bf16.msra.mxu0 %v11290_v25  ;;  %3267 = vmatpush1.bf16.msra.mxu1 %v11295_v26 }
 0xa56   : > { %3227 = vmatprep.subr.bf16.mxu0 %v11302_v27  ;;  %3268 = vmatprep.subr.bf16.mxu1 %v11307_v60 }
 0xa59   : > { %3228 = vmatpush1.bf16.msra.mxu0 %v11314_v55  ;;  %3269 = vmatpush1.bf16.msra.mxu1 %v11319_v9 }
 0xa5a   : > { %3229 = vmatprep.subr.bf16.mxu0 %v11326_v61  ;;  %3270 = vmatprep.subr.bf16.mxu1 %v11331_v62 }
 0xa5d   : > { %3230 = vmatpush1.bf16.msra.mxu0 %v11338_v0  ;;  %3271 = vmatpush1.bf16.msra.mxu1 %v11343_v32 }
 0xa5e   : > { %3231 = vmatprep.subr.bf16.mxu0 %v11350_v33  ;;  %3272 = vmatprep.subr.bf16.mxu1 %v11355_v34 }
 0xa61   : > { %3232 = vmatpush1.bf16.msra.mxu0 %v11362_v35  ;;  %3273 = vmatpush1.bf16.msra.mxu1 %v11367_v36 }
 0xa62   : > { %3346 = vmatprep.subr.bf16.mxu0 %v11177_v59  ;;  %3387 = vmatprep.subr.bf16.mxu1 %v11182_v53 }
 0xb17   : > { %v3122_v51 = vpop.f32.mrb[44].mxu0  ;;  %v3163_v2 = vpop.f32.mrb[44].mxu1 }
 0xb18   : > { %v3174_v38 = vrot.slane %v3122_v51, 6  ;;  %v3124_v30 = vpop.f32.mrb[45].mxu0  ;;  %v3165_v6 = vpop.f32.mrb[45].mxu1  ;;  %v3176_v45 = vrot.slane %v3163_v2, 6 }
 0xb19   : > { %v3175_v44 = vrot.slane %v3124_v30, 6  ;;  %v3126_v28 = vpop.f32.mrb[46].mxu0  ;;  %v3167_v1 = vpop.f32.mrb[46].mxu1  ;;  %v3177_v29 = vrot.slane %v3165_v6, 6  ;;  %v3206_v6 = vrot.slane %v11438_v39, 6 }
 0xb1a   : > { %v3182_v42 = vadd.f32 %v3174_v38, %v11426_v43  ;;  %v3127_v12 = vpop.f32.mrb[47].mxu0  ;;  %v3168_v31 = vpop.f32.mrb[47].mxu1  ;;  %v3184_v58 = vadd.f32 %v3176_v45, %v11435_v40 }
 0xb1b   : > { %v3183_v7 = vadd.f32 %v3175_v44, %v11428_v5  ;;  %v3185_v11 = vadd.f32 %v3177_v29, %v11432_v50 }
 0xb1c   : > { %v7883_v15 = vmul.f32 -1.442695, %v3182_v42 }
 0xb1d   : > { %v7884_v37 = vmul.f32 -1.442695, %v3183_v7  ;;  %v7885_v8 = vmul.f32 -1.442695, %v3185_v11 }
 0xb1e   : > { %8847 = vpow2.f32 %v7883_v15 }
 0xb1f   : > { %8849 = vpow2.f32 %v7884_v37 }
 0xb20   : > { %8851 = vpow2.f32 %v7885_v8 }
 0xb21   : > { %8853 = vtanh.f32 %v3184_v58 }
 0xb28   : > { %v8848_v51 = vpop.eup %8847 }
 0xb29   : > { %v8850_v30 = vpop.eup %8849  ;;  %v3189_v28 = vadd.f32 1.0, %v8848_v51 }
 0xb2a   : > { %v3195_v38 = vadd.f32 1.0, %v8850_v30  ;;  %v8852_v44 = vpop.eup %8851 }
 0xb2b   : > { %8855 = vrcp.f32 %v3189_v28  ;;  %v8854_v1 = vpop.eup %8853  ;;  %v3202_v7 = vadd.f32 1.0, %v8852_v44 }
 0xb2c   : > { %8857 = vrcp.f32 %v3195_v38 }
 0xb2d   : > { %8859 = vrcp.f32 %v3202_v7 }
 0xb35   : > { %v8856_v42 = vpop.eup %8855 }
 0xb36   : > { %v8858_v12 = vpop.eup %8857  ;;  %v3209_v31 = vmul.f32 %v8856_v42, %v8854_v1 }
 0xb37   : > { %v3208_v2 = vmul.f32 %v8858_v12, %v3206_v6  ;;  %v8860_v37 = vpop.eup %8859 }
 0xb39   : > { %v11480_v15 = vadd.f32 %v3209_v31, %v3208_v2 }
 0xb3b   : > { %8861 = vtanh.f32 %v11480_v15 }
 0xb45   : > { %v8862_v29 = vpop.eup %8861 }
 0xb46   : > { %v3212_v11 = vmul.f32 %v8862_v29, %v8860_v37 }
 0xb48   : > { %v3213_v45 = vpack.c.bf16 %v3212_v11, %v3212_v11 }
 0xb4a   : > { %v3215_v8 = vrot.slane %v3213_v45, 1 }
 0xb4c   : > { %3250 = vmatmul.mubr.bf16.vlgmr.msra.gmra.mrb[48].mxu0 %v3215_v8  ;;  %3291 = vmatmul.mubr.bf16.vlgmr.msra.gmra.mrb[48].mxu1 %v3215_v8 }
 0xb4d   : > { %3347 = vmatpush1.bf16.msra.mxu0 %v11194_v14  ;;  %3388 = vmatpush1.bf16.msra.mxu1 %v11199_v10 }
 0xb4e   : > { %3348 = vmatprep.subr.bf16.mxu0 %v11204_v13  ;;  %3389 = vmatprep.subr.bf16.mxu1 %v11209_v46 }
 0xb4f   : > { %3378 = vmatprep.mubr.bf16.mxu0 %v12500_v47  ;;  %3419 = vmatprep.mubr.bf16.mxu1 %v12500_v47 }
 0xb51   : > { %3349 = vmatpush1.bf16.msra.mxu0 %v11216_v57  ;;  %3390 = vmatpush1.bf16.msra.mxu1 %v11221_v56 }
 0xb52   : > { %3350 = vmatprep.subr.bf16.mxu0 %v11228_v54  ;;  %3391 = vmatprep.subr.bf16.mxu1 %v11233_v16 }
 0xb55   : > { %3351 = vmatpush1.bf16.msra.mxu0 %v11242_v17  ;;  %3392 = vmatpush1.bf16.msra.mxu1 %v11247_v18 }
 0xb56   : > { %3352 = vmatprep.subr.bf16.mxu0 %v11254_v19  ;;  %3393 = vmatprep.subr.bf16.mxu1 %v11259_v20 }
 0xb59   : > { %3353 = vmatpush1.bf16.msra.mxu0 %v11266_v21  ;;  %3394 = vmatpush1.bf16.msra.mxu1 %v11271_v22 }
 0xb5a   : > { %3354 = vmatprep.subr.bf16.mxu0 %v11278_v23  ;;  %3395 = vmatprep.subr.bf16.mxu1 %v11283_v24 }
 0xb5d   : > { %3355 = vmatpush1.bf16.msra.mxu0 %v11290_v25  ;;  %3396 = vmatpush1.bf16.msra.mxu1 %v11295_v26 }
 0xb5e   : > { %3356 = vmatprep.subr.bf16.mxu0 %v11302_v27  ;;  %3397 = vmatprep.subr.bf16.mxu1 %v11307_v60 }
 0xb61   : > { %3357 = vmatpush1.bf16.msra.mxu0 %v11314_v55  ;;  %3398 = vmatpush1.bf16.msra.mxu1 %v11319_v9 }
 0xb62   : > { %3358 = vmatprep.subr.bf16.mxu0 %v11326_v61  ;;  %3399 = vmatprep.subr.bf16.mxu1 %v11331_v62 }
 0xb65   : > { %3359 = vmatpush1.bf16.msra.mxu0 %v11338_v0  ;;  %3400 = vmatpush1.bf16.msra.mxu1 %v11343_v32 }
 0xb66   : > { %3360 = vmatprep.subr.bf16.mxu0 %v11350_v33  ;;  %3401 = vmatprep.subr.bf16.mxu1 %v11355_v34 }
 0xb69   : > { %3361 = vmatpush1.bf16.msra.mxu0 %v11362_v35  ;;  %3402 = vmatpush1.bf16.msra.mxu1 %v11367_v36 }
 0xb6a   : > { %3475 = vmatprep.subr.bf16.mxu0 %v11177_v59  ;;  %3516 = vmatprep.subr.bf16.mxu1 %v11182_v53 }
 0xc1f   : > { %v3251_v39 = vpop.f32.mrb[48].mxu0  ;;  %v3292_v58 = vpop.f32.mrb[48].mxu1 }
 0xc20   : > { %v3303_v51 = vrot.slane %v3251_v39, 4  ;;  %v3253_v30 = vpop.f32.mrb[49].mxu0  ;;  %v3294_v28 = vpop.f32.mrb[49].mxu1  ;;  %v3305_v11 = vrot.slane %v3292_v58, 4 }
 0xc21   : > { %v3304_v38 = vrot.slane %v3253_v30, 4  ;;  %v3255_v44 = vpop.f32.mrb[50].mxu0  ;;  %v3296_v1 = vpop.f32.mrb[50].mxu1  ;;  %v3306_v37 = vrot.slane %v3294_v28, 4  ;;  %v3335_v28 = vrot.slane %v11480_v15, 6 }
 0xc22   : > { %v3311_v42 = vadd.f32 %v3303_v51, %v11426_v43  ;;  %v3256_v6 = vpop.f32.mrb[51].mxu0  ;;  %v3297_v12 = vpop.f32.mrb[51].mxu1  ;;  %v3313_v8 = vadd.f32 %v3305_v11, %v11435_v40 }
 0xc23   : > { %v3312_v31 = vadd.f32 %v3304_v38, %v11428_v5  ;;  %v3314_v29 = vadd.f32 %v3306_v37, %v11432_v50 }
 0xc24   : > { %v7886_v7 = vmul.f32 -1.442695, %v3311_v42 }
 0xc25   : > { %v7887_v2 = vmul.f32 -1.442695, %v3312_v31  ;;  %v7888_v45 = vmul.f32 -1.442695, %v3314_v29 }
 0xc26   : > { %8863 = vpow2.f32 %v7886_v7 }
 0xc27   : > { %8865 = vpow2.f32 %v7887_v2 }
 0xc28   : > { %8867 = vpow2.f32 %v7888_v45 }
 0xc29   : > { %8869 = vtanh.f32 %v3313_v8 }
 0xc30   : > { %v8864_v39 = vpop.eup %8863 }
 0xc31   : > { %v8866_v30 = vpop.eup %8865  ;;  %v3318_v44 = vadd.f32 1.0, %v8864_v39 }
 0xc32   : > { %v3324_v51 = vadd.f32 1.0, %v8866_v30  ;;  %v8868_v38 = vpop.eup %8867 }
 0xc33   : > { %8871 = vrcp.f32 %v3318_v44  ;;  %v8870_v1 = vpop.eup %8869  ;;  %v3331_v31 = vadd.f32 1.0, %v8868_v38 }
 0xc34   : > { %8873 = vrcp.f32 %v3324_v51 }
 0xc35   : > { %8875 = vrcp.f32 %v3331_v31 }
 0xc3d   : > { %v8872_v42 = vpop.eup %8871 }
 0xc3e   : > { %v8874_v6 = vpop.eup %8873  ;;  %v3338_v12 = vmul.f32 %v8872_v42, %v8870_v1 }
 0xc3f   : > { %v3337_v58 = vmul.f32 %v8874_v6, %v3335_v28  ;;  %v8876_v2 = vpop.eup %8875 }
 0xc41   : > { %v11522_v7 = vadd.f32 %v3338_v12, %v3337_v58 }
 0xc43   : > { %8877 = vtanh.f32 %v11522_v7 }
 0xc4d   : > { %v8878_v37 = vpop.eup %8877 }
 0xc4e   : > { %v3341_v29 = vmul.f32 %v8878_v37, %v8876_v2 }
 0xc50   : > { %v3342_v11 = vpack.c.bf16 %v3341_v29, %v3341_v29 }
 0xc52   : > { %v3344_v45 = vrot.slane %v3342_v11, 2 }
 0xc54   : > { %3379 = vmatmul.mubr.bf16.vlgmr.msra.gmra.mrb[52].mxu0 %v3344_v45  ;;  %3420 = vmatmul.mubr.bf16.vlgmr.msra.gmra.mrb[52].mxu1 %v3344_v45 }
 0xc55   : > { %3476 = vmatpush1.bf16.msra.mxu0 %v11194_v14  ;;  %3517 = vmatpush1.bf16.msra.mxu1 %v11199_v10 }
 0xc56   : > { %3477 = vmatprep.subr.bf16.mxu0 %v11204_v13  ;;  %3518 = vmatprep.subr.bf16.mxu1 %v11209_v46 }
 0xc57   : > { %3507 = vmatprep.mubr.bf16.mxu0 %v12500_v47  ;;  %3548 = vmatprep.mubr.bf16.mxu1 %v12500_v47 }
 0xc59   : > { %3478 = vmatpush1.bf16.msra.mxu0 %v11216_v57  ;;  %3519 = vmatpush1.bf16.msra.mxu1 %v11221_v56 }
 0xc5a   : > { %3479 = vmatprep.subr.bf16.mxu0 %v11228_v54  ;;  %3520 = vmatprep.subr.bf16.mxu1 %v11233_v16 }
 0xc5d   : > { %3480 = vmatpush1.bf16.msra.mxu0 %v11242_v17  ;;  %3521 = vmatpush1.bf16.msra.mxu1 %v11247_v18 }
 0xc5e   : > { %3481 = vmatprep.subr.bf16.mxu0 %v11254_v19  ;;  %3522 = vmatprep.subr.bf16.mxu1 %v11259_v20 }
 0xc61   : > { %3482 = vmatpush1.bf16.msra.mxu0 %v11266_v21  ;;  %3523 = vmatpush1.bf16.msra.mxu1 %v11271_v22 }
 0xc62   : > { %3483 = vmatprep.subr.bf16.mxu0 %v11278_v23  ;;  %3524 = vmatprep.subr.bf16.mxu1 %v11283_v24 }
 0xc65   : > { %3484 = vmatpush1.bf16.msra.mxu0 %v11290_v25  ;;  %3525 = vmatpush1.bf16.msra.mxu1 %v11295_v26 }
 0xc66   : > { %3485 = vmatprep.subr.bf16.mxu0 %v11302_v27  ;;  %3526 = vmatprep.subr.bf16.mxu1 %v11307_v60 }
 0xc69   : > { %3486 = vmatpush1.bf16.msra.mxu0 %v11314_v55  ;;  %3527 = vmatpush1.bf16.msra.mxu1 %v11319_v9 }
 0xc6a   : > { %3487 = vmatprep.subr.bf16.mxu0 %v11326_v61  ;;  %3528 = vmatprep.subr.bf16.mxu1 %v11331_v62 }
 0xc6d   : > { %3488 = vmatpush1.bf16.msra.mxu0 %v11338_v0  ;;  %3529 = vmatpush1.bf16.msra.mxu1 %v11343_v32 }
 0xc6e   : > { %3489 = vmatprep.subr.bf16.mxu0 %v11350_v33  ;;  %3530 = vmatprep.subr.bf16.mxu1 %v11355_v34 }
 0xc71   : > { %3490 = vmatpush1.bf16.msra.mxu0 %v11362_v35  ;;  %3531 = vmatpush1.bf16.msra.mxu1 %v11367_v36 }
 0xc72   : > { %3589 = vmatprep.subr.bf16.mxu0 %v11177_v59  ;;  %3630 = vmatprep.subr.bf16.mxu1 %v11182_v53 }
 0xd27   : > { %v3380_v15 = vpop.f32.mrb[52].mxu0  ;;  %v3421_v8 = vpop.f32.mrb[52].mxu1 }
 0xd28   : > { %v3432_v39 = vrot.slane %v3380_v15, 2  ;;  %v3382_v30 = vpop.f32.mrb[53].mxu0  ;;  %v3423_v44 = vpop.f32.mrb[53].mxu1  ;;  %v3434_v29 = vrot.slane %v3421_v8, 2 }
 0xd29   : > { %v3433_v51 = vrot.slane %v3382_v30, 2  ;;  %v3384_v38 = vpop.f32.mrb[54].mxu0  ;;  %v3425_v1 = vpop.f32.mrb[54].mxu1  ;;  %v3435_v2 = vrot.slane %v3423_v44, 2  ;;  %v3464_v44 = vrot.slane %v11522_v7, 6 }
 0xd2a   : > { %v3440_v42 = vadd.f32 %v3432_v39, %v11426_v43  ;;  %v3385_v28 = vpop.f32.mrb[55].mxu0  ;;  %v3426_v6 = vpop.f32.mrb[55].mxu1  ;;  %v3442_v45 = vadd.f32 %v3434_v29, %v11435_v40 }
 0xd2b   : > { %v3441_v12 = vadd.f32 %v3433_v51, %v11428_v5  ;;  %v3443_v37 = vadd.f32 %v3435_v2, %v11432_v50 }
 0xd2c   : > { %v7889_v31 = vmul.f32 -1.442695, %v3440_v42 }
 0xd2d   : > { %v7890_v58 = vmul.f32 -1.442695, %v3441_v12  ;;  %v7891_v11 = vmul.f32 -1.442695, %v3443_v37 }
 0xd2e   : > { %8879 = vpow2.f32 %v7889_v31 }
 0xd2f   : > { %8881 = vpow2.f32 %v7890_v58 }
 0xd30   : > { %8883 = vpow2.f32 %v7891_v11 }
 0xd31   : > { %8885 = vtanh.f32 %v3442_v45 }
 0xd38   : > { %v8880_v15 = vpop.eup %8879 }
 0xd39   : > { %v8882_v30 = vpop.eup %8881  ;;  %v3447_v38 = vadd.f32 1.0, %v8880_v15 }
 0xd3a   : > { %v3453_v43 = vadd.f32 1.0, %v8882_v30  ;;  %v8884_v5 = vpop.eup %8883 }
 0xd3b   : > { %8887 = vrcp.f32 %v3447_v38  ;;  %v8886_v39 = vpop.eup %8885  ;;  %v3460_v50 = vadd.f32 1.0, %v8884_v5 }
 0xd3c   : > { %8889 = vrcp.f32 %v3453_v43 }
 0xd3d   : > { %8891 = vrcp.f32 %v3460_v50 }
 0xd45   : > { %v8888_v51 = vpop.eup %8887 }
 0xd46   : > { %v8890_v1 = vpop.eup %8889  ;;  %v3467_v42 = vmul.f32 %v8888_v51, %v8886_v39 }
 0xd47   : > { %v3466_v8 = vmul.f32 %v8890_v1, %v3464_v44  ;;  %v8892_v40 = vpop.eup %8891 }
 0xd49   : > { %v11564_v28 = vadd.f32 %v3467_v42, %v3466_v8 }
 0xd4b   : > { %8893 = vtanh.f32 %v11564_v28 }
 0xd55   : > { %v8894_v6 = vpop.eup %8893 }
 0xd56   : > { %v3470_v12 = vmul.f32 %v8894_v6, %v8892_v40 }
 0xd58   : > { %v3471_v31 = vpack.c.bf16 %v3470_v12, %v3470_v12  ;;  %v3581_v12 = vrot.slane %v11564_v28, 6 }
 0xd5a   : > { %v3473_v58 = vrot.slane %v3471_v31, 3 }
 0xd5c   : > { %3508 = vmatmul.mubr.bf16.vlgmr.msra.gmra.mrb[56].mxu0 %v3473_v58  ;;  %3549 = vmatmul.mubr.bf16.vlgmr.msra.gmra.mrb[56].mxu1 %v3473_v58 }
 0xd5d   : > { %3590 = vmatpush1.bf16.msra.mxu0 %v11194_v14  ;;  %3631 = vmatpush1.bf16.msra.mxu1 %v11199_v10 }
 0xd5e   : > { %3591 = vmatprep.subr.bf16.mxu0 %v11204_v13  ;;  %3632 = vmatprep.subr.bf16.mxu1 %v11209_v46 }
 0xd5f   : > { %3621 = vmatprep.mubr.bf16.mxu0 %v12500_v47  ;;  %3662 = vmatprep.mubr.bf16.mxu1 %v12500_v47 }
 0xd61   : > { %3592 = vmatpush1.bf16.msra.mxu0 %v11216_v57  ;;  %3633 = vmatpush1.bf16.msra.mxu1 %v11221_v56 }
 0xd62   : > { %3593 = vmatprep.subr.bf16.mxu0 %v11228_v54  ;;  %3634 = vmatprep.subr.bf16.mxu1 %v11233_v16 }
 0xd65   : > { %3594 = vmatpush1.bf16.msra.mxu0 %v11242_v17  ;;  %3635 = vmatpush1.bf16.msra.mxu1 %v11247_v18 }
 0xd66   : > { %3595 = vmatprep.subr.bf16.mxu0 %v11254_v19  ;;  %3636 = vmatprep.subr.bf16.mxu1 %v11259_v20 }
 0xd69   : > { %3596 = vmatpush1.bf16.msra.mxu0 %v11266_v21  ;;  %3637 = vmatpush1.bf16.msra.mxu1 %v11271_v22 }
 0xd6a   : > { %3597 = vmatprep.subr.bf16.mxu0 %v11278_v23  ;;  %3638 = vmatprep.subr.bf16.mxu1 %v11283_v24 }
 0xd6d   : > { %3598 = vmatpush1.bf16.msra.mxu0 %v11290_v25  ;;  %3639 = vmatpush1.bf16.msra.mxu1 %v11295_v26 }
 0xd6e   : > { %3599 = vmatprep.subr.bf16.mxu0 %v11302_v27  ;;  %3640 = vmatprep.subr.bf16.mxu1 %v11307_v60 }
 0xd71   : > { %3600 = vmatpush1.bf16.msra.mxu0 %v11314_v55  ;;  %3641 = vmatpush1.bf16.msra.mxu1 %v11319_v9 }
 0xd72   : > { %3601 = vmatprep.subr.bf16.mxu0 %v11326_v61  ;;  %3642 = vmatprep.subr.bf16.mxu1 %v11331_v62 }
 0xd75   : > { %3602 = vmatpush1.bf16.msra.mxu0 %v11338_v0  ;;  %3643 = vmatpush1.bf16.msra.mxu1 %v11343_v32 }
 0xd76   : > { %3603 = vmatprep.subr.bf16.mxu0 %v11350_v33  ;;  %3644 = vmatprep.subr.bf16.mxu1 %v11355_v34 }
 0xd79   : > { %3604 = vmatpush1.bf16.msra.mxu0 %v11362_v35  ;;  %3645 = vmatpush1.bf16.msra.mxu1 %v11367_v36 }
 0xd7a   : > { %3718 = vmatprep.subr.bf16.mxu0 %v11177_v59  ;;  %3759 = vmatprep.subr.bf16.mxu1 %v11182_v53 }
 0xe2f   : > { %v3509_v7 = vpop.f32.mrb[56].mxu0  ;;  %v3550_v2 = vpop.f32.mrb[56].mxu1 }
 0xe30   : > { %v3557_v37 = vadd.f32 %v3509_v7, %v11418_v63  ;;  %v3511_v29 = vpop.f32.mrb[57].mxu0  ;;  %v3552_v11 = vpop.f32.mrb[57].mxu1  ;;  %v3559_v53 = vadd.f32 %v3550_v2, %v11420_v4 }
 0xe31   : > { %v3558_v45 = vadd.f32 %v3511_v29, %v11422_v3  ;;  %v3513_v15 = vpop.f32.mrb[58].mxu0  ;;  %v3554_v30 = vpop.f32.mrb[58].mxu1  ;;  %v3560_v59 = vadd.f32 %v3552_v11, %v11424_v41 }
 0xe32   : > { %v7892_v38 = vmul.f32 -1.442695, %v3557_v37  ;;  %v3514_v43 = vpop.f32.mrb[59].mxu0  ;;  %v3555_v5 = vpop.f32.mrb[59].mxu1 }
 0xe33   : > { %v7893_v39 = vmul.f32 -1.442695, %v3558_v45  ;;  %v7894_v51 = vmul.f32 -1.442695, %v3560_v59 }
 0xe34   : > { %8895 = vpow2.f32 %v7892_v38 }
 0xe35   : > { %8897 = vpow2.f32 %v7893_v39 }
 0xe36   : > { %8899 = vpow2.f32 %v7894_v51 }
 0xe37   : > { %8901 = vtanh.f32 %v3559_v53 }
 0xe3e   : > { %v8896_v44 = vpop.eup %8895 }
 0xe3f   : > { %v8898_v1 = vpop.eup %8897  ;;  %v3564_v42 = vadd.f32 1.0, %v8896_v44  ;;  %v8993_v44 = vld [vmem:[%s12463_s5] ss:$16 sps:$4 sm:$0xff]  }
 0xe40   : > { %v3570_v50 = vadd.f32 1.0, %v8898_v1  ;;  %v8900_v8 = vpop.eup %8899  ;;  %v8994_v1 = vld [vmem:[%s12463_s5 + $0x8] ss:$16 sps:$4 sm:$0xff]  }
 0xe41   : > { %8903 = vrcp.f32 %v3564_v42  ;;  %v8902_v40 = vpop.eup %8901  ;;  %v3577_v7 = vadd.f32 1.0, %v8900_v8  ;;  %v8995_v42 = vld [vmem:[%s12463_s5 + $0x24] ss:$16 sps:$4 sm:$0xff]   ;;  %v8997_v8 = vld [vmem:[%s12463_s5 + $0x20] ss:$16 sps:$4 sm:$0xff]  }
 0xe42   : > { %8905 = vrcp.f32 %v3570_v50  ;;  %v8996_v50 = vld [vmem:[%s12463_s5 + $0x2c] ss:$16 sps:$4 sm:$0xff]  }
 0xe43   : > { %8907 = vrcp.f32 %v3577_v7  ;;  %v9003_v7 = vld [vmem:[%s12463_s5 + $0x64] ss:$16 sps:$4 sm:$0xff]  }
 0xe4b   : > { %v8904_v6 = vpop.eup %8903 }
 0xe4c   : > { %v8906_v31 = vpop.eup %8905  ;;  %v3584_v58 = vmul.f32 %v8904_v6, %v8902_v40  ;;  %v8998_v40 = vld [vmem:[%s12463_s5 + $0x28] ss:$16 sps:$4 sm:$0xff]   ;;  %v8999_v6 = vld [vmem:[%s12463_s5 + $0x44] ss:$16 sps:$4 sm:$0xff]  }
 0xe4d   : > { %v3583_v37 = vmul.f32 %v8906_v31, %v3581_v12  ;;  %v8908_v2 = vpop.eup %8907  ;;  %v9000_v12 = vld [vmem:[%s12463_s5 + $0x4c] ss:$16 sps:$4 sm:$0xff]   ;;  %v9001_v31 = vld [vmem:[%s12463_s5 + $0x40] ss:$16 sps:$4 sm:$0xff]  }
 0xe4f   : > { %v11606_v29 = vadd.f32 %v3584_v58, %v3583_v37  ;;  %v9002_v58 = vld [vmem:[%s12463_s5 + $0x48] ss:$16 sps:$4 sm:$0xff]   ;;  %v9004_v37 = vld [vmem:[%s12463_s5 + $0x6c] ss:$16 sps:$4 sm:$0xff]  }
 0xe51   : > { %8909 = vtanh.f32 %v11606_v29 }
 0xe5b   : > { %v8910_v11 = vpop.eup %8909 }
 0xe5c   : > { %v3587_v45 = vmul.f32 %v8910_v11, %v8908_v2  ;;  %v9006_v2 = vld [vmem:[%s12463_s5 + $0x68] ss:$16 sps:$4 sm:$0xff]   ;;  %v9007_v11 = vld [vmem:[%s12463_s5 + $0x84] ss:$16 sps:$4 sm:$0xff]  }
 0xe5e   : > { %v3588_v15 = vpack.c.bf16 %v3587_v45, %v3587_v45  ;;  %v9008_v45 = vld [vmem:[%s12463_s5 + $0x8c] ss:$16 sps:$4 sm:$0xff]  }
 0xe60   : > { %3622 = vmatmul.mubr.bf16.vlgmr.msra.gmra.mrb[60].mxu0 %v3588_v15  ;;  %3663 = vmatmul.mubr.bf16.vlgmr.msra.gmra.mrb[60].mxu1 %v3588_v15  ;;  %v9009_v15 = vld [vmem:[%s12463_s5 + $0x80] ss:$16 sps:$4 sm:$0xff]  }
 0xe61   : > { %3719 = vmatpush1.bf16.msra.mxu0 %v11194_v14  ;;  %3760 = vmatpush1.bf16.msra.mxu1 %v11199_v10  ;;  %v8991_v14 = vld [vmem:[%s12463_s5 + $0x4] ss:$16 sps:$4 sm:$0xff]   ;;  %v8992_v10 = vld [vmem:[%s12463_s5 + $0xc] ss:$16 sps:$4 sm:$0xff]  }
 0xe62   : > { %3720 = vmatprep.subr.bf16.mxu0 %v11204_v13  ;;  %3761 = vmatprep.subr.bf16.mxu1 %v11209_v46 }
 0xe63   : > { %3750 = vmatprep.mubr.bf16.mxu0 %v12500_v47  ;;  %3791 = vmatprep.mubr.bf16.mxu1 %v12500_v47 }
 0xe65   : > { %3721 = vmatpush1.bf16.msra.mxu0 %v11216_v57  ;;  %3762 = vmatpush1.bf16.msra.mxu1 %v11221_v56 }
 0xe66   : > { %3722 = vmatprep.subr.bf16.mxu0 %v11228_v54  ;;  %3763 = vmatprep.subr.bf16.mxu1 %v11233_v16 }
 0xe69   : > { %3723 = vmatpush1.bf16.msra.mxu0 %v11242_v17  ;;  %3764 = vmatpush1.bf16.msra.mxu1 %v11247_v18 }
 0xe6a   : > { %3724 = vmatprep.subr.bf16.mxu0 %v11254_v19  ;;  %3765 = vmatprep.subr.bf16.mxu1 %v11259_v20 }
 0xe6d   : > { %3725 = vmatpush1.bf16.msra.mxu0 %v11266_v21  ;;  %3766 = vmatpush1.bf16.msra.mxu1 %v11271_v22 }
 0xe6e   : > { %3726 = vmatprep.subr.bf16.mxu0 %v11278_v23  ;;  %3767 = vmatprep.subr.bf16.mxu1 %v11283_v24 }
 0xe71   : > { %3727 = vmatpush1.bf16.msra.mxu0 %v11290_v25  ;;  %3768 = vmatpush1.bf16.msra.mxu1 %v11295_v26 }
 0xe72   : > { %3728 = vmatprep.subr.bf16.mxu0 %v11302_v27  ;;  %3769 = vmatprep.subr.bf16.mxu1 %v11307_v60 }
 0xe75   : > { %3729 = vmatpush1.bf16.msra.mxu0 %v11314_v55  ;;  %3770 = vmatpush1.bf16.msra.mxu1 %v11319_v9 }
 0xe76   : > { %3730 = vmatprep.subr.bf16.mxu0 %v11326_v61  ;;  %3771 = vmatprep.subr.bf16.mxu1 %v11331_v62 }
 0xe79   : > { %3731 = vmatpush1.bf16.msra.mxu0 %v11338_v0  ;;  %3772 = vmatpush1.bf16.msra.mxu1 %v11343_v32 }
 0xe7a   : > { %3732 = vmatprep.subr.bf16.mxu0 %v11350_v33  ;;  %3773 = vmatprep.subr.bf16.mxu1 %v11355_v34 }
 0xe7d   : > { %3733 = vmatpush1.bf16.msra.mxu0 %v11362_v35  ;;  %3774 = vmatpush1.bf16.msra.mxu1 %v11367_v36  ;;  %v3707_v35 = vrot.slane %v11606_v29, 6  ;;  %v9005_v29 = vld [vmem:[%s12463_s5 + $0x60] ss:$16 sps:$4 sm:$0xff]  }
 0xe7e   : > { %3847 = vmatprep.subr.bf16.mxu0 %v8991_v14  ;;  %3888 = vmatprep.subr.bf16.mxu1 %v8992_v10  ;;  %v9010_v14 = vld [vmem:[%s12463_s5 + $0x88] ss:$16 sps:$4 sm:$0xff]   ;;  %v9011_v10 = vld [vmem:[%s12463_s5 + $0xa4] ss:$16 sps:$4 sm:$0xff]  }
 0xf33   : > { %v3623_v13 = vpop.f32.mrb[60].mxu0  ;;  %v3664_v46 = vpop.f32.mrb[60].mxu1 }
 0xf34   : > { %v3675_v57 = vrot.slane %v3623_v13, 6  ;;  %v3625_v56 = vpop.f32.mrb[61].mxu0  ;;  %v3666_v54 = vpop.f32.mrb[61].mxu1  ;;  %v3677_v27 = vrot.slane %v3664_v46, 6  ;;  %v9012_v13 = vld [vmem:[%s12463_s5 + $0xac] ss:$16 sps:$4 sm:$0xff]  }
 0xf35   : > { %v3676_v16 = vrot.slane %v3625_v56, 6  ;;  %v3627_v17 = vpop.f32.mrb[62].mxu0  ;;  %v3668_v18 = vpop.f32.mrb[62].mxu1  ;;  %v3678_v25 = vrot.slane %v3666_v54, 6  ;;  %v9013_v46 = vld [vmem:[%s12463_s5 + $0xa0] ss:$16 sps:$4 sm:$0xff]  }
 0xf36   : > { %v3683_v19 = vadd.f32 %v3675_v57, %v11418_v63  ;;  %v3628_v20 = vpop.f32.mrb[63].mxu0  ;;  %v3669_v21 = vpop.f32.mrb[63].mxu1  ;;  %v3685_v55 = vadd.f32 %v3677_v27, %v11420_v4  ;;  %v9014_v57 = vld [vmem:[%s12463_s5 + $0xa8] ss:$16 sps:$4 sm:$0xff]   ;;  %v9015_v56 = vld [vmem:[%s12463_s5 + $0xc4] ss:$16 sps:$4 sm:$0xff]  }
 0xf37   : > { %v3684_v22 = vadd.f32 %v3676_v16, %v11422_v3  ;;  %v3686_v26 = vadd.f32 %v3678_v25, %v11424_v41  ;;  %v9016_v54 = vld [vmem:[%s12463_s5 + $0xcc] ss:$16 sps:$4 sm:$0xff]   ;;  %v9017_v16 = vld [vmem:[%s12463_s5 + $0xc0] ss:$16 sps:$4 sm:$0xff]   ;;  %v9018_v17 = vld [vmem:[%s12463_s5 + $0xc8] ss:$16 sps:$4 sm:$0xff]  }
 0xf38   : > { %v7895_v23 = vmul.f32 -1.442695, %v3683_v19  ;;  %v9019_v18 = vld [vmem:[%s12463_s5 + $0xe4] ss:$16 sps:$4 sm:$0xff]   ;;  %v9020_v19 = vld [vmem:[%s12463_s5 + $0xec] ss:$16 sps:$4 sm:$0xff]  }
 0xf39   : > { %v7896_v24 = vmul.f32 -1.442695, %v3684_v22  ;;  %v7897_v60 = vmul.f32 -1.442695, %v3686_v26  ;;  %v9021_v20 = vld [vmem:[%s12463_s5 + $0xe0] ss:$16 sps:$4 sm:$0xff]  }
 0xf3a   : > { %8911 = vpow2.f32 %v7895_v23  ;;  %v9022_v21 = vld [vmem:[%s12463_s5 + $0xe8] ss:$16 sps:$4 sm:$0xff]  }
 0xf3b   : > { %8913 = vpow2.f32 %v7896_v24 }
 0xf3c   : > { %8915 = vpow2.f32 %v7897_v60 }
 0xf3d   : > { %8917 = vtanh.f32 %v3685_v55 }
 0xf44   : > { %v8912_v9 = vpop.eup %8911 }
 0xf45   : > { %v8914_v61 = vpop.eup %8913  ;;  %v3690_v62 = vadd.f32 1.0, %v8912_v9 }
 0xf46   : > { %v3696_v0 = vadd.f32 1.0, %v8914_v61  ;;  %v8916_v32 = vpop.eup %8915 }
 0xf47   : > { %8919 = vrcp.f32 %v3690_v62  ;;  %v8918_v33 = vpop.eup %8917  ;;  %v3703_v30 = vadd.f32 1.0, %v8916_v32 }
 0xf48   : > { %8921 = vrcp.f32 %v3696_v0 }
 0xf49   : > { %8923 = vrcp.f32 %v3703_v30 }
 0xf51   : > { %v8920_v34 = vpop.eup %8919 }
 0xf52   : > { %v8922_v36 = vpop.eup %8921  ;;  %v3710_v28 = vmul.f32 %v8920_v34, %v8918_v33 }
 0xf53   : > { %v3709_v38 = vmul.f32 %v8922_v36, %v3707_v35  ;;  %v8924_v5 = vpop.eup %8923 }
 0xf55   : > { %v11652_v43 = vadd.f32 %v3710_v28, %v3709_v38 }
 0xf57   : > { %8925 = vtanh.f32 %v11652_v43 }
 0xf61   : > { %v8926_v39 = vpop.eup %8925 }
 0xf62   : > { %v3713_v59 = vmul.f32 %v8926_v39, %v8924_v5 }
 0xf64   : > { %v3714_v51 = vpack.c.bf16 %v3713_v59, %v3713_v59 }
 0xf66   : > { %v3716_v53 = vrot.slane %v3714_v51, 1 }
 0xf68   : > { %3751 = vmatmul.mubr.bf16.vlgmr.msra.gmra.mrb[64].mxu0 %v3716_v53  ;;  %3792 = vmatmul.mubr.bf16.vlgmr.msra.gmra.mrb[64].mxu1 %v3716_v53 }
 0xf69   : > { %3848 = vmatpush1.bf16.msra.mxu0 %v8993_v44  ;;  %3889 = vmatpush1.bf16.msra.mxu1 %v8994_v1  ;;  %v3836_v1 = vrot.slane %v11652_v43, 6  ;;  %v8657_v43 = vld [vmem:[%s12468_s10 + $0x4] ss:$16 sps:$4 sm:$0xff]  }
 0xf6a   : > { %3849 = vmatprep.subr.bf16.mxu0 %v8995_v42  ;;  %3890 = vmatprep.subr.bf16.mxu1 %v8996_v50 }
 0xf6b   : > { %3879 = vmatprep.mubr.bf16.mxu0 %v12500_v47  ;;  %3920 = vmatprep.mubr.bf16.mxu1 %v12500_v47 }
 0xf6d   : > { %3850 = vmatpush1.bf16.msra.mxu0 %v8997_v8  ;;  %3891 = vmatpush1.bf16.msra.mxu1 %v8998_v40 }
 0xf6e   : > { %3851 = vmatprep.subr.bf16.mxu0 %v8999_v6  ;;  %3892 = vmatprep.subr.bf16.mxu1 %v9000_v12 }
 0xf71   : > { %3852 = vmatpush1.bf16.msra.mxu0 %v9001_v31  ;;  %3893 = vmatpush1.bf16.msra.mxu1 %v9002_v58 }
 0xf72   : > { %3853 = vmatprep.subr.bf16.mxu0 %v9003_v7  ;;  %3894 = vmatprep.subr.bf16.mxu1 %v9004_v37 }
 0xf75   : > { %3854 = vmatpush1.bf16.msra.mxu0 %v9005_v29  ;;  %3895 = vmatpush1.bf16.msra.mxu1 %v9006_v2  ;;  %v8660_v29 = vld [vmem:[%s12468_s10 + $0xc] ss:$16 sps:$4 sm:$0xff]   ;;  %v8655_v2 = vld [vmem:[%s12468_s10] ss:$16 sps:$4 sm:$0xff]  }
 0xf76   : > { %3855 = vmatprep.subr.bf16.mxu0 %v9007_v11  ;;  %3896 = vmatprep.subr.bf16.mxu1 %v9008_v45  ;;  %v8658_v11 = vld [vmem:[%s12468_s10 + $0x8] ss:$16 sps:$4 sm:$0xff]   ;;  %v8666_v45 = vld [vmem:[%s12468_s10 + $0x2c] ss:$16 sps:$4 sm:$0xff]  }
 0xf79   : > { %3856 = vmatpush1.bf16.msra.mxu0 %v9009_v15  ;;  %3897 = vmatpush1.bf16.msra.mxu1 %v9010_v14  ;;  %v8661_v15 = vld [vmem:[%s12468_s10 + $0x20] ss:$16 sps:$4 sm:$0xff]   ;;  %v8664_v14 = vld [vmem:[%s12468_s10 + $0x28] ss:$16 sps:$4 sm:$0xff]  }
 0xf7a   : > { %3857 = vmatprep.subr.bf16.mxu0 %v9011_v10  ;;  %3898 = vmatprep.subr.bf16.mxu1 %v9012_v13  ;;  %v8669_v10 = vld [vmem:[%s12468_s10 + $0x44] ss:$16 sps:$4 sm:$0xff]   ;;  %v8672_v13 = vld [vmem:[%s12468_s10 + $0x4c] ss:$16 sps:$4 sm:$0xff]  }
 0xf7d   : > { %3858 = vmatpush1.bf16.msra.mxu0 %v9013_v46  ;;  %3899 = vmatpush1.bf16.msra.mxu1 %v9014_v57  ;;  %v8667_v46 = vld [vmem:[%s12468_s10 + $0x40] ss:$16 sps:$4 sm:$0xff]   ;;  %v8670_v57 = vld [vmem:[%s12468_s10 + $0x48] ss:$16 sps:$4 sm:$0xff]  }
 0xf7e   : > { %3859 = vmatprep.subr.bf16.mxu0 %v9015_v56  ;;  %3900 = vmatprep.subr.bf16.mxu1 %v9016_v54  ;;  %v8675_v56 = vld [vmem:[%s12468_s10 + $0x64] ss:$16 sps:$4 sm:$0xff]   ;;  %v8678_v54 = vld [vmem:[%s12468_s10 + $0x6c] ss:$16 sps:$4 sm:$0xff]  }
 0xf81   : > { %3860 = vmatpush1.bf16.msra.mxu0 %v9017_v16  ;;  %3901 = vmatpush1.bf16.msra.mxu1 %v9018_v17  ;;  %v8673_v16 = vld [vmem:[%s12468_s10 + $0x60] ss:$16 sps:$4 sm:$0xff]   ;;  %v8676_v17 = vld [vmem:[%s12468_s10 + $0x68] ss:$16 sps:$4 sm:$0xff]  }
 0xf82   : > { %3861 = vmatprep.subr.bf16.mxu0 %v9019_v18  ;;  %3902 = vmatprep.subr.bf16.mxu1 %v9020_v19  ;;  %v8681_v18 = vld [vmem:[%s12468_s10 + $0x84] ss:$16 sps:$4 sm:$0xff]   ;;  %v8679_v19 = vld [vmem:[%s12468_s10 + $0x80] ss:$16 sps:$4 sm:$0xff]  }
 0xf85   : > { %3862 = vmatpush1.bf16.msra.mxu0 %v9021_v20  ;;  %3903 = vmatpush1.bf16.msra.mxu1 %v9022_v21  ;;  %v8682_v20 = vld [vmem:[%s12468_s10 + $0x88] ss:$16 sps:$4 sm:$0xff]   ;;  %v8684_v21 = vld [vmem:[%s12468_s10 + $0x8c] ss:$16 sps:$4 sm:$0xff]  }
 0xf86   : > { %4190 = vmatprep.subr.bf16.mxu0 %v8657_v43  ;;  %4231 = vmatprep.subr.bf16.mxu1 %v8660_v29 }
0x103b   : > { %v3752_v22 = vpop.f32.mrb[64].mxu0  ;;  %v3793_v23 = vpop.f32.mrb[64].mxu1 }
0x103c   : > { %v3804_v24 = vrot.slane %v3752_v22, 4  ;;  %v3754_v25 = vpop.f32.mrb[65].mxu0  ;;  %v3795_v26 = vpop.f32.mrb[65].mxu1  ;;  %v3806_v36 = vrot.slane %v3793_v23, 4  ;;  %v8687_v22 = vld [vmem:[%s12468_s10 + $0xa4] ss:$16 sps:$4 sm:$0xff]  }
0x103d   : > { %v3805_v27 = vrot.slane %v3754_v25, 4  ;;  %v3756_v60 = vpop.f32.mrb[66].mxu0  ;;  %v3797_v55 = vpop.f32.mrb[66].mxu1  ;;  %v3807_v34 = vrot.slane %v3795_v26, 4  ;;  %v8690_v23 = vld [vmem:[%s12468_s10 + $0xac] ss:$16 sps:$4 sm:$0xff]  }
0x103e   : > { %v3812_v9 = vadd.f32 %v3804_v24, %v11418_v63  ;;  %v3757_v61 = vpop.f32.mrb[67].mxu0  ;;  %v3798_v62 = vpop.f32.mrb[67].mxu1  ;;  %v3814_v30 = vadd.f32 %v3806_v36, %v11420_v4  ;;  %v8685_v24 = vld [vmem:[%s12468_s10 + $0xa0] ss:$16 sps:$4 sm:$0xff]   ;;  %v8688_v25 = vld [vmem:[%s12468_s10 + $0xa8] ss:$16 sps:$4 sm:$0xff]  }
0x103f   : > { %v3813_v0 = vadd.f32 %v3805_v27, %v11422_v3  ;;  %v3815_v35 = vadd.f32 %v3807_v34, %v11424_v41  ;;  %v8693_v26 = vld [vmem:[%s12468_s10 + $0xc4] ss:$16 sps:$4 sm:$0xff]   ;;  %v8696_v27 = vld [vmem:[%s12468_s10 + $0xcc] ss:$16 sps:$4 sm:$0xff]   ;;  %v8691_v60 = vld [vmem:[%s12468_s10 + $0xc0] ss:$16 sps:$4 sm:$0xff]  }
0x1040   : > { %v7898_v32 = vmul.f32 -1.442695, %v3812_v9  ;;  %v8694_v55 = vld [vmem:[%s12468_s10 + $0xc8] ss:$16 sps:$4 sm:$0xff]   ;;  %v8699_v9 = vld [vmem:[%s12468_s10 + $0xe4] ss:$16 sps:$4 sm:$0xff]  }
0x1041   : > { %v7899_v33 = vmul.f32 -1.442695, %v3813_v0  ;;  %v7900_v28 = vmul.f32 -1.442695, %v3815_v35  ;;  %v8702_v61 = vld [vmem:[%s12468_s10 + $0xec] ss:$16 sps:$4 sm:$0xff]  }
0x1042   : > { %8927 = vpow2.f32 %v7898_v32  ;;  %v8697_v62 = vld [vmem:[%s12468_s10 + $0xe0] ss:$16 sps:$4 sm:$0xff]   ;;  %v8700_v0 = vld [vmem:[%s12468_s10 + $0xe8] ss:$16 sps:$4 sm:$0xff]  }
0x1043   : > { %8929 = vpow2.f32 %v7899_v33 }
0x1044   : > { %8931 = vpow2.f32 %v7900_v28 }
0x1045   : > { %8933 = vtanh.f32 %v3814_v30 }
0x104c   : > { %v8928_v38 = vpop.eup %8927 }
0x104d   : > { %v8930_v5 = vpop.eup %8929  ;;  %v3819_v39 = vadd.f32 1.0, %v8928_v38 }
0x104e   : > { %v3825_v59 = vadd.f32 1.0, %v8930_v5  ;;  %v8932_v51 = vpop.eup %8931 }
0x104f   : > { %8935 = vrcp.f32 %v3819_v39  ;;  %v8934_v53 = vpop.eup %8933  ;;  %v3832_v8 = vadd.f32 1.0, %v8932_v51 }
0x1050   : > { %8937 = vrcp.f32 %v3825_v59 }
0x1051   : > { %8939 = vrcp.f32 %v3832_v8 }
0x1059   : > { %v8936_v44 = vpop.eup %8935 }
0x105a   : > { %v8938_v42 = vpop.eup %8937  ;;  %v3839_v50 = vmul.f32 %v8936_v44, %v8934_v53 }
0x105b   : > { %v3838_v40 = vmul.f32 %v8938_v42, %v3836_v1  ;;  %v8940_v12 = vpop.eup %8939 }
0x105d   : > { %v11752_v6 = vadd.f32 %v3839_v50, %v3838_v40 }
0x105f   : > { %8941 = vtanh.f32 %v11752_v6  ;;  %v3965_v43 = vrot.slane %v11752_v6, 6 }
0x1069   : > { %v8942_v31 = vpop.eup %8941 }
0x106a   : > { %v3842_v58 = vmul.f32 %v8942_v31, %v8940_v12 }
0x106c   : > { %v3843_v7 = vpack.c.bf16 %v3842_v58, %v3842_v58 }
0x106e   : > { %v3845_v37 = vrot.slane %v3843_v7, 2 }
0x1070   : > { %3880 = vmatmul.mubr.bf16.vlgmr.msra.gmra.mrb[68].mxu0 %v3845_v37  ;;  %3921 = vmatmul.mubr.bf16.vlgmr.msra.gmra.mrb[68].mxu1 %v3845_v37 }
0x1071   : > { %4222 = vmatprep.mubr.bf16.mxu0 %v12500_v47  ;;  %4263 = vmatprep.mubr.bf16.mxu1 %v12500_v47  ;;  %v8663_v47 = vld [vmem:[%s12468_s10 + $0x24] ss:$16 sps:$4 sm:$0xff]  }
0x1072   : > { %4191 = vmatpush1.bf16.msra.mxu0 %v8655_v2  ;;  %4232 = vmatpush1.bf16.msra.mxu1 %v8658_v11 }
0x1073   : > { %4192 = vmatprep.subr.bf16.mxu0 %v8663_v47  ;;  %4233 = vmatprep.subr.bf16.mxu1 %v8666_v45 }
0x1076   : > { %4193 = vmatpush1.bf16.msra.mxu0 %v8661_v15  ;;  %4234 = vmatpush1.bf16.msra.mxu1 %v8664_v14 }
0x1077   : > { %4194 = vmatprep.subr.bf16.mxu0 %v8669_v10  ;;  %4235 = vmatprep.subr.bf16.mxu1 %v8672_v13  ;;  %v4005_v13 = vld [vmem:[%s12470_s12] sm:$0xf] }
0x107a   : > { %4195 = vmatpush1.bf16.msra.mxu0 %v8667_v46  ;;  %4236 = vmatpush1.bf16.msra.mxu1 %v8670_v57  ;;  %v9692_v46 = vmov 1983009808   ;;  %v4010_v57 = vrot.slane %v4005_v13, %v10625_v48 }
0x107b   : > { %4196 = vmatprep.subr.bf16.mxu0 %v8675_v56  ;;  %4237 = vmatprep.subr.bf16.mxu1 %v8678_v54  ;;  %v4279_v6 = vunpack.c.l.s4 %v9692_v46  ;;  %v4018_v56 = vrot.slane %v4005_v13, %v10628_v49  ;;  %v4014_v54 = vrot.slane %v4005_v13, %v10637_v52 }
0x107e   : > { %4197 = vmatpush1.bf16.msra.mxu0 %v8673_v16  ;;  %4238 = vmatpush1.bf16.msra.mxu1 %v8676_v17  ;;  %v4280_v16 = vunpack.c.0.s8 %v4279_v6  ;;  %v12501_v17 = vld [vmem:[#allocation12_spill] sm:$0xff] }
0x107f   : > { %4198 = vmatprep.subr.bf16.mxu0 %v8681_v18  ;;  %4239 = vmatprep.subr.bf16.mxu1 %v8684_v21  ;;  %v4022_v18 = vrot.slane %v4005_v13, %v12501_v17 }
0x1082   : > { %4199 = vmatpush1.bf16.msra.mxu0 %v8679_v19  ;;  %4240 = vmatpush1.bf16.msra.mxu1 %v8682_v20 }
0x1083   : > { %4200 = vmatprep.subr.bf16.mxu0 %v8687_v22  ;;  %4241 = vmatprep.subr.bf16.mxu1 %v8690_v23 }
0x1086   : > { %4201 = vmatpush1.bf16.msra.mxu0 %v8685_v24  ;;  %4242 = vmatpush1.bf16.msra.mxu1 %v8688_v25 }
0x1087   : > { %4202 = vmatprep.subr.bf16.mxu0 %v8693_v26  ;;  %4243 = vmatprep.subr.bf16.mxu1 %v8696_v27  ;;  %v12502_v26 = vld [vmem:[#allocation11_spill] sm:$0xff] }
0x1088   : > { %v4283_v27 = vsub.s32 %v4280_v16, %v12502_v26 }
0x108a   : > { %4203 = vmatpush1.bf16.msra.mxu0 %v8691_v60  ;;  %4244 = vmatpush1.bf16.msra.mxu1 %v8694_v55 }
0x108b   : > { %4204 = vmatprep.subr.bf16.mxu0 %v8699_v9  ;;  %4245 = vmatprep.subr.bf16.mxu1 %v8702_v61 }
0x108e   : > { %4205 = vmatpush1.bf16.msra.mxu0 %v8697_v62  ;;  %4246 = vmatpush1.bf16.msra.mxu1 %v8700_v0 }
0x1143   : > { %v3881_v32 = vpop.f32.mrb[68].mxu0  ;;  %v3922_v33 = vpop.f32.mrb[68].mxu1 }
0x1144   : > { %v3933_v34 = vrot.slane %v3881_v32, 2  ;;  %v3883_v35 = vpop.f32.mrb[69].mxu0  ;;  %v3924_v36 = vpop.f32.mrb[69].mxu1  ;;  %v3935_v50 = vrot.slane %v3922_v33, 2 }
0x1145   : > { %v3934_v28 = vrot.slane %v3883_v35, 2  ;;  %v3885_v30 = vpop.f32.mrb[70].mxu0  ;;  %v3926_v38 = vpop.f32.mrb[70].mxu1  ;;  %v3936_v1 = vrot.slane %v3924_v36, 2 }
0x1146   : > { %v3941_v5 = vadd.f32 %v3933_v34, %v11418_v63  ;;  %v3886_v39 = vpop.f32.mrb[71].mxu0  ;;  %v3927_v59 = vpop.f32.mrb[71].mxu1  ;;  %v3943_v40 = vadd.f32 %v3935_v50, %v11420_v4 }
0x1147   : > { %v3942_v51 = vadd.f32 %v3934_v28, %v11422_v3  ;;  %v3944_v42 = vadd.f32 %v3936_v1, %v11424_v41 }
0x1148   : > { %v7901_v53 = vmul.f32 -1.442695, %v3941_v5 }
0x1149   : > { %v7902_v44 = vmul.f32 -1.442695, %v3942_v51  ;;  %v7903_v8 = vmul.f32 -1.442695, %v3944_v42 }
0x114a   : > { %8943 = vpow2.f32 %v7901_v53 }
0x114b   : > { %8945 = vpow2.f32 %v7902_v44 }
0x114c   : > { %8947 = vpow2.f32 %v7903_v8 }
0x114d   : > { %8949 = vtanh.f32 %v3943_v40 }
0x1154   : > { %v8944_v12 = vpop.eup %8943 }
0x1155   : > { %v8946_v31 = vpop.eup %8945  ;;  %v3948_v58 = vadd.f32 1.0, %v8944_v12 }
0x1156   : > { %v3954_v63 = vadd.f32 1.0, %v8946_v31  ;;  %v8948_v3 = vpop.eup %8947 }
0x1157   : > { %8951 = vrcp.f32 %v3948_v58  ;;  %v8950_v7 = vpop.eup %8949  ;;  %v3961_v41 = vadd.f32 1.0, %v8948_v3 }
0x1158   : > { %8953 = vrcp.f32 %v3954_v63 }
0x1159   : > { %8955 = vrcp.f32 %v3961_v41 }
0x1161   : > { %v8952_v37 = vpop.eup %8951 }
0x1162   : > { %v8954_v29 = vpop.eup %8953  ;;  %v3968_v2 = vmul.f32 %v8952_v37, %v8950_v7 }
0x1163   : > { %v3967_v11 = vmul.f32 %v8954_v29, %v3965_v43  ;;  %v8956_v4 = vpop.eup %8955 }
0x1165   : > { %v3969_v47 = vadd.f32 %v3968_v2, %v3967_v11 }
0x1167   : > { %8957 = vtanh.f32 %v3969_v47 }
0x1171   : > { %v8958_v45 = vpop.eup %8957 }
0x1172   : > { %v3971_v15 = vmul.f32 %v8958_v45, %v8956_v4 }
0x1174   : > { %v3972_v14 = vpack.c.bf16 %v3971_v15, %v3971_v15 }
0x1176   : > { %v4028_v10 = vrot.slane %v3972_v14, 3 }
0x1178   : > { %4223 = vmatmul.mubr.bf16.vlgmr.msra.gmra.mrb[72].mxu0 %v4028_v10  ;;  %4264 = vmatmul.mubr.bf16.vlgmr.msra.gmra.mrb[72].mxu1 %v4028_v10 }
0x124b   : > { %v4224_v19 = vpop.f32.mrb[72].mxu0  ;;  %v4265_v20 = vpop.f32.mrb[72].mxu1 }
0x124c   : > { %v4225_v21 = vadd.f32 %v4224_v19, %v4010_v57  ;;  %v4266_v22 = vadd.f32 %v4265_v20, %v4018_v56  ;;  %v4226_v23 = vpop.f32.mrb[73].mxu0  ;;  %v4267_v24 = vpop.f32.mrb[73].mxu1 }
0x124d   : > { %v4227_v25 = vadd.f32 %v4226_v23, %v4014_v54  ;;  %v4268_v60 = vadd.f32 %v4267_v24, %v4022_v18  ;;  %v4228_v55 = vpop.f32.mrb[74].mxu0  ;;  %v4269_v9 = vpop.f32.mrb[74].mxu1 }
0x124e   : > { %v4229_v48 = vpop.f32.mrb[75].mxu0  ;;  %v4270_v61 = vpop.f32.mrb[75].mxu1 }
0x124f   : > { %v4276_v49 = vcombine.low %v4225_v21, %v4227_v25  ;;  %v4277_v62 = vcombine.low %v4266_v22, %v4268_v60 }
0x1251   : > { %v4284_v52 = vrot.slane %v4276_v49, %v4283_v27  ;;  %v4291_v0 = vrot.slane %v4277_v62, %v4283_v27 }
0x1253   : > { %v4292_v32 = vcombine.low %v4284_v52, %v4291_v0 }
0x1255   : > { %4294 = vst [vmem:[#allocation2] sm:$0xff] %v4292_v32 }
0x1256 PF: > { %v9023_v33 = vld [vmem:[%s10355_s24 + $0x4] ss:$16 sps:$4 sm:$0xff]   ;;  %v9025_v34 = vld [vmem:[%s10355_s24 + $0xc] ss:$16 sps:$4 sm:$0xff]   ;;  %v9027_v35 = vld [vmem:[%s10355_s24] ss:$16 sps:$4 sm:$0xff]   ;;  %v4303_v6 = vlaneseq }
0x1257   : > { %5907 = vmatprep.subr.bf16.mxu0 %v9023_v33  ;;  %v9028_v36 = vld [vmem:[%s10355_s24 + $0x8] ss:$16 sps:$4 sm:$0xff]   ;;  %6071 = vmatprep.subr.bf16.mxu1 %v9025_v34  ;;  %v9029_v28 = vld [vmem:[%s10355_s24 + $0x24] ss:$16 sps:$4 sm:$0xff]   ;;  %v9031_v30 = vld [vmem:[%s10355_s24 + $0x2c] ss:$16 sps:$4 sm:$0xff]  }
0x1258   : > { %5908 = vmatpush1.bf16.msra.mxu0 %v9027_v35  ;;  %6072 = vmatpush1.bf16.msra.mxu1 %v9028_v36  ;;  %v9033_v38 = vld [vmem:[%s10355_s24 + $0x20] ss:$16 sps:$4 sm:$0xff]   ;;  %v9034_v5 = vld [vmem:[%s10355_s24 + $0x28] ss:$16 sps:$4 sm:$0xff]   ;;  %v9035_v39 = vld [vmem:[%s10355_s24 + $0x44] ss:$16 sps:$4 sm:$0xff]  }
0x1259   : > { %5909 = vmatprep.subr.bf16.mxu0 %v9029_v28  ;;  %6073 = vmatprep.subr.bf16.mxu1 %v9031_v30  ;;  %v9037_v59 = vld [vmem:[%s10355_s24 + $0x4c] ss:$16 sps:$4 sm:$0xff]   ;;  %v9039_v51 = vld [vmem:[%s10355_s24 + $0x40] ss:$16 sps:$4 sm:$0xff]   ;;  %v9040_v53 = vld [vmem:[%s10355_s24 + $0x48] ss:$16 sps:$4 sm:$0xff]  }
0x125a   : > { %v9041_v44 = vld [vmem:[%s10355_s24 + $0x64] ss:$16 sps:$4 sm:$0xff]   ;;  %v9043_v1 = vld [vmem:[%s10355_s24 + $0x6c] ss:$16 sps:$4 sm:$0xff]   ;;  %v9045_v42 = vld [vmem:[%s10355_s24 + $0x60] ss:$16 sps:$4 sm:$0xff]  }
0x125b   : > { %v9046_v50 = vld [vmem:[%s10355_s24 + $0x68] ss:$16 sps:$4 sm:$0xff]   ;;  %v9047_v8 = vld [vmem:[%s10355_s24 + $0x84] ss:$16 sps:$4 sm:$0xff]   ;;  %v9049_v40 = vld [vmem:[%s10355_s24 + $0x8c] ss:$16 sps:$4 sm:$0xff]  }
0x125c   : > { %5910 = vmatpush1.bf16.msra.mxu0 %v9033_v38  ;;  %6074 = vmatpush1.bf16.msra.mxu1 %v9034_v5  ;;  %v9051_v12 = vld [vmem:[%s10355_s24 + $0x80] ss:$16 sps:$4 sm:$0xff]   ;;  %v9052_v31 = vld [vmem:[%s10355_s24 + $0x88] ss:$16 sps:$4 sm:$0xff]   ;;  %v9053_v58 = vld [vmem:[%s10355_s24 + $0xa4] ss:$16 sps:$4 sm:$0xff]  }
0x125d   : > { %5911 = vmatprep.subr.bf16.mxu0 %v9035_v39  ;;  %6075 = vmatprep.subr.bf16.mxu1 %v9037_v59  ;;  %v9055_v63 = vld [vmem:[%s10355_s24 + $0xac] ss:$16 sps:$4 sm:$0xff]   ;;  %v9057_v3 = vld [vmem:[%s10355_s24 + $0xa0] ss:$16 sps:$4 sm:$0xff]   ;;  %v9058_v7 = vld [vmem:[%s10355_s24 + $0xa8] ss:$16 sps:$4 sm:$0xff]  }
0x125e   : > { %v9059_v37 = vld [vmem:[%s10355_s24 + $0xc4] ss:$16 sps:$4 sm:$0xff]   ;;  %v9061_v43 = vld [vmem:[%s10355_s24 + $0xcc] ss:$16 sps:$4 sm:$0xff]   ;;  %v9063_v29 = vld [vmem:[%s10355_s24 + $0xc0] ss:$16 sps:$4 sm:$0xff]  }
0x125f   : > { %v9064_v2 = vld [vmem:[%s10355_s24 + $0xc8] ss:$16 sps:$4 sm:$0xff]   ;;  %v9065_v41 = vld [vmem:[%s10355_s24 + $0xe4] ss:$16 sps:$4 sm:$0xff]   ;;  %v9067_v11 = vld [vmem:[%s10355_s24 + $0xec] ss:$16 sps:$4 sm:$0xff]  }
0x1260   : > { %5912 = vmatpush1.bf16.msra.mxu0 %v9039_v51  ;;  %6076 = vmatpush1.bf16.msra.mxu1 %v9040_v53  ;;  %v9069_v47 = vld [vmem:[%s10355_s24 + $0xe0] ss:$16 sps:$4 sm:$0xff]   ;;  %v9070_v4 = vld [vmem:[%s10355_s24 + $0xe8] ss:$16 sps:$4 sm:$0xff]   ;;  %v9071_v45 = vld [vmem:[%s10355_s24 + $0x104] ss:$16 sps:$4 sm:$0xff]  }
0x1261   : > { %5913 = vmatprep.subr.bf16.mxu0 %v9041_v44  ;;  %6077 = vmatprep.subr.bf16.mxu1 %v9043_v1  ;;  %v9073_v15 = vld [vmem:[%s10355_s24 + $0x10c] ss:$16 sps:$4 sm:$0xff]   ;;  %v9075_v14 = vld [vmem:[%s10355_s24 + $0x100] ss:$16 sps:$4 sm:$0xff]   ;;  %v9076_v10 = vld [vmem:[%s10355_s24 + $0x108] ss:$16 sps:$4 sm:$0xff]  }
0x1262   : > { %v9693_v13 = vmov 1983009808   ;;  %v9077_v57 = vld [vmem:[%s10355_s24 + $0x124] ss:$16 sps:$4 sm:$0xff]   ;;  %v9079_v56 = vld [vmem:[%s10355_s24 + $0x12c] ss:$16 sps:$4 sm:$0xff]  }
0x1263   : > { %v4301_v46 = vunpack.c.l.s4 %v9693_v13  ;;  %v9081_v54 = vld [vmem:[%s10355_s24 + $0x120] ss:$16 sps:$4 sm:$0xff]   ;;  %v11905_v17 = vshrl.u32 %v4303_v6, 7  ;;  %v9082_v18 = vld [vmem:[%s10355_s24 + $0x128] ss:$16 sps:$4 sm:$0xff]   ;;  %p8320_p11 = scmp.ne.s32.totalorder %s9803_s27, 1 }
0x1264   : > { %5914 = vmatpush1.bf16.msra.mxu0 %v9045_v42  ;;  %6078 = vmatpush1.bf16.msra.mxu1 %v9046_v50  ;;  %v9083_v19 = vld [vmem:[%s10355_s24 + $0x144] ss:$16 sps:$4 sm:$0xff]   ;;  %v9085_v20 = vld [vmem:[%s10355_s24 + $0x14c] ss:$16 sps:$4 sm:$0xff]   ;;  %v9087_v21 = vld [vmem:[%s10355_s24 + $0x140] ss:$16 sps:$4 sm:$0xff]  }
0x1265   : > { %5915 = vmatprep.subr.bf16.mxu0 %v9047_v8  ;;  %6079 = vmatprep.subr.bf16.mxu1 %v9049_v40  ;;  %v4302_v16 = vunpack.c.0.s8 %v4301_v46  ;;  %v9088_v22 = vld [vmem:[%s10355_s24 + $0x148] ss:$16 sps:$4 sm:$0xff]   ;;  %v9089_v24 = vld [vmem:[%s10355_s24 + $0x164] ss:$16 sps:$4 sm:$0xff]   ;;  %v9091_v25 = vld [vmem:[%s10355_s24 + $0x16c] ss:$16 sps:$4 sm:$0xff]  }
0x1266   : > { %v4295_v26 = vld [vmem:[%s12465_s7] sm:$0xff]  ;;  %v9093_v27 = vld [vmem:[%s10355_s24 + $0x160] ss:$16 sps:$4 sm:$0xff]   ;;  %v9095_v9 = vld [vmem:[%s10355_s24 + $0x184] ss:$16 sps:$4 sm:$0xff]   ;;  %vm9695_vm2 = vmmov (!%p8320_p11), 0  }
0x1267   : > { %v11913_v23 = vsub.s32 %v4302_v16, %v11905_v17  ;;  %v9094_v55 = vld [vmem:[%s10355_s24 + $0x168] ss:$16 sps:$4 sm:$0xff]   ;;  %v9097_v48 = vld [vmem:[%s10355_s24 + $0x18c] ss:$16 sps:$4 sm:$0xff]   ;;  %v9099_v49 = vld [vmem:[%s10355_s24 + $0x180] ss:$16 sps:$4 sm:$0xff]   ;;  %v4299_v28 = vcombine.high %v4295_v26, %v4295_v26 }
0x1268   : > { %5916 = vmatpush1.bf16.msra.mxu0 %v9051_v12  ;;  %6080 = vmatpush1.bf16.msra.mxu1 %v9052_v31  ;;  %v9100_v52 = vld [vmem:[%s10355_s24 + $0x188] ss:$16 sps:$4 sm:$0xff]   ;;  %v9101_v0 = vld [vmem:[%s10355_s24 + $0x1a4] ss:$16 sps:$4 sm:$0xff]   ;;  %v9103_v32 = vld [vmem:[%s10355_s24 + $0x1ac] ss:$16 sps:$4 sm:$0xff]  }
0x1269   : > { %5917 = vmatprep.subr.bf16.mxu0 %v9053_v58  ;;  %6081 = vmatprep.subr.bf16.mxu1 %v9055_v63  ;;  %v4306_v60 = vrot.slane %v4295_v26, %v11913_v23  ;;  %v9105_v33 = vld [vmem:[%s10355_s24 + $0x1a0] ss:$16 sps:$4 sm:$0xff]   ;;  %v9106_v34 = vld [vmem:[%s10355_s24 + $0x1a8] ss:$16 sps:$4 sm:$0xff]   ;;  %v9107_v35 = vld [vmem:[%s10355_s24 + $0x1c4] ss:$16 sps:$4 sm:$0xff]   ;;  %v11938_v59 = vrot.slane %v4299_v28, %v11913_v23 }
0x126a   : > { %v9109_v36 = vld [vmem:[%s10355_s24 + $0x1cc] ss:$16 sps:$4 sm:$0xff]   ;;  %v9111_v30 = vld [vmem:[%s10355_s24 + $0x1c0] ss:$16 sps:$4 sm:$0xff]   ;;  %v9112_v38 = vld [vmem:[%s10355_s24 + $0x1c8] ss:$16 sps:$4 sm:$0xff]  }
0x126b   : > { %v4314_v61 = vcombine.high %v4306_v60, %v4306_v60  ;;  %v9113_v5 = vld [vmem:[%s10355_s24 + $0x1e4] ss:$16 sps:$4 sm:$0xff]   ;;  %v9115_v39 = vld [vmem:[%s10355_s24 + $0x1ec] ss:$16 sps:$4 sm:$0xff]   ;;  %v9117_v51 = vld [vmem:[%s10355_s24 + $0x1e0] ss:$16 sps:$4 sm:$0xff]   ;;  %v4315_v42 = vcombine.high %v11938_v59, %v11938_v59  ;;  %v4341_v8 = vpack.c.bf16 %v4306_v60, %v4306_v60 }
0x126c   : > { %5918 = vmatpush1.bf16.msra.mxu0 %v9057_v3  ;;  %6082 = vmatpush1.bf16.msra.mxu1 %v9058_v7  ;;  %v9118_v53 = vld [vmem:[%s10355_s24 + $0x1e8] ss:$16 sps:$4 sm:$0xff]   ;;  %v9122_v44 = vld [vmem:[%s10355_s24 + $0x204] ss:$16 sps:$4 sm:$0xff]   ;;  %v9125_v1 = vld [vmem:[%s10355_s24 + $0x20c] ss:$16 sps:$4 sm:$0xff]  }
0x126d   : > { %5919 = vmatprep.subr.bf16.mxu0 %v9059_v37  ;;  %6083 = vmatprep.subr.bf16.mxu1 %v9061_v43  ;;  %v4342_v62 = vpack.c.bf16 %v4314_v61, %v4314_v61  ;;  %v9120_v50 = vld [vmem:[%s10355_s24 + $0x200] ss:$16 sps:$4 sm:$0xff]   ;;  %v9123_v40 = vld [vmem:[%s10355_s24 + $0x208] ss:$16 sps:$4 sm:$0xff]   ;;  %v9128_v12 = vld [vmem:[%s10355_s24 + $0x224] ss:$16 sps:$4 sm:$0xff]   ;;  %v4344_v58 = vpack.c.bf16 %v4315_v42, %v4315_v42 }
0x126e   : > { %v9131_v31 = vld [vmem:[%s10355_s24 + $0x22c] ss:$16 sps:$4 sm:$0xff]   ;;  %v9126_v63 = vld [vmem:[%s10355_s24 + $0x220] ss:$16 sps:$4 sm:$0xff]   ;;  %v9129_v3 = vld [vmem:[%s10355_s24 + $0x228] ss:$16 sps:$4 sm:$0xff]  }
0x126f   : > { %5939 = vmatprep.mubr.bf16.mxu0 %v4342_v62  ;;  %6103 = vmatprep.mubr.bf16.mxu1 %v4342_v62  ;;  %v9134_v7 = vld [vmem:[%s10355_s24 + $0x244] ss:$16 sps:$4 sm:$0xff]   ;;  %v9137_v37 = vld [vmem:[%s10355_s24 + $0x24c] ss:$16 sps:$4 sm:$0xff]   ;;  %v9132_v43 = vld [vmem:[%s10355_s24 + $0x240] ss:$16 sps:$4 sm:$0xff]  }
0x1270   : > { %5920 = vmatpush1.bf16.msra.mxu0 %v9063_v29  ;;  %6084 = vmatpush1.bf16.msra.mxu1 %v9064_v2  ;;  %v9135_v29 = vld [vmem:[%s10355_s24 + $0x248] ss:$16 sps:$4 sm:$0xff]   ;;  %v9140_v2 = vld [vmem:[%s10355_s24 + $0x264] ss:$16 sps:$4 sm:$0xff]   ;;  %v9155_v13 = vld [vmem:[%s10355_s24 + $0x2ac] ss:$16 sps:$4 sm:$0xff]  }
0x1271   : > { %5921 = vmatprep.subr.bf16.mxu0 %v9065_v41  ;;  %6085 = vmatprep.subr.bf16.mxu1 %v9067_v11  ;;  %v9143_v41 = vld [vmem:[%s10355_s24 + $0x26c] ss:$16 sps:$4 sm:$0xff]   ;;  %v9138_v11 = vld [vmem:[%s10355_s24 + $0x260] ss:$16 sps:$4 sm:$0xff]   ;;  %v9153_v6 = vld [vmem:[%s10355_s24 + $0x2a8] ss:$16 sps:$4 sm:$0xff]  }
0x1272   : > { %v9150_v46 = vld [vmem:[%s10355_s24 + $0x2a0] ss:$16 sps:$4 sm:$0xff]   ;;  %v9159_v16 = vld [vmem:[%s10355_s24 + $0x2c8] ss:$16 sps:$4 sm:$0xff]   ;;  %v9179_v60 = vld [vmem:[%s10355_s24 + $0x32c] ss:$16 sps:$4 sm:$0xff]  }
0x1273   : > { %v9171_v26 = vld [vmem:[%s10355_s24 + $0x308] ss:$16 sps:$4 sm:$0xff]   ;;  %v9185_v61 = vld [vmem:[%s10355_s24 + $0x34c] ss:$16 sps:$4 sm:$0xff]   ;;  %v9212_v42 = vld [vmem:[%s10355_s24 + $0x3e4] ss:$16 sps:$4 sm:$0xff]  }
0x1274   : > { %5922 = vmatpush1.bf16.msra.mxu0 %v9069_v47  ;;  %6086 = vmatpush1.bf16.msra.mxu1 %v9070_v4  ;;  %v9141_v47 = vld [vmem:[%s10355_s24 + $0x268] ss:$16 sps:$4 sm:$0xff]   ;;  %v9146_v4 = vld [vmem:[%s10355_s24 + $0x284] ss:$16 sps:$4 sm:$0xff]   ;;  %vm7616_vm3 = vcmask (!%p8320_p11), 523264   ;;  %s12503_s0 = sld [smem:[#allocation16_spill]] (!%p8320_p11) }
0x1275   : > { %5923 = vmatprep.subr.bf16.mxu0 %v9071_v45  ;;  %6087 = vmatprep.subr.bf16.mxu1 %v9073_v15  ;;  %v9149_v45 = vld [vmem:[%s10355_s24 + $0x28c] ss:$16 sps:$4 sm:$0xff]   ;;  %v9144_v15 = vld [vmem:[%s10355_s24 + $0x280] ss:$16 sps:$4 sm:$0xff]   ;;  %v9183_v62 = vld [vmem:[%s10355_s24 + $0x348] ss:$16 sps:$4 sm:$0xff]  }
0x1276   : > { %v9195_v28 = vld [vmem:[%s10355_s24 + $0x388] ss:$16 sps:$4 sm:$0xff]   ;;  %vm7660_vm4 = vcmask (!%p8320_p11), 140288  }
0x1278   : > { %5924 = vmatpush1.bf16.msra.mxu0 %v9075_v14  ;;  %6088 = vmatpush1.bf16.msra.mxu1 %v9076_v10  ;;  %v9147_v14 = vld [vmem:[%s10355_s24 + $0x288] ss:$16 sps:$4 sm:$0xff]   ;;  %v9152_v10 = vld [vmem:[%s10355_s24 + $0x2a4] ss:$16 sps:$4 sm:$0xff]  }
0x1279   : > { %5925 = vmatprep.subr.bf16.mxu0 %v9077_v57  ;;  %6089 = vmatprep.subr.bf16.mxu1 %v9079_v56  ;;  %v9158_v57 = vld [vmem:[%s10355_s24 + $0x2c4] ss:$16 sps:$4 sm:$0xff]   ;;  %v9161_v56 = vld [vmem:[%s10355_s24 + $0x2cc] ss:$16 sps:$4 sm:$0xff]  }
0x127c   : > { %5926 = vmatpush1.bf16.msra.mxu0 %v9081_v54  ;;  %6090 = vmatpush1.bf16.msra.mxu1 %v9082_v18  ;;  %v9156_v54 = vld [vmem:[%s10355_s24 + $0x2c0] ss:$16 sps:$4 sm:$0xff]   ;;  %v9164_v18 = vld [vmem:[%s10355_s24 + $0x2e4] ss:$16 sps:$4 sm:$0xff]  }
0x127d   : > { %5927 = vmatprep.subr.bf16.mxu0 %v9083_v19  ;;  %6091 = vmatprep.subr.bf16.mxu1 %v9085_v20  ;;  %v9167_v19 = vld [vmem:[%s10355_s24 + $0x2ec] ss:$16 sps:$4 sm:$0xff]   ;;  %v9162_v20 = vld [vmem:[%s10355_s24 + $0x2e0] ss:$16 sps:$4 sm:$0xff]  }
0x1280   : > { %5928 = vmatpush1.bf16.msra.mxu0 %v9087_v21  ;;  %6092 = vmatpush1.bf16.msra.mxu1 %v9088_v22  ;;  %v9165_v21 = vld [vmem:[%s10355_s24 + $0x2e8] ss:$16 sps:$4 sm:$0xff]   ;;  %v9170_v22 = vld [vmem:[%s10355_s24 + $0x304] ss:$16 sps:$4 sm:$0xff]  }
0x1281   : > { %5929 = vmatprep.subr.bf16.mxu0 %v9089_v24  ;;  %6093 = vmatprep.subr.bf16.mxu1 %v9091_v25  ;;  %v9173_v24 = vld [vmem:[%s10355_s24 + $0x30c] ss:$16 sps:$4 sm:$0xff]   ;;  %v9168_v25 = vld [vmem:[%s10355_s24 + $0x300] ss:$16 sps:$4 sm:$0xff]  }
0x1284   : > { %5930 = vmatpush1.bf16.msra.mxu0 %v9093_v27  ;;  %6094 = vmatpush1.bf16.msra.mxu1 %v9094_v55  ;;  %v9176_v27 = vld [vmem:[%s10355_s24 + $0x324] ss:$16 sps:$4 sm:$0xff]   ;;  %v9174_v55 = vld [vmem:[%s10355_s24 + $0x320] ss:$16 sps:$4 sm:$0xff]  }
0x1285   : > { %5931 = vmatprep.subr.bf16.mxu0 %v9095_v9  ;;  %6095 = vmatprep.subr.bf16.mxu1 %v9097_v48  ;;  %v9177_v9 = vld [vmem:[%s10355_s24 + $0x328] ss:$16 sps:$4 sm:$0xff]   ;;  %v9182_v48 = vld [vmem:[%s10355_s24 + $0x344] ss:$16 sps:$4 sm:$0xff]  }
0x1288   : > { %5932 = vmatpush1.bf16.msra.mxu0 %v9099_v49  ;;  %6096 = vmatpush1.bf16.msra.mxu1 %v9100_v52  ;;  %v9180_v49 = vld [vmem:[%s10355_s24 + $0x340] ss:$16 sps:$4 sm:$0xff]   ;;  %v9188_v52 = vld [vmem:[%s10355_s24 + $0x364] ss:$16 sps:$4 sm:$0xff]  }
0x1289   : > { %5933 = vmatprep.subr.bf16.mxu0 %v9101_v0  ;;  %6097 = vmatprep.subr.bf16.mxu1 %v9103_v32  ;;  %v9191_v0 = vld [vmem:[%s10355_s24 + $0x36c] ss:$16 sps:$4 sm:$0xff]   ;;  %v9186_v32 = vld [vmem:[%s10355_s24 + $0x360] ss:$16 sps:$4 sm:$0xff]  }
0x128c   : > { %5934 = vmatpush1.bf16.msra.mxu0 %v9105_v33  ;;  %6098 = vmatpush1.bf16.msra.mxu1 %v9106_v34  ;;  %v9189_v33 = vld [vmem:[%s10355_s24 + $0x368] ss:$16 sps:$4 sm:$0xff]   ;;  %v9194_v34 = vld [vmem:[%s10355_s24 + $0x384] ss:$16 sps:$4 sm:$0xff]  }
0x128d   : > { %5935 = vmatprep.subr.bf16.mxu0 %v9107_v35  ;;  %6099 = vmatprep.subr.bf16.mxu1 %v9109_v36  ;;  %v9197_v35 = vld [vmem:[%s10355_s24 + $0x38c] ss:$16 sps:$4 sm:$0xff]   ;;  %v9192_v36 = vld [vmem:[%s10355_s24 + $0x380] ss:$16 sps:$4 sm:$0xff]  }
0x1290   : > { %5936 = vmatpush1.bf16.msra.mxu0 %v9111_v30  ;;  %6100 = vmatpush1.bf16.msra.mxu1 %v9112_v38  ;;  %v9200_v30 = vld [vmem:[%s10355_s24 + $0x3a4] ss:$16 sps:$4 sm:$0xff]   ;;  %v9203_v38 = vld [vmem:[%s10355_s24 + $0x3ac] ss:$16 sps:$4 sm:$0xff]  }
0x1291   : > { %5937 = vmatprep.subr.bf16.mxu0 %v9113_v5  ;;  %6101 = vmatprep.subr.bf16.mxu1 %v9115_v39  ;;  %v9198_v5 = vld [vmem:[%s10355_s24 + $0x3a0] ss:$16 sps:$4 sm:$0xff]   ;;  %v9201_v39 = vld [vmem:[%s10355_s24 + $0x3a8] ss:$16 sps:$4 sm:$0xff]  }
0x1294   : > { %5938 = vmatpush1.bf16.msra.mxu0 %v9117_v51  ;;  %6102 = vmatpush1.bf16.msra.mxu1 %v9118_v53  ;;  %v9206_v51 = vld [vmem:[%s10355_s24 + $0x3c4] ss:$16 sps:$4 sm:$0xff]   ;;  %v9209_v53 = vld [vmem:[%s10355_s24 + $0x3cc] ss:$16 sps:$4 sm:$0xff]  }
0x1295   : > { %5948 = vmatprep.subr.bf16.mxu0 %v9122_v44  ;;  %6112 = vmatprep.subr.bf16.mxu1 %v9125_v1  ;;  %v9204_v44 = vld [vmem:[%s10355_s24 + $0x3c0] ss:$16 sps:$4 sm:$0xff]   ;;  %v9207_v1 = vld [vmem:[%s10355_s24 + $0x3c8] ss:$16 sps:$4 sm:$0xff]  }
0x1297   : > { %5940 = vmatmul.mubr.bf16.vlgmr.msra.gmra.mrb[0].mxu0 %v4341_v8  ;;  %6104 = vmatmul.mubr.bf16.vlgmr.msra.gmra.mrb[0].mxu1 %v4341_v8  ;;  %v9210_v8 = vld [vmem:[%s10355_s24 + $0x3e0] ss:$16 sps:$4 sm:$0xff]  }
0x1298   : > { %5949 = vmatpush1.bf16.msra.mxu0 %v9120_v50  ;;  %6113 = vmatpush1.bf16.msra.mxu1 %v9123_v40  ;;  %v9215_v50 = vld [vmem:[%s10355_s24 + $0x3ec] ss:$16 sps:$4 sm:$0xff]   ;;  %v9213_v40 = vld [vmem:[%s10355_s24 + $0x3e8] ss:$16 sps:$4 sm:$0xff]  }
0x1299   : > { %5950 = vmatprep.subr.bf16.mxu0 %v9128_v12  ;;  %6114 = vmatprep.subr.bf16.mxu1 %v9131_v31  ;;  %v9218_v12 = vld [vmem:[%s10355_s24 + $0x404] ss:$16 sps:$4 sm:$0xff]   ;;  %v9221_v31 = vld [vmem:[%s10355_s24 + $0x40c] ss:$16 sps:$4 sm:$0xff]  }
0x129a   : > { %5980 = vmatprep.mubr.bf16.mxu0 %v4344_v58  ;;  %6144 = vmatprep.mubr.bf16.mxu1 %v4344_v58  ;;  %v9216_v58 = vld [vmem:[%s10355_s24 + $0x400] ss:$16 sps:$4 sm:$0xff]  }
0x129c   : > { %5951 = vmatpush1.bf16.msra.mxu0 %v9126_v63  ;;  %6115 = vmatpush1.bf16.msra.mxu1 %v9129_v3  ;;  %v4343_v63 = vpack.c.bf16 %v11938_v59, %v11938_v59  ;;  %v9219_v3 = vld [vmem:[%s10355_s24 + $0x408] ss:$16 sps:$4 sm:$0xff]  }
0x129d   : > { %5952 = vmatprep.subr.bf16.mxu0 %v9134_v7  ;;  %6116 = vmatprep.subr.bf16.mxu1 %v9137_v37  ;;  %v12017_v7 = vld [vmem:[%s12465_s7 + $0x8] sm:$0xff] }
0x129e   : > { %v9224_v37 = vld [vmem:[%s10355_s24 + $0x424] ss:$16 sps:$4 sm:$0xff]  }
0x12a0   : > { %5953 = vmatpush1.bf16.msra.mxu0 %v9132_v43  ;;  %6117 = vmatpush1.bf16.msra.mxu1 %v9135_v29  ;;  %v9227_v43 = vld [vmem:[%s10355_s24 + $0x42c] ss:$16 sps:$4 sm:$0xff]   ;;  %v12023_v29 = vrot.slane %v12017_v7, %v11913_v23 }
0x12a1   : > { %5954 = vmatprep.subr.bf16.mxu0 %v9140_v2  ;;  %6118 = vmatprep.subr.bf16.mxu1 %v9143_v41  ;;  %v9222_v2 = vld [vmem:[%s10355_s24 + $0x420] ss:$16 sps:$4 sm:$0xff]   ;;  %v9225_v41 = vld [vmem:[%s10355_s24 + $0x428] ss:$16 sps:$4 sm:$0xff]  }
0x12a2   : > { %v4331_v59 = vcombine.high %v12023_v29, %v12023_v29 }
0x12a4   : > { %5955 = vmatpush1.bf16.msra.mxu0 %v9138_v11  ;;  %6119 = vmatpush1.bf16.msra.mxu1 %v9141_v47  ;;  %v9230_v11 = vld [vmem:[%s10355_s24 + $0x444] ss:$16 sps:$4 sm:$0xff]   ;;  %v9233_v47 = vld [vmem:[%s10355_s24 + $0x44c] ss:$16 sps:$4 sm:$0xff]  }
0x12a5   : > { %5956 = vmatprep.subr.bf16.mxu0 %v9146_v4  ;;  %6120 = vmatprep.subr.bf16.mxu1 %v9149_v45  ;;  %v4346_v4 = vpack.c.bf16 %v4331_v59, %v4331_v59  ;;  %v9228_v45 = vld [vmem:[%s10355_s24 + $0x440] ss:$16 sps:$4 sm:$0xff]   ;;  %v9309_v59 = vld [vmem:[%s10355_s24 + $0x5e8] ss:$16 sps:$4 sm:$0xff]  }
0x12a8   : > { %5957 = vmatpush1.bf16.msra.mxu0 %v9144_v15  ;;  %6121 = vmatpush1.bf16.msra.mxu1 %v9147_v14  ;;  %v9231_v15 = vld [vmem:[%s10355_s24 + $0x448] ss:$16 sps:$4 sm:$0xff]   ;;  %v9236_v14 = vld [vmem:[%s10355_s24 + $0x464] ss:$16 sps:$4 sm:$0xff]  }
0x12a9   : > { %5958 = vmatprep.subr.bf16.mxu0 %v9152_v10  ;;  %6122 = vmatprep.subr.bf16.mxu1 %v9155_v13  ;;  %v9239_v10 = vld [vmem:[%s10355_s24 + $0x46c] ss:$16 sps:$4 sm:$0xff]   ;;  %v9234_v13 = vld [vmem:[%s10355_s24 + $0x460] ss:$16 sps:$4 sm:$0xff]  }
0x12ac   : > { %5959 = vmatpush1.bf16.msra.mxu0 %v9150_v46  ;;  %6123 = vmatpush1.bf16.msra.mxu1 %v9153_v6  ;;  %v9237_v46 = vld [vmem:[%s10355_s24 + $0x468] ss:$16 sps:$4 sm:$0xff]   ;;  %v9242_v6 = vld [vmem:[%s10355_s24 + $0x484] ss:$16 sps:$4 sm:$0xff]  }
0x12ad   : > { %5960 = vmatprep.subr.bf16.mxu0 %v9158_v57  ;;  %6124 = vmatprep.subr.bf16.mxu1 %v9161_v56  ;;  %v9245_v57 = vld [vmem:[%s10355_s24 + $0x48c] ss:$16 sps:$4 sm:$0xff]   ;;  %v9240_v56 = vld [vmem:[%s10355_s24 + $0x480] ss:$16 sps:$4 sm:$0xff]  }
0x12b0   : > { %5961 = vmatpush1.bf16.msra.mxu0 %v9156_v54  ;;  %6125 = vmatpush1.bf16.msra.mxu1 %v9159_v16  ;;  %v9243_v54 = vld [vmem:[%s10355_s24 + $0x488] ss:$16 sps:$4 sm:$0xff]   ;;  %v9248_v16 = vld [vmem:[%s10355_s24 + $0x4a4] ss:$16 sps:$4 sm:$0xff]  }
0x12b1   : > { %5962 = vmatprep.subr.bf16.mxu0 %v9164_v18  ;;  %6126 = vmatprep.subr.bf16.mxu1 %v9167_v19  ;;  %v9251_v18 = vld [vmem:[%s10355_s24 + $0x4ac] ss:$16 sps:$4 sm:$0xff]   ;;  %v9246_v19 = vld [vmem:[%s10355_s24 + $0x4a0] ss:$16 sps:$4 sm:$0xff]  }
0x12b4   : > { %5963 = vmatpush1.bf16.msra.mxu0 %v9162_v20  ;;  %6127 = vmatpush1.bf16.msra.mxu1 %v9165_v21  ;;  %v9249_v20 = vld [vmem:[%s10355_s24 + $0x4a8] ss:$16 sps:$4 sm:$0xff]   ;;  %v9254_v21 = vld [vmem:[%s10355_s24 + $0x4c4] ss:$16 sps:$4 sm:$0xff]  }
0x12b5   : > { %5964 = vmatprep.subr.bf16.mxu0 %v9170_v22  ;;  %6128 = vmatprep.subr.bf16.mxu1 %v9173_v24  ;;  %v9257_v22 = vld [vmem:[%s10355_s24 + $0x4cc] ss:$16 sps:$4 sm:$0xff]   ;;  %v9252_v24 = vld [vmem:[%s10355_s24 + $0x4c0] ss:$16 sps:$4 sm:$0xff]  }
0x12b8   : > { %5965 = vmatpush1.bf16.msra.mxu0 %v9168_v25  ;;  %6129 = vmatpush1.bf16.msra.mxu1 %v9171_v26  ;;  %v9255_v25 = vld [vmem:[%s10355_s24 + $0x4c8] ss:$16 sps:$4 sm:$0xff]   ;;  %v9260_v26 = vld [vmem:[%s10355_s24 + $0x4e4] ss:$16 sps:$4 sm:$0xff]  }
0x12b9   : > { %5966 = vmatprep.subr.bf16.mxu0 %v9176_v27  ;;  %6130 = vmatprep.subr.bf16.mxu1 %v9179_v60  ;;  %v9263_v27 = vld [vmem:[%s10355_s24 + $0x4ec] ss:$16 sps:$4 sm:$0xff]   ;;  %v9258_v60 = vld [vmem:[%s10355_s24 + $0x4e0] ss:$16 sps:$4 sm:$0xff]  }
0x12bc   : > { %5967 = vmatpush1.bf16.msra.mxu0 %v9174_v55  ;;  %6131 = vmatpush1.bf16.msra.mxu1 %v9177_v9  ;;  %v9261_v55 = vld [vmem:[%s10355_s24 + $0x4e8] ss:$16 sps:$4 sm:$0xff]   ;;  %v9266_v9 = vld [vmem:[%s10355_s24 + $0x504] ss:$16 sps:$4 sm:$0xff]  }
0x12bd   : > { %5968 = vmatprep.subr.bf16.mxu0 %v9182_v48  ;;  %6132 = vmatprep.subr.bf16.mxu1 %v9185_v61  ;;  %v9269_v48 = vld [vmem:[%s10355_s24 + $0x50c] ss:$16 sps:$4 sm:$0xff]   ;;  %v9264_v61 = vld [vmem:[%s10355_s24 + $0x500] ss:$16 sps:$4 sm:$0xff]  }
0x12c0   : > { %5969 = vmatpush1.bf16.msra.mxu0 %v9180_v49  ;;  %6133 = vmatpush1.bf16.msra.mxu1 %v9183_v62  ;;  %v9267_v49 = vld [vmem:[%s10355_s24 + $0x508] ss:$16 sps:$4 sm:$0xff]   ;;  %v9272_v62 = vld [vmem:[%s10355_s24 + $0x524] ss:$16 sps:$4 sm:$0xff]  }
0x12c1   : > { %5970 = vmatprep.subr.bf16.mxu0 %v9188_v52  ;;  %6134 = vmatprep.subr.bf16.mxu1 %v9191_v0  ;;  %v9275_v52 = vld [vmem:[%s10355_s24 + $0x52c] ss:$16 sps:$4 sm:$0xff]   ;;  %v9270_v0 = vld [vmem:[%s10355_s24 + $0x520] ss:$16 sps:$4 sm:$0xff]  }
0x12c4   : > { %5971 = vmatpush1.bf16.msra.mxu0 %v9186_v32  ;;  %6135 = vmatpush1.bf16.msra.mxu1 %v9189_v33  ;;  %v9273_v32 = vld [vmem:[%s10355_s24 + $0x528] ss:$16 sps:$4 sm:$0xff]   ;;  %v9278_v33 = vld [vmem:[%s10355_s24 + $0x544] ss:$16 sps:$4 sm:$0xff]  }
0x12c5   : > { %5972 = vmatprep.subr.bf16.mxu0 %v9194_v34  ;;  %6136 = vmatprep.subr.bf16.mxu1 %v9197_v35  ;;  %v9281_v34 = vld [vmem:[%s10355_s24 + $0x54c] ss:$16 sps:$4 sm:$0xff]   ;;  %v9276_v35 = vld [vmem:[%s10355_s24 + $0x540] ss:$16 sps:$4 sm:$0xff]  }
0x12c8   : > { %5973 = vmatpush1.bf16.msra.mxu0 %v9192_v36  ;;  %6137 = vmatpush1.bf16.msra.mxu1 %v9195_v28  ;;  %v9279_v36 = vld [vmem:[%s10355_s24 + $0x548] ss:$16 sps:$4 sm:$0xff]   ;;  %v9284_v28 = vld [vmem:[%s10355_s24 + $0x564] ss:$16 sps:$4 sm:$0xff]  }
0x12c9   : > { %5974 = vmatprep.subr.bf16.mxu0 %v9200_v30  ;;  %6138 = vmatprep.subr.bf16.mxu1 %v9203_v38  ;;  %v9287_v30 = vld [vmem:[%s10355_s24 + $0x56c] ss:$16 sps:$4 sm:$0xff]   ;;  %v9282_v38 = vld [vmem:[%s10355_s24 + $0x560] ss:$16 sps:$4 sm:$0xff]  }
0x12cc   : > { %5975 = vmatpush1.bf16.msra.mxu0 %v9198_v5  ;;  %6139 = vmatpush1.bf16.msra.mxu1 %v9201_v39  ;;  %v9285_v5 = vld [vmem:[%s10355_s24 + $0x568] ss:$16 sps:$4 sm:$0xff]   ;;  %v9290_v39 = vld [vmem:[%s10355_s24 + $0x584] ss:$16 sps:$4 sm:$0xff]  }
0x12cd   : > { %5976 = vmatprep.subr.bf16.mxu0 %v9206_v51  ;;  %6140 = vmatprep.subr.bf16.mxu1 %v9209_v53  ;;  %v9293_v51 = vld [vmem:[%s10355_s24 + $0x58c] ss:$16 sps:$4 sm:$0xff]   ;;  %v9288_v53 = vld [vmem:[%s10355_s24 + $0x580] ss:$16 sps:$4 sm:$0xff]  }
0x12d0   : > { %5977 = vmatpush1.bf16.msra.mxu0 %v9204_v44  ;;  %6141 = vmatpush1.bf16.msra.mxu1 %v9207_v1  ;;  %v9291_v44 = vld [vmem:[%s10355_s24 + $0x588] ss:$16 sps:$4 sm:$0xff]   ;;  %v9296_v1 = vld [vmem:[%s10355_s24 + $0x5a4] ss:$16 sps:$4 sm:$0xff]  }
0x12d1   : > { %5978 = vmatprep.subr.bf16.mxu0 %v9212_v42  ;;  %6142 = vmatprep.subr.bf16.mxu1 %v9215_v50  ;;  %v9299_v42 = vld [vmem:[%s10355_s24 + $0x5ac] ss:$16 sps:$4 sm:$0xff]   ;;  %v9294_v50 = vld [vmem:[%s10355_s24 + $0x5a0] ss:$16 sps:$4 sm:$0xff]  }
0x12d4   : > { %5979 = vmatpush1.bf16.msra.mxu0 %v9210_v8  ;;  %6143 = vmatpush1.bf16.msra.mxu1 %v9213_v40  ;;  %v9297_v8 = vld [vmem:[%s10355_s24 + $0x5a8] ss:$16 sps:$4 sm:$0xff]   ;;  %v9302_v40 = vld [vmem:[%s10355_s24 + $0x5c4] ss:$16 sps:$4 sm:$0xff]  }
0x12d5   : > { %5989 = vmatprep.subr.bf16.mxu0 %v9218_v12  ;;  %6153 = vmatprep.subr.bf16.mxu1 %v9221_v31  ;;  %v9305_v12 = vld [vmem:[%s10355_s24 + $0x5cc] ss:$16 sps:$4 sm:$0xff]   ;;  %v4316_v31 = vcombine.high %v12017_v7, %v12017_v7  ;;  %v9306_v7 = vld [vmem:[%s10355_s24 + $0x5e0] ss:$16 sps:$4 sm:$0xff]  }
0x12d7   : > { %5981 = vmatmul.mubr.bf16.vlgmr.msra.gmra.mrb[0].mxu0 %v4343_v63  ;;  %6145 = vmatmul.mubr.bf16.vlgmr.msra.gmra.mrb[0].mxu1 %v4343_v63  ;;  %v9303_v63 = vld [vmem:[%s10355_s24 + $0x5c8] ss:$16 sps:$4 sm:$0xff]  }
0x12d8   : > { %5990 = vmatpush1.bf16.msra.mxu0 %v9216_v58  ;;  %6154 = vmatpush1.bf16.msra.mxu1 %v9219_v3  ;;  %v9300_v58 = vld [vmem:[%s10355_s24 + $0x5c0] ss:$16 sps:$4 sm:$0xff]   ;;  %v9308_v3 = vld [vmem:[%s10355_s24 + $0x5e4] ss:$16 sps:$4 sm:$0xff]  }
0x12d9   : > { %5991 = vmatprep.subr.bf16.mxu0 %v9224_v37  ;;  %6155 = vmatprep.subr.bf16.mxu1 %v9227_v43  ;;  %v9311_v37 = vld [vmem:[%s10355_s24 + $0x5ec] ss:$16 sps:$4 sm:$0xff]   ;;  %v12086_v43 = vrot.slane %v4316_v31, %v11913_v23  ;;  %v9387_v31 = vld [vmem:[%s10355_s24 + $0x788] ss:$16 sps:$4 sm:$0xff]  }
0x12da   : > { %6021 = vmatprep.mubr.bf16.mxu0 %v4346_v4  ;;  %6185 = vmatprep.mubr.bf16.mxu1 %v4346_v4  ;;  %v9312_v4 = vld [vmem:[%s10355_s24 + $0x600] ss:$16 sps:$4 sm:$0xff]  }
0x12dc   : > { %5992 = vmatpush1.bf16.msra.mxu0 %v9222_v2  ;;  %6156 = vmatpush1.bf16.msra.mxu1 %v9225_v41  ;;  %v9314_v2 = vld [vmem:[%s10355_s24 + $0x604] ss:$16 sps:$4 sm:$0xff]   ;;  %v9317_v41 = vld [vmem:[%s10355_s24 + $0x60c] ss:$16 sps:$4 sm:$0xff]  }
0x12dd   : > { %5993 = vmatprep.subr.bf16.mxu0 %v9230_v11  ;;  %6157 = vmatprep.subr.bf16.mxu1 %v9233_v47  ;;  %v4332_v11 = vcombine.high %v12086_v43, %v12086_v43  ;;  %v4345_v47 = vpack.c.bf16 %v12023_v29, %v12023_v29  ;;  %v9318_v29 = vld [vmem:[%s10355_s24 + $0x620] ss:$16 sps:$4 sm:$0xff]  }
0x12e0   : > { %5994 = vmatpush1.bf16.msra.mxu0 %v9228_v45  ;;  %6158 = vmatpush1.bf16.msra.mxu1 %v9231_v15  ;;  %v9315_v45 = vld [vmem:[%s10355_s24 + $0x608] ss:$16 sps:$4 sm:$0xff]   ;;  %v9320_v15 = vld [vmem:[%s10355_s24 + $0x624] ss:$16 sps:$4 sm:$0xff]  }
0x12e1   : > { %5995 = vmatprep.subr.bf16.mxu0 %v9236_v14  ;;  %6159 = vmatprep.subr.bf16.mxu1 %v9239_v10  ;;  %v9323_v14 = vld [vmem:[%s10355_s24 + $0x62c] ss:$16 sps:$4 sm:$0xff]   ;;  %v4348_v10 = vpack.c.bf16 %v4332_v11, %v4332_v11  ;;  %v9404_v11 = vld [vmem:[%s10355_s24 + $0x7e4] ss:$16 sps:$4 sm:$0xff]  }
0x12e4   : > { %5996 = vmatpush1.bf16.msra.mxu0 %v9234_v13  ;;  %6160 = vmatpush1.bf16.msra.mxu1 %v9237_v46  ;;  %v9321_v13 = vld [vmem:[%s10355_s24 + $0x628] ss:$16 sps:$4 sm:$0xff]   ;;  %v9326_v46 = vld [vmem:[%s10355_s24 + $0x644] ss:$16 sps:$4 sm:$0xff]  }
0x12e5   : > { %5997 = vmatprep.subr.bf16.mxu0 %v9242_v6  ;;  %6161 = vmatprep.subr.bf16.mxu1 %v9245_v57  ;;  %v9329_v6 = vld [vmem:[%s10355_s24 + $0x64c] ss:$16 sps:$4 sm:$0xff]   ;;  %v9324_v57 = vld [vmem:[%s10355_s24 + $0x640] ss:$16 sps:$4 sm:$0xff]  }
0x12e8   : > { %5998 = vmatpush1.bf16.msra.mxu0 %v9240_v56  ;;  %6162 = vmatpush1.bf16.msra.mxu1 %v9243_v54  ;;  %v9327_v56 = vld [vmem:[%s10355_s24 + $0x648] ss:$16 sps:$4 sm:$0xff]   ;;  %v9332_v54 = vld [vmem:[%s10355_s24 + $0x664] ss:$16 sps:$4 sm:$0xff]  }
0x12e9   : > { %5999 = vmatprep.subr.bf16.mxu0 %v9248_v16  ;;  %6163 = vmatprep.subr.bf16.mxu1 %v9251_v18  ;;  %v9335_v16 = vld [vmem:[%s10355_s24 + $0x66c] ss:$16 sps:$4 sm:$0xff]   ;;  %v9330_v18 = vld [vmem:[%s10355_s24 + $0x660] ss:$16 sps:$4 sm:$0xff]  }
0x12ec   : > { %6000 = vmatpush1.bf16.msra.mxu0 %v9246_v19  ;;  %6164 = vmatpush1.bf16.msra.mxu1 %v9249_v20  ;;  %v9333_v19 = vld [vmem:[%s10355_s24 + $0x668] ss:$16 sps:$4 sm:$0xff]   ;;  %v9338_v20 = vld [vmem:[%s10355_s24 + $0x684] ss:$16 sps:$4 sm:$0xff]  }
0x12ed   : > { %6001 = vmatprep.subr.bf16.mxu0 %v9254_v21  ;;  %6165 = vmatprep.subr.bf16.mxu1 %v9257_v22  ;;  %v9341_v21 = vld [vmem:[%s10355_s24 + $0x68c] ss:$16 sps:$4 sm:$0xff]   ;;  %v9336_v22 = vld [vmem:[%s10355_s24 + $0x680] ss:$16 sps:$4 sm:$0xff]  }
0x12f0   : > { %6002 = vmatpush1.bf16.msra.mxu0 %v9252_v24  ;;  %6166 = vmatpush1.bf16.msra.mxu1 %v9255_v25  ;;  %v9339_v24 = vld [vmem:[%s10355_s24 + $0x688] ss:$16 sps:$4 sm:$0xff]   ;;  %v9344_v25 = vld [vmem:[%s10355_s24 + $0x6a4] ss:$16 sps:$4 sm:$0xff]  }
0x12f1   : > { %6003 = vmatprep.subr.bf16.mxu0 %v9260_v26  ;;  %6167 = vmatprep.subr.bf16.mxu1 %v9263_v27  ;;  %v9347_v26 = vld [vmem:[%s10355_s24 + $0x6ac] ss:$16 sps:$4 sm:$0xff]   ;;  %v9342_v27 = vld [vmem:[%s10355_s24 + $0x6a0] ss:$16 sps:$4 sm:$0xff]  }
0x12f4   : > { %6004 = vmatpush1.bf16.msra.mxu0 %v9258_v60  ;;  %6168 = vmatpush1.bf16.msra.mxu1 %v9261_v55  ;;  %v9345_v60 = vld [vmem:[%s10355_s24 + $0x6a8] ss:$16 sps:$4 sm:$0xff]   ;;  %v9350_v55 = vld [vmem:[%s10355_s24 + $0x6c4] ss:$16 sps:$4 sm:$0xff]  }
0x12f5   : > { %6005 = vmatprep.subr.bf16.mxu0 %v9266_v9  ;;  %6169 = vmatprep.subr.bf16.mxu1 %v9269_v48  ;;  %v9353_v9 = vld [vmem:[%s10355_s24 + $0x6cc] ss:$16 sps:$4 sm:$0xff]   ;;  %v9348_v48 = vld [vmem:[%s10355_s24 + $0x6c0] ss:$16 sps:$4 sm:$0xff]  }
0x12f8   : > { %6006 = vmatpush1.bf16.msra.mxu0 %v9264_v61  ;;  %6170 = vmatpush1.bf16.msra.mxu1 %v9267_v49  ;;  %v9351_v61 = vld [vmem:[%s10355_s24 + $0x6c8] ss:$16 sps:$4 sm:$0xff]   ;;  %v9356_v49 = vld [vmem:[%s10355_s24 + $0x6e4] ss:$16 sps:$4 sm:$0xff]  }
0x12f9   : > { %6007 = vmatprep.subr.bf16.mxu0 %v9272_v62  ;;  %6171 = vmatprep.subr.bf16.mxu1 %v9275_v52  ;;  %v9359_v62 = vld [vmem:[%s10355_s24 + $0x6ec] ss:$16 sps:$4 sm:$0xff]   ;;  %v9354_v52 = vld [vmem:[%s10355_s24 + $0x6e0] ss:$16 sps:$4 sm:$0xff]  }
0x12fc   : > { %6008 = vmatpush1.bf16.msra.mxu0 %v9270_v0  ;;  %6172 = vmatpush1.bf16.msra.mxu1 %v9273_v32  ;;  %v9357_v0 = vld [vmem:[%s10355_s24 + $0x6e8] ss:$16 sps:$4 sm:$0xff]   ;;  %v9362_v32 = vld [vmem:[%s10355_s24 + $0x704] ss:$16 sps:$4 sm:$0xff]  }
0x12fd   : > { %6009 = vmatprep.subr.bf16.mxu0 %v9278_v33  ;;  %6173 = vmatprep.subr.bf16.mxu1 %v9281_v34  ;;  %v9365_v33 = vld [vmem:[%s10355_s24 + $0x70c] ss:$16 sps:$4 sm:$0xff]   ;;  %v9360_v34 = vld [vmem:[%s10355_s24 + $0x700] ss:$16 sps:$4 sm:$0xff]  }
0x1300   : > { %6010 = vmatpush1.bf16.msra.mxu0 %v9276_v35  ;;  %6174 = vmatpush1.bf16.msra.mxu1 %v9279_v36  ;;  %v9363_v35 = vld [vmem:[%s10355_s24 + $0x708] ss:$16 sps:$4 sm:$0xff]   ;;  %v9368_v36 = vld [vmem:[%s10355_s24 + $0x724] ss:$16 sps:$4 sm:$0xff]  }
0x1301   : > { %6011 = vmatprep.subr.bf16.mxu0 %v9284_v28  ;;  %6175 = vmatprep.subr.bf16.mxu1 %v9287_v30  ;;  %v9371_v28 = vld [vmem:[%s10355_s24 + $0x72c] ss:$16 sps:$4 sm:$0xff]   ;;  %v9366_v30 = vld [vmem:[%s10355_s24 + $0x720] ss:$16 sps:$4 sm:$0xff]  }
0x1304   : > { %6012 = vmatpush1.bf16.msra.mxu0 %v9282_v38  ;;  %6176 = vmatpush1.bf16.msra.mxu1 %v9285_v5  ;;  %v9369_v38 = vld [vmem:[%s10355_s24 + $0x728] ss:$16 sps:$4 sm:$0xff]   ;;  %v9374_v5 = vld [vmem:[%s10355_s24 + $0x744] ss:$16 sps:$4 sm:$0xff]  }
0x1305   : > { %6013 = vmatprep.subr.bf16.mxu0 %v9290_v39  ;;  %6177 = vmatprep.subr.bf16.mxu1 %v9293_v51  ;;  %v9377_v39 = vld [vmem:[%s10355_s24 + $0x74c] ss:$16 sps:$4 sm:$0xff]   ;;  %v9372_v51 = vld [vmem:[%s10355_s24 + $0x740] ss:$16 sps:$4 sm:$0xff]  }
0x1308   : > { %6014 = vmatpush1.bf16.msra.mxu0 %v9288_v53  ;;  %6178 = vmatpush1.bf16.msra.mxu1 %v9291_v44  ;;  %v9375_v53 = vld [vmem:[%s10355_s24 + $0x748] ss:$16 sps:$4 sm:$0xff]   ;;  %v9380_v44 = vld [vmem:[%s10355_s24 + $0x764] ss:$16 sps:$4 sm:$0xff]  }
0x1309   : > { %6015 = vmatprep.subr.bf16.mxu0 %v9296_v1  ;;  %6179 = vmatprep.subr.bf16.mxu1 %v9299_v42  ;;  %v9383_v1 = vld [vmem:[%s10355_s24 + $0x76c] ss:$16 sps:$4 sm:$0xff]   ;;  %v9378_v42 = vld [vmem:[%s10355_s24 + $0x760] ss:$16 sps:$4 sm:$0xff]  }
0x130c   : > { %6016 = vmatpush1.bf16.msra.mxu0 %v9294_v50  ;;  %6180 = vmatpush1.bf16.msra.mxu1 %v9297_v8  ;;  %v9381_v50 = vld [vmem:[%s10355_s24 + $0x768] ss:$16 sps:$4 sm:$0xff]   ;;  %v9386_v8 = vld [vmem:[%s10355_s24 + $0x784] ss:$16 sps:$4 sm:$0xff]  }
0x130d   : > { %6017 = vmatprep.subr.bf16.mxu0 %v9302_v40  ;;  %6181 = vmatprep.subr.bf16.mxu1 %v9305_v12  ;;  %v9389_v40 = vld [vmem:[%s10355_s24 + $0x78c] ss:$16 sps:$4 sm:$0xff]   ;;  %v9384_v12 = vld [vmem:[%s10355_s24 + $0x780] ss:$16 sps:$4 sm:$0xff]  }
0x1310   : > { %6018 = vmatpush1.bf16.msra.mxu0 %v9300_v58  ;;  %6182 = vmatpush1.bf16.msra.mxu1 %v9303_v63  ;;  %v9392_v58 = vld [vmem:[%s10355_s24 + $0x7a4] ss:$16 sps:$4 sm:$0xff]   ;;  %v9395_v63 = vld [vmem:[%s10355_s24 + $0x7ac] ss:$16 sps:$4 sm:$0xff]  }
0x1311   : > { %6019 = vmatprep.subr.bf16.mxu0 %v9308_v3  ;;  %6183 = vmatprep.subr.bf16.mxu1 %v9311_v37  ;;  %v9390_v3 = vld [vmem:[%s10355_s24 + $0x7a0] ss:$16 sps:$4 sm:$0xff]   ;;  %v9393_v37 = vld [vmem:[%s10355_s24 + $0x7a8] ss:$16 sps:$4 sm:$0xff]  }
0x1314   : > { %6020 = vmatpush1.bf16.msra.mxu0 %v9306_v7  ;;  %6184 = vmatpush1.bf16.msra.mxu1 %v9309_v59  ;;  %v9398_v7 = vld [vmem:[%s10355_s24 + $0x7c4] ss:$16 sps:$4 sm:$0xff]   ;;  %v9401_v59 = vld [vmem:[%s10355_s24 + $0x7cc] ss:$16 sps:$4 sm:$0xff]  }
0x1315   : > { %6030 = vmatprep.subr.bf16.mxu0 %v9314_v2  ;;  %6194 = vmatprep.subr.bf16.mxu1 %v9317_v41  ;;  %v9396_v2 = vld [vmem:[%s10355_s24 + $0x7c0] ss:$16 sps:$4 sm:$0xff]   ;;  %v9399_v41 = vld [vmem:[%s10355_s24 + $0x7c8] ss:$16 sps:$4 sm:$0xff]  }
0x1317   : > { %6022 = vmatmul.mubr.bf16.vlgmr.msra.gmra.mrb[0].mxu0 %v4345_v47  ;;  %6186 = vmatmul.mubr.bf16.vlgmr.msra.gmra.mrb[0].mxu1 %v4345_v47  ;;  %v9407_v47 = vld [vmem:[%s10355_s24 + $0x7ec] ss:$16 sps:$4 sm:$0xff]  }
0x1318   : > { %6031 = vmatpush1.bf16.msra.mxu0 %v9312_v4  ;;  %6195 = vmatpush1.bf16.msra.mxu1 %v9315_v45  ;;  %v9402_v4 = vld [vmem:[%s10355_s24 + $0x7e0] ss:$16 sps:$4 sm:$0xff]   ;;  %v9405_v45 = vld [vmem:[%s10355_s24 + $0x7e8] ss:$16 sps:$4 sm:$0xff]  }
0x1319   : > { %6032 = vmatprep.subr.bf16.mxu0 %v9320_v15  ;;  %6196 = vmatprep.subr.bf16.mxu1 %v9323_v14  ;;  %v9411_v15 = vld [vmem:[%s10353_s8 + $0x4] ss:$16 sps:$4 sm:$0xff]   ;;  %v9414_v14 = vld [vmem:[%s10353_s8 + $0xc] ss:$16 sps:$4 sm:$0xff]  }
0x131a   : > { %6062 = vmatprep.mubr.bf16.mxu0 %v4348_v10  ;;  %6226 = vmatprep.mubr.bf16.mxu1 %v4348_v10  ;;  %v4347_v10 = vpack.c.bf16 %v12086_v43, %v12086_v43  ;;  %v9418_v43 = vld [vmem:[%s10353_s8 + $0x28] ss:$16 sps:$4 sm:$0xff]  }
0x131c   : > { %6033 = vmatpush1.bf16.msra.mxu0 %v9318_v29  ;;  %6197 = vmatpush1.bf16.msra.mxu1 %v9321_v13  ;;  %v9409_v29 = vld [vmem:[%s10353_s8] ss:$16 sps:$4 sm:$0xff]   ;;  %v9412_v13 = vld [vmem:[%s10353_s8 + $0x8] ss:$16 sps:$4 sm:$0xff]  }
0x131d   : > { %6034 = vmatprep.subr.bf16.mxu0 %v9326_v46  ;;  %6198 = vmatprep.subr.bf16.mxu1 %v9329_v6  ;;  %v9417_v46 = vld [vmem:[%s10353_s8 + $0x24] ss:$16 sps:$4 sm:$0xff]   ;;  %v9420_v6 = vld [vmem:[%s10353_s8 + $0x2c] ss:$16 sps:$4 sm:$0xff]  }
0x1320   : > { %6035 = vmatpush1.bf16.msra.mxu0 %v9324_v57  ;;  %6199 = vmatpush1.bf16.msra.mxu1 %v9327_v56  ;;  %v9415_v57 = vld [vmem:[%s10353_s8 + $0x20] ss:$16 sps:$4 sm:$0xff]   ;;  %v9423_v56 = vld [vmem:[%s10353_s8 + $0x44] ss:$16 sps:$4 sm:$0xff]  }
0x1321   : > { %6036 = vmatprep.subr.bf16.mxu0 %v9332_v54  ;;  %6200 = vmatprep.subr.bf16.mxu1 %v9335_v16  ;;  %v9426_v54 = vld [vmem:[%s10353_s8 + $0x4c] ss:$16 sps:$4 sm:$0xff]   ;;  %v9421_v16 = vld [vmem:[%s10353_s8 + $0x40] ss:$16 sps:$4 sm:$0xff]  }
0x1324   : > { %6037 = vmatpush1.bf16.msra.mxu0 %v9330_v18  ;;  %6201 = vmatpush1.bf16.msra.mxu1 %v9333_v19  ;;  %v9424_v18 = vld [vmem:[%s10353_s8 + $0x48] ss:$16 sps:$4 sm:$0xff]   ;;  %v9429_v19 = vld [vmem:[%s10353_s8 + $0x64] ss:$16 sps:$4 sm:$0xff]  }
0x1325   : > { %6038 = vmatprep.subr.bf16.mxu0 %v9338_v20  ;;  %6202 = vmatprep.subr.bf16.mxu1 %v9341_v21  ;;  %v9432_v20 = vld [vmem:[%s10353_s8 + $0x6c] ss:$16 sps:$4 sm:$0xff]   ;;  %v9427_v21 = vld [vmem:[%s10353_s8 + $0x60] ss:$16 sps:$4 sm:$0xff]  }
0x1328   : > { %6039 = vmatpush1.bf16.msra.mxu0 %v9336_v22  ;;  %6203 = vmatpush1.bf16.msra.mxu1 %v9339_v24  ;;  %v9430_v22 = vld [vmem:[%s10353_s8 + $0x68] ss:$16 sps:$4 sm:$0xff]   ;;  %v9435_v24 = vld [vmem:[%s10353_s8 + $0x84] ss:$16 sps:$4 sm:$0xff]  }
0x1329   : > { %6040 = vmatprep.subr.bf16.mxu0 %v9344_v25  ;;  %6204 = vmatprep.subr.bf16.mxu1 %v9347_v26  ;;  %v9438_v25 = vld [vmem:[%s10353_s8 + $0x8c] ss:$16 sps:$4 sm:$0xff]   ;;  %v9433_v26 = vld [vmem:[%s10353_s8 + $0x80] ss:$16 sps:$4 sm:$0xff]  }
0x132c   : > { %6041 = vmatpush1.bf16.msra.mxu0 %v9342_v27  ;;  %6205 = vmatpush1.bf16.msra.mxu1 %v9345_v60  ;;  %v9436_v27 = vld [vmem:[%s10353_s8 + $0x88] ss:$16 sps:$4 sm:$0xff]   ;;  %v9441_v60 = vld [vmem:[%s10353_s8 + $0xa4] ss:$16 sps:$4 sm:$0xff]  }
0x132d   : > { %6042 = vmatprep.subr.bf16.mxu0 %v9350_v55  ;;  %6206 = vmatprep.subr.bf16.mxu1 %v9353_v9  ;;  %v9444_v55 = vld [vmem:[%s10353_s8 + $0xac] ss:$16 sps:$4 sm:$0xff]   ;;  %v9439_v9 = vld [vmem:[%s10353_s8 + $0xa0] ss:$16 sps:$4 sm:$0xff]  }
0x1330   : > { %6043 = vmatpush1.bf16.msra.mxu0 %v9348_v48  ;;  %6207 = vmatpush1.bf16.msra.mxu1 %v9351_v61  ;;  %v9442_v48 = vld [vmem:[%s10353_s8 + $0xa8] ss:$16 sps:$4 sm:$0xff]   ;;  %v9447_v61 = vld [vmem:[%s10353_s8 + $0xc4] ss:$16 sps:$4 sm:$0xff]  }
0x1331   : > { %6044 = vmatprep.subr.bf16.mxu0 %v9356_v49  ;;  %6208 = vmatprep.subr.bf16.mxu1 %v9359_v62  ;;  %v9450_v49 = vld [vmem:[%s10353_s8 + $0xcc] ss:$16 sps:$4 sm:$0xff]   ;;  %v9445_v62 = vld [vmem:[%s10353_s8 + $0xc0] ss:$16 sps:$4 sm:$0xff]  }
0x1334   : > { %6045 = vmatpush1.bf16.msra.mxu0 %v9354_v52  ;;  %6209 = vmatpush1.bf16.msra.mxu1 %v9357_v0  ;;  %v9448_v52 = vld [vmem:[%s10353_s8 + $0xc8] ss:$16 sps:$4 sm:$0xff]   ;;  %v9453_v0 = vld [vmem:[%s10353_s8 + $0xe4] ss:$16 sps:$4 sm:$0xff]  }
0x1335   : > { %6046 = vmatprep.subr.bf16.mxu0 %v9362_v32  ;;  %6210 = vmatprep.subr.bf16.mxu1 %v9365_v33  ;;  %v9456_v32 = vld [vmem:[%s10353_s8 + $0xec] ss:$16 sps:$4 sm:$0xff]   ;;  %v9451_v33 = vld [vmem:[%s10353_s8 + $0xe0] ss:$16 sps:$4 sm:$0xff]  }
0x1338   : > { %6047 = vmatpush1.bf16.msra.mxu0 %v9360_v34  ;;  %6211 = vmatpush1.bf16.msra.mxu1 %v9363_v35  ;;  %v9454_v34 = vld [vmem:[%s10353_s8 + $0xe8] ss:$16 sps:$4 sm:$0xff]   ;;  %v9459_v35 = vld [vmem:[%s10353_s8 + $0x104] ss:$16 sps:$4 sm:$0xff]  }
0x1339   : > { %6048 = vmatprep.subr.bf16.mxu0 %v9368_v36  ;;  %6212 = vmatprep.subr.bf16.mxu1 %v9371_v28  ;;  %v9462_v36 = vld [vmem:[%s10353_s8 + $0x10c] ss:$16 sps:$4 sm:$0xff]   ;;  %v9457_v28 = vld [vmem:[%s10353_s8 + $0x100] ss:$16 sps:$4 sm:$0xff]  }
0x133c   : > { %6049 = vmatpush1.bf16.msra.mxu0 %v9366_v30  ;;  %6213 = vmatpush1.bf16.msra.mxu1 %v9369_v38  ;;  %v9460_v30 = vld [vmem:[%s10353_s8 + $0x108] ss:$16 sps:$4 sm:$0xff]   ;;  %v9465_v38 = vld [vmem:[%s10353_s8 + $0x124] ss:$16 sps:$4 sm:$0xff]  }
0x133d   : > { %6050 = vmatprep.subr.bf16.mxu0 %v9374_v5  ;;  %6214 = vmatprep.subr.bf16.mxu1 %v9377_v39  ;;  %v9468_v5 = vld [vmem:[%s10353_s8 + $0x12c] ss:$16 sps:$4 sm:$0xff]   ;;  %v9463_v39 = vld [vmem:[%s10353_s8 + $0x120] ss:$16 sps:$4 sm:$0xff]  }
0x1340   : > { %6051 = vmatpush1.bf16.msra.mxu0 %v9372_v51  ;;  %6215 = vmatpush1.bf16.msra.mxu1 %v9375_v53  ;;  %v9466_v51 = vld [vmem:[%s10353_s8 + $0x128] ss:$16 sps:$4 sm:$0xff]   ;;  %v9471_v53 = vld [vmem:[%s10353_s8 + $0x144] ss:$16 sps:$4 sm:$0xff]  }
0x1341   : > { %6052 = vmatprep.subr.bf16.mxu0 %v9380_v44  ;;  %6216 = vmatprep.subr.bf16.mxu1 %v9383_v1  ;;  %v9474_v44 = vld [vmem:[%s10353_s8 + $0x14c] ss:$16 sps:$4 sm:$0xff]   ;;  %v9469_v1 = vld [vmem:[%s10353_s8 + $0x140] ss:$16 sps:$4 sm:$0xff]  }
0x1344   : > { %6053 = vmatpush1.bf16.msra.mxu0 %v9378_v42  ;;  %6217 = vmatpush1.bf16.msra.mxu1 %v9381_v50  ;;  %v9472_v42 = vld [vmem:[%s10353_s8 + $0x148] ss:$16 sps:$4 sm:$0xff]   ;;  %v9477_v50 = vld [vmem:[%s10353_s8 + $0x164] ss:$16 sps:$4 sm:$0xff]  }
0x1345   : > { %6054 = vmatprep.subr.bf16.mxu0 %v9386_v8  ;;  %6218 = vmatprep.subr.bf16.mxu1 %v9389_v40  ;;  %v9480_v8 = vld [vmem:[%s10353_s8 + $0x16c] ss:$16 sps:$4 sm:$0xff]   ;;  %v9475_v40 = vld [vmem:[%s10353_s8 + $0x160] ss:$16 sps:$4 sm:$0xff]  }
0x1348   : > { %6055 = vmatpush1.bf16.msra.mxu0 %v9384_v12  ;;  %6219 = vmatpush1.bf16.msra.mxu1 %v9387_v31  ;;  %v9478_v12 = vld [vmem:[%s10353_s8 + $0x168] ss:$16 sps:$4 sm:$0xff]   ;;  %v9483_v31 = vld [vmem:[%s10353_s8 + $0x184] ss:$16 sps:$4 sm:$0xff]  }
0x1349   : > { %6056 = vmatprep.subr.bf16.mxu0 %v9392_v58  ;;  %6220 = vmatprep.subr.bf16.mxu1 %v9395_v63  ;;  %v9486_v58 = vld [vmem:[%s10353_s8 + $0x18c] ss:$16 sps:$4 sm:$0xff]   ;;  %v9481_v63 = vld [vmem:[%s10353_s8 + $0x180] ss:$16 sps:$4 sm:$0xff]  }
0x134c   : > { %6057 = vmatpush1.bf16.msra.mxu0 %v9390_v3  ;;  %6221 = vmatpush1.bf16.msra.mxu1 %v9393_v37  ;;  %v9484_v3 = vld [vmem:[%s10353_s8 + $0x188] ss:$16 sps:$4 sm:$0xff]   ;;  %v9489_v37 = vld [vmem:[%s10353_s8 + $0x1a4] ss:$16 sps:$4 sm:$0xff]  }
0x134d   : > { %6058 = vmatprep.subr.bf16.mxu0 %v9398_v7  ;;  %6222 = vmatprep.subr.bf16.mxu1 %v9401_v59  ;;  %v9492_v7 = vld [vmem:[%s10353_s8 + $0x1ac] ss:$16 sps:$4 sm:$0xff]   ;;  %v9487_v59 = vld [vmem:[%s10353_s8 + $0x1a0] ss:$16 sps:$4 sm:$0xff]  }
0x1350   : > { %6059 = vmatpush1.bf16.msra.mxu0 %v9396_v2  ;;  %6223 = vmatpush1.bf16.msra.mxu1 %v9399_v41  ;;  %v9490_v2 = vld [vmem:[%s10353_s8 + $0x1a8] ss:$16 sps:$4 sm:$0xff]   ;;  %v9495_v41 = vld [vmem:[%s10353_s8 + $0x1c4] ss:$16 sps:$4 sm:$0xff]  }
0x1351   : > { %6060 = vmatprep.subr.bf16.mxu0 %v9404_v11  ;;  %6224 = vmatprep.subr.bf16.mxu1 %v9407_v47  ;;  %v9498_v11 = vld [vmem:[%s10353_s8 + $0x1cc] ss:$16 sps:$4 sm:$0xff]   ;;  %v9493_v47 = vld [vmem:[%s10353_s8 + $0x1c0] ss:$16 sps:$4 sm:$0xff]  }
0x1354   : > { %6061 = vmatpush1.bf16.msra.mxu0 %v9402_v4  ;;  %6225 = vmatpush1.bf16.msra.mxu1 %v9405_v45  ;;  %v9496_v4 = vld [vmem:[%s10353_s8 + $0x1c8] ss:$16 sps:$4 sm:$0xff]   ;;  %v9501_v45 = vld [vmem:[%s10353_s8 + $0x1e4] ss:$16 sps:$4 sm:$0xff]  }
0x1355   : > { %7012 = vmatprep.subr.bf16.mxu0 %v9411_v15  ;;  %7094 = vmatprep.subr.bf16.mxu1 %v9414_v14  ;;  %v9504_v15 = vld [vmem:[%s10353_s8 + $0x1ec] ss:$16 sps:$4 sm:$0xff]   ;;  %v9499_v14 = vld [vmem:[%s10353_s8 + $0x1e0] ss:$16 sps:$4 sm:$0xff]  }
0x1357   : > { %6063 = vmatmul.mubr.bf16.vlgmr.msra.gmra.mrb[0].mxu0 %v4347_v10  ;;  %6227 = vmatmul.mubr.bf16.vlgmr.msra.gmra.mrb[0].mxu1 %v4347_v10  ;;  %v9502_v10 = vld [vmem:[%s10353_s8 + $0x1e8] ss:$16 sps:$4 sm:$0xff]  }
0x1358   : > { %7013 = vmatpush1.bf16.msra.mxu0 %v9409_v29  ;;  %7095 = vmatpush1.bf16.msra.mxu1 %v9412_v13  ;;  %v9507_v29 = vld [vmem:[%s10353_s8 + $0x204] ss:$16 sps:$4 sm:$0xff]   ;;  %v9510_v13 = vld [vmem:[%s10353_s8 + $0x20c] ss:$16 sps:$4 sm:$0xff]  }
0x1359   : > { %7014 = vmatprep.subr.bf16.mxu0 %v9417_v46  ;;  %7096 = vmatprep.subr.bf16.mxu1 %v9420_v6  ;;  %v4609_v46 = vsub.s32 0, %v11905_v17  ;;  %v12232_v6 = vld [vmem:[%s1101_s21] sm:$0xf] }
0x135c   : > { %7015 = vmatpush1.bf16.msra.mxu0 %v9415_v57  ;;  %7097 = vmatpush1.bf16.msra.mxu1 %v9418_v43  ;;  %v4613_v57 = vsub.s32 1, %v11905_v17  ;;  %v4621_v43 = vsub.s32 3, %v11905_v17 }
0x135d   : > { %7016 = vmatprep.subr.bf16.mxu0 %v9423_v56  ;;  %7098 = vmatprep.subr.bf16.mxu1 %v9426_v54  ;;  %v4610_v56 = vrot.slane %v12232_v6, %v4609_v46  ;;  %v9567_v46 = vld [vmem:[%s10353_s8 + $0x344] ss:$16 sps:$4 sm:$0xff]  }
0x135e   : > { %v4614_v54 = vrot.slane %v12232_v6, %v4613_v57  ;;  %v9570_v57 = vld [vmem:[%s10353_s8 + $0x34c] ss:$16 sps:$4 sm:$0xff]  }
0x1360   : > { %7017 = vmatpush1.bf16.msra.mxu0 %v9421_v16  ;;  %7099 = vmatpush1.bf16.msra.mxu1 %v9424_v18  ;;  %v4622_v16 = vrot.slane %v12232_v6, %v4621_v43  ;;  %v9565_v43 = vld [vmem:[%s10353_s8 + $0x340] ss:$16 sps:$4 sm:$0xff]  }
0x1361   : > { %7018 = vmatprep.subr.bf16.mxu0 %v9429_v19  ;;  %7100 = vmatprep.subr.bf16.mxu1 %v9432_v20 }
0x1364   : > { %7019 = vmatpush1.bf16.msra.mxu0 %v9427_v21  ;;  %7101 = vmatpush1.bf16.msra.mxu1 %v9430_v22 }
0x1365   : > { %7020 = vmatprep.subr.bf16.mxu0 %v9435_v24  ;;  %7102 = vmatprep.subr.bf16.mxu1 %v9438_v25 }
0x1368   : > { %7021 = vmatpush1.bf16.msra.mxu0 %v9433_v26  ;;  %7103 = vmatpush1.bf16.msra.mxu1 %v9436_v27 }
0x1369   : > { %7022 = vmatprep.subr.bf16.mxu0 %v9441_v60  ;;  %7104 = vmatprep.subr.bf16.mxu1 %v9444_v55 }
0x136c   : > { %7023 = vmatpush1.bf16.msra.mxu0 %v9439_v9  ;;  %7105 = vmatpush1.bf16.msra.mxu1 %v9442_v48 }
0x136d   : > { %7024 = vmatprep.subr.bf16.mxu0 %v9447_v61  ;;  %7106 = vmatprep.subr.bf16.mxu1 %v9450_v49 }
0x1370   : > { %7025 = vmatpush1.bf16.msra.mxu0 %v9445_v62  ;;  %7107 = vmatpush1.bf16.msra.mxu1 %v9448_v52  ;;  %v9505_v62 = vld [vmem:[%s10353_s8 + $0x200] ss:$16 sps:$4 sm:$0xff]   ;;  %v9508_v52 = vld [vmem:[%s10353_s8 + $0x208] ss:$16 sps:$4 sm:$0xff]  }
0x1371   : > { %7026 = vmatprep.subr.bf16.mxu0 %v9453_v0  ;;  %7108 = vmatprep.subr.bf16.mxu1 %v9456_v32  ;;  %v9513_v32 = vld [vmem:[%s10353_s8 + $0x224] ss:$16 sps:$4 sm:$0xff]  }
0x1374   : > { %7027 = vmatpush1.bf16.msra.mxu0 %v9451_v33  ;;  %7109 = vmatpush1.bf16.msra.mxu1 %v9454_v34  ;;  %v9516_v33 = vld [vmem:[%s10353_s8 + $0x22c] ss:$16 sps:$4 sm:$0xff]  }
0x1375   : > { %7028 = vmatprep.subr.bf16.mxu0 %v9459_v35  ;;  %7110 = vmatprep.subr.bf16.mxu1 %v9462_v36  ;;  %v9511_v35 = vld [vmem:[%s10353_s8 + $0x220] ss:$16 sps:$4 sm:$0xff]   ;;  %v9514_v36 = vld [vmem:[%s10353_s8 + $0x228] ss:$16 sps:$4 sm:$0xff]  }
0x1378   : > { %7029 = vmatpush1.bf16.msra.mxu0 %v9457_v28  ;;  %7111 = vmatpush1.bf16.msra.mxu1 %v9460_v30  ;;  %v9519_v28 = vld [vmem:[%s10353_s8 + $0x244] ss:$16 sps:$4 sm:$0xff]   ;;  %v9522_v30 = vld [vmem:[%s10353_s8 + $0x24c] ss:$16 sps:$4 sm:$0xff]  }
0x1379   : > { %7030 = vmatprep.subr.bf16.mxu0 %v9465_v38  ;;  %7112 = vmatprep.subr.bf16.mxu1 %v9468_v5  ;;  %v9517_v38 = vld [vmem:[%s10353_s8 + $0x240] ss:$16 sps:$4 sm:$0xff]   ;;  %v9520_v5 = vld [vmem:[%s10353_s8 + $0x248] ss:$16 sps:$4 sm:$0xff]  }
0x137c   : > { %7031 = vmatpush1.bf16.msra.mxu0 %v9463_v39  ;;  %7113 = vmatpush1.bf16.msra.mxu1 %v9466_v51  ;;  %v9525_v39 = vld [vmem:[%s10353_s8 + $0x264] ss:$16 sps:$4 sm:$0xff]   ;;  %v9528_v51 = vld [vmem:[%s10353_s8 + $0x26c] ss:$16 sps:$4 sm:$0xff]  }
0x137d   : > { %7032 = vmatprep.subr.bf16.mxu0 %v9471_v53  ;;  %7114 = vmatprep.subr.bf16.mxu1 %v9474_v44  ;;  %v9523_v53 = vld [vmem:[%s10353_s8 + $0x260] ss:$16 sps:$4 sm:$0xff]   ;;  %v9526_v44 = vld [vmem:[%s10353_s8 + $0x268] ss:$16 sps:$4 sm:$0xff]  }
0x1380   : > { %7033 = vmatpush1.bf16.msra.mxu0 %v9469_v1  ;;  %7115 = vmatpush1.bf16.msra.mxu1 %v9472_v42  ;;  %v9531_v1 = vld [vmem:[%s10353_s8 + $0x284] ss:$16 sps:$4 sm:$0xff]   ;;  %v9534_v42 = vld [vmem:[%s10353_s8 + $0x28c] ss:$16 sps:$4 sm:$0xff]  }
0x1381   : > { %7034 = vmatprep.subr.bf16.mxu0 %v9477_v50  ;;  %7116 = vmatprep.subr.bf16.mxu1 %v9480_v8  ;;  %v9529_v50 = vld [vmem:[%s10353_s8 + $0x280] ss:$16 sps:$4 sm:$0xff]   ;;  %v9532_v8 = vld [vmem:[%s10353_s8 + $0x288] ss:$16 sps:$4 sm:$0xff]  }
0x1384   : > { %7035 = vmatpush1.bf16.msra.mxu0 %v9475_v40  ;;  %7117 = vmatpush1.bf16.msra.mxu1 %v9478_v12  ;;  %v9537_v40 = vld [vmem:[%s10353_s8 + $0x2a4] ss:$16 sps:$4 sm:$0xff]   ;;  %v9540_v12 = vld [vmem:[%s10353_s8 + $0x2ac] ss:$16 sps:$4 sm:$0xff]  }
0x1385   : > { %7036 = vmatprep.subr.bf16.mxu0 %v9483_v31  ;;  %7118 = vmatprep.subr.bf16.mxu1 %v9486_v58  ;;  %v9535_v31 = vld [vmem:[%s10353_s8 + $0x2a0] ss:$16 sps:$4 sm:$0xff]   ;;  %v9538_v58 = vld [vmem:[%s10353_s8 + $0x2a8] ss:$16 sps:$4 sm:$0xff]  }
0x1388   : > { %7037 = vmatpush1.bf16.msra.mxu0 %v9481_v63  ;;  %7119 = vmatpush1.bf16.msra.mxu1 %v9484_v3  ;;  %v9543_v63 = vld [vmem:[%s10353_s8 + $0x2c4] ss:$16 sps:$4 sm:$0xff]   ;;  %v9546_v3 = vld [vmem:[%s10353_s8 + $0x2cc] ss:$16 sps:$4 sm:$0xff]  }
0x1389   : > { %7038 = vmatprep.subr.bf16.mxu0 %v9489_v37  ;;  %7120 = vmatprep.subr.bf16.mxu1 %v9492_v7  ;;  %v9541_v37 = vld [vmem:[%s10353_s8 + $0x2c0] ss:$16 sps:$4 sm:$0xff]   ;;  %v9544_v7 = vld [vmem:[%s10353_s8 + $0x2c8] ss:$16 sps:$4 sm:$0xff]  }
0x138c   : > { %7039 = vmatpush1.bf16.msra.mxu0 %v9487_v59  ;;  %7121 = vmatpush1.bf16.msra.mxu1 %v9490_v2  ;;  %v9549_v59 = vld [vmem:[%s10353_s8 + $0x2e4] ss:$16 sps:$4 sm:$0xff]   ;;  %v9552_v2 = vld [vmem:[%s10353_s8 + $0x2ec] ss:$16 sps:$4 sm:$0xff]  }
0x138d   : > { %7040 = vmatprep.subr.bf16.mxu0 %v9495_v41  ;;  %7122 = vmatprep.subr.bf16.mxu1 %v9498_v11  ;;  %v9547_v41 = vld [vmem:[%s10353_s8 + $0x2e0] ss:$16 sps:$4 sm:$0xff]   ;;  %v9550_v11 = vld [vmem:[%s10353_s8 + $0x2e8] ss:$16 sps:$4 sm:$0xff]  }
0x1390   : > { %7041 = vmatpush1.bf16.msra.mxu0 %v9493_v47  ;;  %7123 = vmatpush1.bf16.msra.mxu1 %v9496_v4  ;;  %v9555_v47 = vld [vmem:[%s10353_s8 + $0x304] ss:$16 sps:$4 sm:$0xff]   ;;  %v9558_v4 = vld [vmem:[%s10353_s8 + $0x30c] ss:$16 sps:$4 sm:$0xff]  }
0x1391   : > { %7042 = vmatprep.subr.bf16.mxu0 %v9501_v45  ;;  %7124 = vmatprep.subr.bf16.mxu1 %v9504_v15  ;;  %v9553_v45 = vld [vmem:[%s10353_s8 + $0x300] ss:$16 sps:$4 sm:$0xff]   ;;  %v9556_v15 = vld [vmem:[%s10353_s8 + $0x308] ss:$16 sps:$4 sm:$0xff]  }
0x1394   : > { %7043 = vmatpush1.bf16.msra.mxu0 %v9499_v14  ;;  %7125 = vmatpush1.bf16.msra.mxu1 %v9502_v10  ;;  %v9561_v14 = vld [vmem:[%s10353_s8 + $0x324] ss:$16 sps:$4 sm:$0xff]   ;;  %v9564_v10 = vld [vmem:[%s10353_s8 + $0x32c] ss:$16 sps:$4 sm:$0xff]  }
0x1395   : > { %7053 = vmatprep.subr.bf16.mxu0 %v9507_v29  ;;  %7135 = vmatprep.subr.bf16.mxu1 %v9510_v13  ;;  %v9559_v29 = vld [vmem:[%s10353_s8 + $0x320] ss:$16 sps:$4 sm:$0xff]   ;;  %v9562_v13 = vld [vmem:[%s10353_s8 + $0x328] ss:$16 sps:$4 sm:$0xff]  }
0x142a   : > { %v6064_v18 = vpop.f32.mrb[0].mxu0  ;;  %v12239_v19 = vpop.f32.mrb[0].mxu1 }
0x142b   : > { %v8427_v20 = vadd.f32 %v6064_v18, %v4610_v56  ;;  %v6066_v21 = vpop.f32.mrb[1].mxu0  ;;  %v6230_v22 = vpop.f32.mrb[1].mxu1  ;;  %v9568_v56 = vld [vmem:[%s10353_s8 + $0x348] ss:$16 sps:$4 sm:$0xff]   ;;  %v9571_v18 = vld [vmem:[%s10353_s8 + $0x360] ss:$16 sps:$4 sm:$0xff]  }
0x142c   : > { %v8428_v24 = vadd.f32 %v6066_v21, %v4614_v54  ;;  %v8430_v25 = vadd.f32 %v6230_v22, %v4622_v16  ;;  %v6068_v26 = vpop.f32.mrb[2].mxu0  ;;  %v6232_v27 = vpop.f32.mrb[2].mxu1  ;;  %v9573_v54 = vld [vmem:[%s10353_s8 + $0x364] ss:$16 sps:$4 sm:$0xff]   ;;  %v9576_v16 = vld [vmem:[%s10353_s8 + $0x36c] ss:$16 sps:$4 sm:$0xff]  }
0x142d   : > { %v6235_v60 = vmax.f32 %v8427_v20, 0.0  ;;  %v6069_v55 = vpop.f32.mrb[3].mxu0  ;;  %v6233_v9 = vpop.f32.mrb[3].mxu1  ;;  %v9574_v20 = vld [vmem:[%s10353_s8 + $0x368] ss:$16 sps:$4 sm:$0xff]   ;;  %v4617_v26 = vsub.s32 2, %v11905_v17 }
0x142e   : > { %v6236_v48 = vmax.f32 %v8428_v24, 0.0  ;;  %v6238_v61 = vmax.f32 %v8430_v25, 0.0  ;;  %v9579_v21 = vld [vmem:[%s10353_s8 + $0x384] ss:$16 sps:$4 sm:$0xff]   ;;  %v9582_v22 = vld [vmem:[%s10353_s8 + $0x38c] ss:$16 sps:$4 sm:$0xff]  }
0x142f   : > { %v6240_v0 = vpack.c.bf16 %v6235_v60, %v6235_v60  ;;  %v9577_v24 = vld [vmem:[%s10353_s8 + $0x380] ss:$16 sps:$4 sm:$0xff]   ;;  %v9580_v25 = vld [vmem:[%s10353_s8 + $0x388] ss:$16 sps:$4 sm:$0xff]   ;;  %v9585_v27 = vld [vmem:[%s10353_s8 + $0x3a4] ss:$16 sps:$4 sm:$0xff]  }
0x1430   : > { %v6241_v49 = vpack.c.bf16 %v6236_v48, %v6236_v48  ;;  %v6243_v34 = vpack.c.bf16 %v6238_v61, %v6238_v61  ;;  %v9588_v60 = vld [vmem:[%s10353_s8 + $0x3ac] ss:$16 sps:$4 sm:$0xff]   ;;  %v9583_v55 = vld [vmem:[%s10353_s8 + $0x3a0] ss:$16 sps:$4 sm:$0xff]   ;;  %v9586_v9 = vld [vmem:[%s10353_s8 + $0x3a8] ss:$16 sps:$4 sm:$0xff]   ;;  %v4618_v48 = vrot.slane %v12232_v6, %v4617_v26 }
0x1431   : > { %v9591_v61 = vld [vmem:[%s10353_s8 + $0x3c4] ss:$16 sps:$4 sm:$0xff]   ;;  %v9594_v17 = vld [vmem:[%s10353_s8 + $0x3cc] ss:$16 sps:$4 sm:$0xff]   ;;  %v9598_v6 = vld [vmem:[%s10353_s8 + $0x3e8] ss:$16 sps:$4 sm:$0xff]  }
0x1432   : > { %7044 = vmatprep.mubr.bf16.mxu0 %v6241_v49  ;;  %7126 = vmatprep.mubr.bf16.mxu1 %v6241_v49  ;;  %v9589_v49 = vld [vmem:[%s10353_s8 + $0x3c0] ss:$16 sps:$4 sm:$0xff]   ;;  %v9632_v26 = vld [vmem:[%s12471_s13 + $0xb8] sm:$0xff] (!%p8320_p11)  }
0x1433   : > { %7045 = vmatmul.mubr.bf16.vlgmr.msra.gmra.mrb[4].mxu0 %v6240_v0  ;;  %7127 = vmatmul.mubr.bf16.vlgmr.msra.gmra.mrb[4].mxu1 %v6240_v0  ;;  %v9597_v0 = vld [vmem:[%s10353_s8 + $0x3e4] ss:$16 sps:$4 sm:$0xff]  }
0x1434   : > { %7054 = vmatpush1.bf16.msra.mxu0 %v9505_v62  ;;  %7136 = vmatpush1.bf16.msra.mxu1 %v9508_v52  ;;  %v9592_v62 = vld [vmem:[%s10353_s8 + $0x3c8] ss:$16 sps:$4 sm:$0xff]   ;;  %v8429_v52 = vadd.f32 %v12239_v19, %v4618_v48 }
0x1435   : > { %7085 = vmatprep.mubr.bf16.mxu0 %v6243_v34  ;;  %7167 = vmatprep.mubr.bf16.mxu1 %v6243_v34 }
0x1436   : > { %7055 = vmatprep.subr.bf16.mxu0 %v9513_v32  ;;  %7137 = vmatprep.subr.bf16.mxu1 %v9516_v33  ;;  %v9600_v32 = vld [vmem:[%s10353_s8 + $0x3ec] ss:$16 sps:$4 sm:$0xff]   ;;  %v9595_v33 = vld [vmem:[%s10353_s8 + $0x3e0] ss:$16 sps:$4 sm:$0xff]   ;;  %v6237_v34 = vmax.f32 %v8429_v52, 0.0 }
0x1438   : > { %7056 = vmatpush1.bf16.msra.mxu0 %v9511_v35  ;;  %7138 = vmatpush1.bf16.msra.mxu1 %v9514_v36  ;;  %v6242_v35 = vpack.c.bf16 %v6237_v34, %v6237_v34  ;;  %v9636_v34 = vld [vmem:[%s12473_s15 + $0x18] sm:$0xff] (!%p8320_p11)  }
0x1439   : > { %7057 = vmatprep.subr.bf16.mxu0 %v9519_v28  ;;  %7139 = vmatprep.subr.bf16.mxu1 %v9522_v30 }
0x143c   : > { %7058 = vmatpush1.bf16.msra.mxu0 %v9517_v38  ;;  %7140 = vmatpush1.bf16.msra.mxu1 %v9520_v5 }
0x143d   : > { %7059 = vmatprep.subr.bf16.mxu0 %v9525_v39  ;;  %7141 = vmatprep.subr.bf16.mxu1 %v9528_v51 }
0x1440   : > { %7060 = vmatpush1.bf16.msra.mxu0 %v9523_v53  ;;  %7142 = vmatpush1.bf16.msra.mxu1 %v9526_v44 }
0x1441   : > { %7061 = vmatprep.subr.bf16.mxu0 %v9531_v1  ;;  %7143 = vmatprep.subr.bf16.mxu1 %v9534_v42 }
0x1444   : > { %7062 = vmatpush1.bf16.msra.mxu0 %v9529_v50  ;;  %7144 = vmatpush1.bf16.msra.mxu1 %v9532_v8  ;;  %v6239_v50 = vld [vmem:[#allocation2] sm:$0xff] }
0x1445   : > { %7063 = vmatprep.subr.bf16.mxu0 %v9537_v40  ;;  %7145 = vmatprep.subr.bf16.mxu1 %v9540_v12  ;;  %v9601_v12 = vld [vmem:[%s12471_s13 + $0x40] sm:$0xff] (!%p8320_p11)  }
0x1448   : > { %7064 = vmatpush1.bf16.msra.mxu0 %v9535_v31  ;;  %7146 = vmatpush1.bf16.msra.mxu1 %v9538_v58  ;;  %v9602_v31 = vld [vmem:[%s12471_s13 + $0xc0] sm:$0xff] (!%p8320_p11)  }
0x1449   : > { %7065 = vmatprep.subr.bf16.mxu0 %v9543_v63  ;;  %7147 = vmatprep.subr.bf16.mxu1 %v9546_v3  ;;  %v9603_v58 = vld [vmem:[%s12471_s13] sm:$0xff] (!%p8320_p11)   ;;  %v9605_v3 = vld [vmem:[%s12471_s13 + $0x48] sm:$0xff] (!%p8320_p11)  }
0x144a   : > { %v9604_v63 = vld [vmem:[%s12471_s13 + $0x80] sm:$0xff] (!%p8320_p11)  }
0x144c   : > { %7066 = vmatpush1.bf16.msra.mxu0 %v9541_v37  ;;  %7148 = vmatpush1.bf16.msra.mxu1 %v9544_v7  ;;  %v9606_v37 = vld [vmem:[%s12471_s13 + $0xc8] sm:$0xff] (!%p8320_p11)  }
0x144d   : > { %7067 = vmatprep.subr.bf16.mxu0 %v9549_v59  ;;  %7149 = vmatprep.subr.bf16.mxu1 %v9552_v2  ;;  %v9607_v7 = vld [vmem:[%s12471_s13 + $0x8] sm:$0xff] (!%p8320_p11)   ;;  %v9609_v2 = vld [vmem:[%s12471_s13 + $0x50] sm:$0xff] (!%p8320_p11)  }
0x144e   : > { %v9608_v59 = vld [vmem:[%s12471_s13 + $0x88] sm:$0xff] (!%p8320_p11)  }
0x1450   : > { %7068 = vmatpush1.bf16.msra.mxu0 %v9547_v41  ;;  %7150 = vmatpush1.bf16.msra.mxu1 %v9550_v11  ;;  %v9610_v41 = vld [vmem:[%s12471_s13 + $0xd0] sm:$0xff] (!%p8320_p11)  }
0x1451   : > { %7069 = vmatprep.subr.bf16.mxu0 %v9555_v47  ;;  %7151 = vmatprep.subr.bf16.mxu1 %v9558_v4  ;;  %v9611_v11 = vld [vmem:[%s12471_s13 + $0x10] sm:$0xff] (!%p8320_p11)   ;;  %v9613_v4 = vld [vmem:[%s12471_s13 + $0x58] sm:$0xff] (!%p8320_p11)  }
0x1452   : > { %v9612_v47 = vld [vmem:[%s12471_s13 + $0x90] sm:$0xff] (!%p8320_p11)  }
0x1454   : > { %7070 = vmatpush1.bf16.msra.mxu0 %v9553_v45  ;;  %7152 = vmatpush1.bf16.msra.mxu1 %v9556_v15  ;;  %v9614_v45 = vld [vmem:[%s12471_s13 + $0xd8] sm:$0xff] (!%p8320_p11)  }
0x1455   : > { %7071 = vmatprep.subr.bf16.mxu0 %v9561_v14  ;;  %7153 = vmatprep.subr.bf16.mxu1 %v9564_v10  ;;  %v9615_v15 = vld [vmem:[%s12471_s13 + $0x18] sm:$0xff] (!%p8320_p11)   ;;  %v9617_v10 = vld [vmem:[%s12471_s13 + $0x60] sm:$0xff] (!%p8320_p11)  }
0x1456   : > { %v9616_v14 = vld [vmem:[%s12471_s13 + $0x98] sm:$0xff] (!%p8320_p11)  }
0x1458   : > { %7072 = vmatpush1.bf16.msra.mxu0 %v9559_v29  ;;  %7154 = vmatpush1.bf16.msra.mxu1 %v9562_v13  ;;  %v9618_v29 = vld [vmem:[%s12471_s13 + $0xe0] sm:$0xff] (!%p8320_p11)  }
0x1459   : > { %7073 = vmatprep.subr.bf16.mxu0 %v9567_v46  ;;  %7155 = vmatprep.subr.bf16.mxu1 %v9570_v57  ;;  %v9619_v13 = vld [vmem:[%s12471_s13 + $0x20] sm:$0xff] (!%p8320_p11)   ;;  %v9621_v57 = vld [vmem:[%s12471_s13 + $0x68] sm:$0xff] (!%p8320_p11)  }
0x145a   : > { %v9620_v46 = vld [vmem:[%s12471_s13 + $0xa0] sm:$0xff] (!%p8320_p11)  }
0x145c   : > { %7074 = vmatpush1.bf16.msra.mxu0 %v9565_v43  ;;  %7156 = vmatpush1.bf16.msra.mxu1 %v9568_v56  ;;  %v9622_v43 = vld [vmem:[%s12471_s13 + $0xe8] sm:$0xff] (!%p8320_p11)  }
0x145d   : > { %7075 = vmatprep.subr.bf16.mxu0 %v9573_v54  ;;  %7157 = vmatprep.subr.bf16.mxu1 %v9576_v16  ;;  %v9623_v56 = vld [vmem:[%s12471_s13 + $0x28] sm:$0xff] (!%p8320_p11)   ;;  %v9625_v16 = vld [vmem:[%s12471_s13 + $0x70] sm:$0xff] (!%p8320_p11)  }
0x145e   : > { %v9624_v54 = vld [vmem:[%s12471_s13 + $0xa8] sm:$0xff] (!%p8320_p11)  }
0x1460   : > { %7076 = vmatpush1.bf16.msra.mxu0 %v9571_v18  ;;  %7158 = vmatpush1.bf16.msra.mxu1 %v9574_v20  ;;  %v9626_v18 = vld [vmem:[%s12471_s13 + $0xf0] sm:$0xff] (!%p8320_p11)  }
0x1461   : > { %7077 = vmatprep.subr.bf16.mxu0 %v9579_v21  ;;  %7159 = vmatprep.subr.bf16.mxu1 %v9582_v22  ;;  %v9627_v20 = vld [vmem:[%s12471_s13 + $0x30] sm:$0xff] (!%p8320_p11)   ;;  %v9629_v22 = vld [vmem:[%s12471_s13 + $0x78] sm:$0xff] (!%p8320_p11)  }
0x1462   : > { %v9628_v21 = vld [vmem:[%s12471_s13 + $0xb0] sm:$0xff] (!%p8320_p11)  }
0x1464   : > { %7078 = vmatpush1.bf16.msra.mxu0 %v9577_v24  ;;  %7160 = vmatpush1.bf16.msra.mxu1 %v9580_v25  ;;  %v9630_v24 = vld [vmem:[%s12471_s13 + $0xf8] sm:$0xff] (!%p8320_p11)  }
0x1465   : > { %7079 = vmatprep.subr.bf16.mxu0 %v9585_v27  ;;  %7161 = vmatprep.subr.bf16.mxu1 %v9588_v60  ;;  %v9631_v25 = vld [vmem:[%s12471_s13 + $0x38] sm:$0xff] (!%p8320_p11)  }
0x1468   : > { %7080 = vmatpush1.bf16.msra.mxu0 %v9583_v55  ;;  %7162 = vmatpush1.bf16.msra.mxu1 %v9586_v9  ;;  %v9694_v55 = vmov (!%p8320_p11), 0.0  }
0x1469   : > { %7081 = vmatprep.subr.bf16.mxu0 %v9591_v61  ;;  %7163 = vmatprep.subr.bf16.mxu1 %v9594_v17 }
0x146c   : > { %7082 = vmatpush1.bf16.msra.mxu0 %v9589_v49  ;;  %7164 = vmatpush1.bf16.msra.mxu1 %v9592_v62 }
0x146d   : > { %7083 = vmatprep.subr.bf16.mxu0 %v9597_v0  ;;  %7165 = vmatprep.subr.bf16.mxu1 %v9600_v32  ;;  %v9633_v0 = vld [vmem:[%s12473_s15] sm:$0xff] (!%p8320_p11)  }
0x1470   : > { %7084 = vmatpush1.bf16.msra.mxu0 %v9595_v33  ;;  %7166 = vmatpush1.bf16.msra.mxu1 %v9598_v6  ;;  %v9634_v6 = vld [vmem:[%s12473_s15 + $0x8] sm:$0xff] (!%p8320_p11)  }
0x1471   : > { %8366 = vmatprep.subr.bf16.mxu0 (!%p8320_p11), %v9601_v12  ;;  %8388 = vmatprep.subr.bf16.mxu1 (!%p8320_p11), %v9602_v31 }
0x1473   : > { %7086 = vmatmul.mubr.bf16.vlgmr.msra.gmra.mrb[4].mxu0 %v6242_v35  ;;  %7168 = vmatmul.mubr.bf16.vlgmr.msra.gmra.mrb[4].mxu1 %v6242_v35 }
0x1474   : > { %8367 = vmatpush3.bf16.msra.mxu0 (!%p8320_p11), %v9603_v58  ;;  %8389 = vmatpush3.bf16.msra.mxu1 (!%p8320_p11), %v9604_v63 }
0x1475   : > { %8368 = vmatprep.subr.bf16.mxu0 (!%p8320_p11), %v9605_v3  ;;  %8390 = vmatprep.subr.bf16.mxu1 (!%p8320_p11), %v9606_v37 }
0x1478   : > { %8369 = vmatpush3.bf16.msra.mxu0 (!%p8320_p11), %v9607_v7  ;;  %8391 = vmatpush3.bf16.msra.mxu1 (!%p8320_p11), %v9608_v59 }
0x1479   : > { %8370 = vmatprep.subr.bf16.mxu0 (!%p8320_p11), %v9609_v2  ;;  %8392 = vmatprep.subr.bf16.mxu1 (!%p8320_p11), %v9610_v41 }
0x147c   : > { %8371 = vmatpush3.bf16.msra.mxu0 (!%p8320_p11), %v9611_v11  ;;  %8393 = vmatpush3.bf16.msra.mxu1 (!%p8320_p11), %v9612_v47 }
0x147d   : > { %8372 = vmatprep.subr.bf16.mxu0 (!%p8320_p11), %v9613_v4  ;;  %8394 = vmatprep.subr.bf16.mxu1 (!%p8320_p11), %v9614_v45 }
0x1480   : > { %8373 = vmatpush3.bf16.msra.mxu0 (!%p8320_p11), %v9615_v15  ;;  %8395 = vmatpush3.bf16.msra.mxu1 (!%p8320_p11), %v9616_v14 }
0x1481   : > { %8374 = vmatprep.subr.bf16.mxu0 (!%p8320_p11), %v9617_v10  ;;  %8396 = vmatprep.subr.bf16.mxu1 (!%p8320_p11), %v9618_v29 }
0x1484   : > { %8375 = vmatpush3.bf16.msra.mxu0 (!%p8320_p11), %v9619_v13  ;;  %8397 = vmatpush3.bf16.msra.mxu1 (!%p8320_p11), %v9620_v46 }
0x1485   : > { %8376 = vmatprep.subr.bf16.mxu0 (!%p8320_p11), %v9621_v57  ;;  %8398 = vmatprep.subr.bf16.mxu1 (!%p8320_p11), %v9622_v43 }
0x1488   : > { %8377 = vmatpush3.bf16.msra.mxu0 (!%p8320_p11), %v9623_v56  ;;  %8399 = vmatpush3.bf16.msra.mxu1 (!%p8320_p11), %v9624_v54 }
0x1489   : > { %8378 = vmatprep.subr.bf16.mxu0 (!%p8320_p11), %v9625_v16  ;;  %8400 = vmatprep.subr.bf16.mxu1 (!%p8320_p11), %v9626_v18 }
0x148c   : > { %8379 = vmatpush3.bf16.msra.mxu0 (!%p8320_p11), %v9627_v20  ;;  %8401 = vmatpush3.bf16.msra.mxu1 (!%p8320_p11), %v9628_v21 }
0x148d   : > { %8380 = vmatprep.subr.bf16.mxu0 (!%p8320_p11), %v9629_v22  ;;  %8402 = vmatprep.subr.bf16.mxu1 (!%p8320_p11), %v9630_v24 }
0x1490   : > { %8381 = vmatpush3.bf16.msra.mxu0 (!%p8320_p11), %v9631_v25  ;;  %8403 = vmatpush3.bf16.msra.mxu1 (!%p8320_p11), %v9632_v26 }
0x1491   : > { %8415 = vmatprep.subr.bf16.mxu0 (!%p8320_p11), %v9694_v55 }
0x1546   : > { %v7087_v36 = vpop.f32.mrb[4].mxu0  ;;  %v7169_v28 = vpop.f32.mrb[4].mxu1 }
0x1547   : > { %v7089_v30 = vpop.f32.mrb[5].mxu0  ;;  %v7171_v19 = vpop.f32.mrb[5].mxu1 }
0x1548   : > { %v7180_v38 = vcombine.low %v7087_v36, %v7089_v30  ;;  %v7181_v5 = vcombine.low %v7169_v28, %v7171_v19  ;;  %v7091_v39 = vpop.f32.mrb[6].mxu0  ;;  %v7173_v51 = vpop.f32.mrb[6].mxu1  ;;  %v8321_v36 = vld [vmem:[%s12472_s14] ss:$0 sm:$0xff] (!%p8320_p11) }
0x1549   : > { %v7092_v53 = vpop.f32.mrb[7].mxu0  ;;  %v7174_v44 = vpop.f32.mrb[7].mxu1 }
0x154a   : > { %v7188_v1 = vrot.slane %v7180_v38, %v11913_v23  ;;  %v7195_v42 = vrot.slane %v7181_v5, %v11913_v23  ;;  %7203 = sbr.rel (%p8320_p11) target bundleno = 5911 (0x1717), region = 119 }
0x154c   : > { %v7196_v8 = vcombine.low %v7188_v1, %v7195_v42 }
0x154e   : > { %v7198_v40 = vadd.f32 %v7196_v8, %v6239_v50 }
0x1550   : > { %7199 = vst [vmem:[#allocation2] sm:$0xff] %v7198_v40  ;;  %v8354_v40 = vld [vmem:[%s12503_s0] ss:$0 sm:$0xff] (!%p8320_p11) }
0x1557   : > { %v7204_v27 = vld [vmem:[#allocation2] sm:$0xff] }
0x1558   : > { %v7205_v60 = vmax.f32 %v7204_v27, 0.0 }
0x155a   : > { %v7214_v9 = vrot.slane %v7205_v60, %v11913_v23  ;;  %v7207_v48 = vcombine.high %v7205_v60, %v7205_v60 }
0x155c   : > { %v7222_v61 = vcombine.high %v7214_v9, %v7214_v9  ;;  %v7221_v17 = vrot.slane %v7207_v48, %v11913_v23  ;;  %v7228_v49 = vpack.c.bf16 %v7214_v9, %v7214_v9  ;;  %v9635_v23 = vld [vmem:[%s12473_s15 + $0x10] sm:$0xff]  }
0x155e   : > { %v7229_v62 = vpack.c.bf16 %v7222_v61, %v7222_v61  ;;  %v7223_v52 = vcombine.high %v7221_v17, %v7221_v17  ;;  %v7230_v32 = vpack.c.bf16 %v7221_v17, %v7221_v17 }
0x1560   : > { %7527 = vmatprep.mubr.bf16.mxu0 %v7229_v62  ;;  %v7231_v33 = vpack.c.bf16 %v7223_v52, %v7223_v52 }
0x1561   : > { %7528 = vmatmul.mubr.bf16.vlgmr.msra.gmra.mrb[0].mxu0 %v7228_v49 }
0x1562   : > { %7567 = vmatprep.mubr.bf16.mxu1 %v7231_v33  ;;  %8416 = vmatpush3.bf16.msra.mxu0 %v9633_v0 }
0x1563   : > { %7568 = vmatmul.mubr.bf16.vlgmr.msra.gmra.mrb[0].mxu1 %v7230_v32  ;;  %8417 = vmatprep.subr.bf16.mxu0 %v9694_v55 }
0x1564   : > { %8423 = vmatprep.mubr.msk.bf16.mxu0 %vm9695_vm2, %v9694_v55 }
0x1566   : > { %8418 = vmatpush3.bf16.msra.mxu0 %v9634_v6 }
0x1567   : > { %8419 = vmatprep.subr.bf16.mxu0 %v9694_v55 }
0x156a   : > { %8420 = vmatpush3.bf16.msra.mxu0 %v9635_v23 }
0x156b   : > { %8421 = vmatprep.subr.bf16.mxu0 %v9694_v55 }
0x156e   : > { %8422 = vmatpush3.bf16.msra.mxu0 %v9636_v34 }
0x1634   : > { %v8382_v35 = vpop.f32.mrb[0].mxu0 }
0x1635   : > { %v8383_v28 = vpop.f32.mrb[1].mxu0 }
0x1636   : > { %v8404_v30 = vpop.f32.mrb[0].mxu1  ;;  %v8384_v19 = vadd.f32 %v8383_v28, %v8382_v35  ;;  %v8385_v38 = vpop.f32.mrb[2].mxu0 }
0x1637   : > { %v8405_v5 = vpop.f32.mrb[1].mxu1  ;;  %v8386_v39 = vpop.f32.mrb[3].mxu0 }
0x1638   : > { %v7530_v51 = vadd.f32 %v8384_v19, %v8321_v36  ;;  %v8406_v53 = vadd.f32 %v8405_v5, %v8404_v30  ;;  %v8407_v44 = vpop.f32.mrb[2].mxu1 }
0x1639   : > { %v8408_v1 = vpop.f32.mrb[3].mxu1 }
0x163a   : > { %v7570_v42 = vadd.f32 %v8406_v53, %v7530_v51 }
0x163c   : > { %v7575_v50 = vmax.f32 %v7570_v42, 0.0 }
0x163e   : > { %v7576_v8 = vpack.c.bf16 %v7575_v50, %v7575_v50 }
0x1640   : > { %8424 = vmatmul.mubr.msk.bf16.vlgmr.msra.gmra.mrb[4].mxu0 %vm7616_vm3, %v7576_v8 }
0x1713   : > { %v7654_v12 = vpop.f32.mrb[4].mxu0 }
0x1714   : > { %v7655_v31 = vadd.f32 %v8354_v40, %v7654_v12  ;;  %v8425_v58 = vpop.f32.mrb[5].mxu0 }
0x1715   : > { %v7657_v63 = vpop.f32.mrb[6].mxu0 }
0x1716   : > { %7661 = vst.msk [vmem:[#allocation5] sm:$0x3] %vm7660_vm4, %v7655_v31  ;;  %v8426_v3 = vpop.f32.mrb[7].mxu0 }
0x1717 PF: > { %p8467_p12 = scmp.eq.s32.totalorder %s9803_s27, 1  ;;  %s9696_s21 = smov [#allocation5]  }
0x1718   : > { %s7669_s25 = sshll.u32 %s9696_s21, 4  ;;  %s7670_s25 = int_to_ptr.vmem [resolvable:$true] %s7669_s25 }
0x1719   : > { %s9637_s30 = scalar_lea.vmem %s7670_s25, 32  ;;  %p9644_p2 = scmp.lt.s32.totalorder %s7670_s25, %s7670_s25 }
0x171a   : > { %p9638_p13 = scmp.ne.s32.totalorder %s7670_s25, %s9637_s30  ;;  %p9645_p3 = scmp.lt.s32.totalorder %s9637_s30, %s9637_s30 }
0x171c   : > { %p9639_p0 = pnand %p9638_p13, %p8467_p12  ;;  %p9646_p4 = por %p9645_p3, %p9644_p2 }
0x171e   : > { %p9640_p1 = pneg %p9639_p0 }
0x1720   : > { %p9647_p5 = pnand %p9646_p4, %p9640_p1 }
0x1722   : > { %9650 = shalt.err (!%p9647_p5)
}
0x1723   : > { %s12504_s26 = sld [smem:[#allocation17_spill]] }
0x1729   : > { %s12505_s22 = smov %s12504_s26  ;;  %s9651_s29 = scalar_lea.hbm %s12504_s26, 32 }
0x172a   : > { %p9652_p6 = scmp.ne.s32.totalorder %s12505_s22, %s9651_s29  ;;  %p9657_p9 = scmp.lt.u32.totalorder %s9651_s29, %s12505_s22 }
0x172c   : > { %p9653_p7 = pnand %p9652_p6, %p8467_p12 }
0x172e   : > { %p9654_p8 = pneg %p9653_p7 }
0x1730   : > { %p9659_p10 = pnand %p9657_p9, %p9654_p8 }
0x1732   : > { %9662 = shalt.err (!%p9659_p10)
}
0x1733   : > { %8464 = dma.vmem_to_hbm [thread:$0]  (%p8467_p12), %s7670_s25, 32, %s12505_s22, [#allocation6]  }
0x1734   : > { %9676 = dma.done.wait (%p8467_p12), [#allocation6], 32  }
0x1735   : > { %9678 = vsyncadd (%p8467_p12), [#allocation6], 4294967264 }
0x1736 PF: > { %s12506_s26 = sld [smem:[#allocation9_spill]]  ;;  %s12507_s24 = sld [smem:[#allocation8_spill]] }
0x1737   : > { %s12508_s25 = sld [smem:[#allocation10_spill]] }
0x173c   : > { %p25_p11 = scmp.ge.s32.totalorder %s12506_s26, 4  }
0x173e   :  { %27 = sbr.rel (!%p25_p11) target bundleno = 8 (0x8), region = 157 }
0x1745   :  { %7682 = vsyncpa [#allocation6], 1 }
0x1746   :  { %7684 = vsyncpa [#allocation6 + $0x1], 1 }

</bundles_post_ra>
